<compile_context>
chip_gen: v7x
topology: tpu7x:2x2x1
jax: 0.10.0
libtpu: 0.0.40
codegen_flags: <defaults>
</compile_context>

<pallas_src>
import jax
import jax.numpy as jnp
from jax import lax
from jax.experimental import pallas as pl
from jax.experimental.pallas import tpu as pltpu

HIDDEN = 16
IN_FEATS = 6
OUT_FEATS = 5
GP = 128                 # gate pitch: each gate's columns start on a vreg boundary
G3 = 3 * GP


def _sigmoid(v):
    # sigmoid(v) = 0.5 * (tanh(v/2) + 1): tanh runs on the EUP, no VALU divide.
    return 0.5 * jnp.tanh(0.5 * v) + 0.5


def gru_fc_kernel(x_ref,
                  wih0_ref, bih0_ref,          # (6, 3GP), (1, 3GP)
                  whh_ref, bhh_ref,            # (2GP, 6GP), (1, 6GP)  fused L0+L1 recurrent
                  wih1_ref, bih1_ref,          # (GP, 3GP), (1, 3GP)
                  wfc_ref, bfc_ref,            # (GP, 5), (1, 5)
                  out_ref,                     # (bb, 5)
                  gi0_ref):                    # VMEM scratch (T, bb, 3GP)
    T, bb, _ = x_ref.shape

    # ---- hoisted layer-0 input projection (no recurrent dependency) --------
    # K = 6 is tiny: broadcast-FMAs on the VPU beat MXU push/pop latency here,
    # and the whole thing runs once, off the per-step critical path.
    x = x_ref[...]                               # (T, bb, 6)
    wih0 = wih0_ref[...]                         # (6, 3GP)
    gi0 = x[:, :, 0:1] * wih0[0:1, :][None, :, :] + bih0_ref[...][None, :, :]
    for k in range(1, IN_FEATS):
        gi0 = gi0 + x[:, :, k:k + 1] * wih0[k:k + 1, :][None, :, :]
    gi0_ref[...] = gi0                           # (T, bb, 3GP)

    whh = whh_ref[...]
    bhh = bhh_ref[...]
    wih1 = wih1_ref[...]
    bih1 = bih1_ref[...]

    def step(t, carry):
        h0, h1 = carry                                        # (bb, GP) each
        # One fused MXU op for both layers' hidden projections (vreg-aligned concat).
        hcat = jnp.concatenate([h0, h1], axis=1)              # (bb, 2GP)
        gh = jnp.dot(hcat, whh, preferred_element_type=jnp.float32) + bhh   # (bb, 6GP)

        gi0_t = gi0_ref[t]                                    # (bb, 3GP)
        r0 = _sigmoid(gi0_t[:, 0:GP] + gh[:, 0:GP])
        z0 = _sigmoid(gi0_t[:, GP:2 * GP] + gh[:, GP:2 * GP])
        n0 = jnp.tanh(gi0_t[:, 2 * GP:3 * GP] + r0 * gh[:, 2 * GP:3 * GP])
        h0n = (1.0 - z0) * n0 + z0 * h0

        # TODO(synk): inter-layer dropout (p=0.3) is training-only; eval forward omits it.
        gi1 = jnp.dot(h0n, wih1, preferred_element_type=jnp.float32) + bih1  # (bb, 3GP)
        r1 = _sigmoid(gi1[:, 0:GP] + gh[:, 3 * GP:4 * GP])
        z1 = _sigmoid(gi1[:, GP:2 * GP] + gh[:, 4 * GP:5 * GP])
        n1 = jnp.tanh(gi1[:, 2 * GP:3 * GP] + r1 * gh[:, 5 * GP:6 * GP])
        h1n = (1.0 - z1) * n1 + z1 * h1
        return (h0n, h1n)

    h0 = jnp.zeros((bb, GP), jnp.float32)
    h1 = jnp.zeros((bb, GP), jnp.float32)
    h0, h1 = lax.fori_loop(0, T, step, (h0, h1),
                           unroll=True if T <= 32 else 8)

    # fc on the last timestep's top-layer hidden state (padded rows of wfc are zero)
    out_ref[...] = (jnp.dot(h1, wfc_ref[...], preferred_element_type=jnp.float32)
                    + bfc_ref[...])


# ----------------------------- wrapper-side weight prep ------------------------------

def _pad_gate_cols(w, hidden=HIDDEN):
    """(K, 3*hidden) -> (K, 3*GP): gate g's columns moved to [g*GP, g*GP+hidden)."""
    k = w.shape[0]
    out = jnp.zeros((k, G3), jnp.float32)
    for g in range(3):
        out = out.at[:, g * GP:g * GP + hidden].set(w[:, g * hidden:(g + 1) * hidden])
    return out


def prepare_kernel_weights(params, hidden=HIDDEN):
    """Pre-transpose + gate-pad all weights once (nothing is transposed in-kernel)."""
    wih0_p = _pad_gate_cols(params['wih0'].T, hidden)              # (6, 3GP)
    bih0_p = _pad_gate_cols(params['bih0'], hidden)                # (1, 3GP)

    # Block-diagonal fused recurrent weight: rows 0:H act on h0, rows GP:GP+H on h1.
    whh = jnp.zeros((2 * GP, 6 * GP), jnp.float32)
    whh = whh.at[0:hidden, 0:G3].set(_pad_gate_cols(params['whh0'].T, hidden))
    whh = whh.at[GP:GP + hidden, G3:2 * G3].set(_pad_gate_cols(params['whh1'].T, hidden))
    bhh = jnp.concatenate([_pad_gate_cols(params['bhh0'], hidden),
                           _pad_gate_cols(params['bhh1'], hidden)], axis=1)  # (1, 6GP)

    wih1_p = jnp.zeros((GP, G3), jnp.float32)
    wih1_p = wih1_p.at[0:hidden, :].set(_pad_gate_cols(params['wih1'].T, hidden))
    bih1_p = _pad_gate_cols(params['bih1'], hidden)

    wfc_p = jnp.zeros((GP, OUT_FEATS), jnp.float32)
    wfc_p = wfc_p.at[0:hidden, :].set(params['wfc'].T)
    return (wih0_p, bih0_p, whh, bhh, wih1_p, bih1_p, wfc_p, params['bfc'])


def _pick_batch_block(batch):
    """Batch tile (multiple of 8) so larger batches give >1 grid step for the
    parallel grid axis (both v7x TensorCores); tiny batches stay in one block."""
    if batch % 16 == 0:
        bb = min(batch // 2, 256)
        while batch % bb:
            bb //= 2
        return max(bb, 8)
    return batch


def sleep_rnn6_forward(x, params):
    """x: (B, T, 6) float32 -> (B, 5) float32 (eval-mode forward)."""
    B, T, F = x.shape
    assert F == IN_FEATS
    x_tm = jnp.transpose(x, (1, 0, 2)).astype(jnp.float32)     # time-major (T, B, 6)
    weights = prepare_kernel_weights(params)

    bb = _pick_batch_block(B)
    grid = (B // bb,)

    in_specs = [pl.BlockSpec((T, bb, IN_FEATS), lambda i: (0, i, 0))]
    in_specs += [pl.BlockSpec(w.shape, lambda i: (0, 0)) for w in weights]
    out_specs = pl.BlockSpec((bb, OUT_FEATS), lambda i: (i, 0))

    return pl.pallas_call(
        gru_fc_kernel,
        out_shape=jax.ShapeDtypeStruct((B, OUT_FEATS), jnp.float32),
        grid_spec=pltpu.PrefetchScalarGridSpec(
            num_scalar_prefetch=0,
            grid=grid,
            in_specs=in_specs,
            out_specs=out_specs,
            scratch_shapes=[pltpu.VMEM((T, bb, G3), jnp.float32)],
        ),
        compiler_params=pltpu.CompilerParams(
            dimension_semantics=("parallel",),
            vmem_limit_bytes=32 * 1024 * 1024,
        ),
    )(x_tm, *weights)


# ----------------------------- init + pure-JAX reference -----------------------------

def make_params(key, hidden=HIDDEN):
    """Deterministic init matching PyTorch shapes (uniform(-1/sqrt(H), 1/sqrt(H)))."""
    bound = 1.0 / float(jnp.sqrt(jnp.float32(hidden)))
    ks = jax.random.split(key, 10)

    def u(k, shape):
        return jax.random.uniform(k, shape, jnp.float32, -bound, bound)

    return dict(
        wih0=u(ks[0], (3 * hidden, IN_FEATS)),
        whh0=u(ks[1], (3 * hidden, hidden)),
        bih0=u(ks[2], (1, 3 * hidden)),
        bhh0=u(ks[3], (1, 3 * hidden)),
        wih1=u(ks[4], (3 * hidden, hidden)),
        whh1=u(ks[5], (3 * hidden, hidden)),
        bih1=u(ks[6], (1, 3 * hidden)),
        bhh1=u(ks[7], (1, 3 * hidden)),
        wfc=u(ks[8], (OUT_FEATS, hidden)),
        bfc=u(ks[9], (1, OUT_FEATS)),
    )


def sleep_rnn6_reference(x, params):
    """Pure-JAX reference of the PyTorch forward (eval mode)."""
    H = HIDDEN

    def cell(x_t, h, wih, whh, bih, bhh):
        gi = x_t @ wih.T + bih
        gh = h @ whh.T + bhh
        r = jax.nn.sigmoid(gi[:, :H] + gh[:, :H])
        z = jax.nn.sigmoid(gi[:, H:2 * H] + gh[:, H:2 * H])
        n = jnp.tanh(gi[:, 2 * H:] + r * gh[:, 2 * H:])
        return (1.0 - z) * n + z * h

    B, T, _ = x.shape
    h0 = jnp.zeros((B, H), jnp.float32)
    h1 = jnp.zeros((B, H), jnp.float32)
    for t in range(T):
        h0 = cell(x[:, t, :], h0, params['wih0'], params['whh0'],
                  params['bih0'], params['bhh0'])
        h1 = cell(h0, h1, params['wih1'], params['whh1'],
                  params['bih1'], params['bhh1'])
    return h1 @ params['wfc'].T + params['bfc']


if __name__ == "__main__":
    key = jax.random.PRNGKey(0)
    k_x, k_p = jax.random.split(key)

    B, T = 2, 8
    x = jax.random.normal(k_x, (B, T, IN_FEATS), jnp.float32)
    params = make_params(k_p)

    out = jax.block_until_ready(sleep_rnn6_forward(x, params))
    ref = sleep_rnn6_reference(x, params)

    assert out.shape == (B, OUT_FEATS)
    assert jnp.allclose(out, ref, atol=1e-4, rtol=1e-4), "mismatch vs JAX reference"

    print("KERNEL_OK")
</pallas_src>

<mosaic_0001>
module attributes {stable_mosaic.version = 11 : i64} {
  func.func @gru_fc_kernel(%arg0: i32, %arg1: memref<8x2x6xf32, #tpu.memory_space<vmem>>, %arg2: memref<6x384xf32, #tpu.memory_space<vmem>>, %arg3: memref<1x384xf32, #tpu.memory_space<vmem>>, %arg4: memref<256x768xf32, #tpu.memory_space<vmem>>, %arg5: memref<1x768xf32, #tpu.memory_space<vmem>>, %arg6: memref<128x384xf32, #tpu.memory_space<vmem>>, %arg7: memref<1x384xf32, #tpu.memory_space<vmem>>, %arg8: memref<128x5xf32, #tpu.memory_space<vmem>>, %arg9: memref<1x5xf32, #tpu.memory_space<vmem>>, %arg10: memref<2x5xf32, #tpu.memory_space<vmem>>, %arg11: memref<8x2x384xf32, #tpu.memory_space<vmem>>) attributes {dimension_semantics = [#tpu.dimension_semantics<parallel>], iteration_bounds = array<i64: 1>, scalar_prefetch = 0 : i64, scratch_operands = 1 : i64, tpu.core_type = #tpu.core_type<tc>, window_params = [{transform_indices = @transform_0, window_bounds = array<i64: 8, 2, 6>}, {pipeline_mode = #tpu.pipeline_mode<synchronous>, transform_indices = @transform_1, window_bounds = array<i64: 6, 384>}, {pipeline_mode = #tpu.pipeline_mode<synchronous>, transform_indices = @transform_2, window_bounds = array<i64: 1, 384>}, {pipeline_mode = #tpu.pipeline_mode<synchronous>, transform_indices = @transform_3, window_bounds = array<i64: 256, 768>}, {pipeline_mode = #tpu.pipeline_mode<synchronous>, transform_indices = @transform_4, window_bounds = array<i64: 1, 768>}, {pipeline_mode = #tpu.pipeline_mode<synchronous>, transform_indices = @transform_5, window_bounds = array<i64: 128, 384>}, {pipeline_mode = #tpu.pipeline_mode<synchronous>, transform_indices = @transform_6, window_bounds = array<i64: 1, 384>}, {pipeline_mode = #tpu.pipeline_mode<synchronous>, transform_indices = @transform_7, window_bounds = array<i64: 128, 5>}, {pipeline_mode = #tpu.pipeline_mode<synchronous>, transform_indices = @transform_8, window_bounds = array<i64: 1, 5>}, {transform_indices = @transform_9, window_bounds = array<i64: 2, 5>}]} {
    %c0 = arith.constant 0 : index
    %c0_0 = arith.constant 0 : index
    %c0_1 = arith.constant 0 : index
    %0 = vector.load %arg1[%c0, %c0_0, %c0_1] : memref<8x2x6xf32, #tpu.memory_space<vmem>>, vector<8x2x6xf32>
    %c0_2 = arith.constant 0 : index
    %c0_3 = arith.constant 0 : index
    %1 = vector.load %arg2[%c0_2, %c0_3] : memref<6x384xf32, #tpu.memory_space<vmem>>, vector<6x384xf32>
    %2 = vector.extract_strided_slice %0 {offsets = [0, 0, 0], sizes = [8, 2, 1], strides = [1, 1, 1]} : vector<8x2x6xf32> to vector<8x2x1xf32>
    %3 = vector.extract_strided_slice %1 {offsets = [0, 0], sizes = [1, 384], strides = [1, 1]} : vector<6x384xf32> to vector<1x384xf32>
    %4 = vector.shape_cast %3 : vector<1x384xf32> to vector<1x1x384xf32>
    %5 = vector.broadcast %2 : vector<8x2x1xf32> to vector<8x2x384xf32>
    %6 = vector.broadcast %4 : vector<1x1x384xf32> to vector<8x2x384xf32>
    %7 = arith.mulf %5, %6 : vector<8x2x384xf32>
    %c0_4 = arith.constant 0 : index
    %c0_5 = arith.constant 0 : index
    %8 = vector.load %arg3[%c0_4, %c0_5] : memref<1x384xf32, #tpu.memory_space<vmem>>, vector<1x384xf32>
    %9 = vector.shape_cast %8 : vector<1x384xf32> to vector<1x1x384xf32>
    %10 = vector.broadcast %9 : vector<1x1x384xf32> to vector<8x2x384xf32>
    %11 = arith.addf %7, %10 : vector<8x2x384xf32>
    %12 = vector.extract_strided_slice %0 {offsets = [0, 0, 1], sizes = [8, 2, 1], strides = [1, 1, 1]} : vector<8x2x6xf32> to vector<8x2x1xf32>
    %13 = vector.extract_strided_slice %1 {offsets = [1, 0], sizes = [1, 384], strides = [1, 1]} : vector<6x384xf32> to vector<1x384xf32>
    %14 = vector.shape_cast %13 : vector<1x384xf32> to vector<1x1x384xf32>
    %15 = vector.broadcast %12 : vector<8x2x1xf32> to vector<8x2x384xf32>
    %16 = vector.broadcast %14 : vector<1x1x384xf32> to vector<8x2x384xf32>
    %17 = arith.mulf %15, %16 : vector<8x2x384xf32>
    %18 = arith.addf %11, %17 : vector<8x2x384xf32>
    %19 = vector.extract_strided_slice %0 {offsets = [0, 0, 2], sizes = [8, 2, 1], strides = [1, 1, 1]} : vector<8x2x6xf32> to vector<8x2x1xf32>
    %20 = vector.extract_strided_slice %1 {offsets = [2, 0], sizes = [1, 384], strides = [1, 1]} : vector<6x384xf32> to vector<1x384xf32>
    %21 = vector.shape_cast %20 : vector<1x384xf32> to vector<1x1x384xf32>
    %22 = vector.broadcast %19 : vector<8x2x1xf32> to vector<8x2x384xf32>
    %23 = vector.broadcast %21 : vector<1x1x384xf32> to vector<8x2x384xf32>
    %24 = arith.mulf %22, %23 : vector<8x2x384xf32>
    %25 = arith.addf %18, %24 : vector<8x2x384xf32>
    %26 = vector.extract_strided_slice %0 {offsets = [0, 0, 3], sizes = [8, 2, 1], strides = [1, 1, 1]} : vector<8x2x6xf32> to vector<8x2x1xf32>
    %27 = vector.extract_strided_slice %1 {offsets = [3, 0], sizes = [1, 384], strides = [1, 1]} : vector<6x384xf32> to vector<1x384xf32>
    %28 = vector.shape_cast %27 : vector<1x384xf32> to vector<1x1x384xf32>
    %29 = vector.broadcast %26 : vector<8x2x1xf32> to vector<8x2x384xf32>
    %30 = vector.broadcast %28 : vector<1x1x384xf32> to vector<8x2x384xf32>
    %31 = arith.mulf %29, %30 : vector<8x2x384xf32>
    %32 = arith.addf %25, %31 : vector<8x2x384xf32>
    %33 = vector.extract_strided_slice %0 {offsets = [0, 0, 4], sizes = [8, 2, 1], strides = [1, 1, 1]} : vector<8x2x6xf32> to vector<8x2x1xf32>
    %34 = vector.extract_strided_slice %1 {offsets = [4, 0], sizes = [1, 384], strides = [1, 1]} : vector<6x384xf32> to vector<1x384xf32>
    %35 = vector.shape_cast %34 : vector<1x384xf32> to vector<1x1x384xf32>
    %36 = vector.broadcast %33 : vector<8x2x1xf32> to vector<8x2x384xf32>
    %37 = vector.broadcast %35 : vector<1x1x384xf32> to vector<8x2x384xf32>
    %38 = arith.mulf %36, %37 : vector<8x2x384xf32>
    %39 = arith.addf %32, %38 : vector<8x2x384xf32>
    %40 = vector.extract_strided_slice %0 {offsets = [0, 0, 5], sizes = [8, 2, 1], strides = [1, 1, 1]} : vector<8x2x6xf32> to vector<8x2x1xf32>
    %41 = vector.extract_strided_slice %1 {offsets = [5, 0], sizes = [1, 384], strides = [1, 1]} : vector<6x384xf32> to vector<1x384xf32>
    %42 = vector.shape_cast %41 : vector<1x384xf32> to vector<1x1x384xf32>
    %43 = vector.broadcast %40 : vector<8x2x1xf32> to vector<8x2x384xf32>
    %44 = vector.broadcast %42 : vector<1x1x384xf32> to vector<8x2x384xf32>
    %45 = arith.mulf %43, %44 : vector<8x2x384xf32>
    %46 = arith.addf %39, %45 : vector<8x2x384xf32>
    %c0_6 = arith.constant 0 : index
    %c0_7 = arith.constant 0 : index
    %c0_8 = arith.constant 0 : index
    %47 = vector.load %arg11[%c0_6, %c0_7, %c0_8] : memref<8x2x384xf32, #tpu.memory_space<vmem>>, vector<8x2x384xf32>
    tpu.vector_store %arg11[%c0_6, %c0_7, %c0_8], %46 {strides = array<i32>} : memref<8x2x384xf32, #tpu.memory_space<vmem>>, vector<8x2x384xf32>,
    %c0_9 = arith.constant 0 : index
    %c0_10 = arith.constant 0 : index
    %48 = vector.load %arg4[%c0_9, %c0_10] : memref<256x768xf32, #tpu.memory_space<vmem>>, vector<256x768xf32>
    %c0_11 = arith.constant 0 : index
    %c0_12 = arith.constant 0 : index
    %49 = vector.load %arg5[%c0_11, %c0_12] : memref<1x768xf32, #tpu.memory_space<vmem>>, vector<1x768xf32>
    %c0_13 = arith.constant 0 : index
    %c0_14 = arith.constant 0 : index
    %50 = vector.load %arg6[%c0_13, %c0_14] : memref<128x384xf32, #tpu.memory_space<vmem>>, vector<128x384xf32>
    %c0_15 = arith.constant 0 : index
    %c0_16 = arith.constant 0 : index
    %51 = vector.load %arg7[%c0_15, %c0_16] : memref<1x384xf32, #tpu.memory_space<vmem>>, vector<1x384xf32>
    %cst = arith.constant 0.000000e+00 : f32
    %52 = vector.broadcast %cst : f32 to vector<2x128xf32>
    %cst_17 = arith.constant 0.000000e+00 : f32
    %53 = vector.broadcast %cst_17 : f32 to vector<2x128xf32>
    %c0_i32 = arith.constant 0 : i32
    %54 = tpu.concatenate %52, %53 in 1 : vector<2x128xf32>, vector<2x128xf32> -> vector<2x256xf32>
    %cst_18 = arith.constant dense<0.000000e+00> : vector<2x768xf32>
    %55 = tpu.matmul %54, %48, %cst_18 {dimension_numbers = #tpu.dot_dimension_numbers<[1], [0], [0], [1], [0, 0, 1, 1], [], []>} : vector<2x256xf32>, vector<256x768xf32>, vector<2x768xf32> -> vector<2x768xf32>
    %56 = vector.broadcast %49 : vector<1x768xf32> to vector<2x768xf32>
    %57 = arith.addf %55, %56 : vector<2x768xf32>
    %58 = arith.index_cast %c0_i32 : i32 to index
    %c0_19 = arith.constant 0 : index
    %c0_20 = arith.constant 0 : index
    %59 = vector.load %arg11[%58, %c0_19, %c0_20] : memref<8x2x384xf32, #tpu.memory_space<vmem>>, vector<1x2x384xf32>
    %60 = vector.shape_cast %59 : vector<1x2x384xf32> to vector<2x384xf32>
    %61 = vector.extract_strided_slice %60 {offsets = [0, 0], sizes = [2, 128], strides = [1, 1]} : vector<2x384xf32> to vector<2x128xf32>
    %62 = vector.extract_strided_slice %57 {offsets = [0, 0], sizes = [2, 128], strides = [1, 1]} : vector<2x768xf32> to vector<2x128xf32>
    %63 = arith.addf %61, %62 : vector<2x128xf32>
    %cst_21 = arith.constant 5.000000e-01 : f32
    %64 = vector.broadcast %cst_21 : f32 to vector<2x128xf32>
    %65 = arith.mulf %64, %63 : vector<2x128xf32>
    %66 = math.tanh %65 : vector<2x128xf32>
    %cst_22 = arith.constant 5.000000e-01 : f32
    %67 = vector.broadcast %cst_22 : f32 to vector<2x128xf32>
    %68 = arith.mulf %67, %66 : vector<2x128xf32>
    %cst_23 = arith.constant 5.000000e-01 : f32
    %69 = vector.broadcast %cst_23 : f32 to vector<2x128xf32>
    %70 = arith.addf %68, %69 : vector<2x128xf32>
    %71 = vector.extract_strided_slice %60 {offsets = [0, 128], sizes = [2, 128], strides = [1, 1]} : vector<2x384xf32> to vector<2x128xf32>
    %72 = vector.extract_strided_slice %57 {offsets = [0, 128], sizes = [2, 128], strides = [1, 1]} : vector<2x768xf32> to vector<2x128xf32>
    %73 = arith.addf %71, %72 : vector<2x128xf32>
    %cst_24 = arith.constant 5.000000e-01 : f32
    %74 = vector.broadcast %cst_24 : f32 to vector<2x128xf32>
    %75 = arith.mulf %74, %73 : vector<2x128xf32>
    %76 = math.tanh %75 : vector<2x128xf32>
    %cst_25 = arith.constant 5.000000e-01 : f32
    %77 = vector.broadcast %cst_25 : f32 to vector<2x128xf32>
    %78 = arith.mulf %77, %76 : vector<2x128xf32>
    %cst_26 = arith.constant 5.000000e-01 : f32
    %79 = vector.broadcast %cst_26 : f32 to vector<2x128xf32>
    %80 = arith.addf %78, %79 : vector<2x128xf32>
    %81 = vector.extract_strided_slice %60 {offsets = [0, 256], sizes = [2, 128], strides = [1, 1]} : vector<2x384xf32> to vector<2x128xf32>
    %82 = vector.extract_strided_slice %57 {offsets = [0, 256], sizes = [2, 128], strides = [1, 1]} : vector<2x768xf32> to vector<2x128xf32>
    %83 = arith.mulf %70, %82 : vector<2x128xf32>
    %84 = arith.addf %81, %83 : vector<2x128xf32>
    %85 = math.tanh %84 : vector<2x128xf32>
    %cst_27 = arith.constant 1.000000e+00 : f32
    %86 = vector.broadcast %cst_27 : f32 to vector<2x128xf32>
    %87 = arith.subf %86, %80 : vector<2x128xf32>
    %88 = arith.mulf %87, %85 : vector<2x128xf32>
    %89 = arith.mulf %80, %52 : vector<2x128xf32>
    %90 = arith.addf %88, %89 : vector<2x128xf32>
    %cst_28 = arith.constant dense<0.000000e+00> : vector<2x384xf32>
    %91 = tpu.matmul %90, %50, %cst_28 {dimension_numbers = #tpu.dot_dimension_numbers<[1], [0], [0], [1], [0, 0, 1, 1], [], []>} : vector<2x128xf32>, vector<128x384xf32>, vector<2x384xf32> -> vector<2x384xf32>
    %92 = vector.broadcast %51 : vector<1x384xf32> to vector<2x384xf32>
    %93 = arith.addf %91, %92 : vector<2x384xf32>
    %94 = vector.extract_strided_slice %93 {offsets = [0, 0], sizes = [2, 128], strides = [1, 1]} : vector<2x384xf32> to vector<2x128xf32>
    %95 = vector.extract_strided_slice %57 {offsets = [0, 384], sizes = [2, 128], strides = [1, 1]} : vector<2x768xf32> to vector<2x128xf32>
    %96 = arith.addf %94, %95 : vector<2x128xf32>
    %cst_29 = arith.constant 5.000000e-01 : f32
    %97 = vector.broadcast %cst_29 : f32 to vector<2x128xf32>
    %98 = arith.mulf %97, %96 : vector<2x128xf32>
    %99 = math.tanh %98 : vector<2x128xf32>
    %cst_30 = arith.constant 5.000000e-01 : f32
    %100 = vector.broadcast %cst_30 : f32 to vector<2x128xf32>
    %101 = arith.mulf %100, %99 : vector<2x128xf32>
    %cst_31 = arith.constant 5.000000e-01 : f32
    %102 = vector.broadcast %cst_31 : f32 to vector<2x128xf32>
    %103 = arith.addf %101, %102 : vector<2x128xf32>
    %104 = vector.extract_strided_slice %93 {offsets = [0, 128], sizes = [2, 128], strides = [1, 1]} : vector<2x384xf32> to vector<2x128xf32>
    %105 = vector.extract_strided_slice %57 {offsets = [0, 512], sizes = [2, 128], strides = [1, 1]} : vector<2x768xf32> to vector<2x128xf32>
    %106 = arith.addf %104, %105 : vector<2x128xf32>
    %cst_32 = arith.constant 5.000000e-01 : f32
    %107 = vector.broadcast %cst_32 : f32 to vector<2x128xf32>
    %108 = arith.mulf %107, %106 : vector<2x128xf32>
    %109 = math.tanh %108 : vector<2x128xf32>
    %cst_33 = arith.constant 5.000000e-01 : f32
    %110 = vector.broadcast %cst_33 : f32 to vector<2x128xf32>
    %111 = arith.mulf %110, %109 : vector<2x128xf32>
    %cst_34 = arith.constant 5.000000e-01 : f32
    %112 = vector.broadcast %cst_34 : f32 to vector<2x128xf32>
    %113 = arith.addf %111, %112 : vector<2x128xf32>
    %114 = vector.extract_strided_slice %93 {offsets = [0, 256], sizes = [2, 128], strides = [1, 1]} : vector<2x384xf32> to vector<2x128xf32>
    %115 = vector.extract_strided_slice %57 {offsets = [0, 640], sizes = [2, 128], strides = [1, 1]} : vector<2x768xf32> to vector<2x128xf32>
    %116 = arith.mulf %103, %115 : vector<2x128xf32>
    %117 = arith.addf %114, %116 : vector<2x128xf32>
    %118 = math.tanh %117 : vector<2x128xf32>
    %cst_35 = arith.constant 1.000000e+00 : f32
    %119 = vector.broadcast %cst_35 : f32 to vector<2x128xf32>
    %120 = arith.subf %119, %113 : vector<2x128xf32>
    %121 = arith.mulf %120, %118 : vector<2x128xf32>
    %122 = arith.mulf %113, %53 : vector<2x128xf32>
    %123 = arith.addf %121, %122 : vector<2x128xf32>
    %c1_i32 = arith.constant 1 : i32
    %124 = tpu.concatenate %90, %123 in 1 : vector<2x128xf32>, vector<2x128xf32> -> vector<2x256xf32>
    %cst_36 = arith.constant dense<0.000000e+00> : vector<2x768xf32>
    %125 = tpu.matmul %124, %48, %cst_36 {dimension_numbers = #tpu.dot_dimension_numbers<[1], [0], [0], [1], [0, 0, 1, 1], [], []>} : vector<2x256xf32>, vector<256x768xf32>, vector<2x768xf32> -> vector<2x768xf32>
    %126 = vector.broadcast %49 : vector<1x768xf32> to vector<2x768xf32>
    %127 = arith.addf %125, %126 : vector<2x768xf32>
    %128 = arith.index_cast %c1_i32 : i32 to index
    %c0_37 = arith.constant 0 : index
    %c0_38 = arith.constant 0 : index
    %129 = vector.load %arg11[%128, %c0_37, %c0_38] : memref<8x2x384xf32, #tpu.memory_space<vmem>>, vector<1x2x384xf32>
    %130 = vector.shape_cast %129 : vector<1x2x384xf32> to vector<2x384xf32>
    %131 = vector.extract_strided_slice %130 {offsets = [0, 0], sizes = [2, 128], strides = [1, 1]} : vector<2x384xf32> to vector<2x128xf32>
    %132 = vector.extract_strided_slice %127 {offsets = [0, 0], sizes = [2, 128], strides = [1, 1]} : vector<2x768xf32> to vector<2x128xf32>
    %133 = arith.addf %131, %132 : vector<2x128xf32>
    %cst_39 = arith.constant 5.000000e-01 : f32
    %134 = vector.broadcast %cst_39 : f32 to vector<2x128xf32>
    %135 = arith.mulf %134, %133 : vector<2x128xf32>
    %136 = math.tanh %135 : vector<2x128xf32>
    %cst_40 = arith.constant 5.000000e-01 : f32
    %137 = vector.broadcast %cst_40 : f32 to vector<2x128xf32>
    %138 = arith.mulf %137, %136 : vector<2x128xf32>
    %cst_41 = arith.constant 5.000000e-01 : f32
    %139 = vector.broadcast %cst_41 : f32 to vector<2x128xf32>
    %140 = arith.addf %138, %139 : vector<2x128xf32>
    %141 = vector.extract_strided_slice %130 {offsets = [0, 128], sizes = [2, 128], strides = [1, 1]} : vector<2x384xf32> to vector<2x128xf32>
    %142 = vector.extract_strided_slice %127 {offsets = [0, 128], sizes = [2, 128], strides = [1, 1]} : vector<2x768xf32> to vector<2x128xf32>
    %143 = arith.addf %141, %142 : vector<2x128xf32>
    %cst_42 = arith.constant 5.000000e-01 : f32
    %144 = vector.broadcast %cst_42 : f32 to vector<2x128xf32>
    %145 = arith.mulf %144, %143 : vector<2x128xf32>
    %146 = math.tanh %145 : vector<2x128xf32>
    %cst_43 = arith.constant 5.000000e-01 : f32
    %147 = vector.broadcast %cst_43 : f32 to vector<2x128xf32>
    %148 = arith.mulf %147, %146 : vector<2x128xf32>
    %cst_44 = arith.constant 5.000000e-01 : f32
    %149 = vector.broadcast %cst_44 : f32 to vector<2x128xf32>
    %150 = arith.addf %148, %149 : vector<2x128xf32>
    %151 = vector.extract_strided_slice %130 {offsets = [0, 256], sizes = [2, 128], strides = [1, 1]} : vector<2x384xf32> to vector<2x128xf32>
    %152 = vector.extract_strided_slice %127 {offsets = [0, 256], sizes = [2, 128], strides = [1, 1]} : vector<2x768xf32> to vector<2x128xf32>
    %153 = arith.mulf %140, %152 : vector<2x128xf32>
    %154 = arith.addf %151, %153 : vector<2x128xf32>
    %155 = math.tanh %154 : vector<2x128xf32>
    %cst_45 = arith.constant 1.000000e+00 : f32
    %156 = vector.broadcast %cst_45 : f32 to vector<2x128xf32>
    %157 = arith.subf %156, %150 : vector<2x128xf32>
    %158 = arith.mulf %157, %155 : vector<2x128xf32>
    %159 = arith.mulf %150, %90 : vector<2x128xf32>
    %160 = arith.addf %158, %159 : vector<2x128xf32>
    %cst_46 = arith.constant dense<0.000000e+00> : vector<2x384xf32>
    %161 = tpu.matmul %160, %50, %cst_46 {dimension_numbers = #tpu.dot_dimension_numbers<[1], [0], [0], [1], [0, 0, 1, 1], [], []>} : vector<2x128xf32>, vector<128x384xf32>, vector<2x384xf32> -> vector<2x384xf32>
    %162 = vector.broadcast %51 : vector<1x384xf32> to vector<2x384xf32>
    %163 = arith.addf %161, %162 : vector<2x384xf32>
    %164 = vector.extract_strided_slice %163 {offsets = [0, 0], sizes = [2, 128], strides = [1, 1]} : vector<2x384xf32> to vector<2x128xf32>
    %165 = vector.extract_strided_slice %127 {offsets = [0, 384], sizes = [2, 128], strides = [1, 1]} : vector<2x768xf32> to vector<2x128xf32>
    %166 = arith.addf %164, %165 : vector<2x128xf32>
    %cst_47 = arith.constant 5.000000e-01 : f32
    %167 = vector.broadcast %cst_47 : f32 to vector<2x128xf32>
    %168 = arith.mulf %167, %166 : vector<2x128xf32>
    %169 = math.tanh %168 : vector<2x128xf32>
    %cst_48 = arith.constant 5.000000e-01 : f32
    %170 = vector.broadcast %cst_48 : f32 to vector<2x128xf32>
    %171 = arith.mulf %170, %169 : vector<2x128xf32>
    %cst_49 = arith.constant 5.000000e-01 : f32
    %172 = vector.broadcast %cst_49 : f32 to vector<2x128xf32>
    %173 = arith.addf %171, %172 : vector<2x128xf32>
    %174 = vector.extract_strided_slice %163 {offsets = [0, 128], sizes = [2, 128], strides = [1, 1]} : vector<2x384xf32> to vector<2x128xf32>
    %175 = vector.extract_strided_slice %127 {offsets = [0, 512], sizes = [2, 128], strides = [1, 1]} : vector<2x768xf32> to vector<2x128xf32>
    %176 = arith.addf %174, %175 : vector<2x128xf32>
    %cst_50 = arith.constant 5.000000e-01 : f32
    %177 = vector.broadcast %cst_50 : f32 to vector<2x128xf32>
    %178 = arith.mulf %177, %176 : vector<2x128xf32>
    %179 = math.tanh %178 : vector<2x128xf32>
    %cst_51 = arith.constant 5.000000e-01 : f32
    %180 = vector.broadcast %cst_51 : f32 to vector<2x128xf32>
    %181 = arith.mulf %180, %179 : vector<2x128xf32>
    %cst_52 = arith.constant 5.000000e-01 : f32
    %182 = vector.broadcast %cst_52 : f32 to vector<2x128xf32>
    %183 = arith.addf %181, %182 : vector<2x128xf32>
    %184 = vector.extract_strided_slice %163 {offsets = [0, 256], sizes = [2, 128], strides = [1, 1]} : vector<2x384xf32> to vector<2x128xf32>
    %185 = vector.extract_strided_slice %127 {offsets = [0, 640], sizes = [2, 128], strides = [1, 1]} : vector<2x768xf32> to vector<2x128xf32>
    %186 = arith.mulf %173, %185 : vector<2x128xf32>
    %187 = arith.addf %184, %186 : vector<2x128xf32>
    %188 = math.tanh %187 : vector<2x128xf32>
    %cst_53 = arith.constant 1.000000e+00 : f32
    %189 = vector.broadcast %cst_53 : f32 to vector<2x128xf32>
    %190 = arith.subf %189, %183 : vector<2x128xf32>
    %191 = arith.mulf %190, %188 : vector<2x128xf32>
    %192 = arith.mulf %183, %123 : vector<2x128xf32>
    %193 = arith.addf %191, %192 : vector<2x128xf32>
    %c2_i32 = arith.constant 2 : i32
    %194 = tpu.concatenate %160, %193 in 1 : vector<2x128xf32>, vector<2x128xf32> -> vector<2x256xf32>
    %cst_54 = arith.constant dense<0.000000e+00> : vector<2x768xf32>
    %195 = tpu.matmul %194, %48, %cst_54 {dimension_numbers = #tpu.dot_dimension_numbers<[1], [0], [0], [1], [0, 0, 1, 1], [], []>} : vector<2x256xf32>, vector<256x768xf32>, vector<2x768xf32> -> vector<2x768xf32>
    %196 = vector.broadcast %49 : vector<1x768xf32> to vector<2x768xf32>
    %197 = arith.addf %195, %196 : vector<2x768xf32>
    %198 = arith.index_cast %c2_i32 : i32 to index
    %c0_55 = arith.constant 0 : index
    %c0_56 = arith.constant 0 : index
    %199 = vector.load %arg11[%198, %c0_55, %c0_56] : memref<8x2x384xf32, #tpu.memory_space<vmem>>, vector<1x2x384xf32>
    %200 = vector.shape_cast %199 : vector<1x2x384xf32> to vector<2x384xf32>
    %201 = vector.extract_strided_slice %200 {offsets = [0, 0], sizes = [2, 128], strides = [1, 1]} : vector<2x384xf32> to vector<2x128xf32>
    %202 = vector.extract_strided_slice %197 {offsets = [0, 0], sizes = [2, 128], strides = [1, 1]} : vector<2x768xf32> to vector<2x128xf32>
    %203 = arith.addf %201, %202 : vector<2x128xf32>
    %cst_57 = arith.constant 5.000000e-01 : f32
    %204 = vector.broadcast %cst_57 : f32 to vector<2x128xf32>
    %205 = arith.mulf %204, %203 : vector<2x128xf32>
    %206 = math.tanh %205 : vector<2x128xf32>
    %cst_58 = arith.constant 5.000000e-01 : f32
    %207 = vector.broadcast %cst_58 : f32 to vector<2x128xf32>
    %208 = arith.mulf %207, %206 : vector<2x128xf32>
    %cst_59 = arith.constant 5.000000e-01 : f32
    %209 = vector.broadcast %cst_59 : f32 to vector<2x128xf32>
    %210 = arith.addf %208, %209 : vector<2x128xf32>
    %211 = vector.extract_strided_slice %200 {offsets = [0, 128], sizes = [2, 128], strides = [1, 1]} : vector<2x384xf32> to vector<2x128xf32>
    %212 = vector.extract_strided_slice %197 {offsets = [0, 128], sizes = [2, 128], strides = [1, 1]} : vector<2x768xf32> to vector<2x128xf32>
    %213 = arith.addf %211, %212 : vector<2x128xf32>
    %cst_60 = arith.constant 5.000000e-01 : f32
    %214 = vector.broadcast %cst_60 : f32 to vector<2x128xf32>
    %215 = arith.mulf %214, %213 : vector<2x128xf32>
    %216 = math.tanh %215 : vector<2x128xf32>
    %cst_61 = arith.constant 5.000000e-01 : f32
    %217 = vector.broadcast %cst_61 : f32 to vector<2x128xf32>
    %218 = arith.mulf %217, %216 : vector<2x128xf32>
    %cst_62 = arith.constant 5.000000e-01 : f32
    %219 = vector.broadcast %cst_62 : f32 to vector<2x128xf32>
    %220 = arith.addf %218, %219 : vector<2x128xf32>
    %221 = vector.extract_strided_slice %200 {offsets = [0, 256], sizes = [2, 128], strides = [1, 1]} : vector<2x384xf32> to vector<2x128xf32>
    %222 = vector.extract_strided_slice %197 {offsets = [0, 256], sizes = [2, 128], strides = [1, 1]} : vector<2x768xf32> to vector<2x128xf32>
    %223 = arith.mulf %210, %222 : vector<2x128xf32>
    %224 = arith.addf %221, %223 : vector<2x128xf32>
    %225 = math.tanh %224 : vector<2x128xf32>
    %cst_63 = arith.constant 1.000000e+00 : f32
    %226 = vector.broadcast %cst_63 : f32 to vector<2x128xf32>
    %227 = arith.subf %226, %220 : vector<2x128xf32>
    %228 = arith.mulf %227, %225 : vector<2x128xf32>
    %229 = arith.mulf %220, %160 : vector<2x128xf32>
    %230 = arith.addf %228, %229 : vector<2x128xf32>
    %cst_64 = arith.constant dense<0.000000e+00> : vector<2x384xf32>
    %231 = tpu.matmul %230, %50, %cst_64 {dimension_numbers = #tpu.dot_dimension_numbers<[1], [0], [0], [1], [0, 0, 1, 1], [], []>} : vector<2x128xf32>, vector<128x384xf32>, vector<2x384xf32> -> vector<2x384xf32>
    %232 = vector.broadcast %51 : vector<1x384xf32> to vector<2x384xf32>
    %233 = arith.addf %231, %232 : vector<2x384xf32>
    %234 = vector.extract_strided_slice %233 {offsets = [0, 0], sizes = [2, 128], strides = [1, 1]} : vector<2x384xf32> to vector<2x128xf32>
    %235 = vector.extract_strided_slice %197 {offsets = [0, 384], sizes = [2, 128], strides = [1, 1]} : vector<2x768xf32> to vector<2x128xf32>
    %236 = arith.addf %234, %235 : vector<2x128xf32>
    %cst_65 = arith.constant 5.000000e-01 : f32
    %237 = vector.broadcast %cst_65 : f32 to vector<2x128xf32>
    %238 = arith.mulf %237, %236 : vector<2x128xf32>
    %239 = math.tanh %238 : vector<2x128xf32>
    %cst_66 = arith.constant 5.000000e-01 : f32
    %240 = vector.broadcast %cst_66 : f32 to vector<2x128xf32>
    %241 = arith.mulf %240, %239 : vector<2x128xf32>
    %cst_67 = arith.constant 5.000000e-01 : f32
    %242 = vector.broadcast %cst_67 : f32 to vector<2x128xf32>
    %243 = arith.addf %241, %242 : vector<2x128xf32>
    %244 = vector.extract_strided_slice %233 {offsets = [0, 128], sizes = [2, 128], strides = [1, 1]} : vector<2x384xf32> to vector<2x128xf32>
    %245 = vector.extract_strided_slice %197 {offsets = [0, 512], sizes = [2, 128], strides = [1, 1]} : vector<2x768xf32> to vector<2x128xf32>
    %246 = arith.addf %244, %245 : vector<2x128xf32>
    %cst_68 = arith.constant 5.000000e-01 : f32
    %247 = vector.broadcast %cst_68 : f32 to vector<2x128xf32>
    %248 = arith.mulf %247, %246 : vector<2x128xf32>
    %249 = math.tanh %248 : vector<2x128xf32>
    %cst_69 = arith.constant 5.000000e-01 : f32
    %250 = vector.broadcast %cst_69 : f32 to vector<2x128xf32>
    %251 = arith.mulf %250, %249 : vector<2x128xf32>
    %cst_70 = arith.constant 5.000000e-01 : f32
    %252 = vector.broadcast %cst_70 : f32 to vector<2x128xf32>
    %253 = arith.addf %251, %252 : vector<2x128xf32>
    %254 = vector.extract_strided_slice %233 {offsets = [0, 256], sizes = [2, 128], strides = [1, 1]} : vector<2x384xf32> to vector<2x128xf32>
    %255 = vector.extract_strided_slice %197 {offsets = [0, 640], sizes = [2, 128], strides = [1, 1]} : vector<2x768xf32> to vector<2x128xf32>
    %256 = arith.mulf %243, %255 : vector<2x128xf32>
    %257 = arith.addf %254, %256 : vector<2x128xf32>
    %258 = math.tanh %257 : vector<2x128xf32>
    %cst_71 = arith.constant 1.000000e+00 : f32
    %259 = vector.broadcast %cst_71 : f32 to vector<2x128xf32>
    %260 = arith.subf %259, %253 : vector<2x128xf32>
    %261 = arith.mulf %260, %258 : vector<2x128xf32>
    %262 = arith.mulf %253, %193 : vector<2x128xf32>
    %263 = arith.addf %261, %262 : vector<2x128xf32>
    %c3_i32 = arith.constant 3 : i32
    %264 = tpu.concatenate %230, %263 in 1 : vector<2x128xf32>, vector<2x128xf32> -> vector<2x256xf32>
    %cst_72 = arith.constant dense<0.000000e+00> : vector<2x768xf32>
    %265 = tpu.matmul %264, %48, %cst_72 {dimension_numbers = #tpu.dot_dimension_numbers<[1], [0], [0], [1], [0, 0, 1, 1], [], []>} : vector<2x256xf32>, vector<256x768xf32>, vector<2x768xf32> -> vector<2x768xf32>
    %266 = vector.broadcast %49 : vector<1x768xf32> to vector<2x768xf32>
    %267 = arith.addf %265, %266 : vector<2x768xf32>
    %268 = arith.index_cast %c3_i32 : i32 to index
    %c0_73 = arith.constant 0 : index
    %c0_74 = arith.constant 0 : index
    %269 = vector.load %arg11[%268, %c0_73, %c0_74] : memref<8x2x384xf32, #tpu.memory_space<vmem>>, vector<1x2x384xf32>
    %270 = vector.shape_cast %269 : vector<1x2x384xf32> to vector<2x384xf32>
    %271 = vector.extract_strided_slice %270 {offsets = [0, 0], sizes = [2, 128], strides = [1, 1]} : vector<2x384xf32> to vector<2x128xf32>
    %272 = vector.extract_strided_slice %267 {offsets = [0, 0], sizes = [2, 128], strides = [1, 1]} : vector<2x768xf32> to vector<2x128xf32>
    %273 = arith.addf %271, %272 : vector<2x128xf32>
    %cst_75 = arith.constant 5.000000e-01 : f32
    %274 = vector.broadcast %cst_75 : f32 to vector<2x128xf32>
    %275 = arith.mulf %274, %273 : vector<2x128xf32>
    %276 = math.tanh %275 : vector<2x128xf32>
    %cst_76 = arith.constant 5.000000e-01 : f32
    %277 = vector.broadcast %cst_76 : f32 to vector<2x128xf32>
    %278 = arith.mulf %277, %276 : vector<2x128xf32>
    %cst_77 = arith.constant 5.000000e-01 : f32
    %279 = vector.broadcast %cst_77 : f32 to vector<2x128xf32>
    %280 = arith.addf %278, %279 : vector<2x128xf32>
    %281 = vector.extract_strided_slice %270 {offsets = [0, 128], sizes = [2, 128], strides = [1, 1]} : vector<2x384xf32> to vector<2x128xf32>
    %282 = vector.extract_strided_slice %267 {offsets = [0, 128], sizes = [2, 128], strides = [1, 1]} : vector<2x768xf32> to vector<2x128xf32>
    %283 = arith.addf %281, %282 : vector<2x128xf32>
    %cst_78 = arith.constant 5.000000e-01 : f32
    %284 = vector.broadcast %cst_78 : f32 to vector<2x128xf32>
    %285 = arith.mulf %284, %283 : vector<2x128xf32>
    %286 = math.tanh %285 : vector<2x128xf32>
    %cst_79 = arith.constant 5.000000e-01 : f32
    %287 = vector.broadcast %cst_79 : f32 to vector<2x128xf32>
    %288 = arith.mulf %287, %286 : vector<2x128xf32>
    %cst_80 = arith.constant 5.000000e-01 : f32
    %289 = vector.broadcast %cst_80 : f32 to vector<2x128xf32>
    %290 = arith.addf %288, %289 : vector<2x128xf32>
    %291 = vector.extract_strided_slice %270 {offsets = [0, 256], sizes = [2, 128], strides = [1, 1]} : vector<2x384xf32> to vector<2x128xf32>
    %292 = vector.extract_strided_slice %267 {offsets = [0, 256], sizes = [2, 128], strides = [1, 1]} : vector<2x768xf32> to vector<2x128xf32>
    %293 = arith.mulf %280, %292 : vector<2x128xf32>
    %294 = arith.addf %291, %293 : vector<2x128xf32>
    %295 = math.tanh %294 : vector<2x128xf32>
    %cst_81 = arith.constant 1.000000e+00 : f32
    %296 = vector.broadcast %cst_81 : f32 to vector<2x128xf32>
    %297 = arith.subf %296, %290 : vector<2x128xf32>
    %298 = arith.mulf %297, %295 : vector<2x128xf32>
    %299 = arith.mulf %290, %230 : vector<2x128xf32>
    %300 = arith.addf %298, %299 : vector<2x128xf32>
    %cst_82 = arith.constant dense<0.000000e+00> : vector<2x384xf32>
    %301 = tpu.matmul %300, %50, %cst_82 {dimension_numbers = #tpu.dot_dimension_numbers<[1], [0], [0], [1], [0, 0, 1, 1], [], []>} : vector<2x128xf32>, vector<128x384xf32>, vector<2x384xf32> -> vector<2x384xf32>
    %302 = vector.broadcast %51 : vector<1x384xf32> to vector<2x384xf32>
    %303 = arith.addf %301, %302 : vector<2x384xf32>
    %304 = vector.extract_strided_slice %303 {offsets = [0, 0], sizes = [2, 128], strides = [1, 1]} : vector<2x384xf32> to vector<2x128xf32>
    %305 = vector.extract_strided_slice %267 {offsets = [0, 384], sizes = [2, 128], strides = [1, 1]} : vector<2x768xf32> to vector<2x128xf32>
    %306 = arith.addf %304, %305 : vector<2x128xf32>
    %cst_83 = arith.constant 5.000000e-01 : f32
    %307 = vector.broadcast %cst_83 : f32 to vector<2x128xf32>
    %308 = arith.mulf %307, %306 : vector<2x128xf32>
    %309 = math.tanh %308 : vector<2x128xf32>
    %cst_84 = arith.constant 5.000000e-01 : f32
    %310 = vector.broadcast %cst_84 : f32 to vector<2x128xf32>
    %311 = arith.mulf %310, %309 : vector<2x128xf32>
    %cst_85 = arith.constant 5.000000e-01 : f32
    %312 = vector.broadcast %cst_85 : f32 to vector<2x128xf32>
    %313 = arith.addf %311, %312 : vector<2x128xf32>
    %314 = vector.extract_strided_slice %303 {offsets = [0, 128], sizes = [2, 128], strides = [1, 1]} : vector<2x384xf32> to vector<2x128xf32>
    %315 = vector.extract_strided_slice %267 {offsets = [0, 512], sizes = [2, 128], strides = [1, 1]} : vector<2x768xf32> to vector<2x128xf32>
    %316 = arith.addf %314, %315 : vector<2x128xf32>
    %cst_86 = arith.constant 5.000000e-01 : f32
    %317 = vector.broadcast %cst_86 : f32 to vector<2x128xf32>
    %318 = arith.mulf %317, %316 : vector<2x128xf32>
    %319 = math.tanh %318 : vector<2x128xf32>
    %cst_87 = arith.constant 5.000000e-01 : f32
    %320 = vector.broadcast %cst_87 : f32 to vector<2x128xf32>
    %321 = arith.mulf %320, %319 : vector<2x128xf32>
    %cst_88 = arith.constant 5.000000e-01 : f32
    %322 = vector.broadcast %cst_88 : f32 to vector<2x128xf32>
    %323 = arith.addf %321, %322 : vector<2x128xf32>
    %324 = vector.extract_strided_slice %303 {offsets = [0, 256], sizes = [2, 128], strides = [1, 1]} : vector<2x384xf32> to vector<2x128xf32>
    %325 = vector.extract_strided_slice %267 {offsets = [0, 640], sizes = [2, 128], strides = [1, 1]} : vector<2x768xf32> to vector<2x128xf32>
    %326 = arith.mulf %313, %325 : vector<2x128xf32>
    %327 = arith.addf %324, %326 : vector<2x128xf32>
    %328 = math.tanh %327 : vector<2x128xf32>
    %cst_89 = arith.constant 1.000000e+00 : f32
    %329 = vector.broadcast %cst_89 : f32 to vector<2x128xf32>
    %330 = arith.subf %329, %323 : vector<2x128xf32>
    %331 = arith.mulf %330, %328 : vector<2x128xf32>
    %332 = arith.mulf %323, %263 : vector<2x128xf32>
    %333 = arith.addf %331, %332 : vector<2x128xf32>
    %c4_i32 = arith.constant 4 : i32
    %334 = tpu.concatenate %300, %333 in 1 : vector<2x128xf32>, vector<2x128xf32> -> vector<2x256xf32>
    %cst_90 = arith.constant dense<0.000000e+00> : vector<2x768xf32>
    %335 = tpu.matmul %334, %48, %cst_90 {dimension_numbers = #tpu.dot_dimension_numbers<[1], [0], [0], [1], [0, 0, 1, 1], [], []>} : vector<2x256xf32>, vector<256x768xf32>, vector<2x768xf32> -> vector<2x768xf32>
    %336 = vector.broadcast %49 : vector<1x768xf32> to vector<2x768xf32>
    %337 = arith.addf %335, %336 : vector<2x768xf32>
    %338 = arith.index_cast %c4_i32 : i32 to index
    %c0_91 = arith.constant 0 : index
    %c0_92 = arith.constant 0 : index
    %339 = vector.load %arg11[%338, %c0_91, %c0_92] : memref<8x2x384xf32, #tpu.memory_space<vmem>>, vector<1x2x384xf32>
    %340 = vector.shape_cast %339 : vector<1x2x384xf32> to vector<2x384xf32>
    %341 = vector.extract_strided_slice %340 {offsets = [0, 0], sizes = [2, 128], strides = [1, 1]} : vector<2x384xf32> to vector<2x128xf32>
    %342 = vector.extract_strided_slice %337 {offsets = [0, 0], sizes = [2, 128], strides = [1, 1]} : vector<2x768xf32> to vector<2x128xf32>
    %343 = arith.addf %341, %342 : vector<2x128xf32>
    %cst_93 = arith.constant 5.000000e-01 : f32
    %344 = vector.broadcast %cst_93 : f32 to vector<2x128xf32>
    %345 = arith.mulf %344, %343 : vector<2x128xf32>
    %346 = math.tanh %345 : vector<2x128xf32>
    %cst_94 = arith.constant 5.000000e-01 : f32
    %347 = vector.broadcast %cst_94 : f32 to vector<2x128xf32>
    %348 = arith.mulf %347, %346 : vector<2x128xf32>
    %cst_95 = arith.constant 5.000000e-01 : f32
    %349 = vector.broadcast %cst_95 : f32 to vector<2x128xf32>
    %350 = arith.addf %348, %349 : vector<2x128xf32>
    %351 = vector.extract_strided_slice %340 {offsets = [0, 128], sizes = [2, 128], strides = [1, 1]} : vector<2x384xf32> to vector<2x128xf32>
    %352 = vector.extract_strided_slice %337 {offsets = [0, 128], sizes = [2, 128], strides = [1, 1]} : vector<2x768xf32> to vector<2x128xf32>
    %353 = arith.addf %351, %352 : vector<2x128xf32>
    %cst_96 = arith.constant 5.000000e-01 : f32
    %354 = vector.broadcast %cst_96 : f32 to vector<2x128xf32>
    %355 = arith.mulf %354, %353 : vector<2x128xf32>
    %356 = math.tanh %355 : vector<2x128xf32>
    %cst_97 = arith.constant 5.000000e-01 : f32
    %357 = vector.broadcast %cst_97 : f32 to vector<2x128xf32>
    %358 = arith.mulf %357, %356 : vector<2x128xf32>
    %cst_98 = arith.constant 5.000000e-01 : f32
    %359 = vector.broadcast %cst_98 : f32 to vector<2x128xf32>
    %360 = arith.addf %358, %359 : vector<2x128xf32>
    %361 = vector.extract_strided_slice %340 {offsets = [0, 256], sizes = [2, 128], strides = [1, 1]} : vector<2x384xf32> to vector<2x128xf32>
    %362 = vector.extract_strided_slice %337 {offsets = [0, 256], sizes = [2, 128], strides = [1, 1]} : vector<2x768xf32> to vector<2x128xf32>
    %363 = arith.mulf %350, %362 : vector<2x128xf32>
    %364 = arith.addf %361, %363 : vector<2x128xf32>
    %365 = math.tanh %364 : vector<2x128xf32>
    %cst_99 = arith.constant 1.000000e+00 : f32
    %366 = vector.broadcast %cst_99 : f32 to vector<2x128xf32>
    %367 = arith.subf %366, %360 : vector<2x128xf32>
    %368 = arith.mulf %367, %365 : vector<2x128xf32>
    %369 = arith.mulf %360, %300 : vector<2x128xf32>
    %370 = arith.addf %368, %369 : vector<2x128xf32>
    %cst_100 = arith.constant dense<0.000000e+00> : vector<2x384xf32>
    %371 = tpu.matmul %370, %50, %cst_100 {dimension_numbers = #tpu.dot_dimension_numbers<[1], [0], [0], [1], [0, 0, 1, 1], [], []>} : vector<2x128xf32>, vector<128x384xf32>, vector<2x384xf32> -> vector<2x384xf32>
    %372 = vector.broadcast %51 : vector<1x384xf32> to vector<2x384xf32>
    %373 = arith.addf %371, %372 : vector<2x384xf32>
    %374 = vector.extract_strided_slice %373 {offsets = [0, 0], sizes = [2, 128], strides = [1, 1]} : vector<2x384xf32> to vector<2x128xf32>
    %375 = vector.extract_strided_slice %337 {offsets = [0, 384], sizes = [2, 128], strides = [1, 1]} : vector<2x768xf32> to vector<2x128xf32>
    %376 = arith.addf %374, %375 : vector<2x128xf32>
    %cst_101 = arith.constant 5.000000e-01 : f32
    %377 = vector.broadcast %cst_101 : f32 to vector<2x128xf32>
    %378 = arith.mulf %377, %376 : vector<2x128xf32>
    %379 = math.tanh %378 : vector<2x128xf32>
    %cst_102 = arith.constant 5.000000e-01 : f32
    %380 = vector.broadcast %cst_102 : f32 to vector<2x128xf32>
    %381 = arith.mulf %380, %379 : vector<2x128xf32>
    %cst_103 = arith.constant 5.000000e-01 : f32
    %382 = vector.broadcast %cst_103 : f32 to vector<2x128xf32>
    %383 = arith.addf %381, %382 : vector<2x128xf32>
    %384 = vector.extract_strided_slice %373 {offsets = [0, 128], sizes = [2, 128], strides = [1, 1]} : vector<2x384xf32> to vector<2x128xf32>
    %385 = vector.extract_strided_slice %337 {offsets = [0, 512], sizes = [2, 128], strides = [1, 1]} : vector<2x768xf32> to vector<2x128xf32>
    %386 = arith.addf %384, %385 : vector<2x128xf32>
    %cst_104 = arith.constant 5.000000e-01 : f32
    %387 = vector.broadcast %cst_104 : f32 to vector<2x128xf32>
    %388 = arith.mulf %387, %386 : vector<2x128xf32>
    %389 = math.tanh %388 : vector<2x128xf32>
    %cst_105 = arith.constant 5.000000e-01 : f32
    %390 = vector.broadcast %cst_105 : f32 to vector<2x128xf32>
    %391 = arith.mulf %390, %389 : vector<2x128xf32>
    %cst_106 = arith.constant 5.000000e-01 : f32
    %392 = vector.broadcast %cst_106 : f32 to vector<2x128xf32>
    %393 = arith.addf %391, %392 : vector<2x128xf32>
    %394 = vector.extract_strided_slice %373 {offsets = [0, 256], sizes = [2, 128], strides = [1, 1]} : vector<2x384xf32> to vector<2x128xf32>
    %395 = vector.extract_strided_slice %337 {offsets = [0, 640], sizes = [2, 128], strides = [1, 1]} : vector<2x768xf32> to vector<2x128xf32>
    %396 = arith.mulf %383, %395 : vector<2x128xf32>
    %397 = arith.addf %394, %396 : vector<2x128xf32>
    %398 = math.tanh %397 : vector<2x128xf32>
    %cst_107 = arith.constant 1.000000e+00 : f32
    %399 = vector.broadcast %cst_107 : f32 to vector<2x128xf32>
    %400 = arith.subf %399, %393 : vector<2x128xf32>
    %401 = arith.mulf %400, %398 : vector<2x128xf32>
    %402 = arith.mulf %393, %333 : vector<2x128xf32>
    %403 = arith.addf %401, %402 : vector<2x128xf32>
    %c5_i32 = arith.constant 5 : i32
    %404 = tpu.concatenate %370, %403 in 1 : vector<2x128xf32>, vector<2x128xf32> -> vector<2x256xf32>
    %cst_108 = arith.constant dense<0.000000e+00> : vector<2x768xf32>
    %405 = tpu.matmul %404, %48, %cst_108 {dimension_numbers = #tpu.dot_dimension_numbers<[1], [0], [0], [1], [0, 0, 1, 1], [], []>} : vector<2x256xf32>, vector<256x768xf32>, vector<2x768xf32> -> vector<2x768xf32>
    %406 = vector.broadcast %49 : vector<1x768xf32> to vector<2x768xf32>
    %407 = arith.addf %405, %406 : vector<2x768xf32>
    %408 = arith.index_cast %c5_i32 : i32 to index
    %c0_109 = arith.constant 0 : index
    %c0_110 = arith.constant 0 : index
    %409 = vector.load %arg11[%408, %c0_109, %c0_110] : memref<8x2x384xf32, #tpu.memory_space<vmem>>, vector<1x2x384xf32>
    %410 = vector.shape_cast %409 : vector<1x2x384xf32> to vector<2x384xf32>
    %411 = vector.extract_strided_slice %410 {offsets = [0, 0], sizes = [2, 128], strides = [1, 1]} : vector<2x384xf32> to vector<2x128xf32>
    %412 = vector.extract_strided_slice %407 {offsets = [0, 0], sizes = [2, 128], strides = [1, 1]} : vector<2x768xf32> to vector<2x128xf32>
    %413 = arith.addf %411, %412 : vector<2x128xf32>
    %cst_111 = arith.constant 5.000000e-01 : f32
    %414 = vector.broadcast %cst_111 : f32 to vector<2x128xf32>
    %415 = arith.mulf %414, %413 : vector<2x128xf32>
    %416 = math.tanh %415 : vector<2x128xf32>
    %cst_112 = arith.constant 5.000000e-01 : f32
    %417 = vector.broadcast %cst_112 : f32 to vector<2x128xf32>
    %418 = arith.mulf %417, %416 : vector<2x128xf32>
    %cst_113 = arith.constant 5.000000e-01 : f32
    %419 = vector.broadcast %cst_113 : f32 to vector<2x128xf32>
    %420 = arith.addf %418, %419 : vector<2x128xf32>
    %421 = vector.extract_strided_slice %410 {offsets = [0, 128], sizes = [2, 128], strides = [1, 1]} : vector<2x384xf32> to vector<2x128xf32>
    %422 = vector.extract_strided_slice %407 {offsets = [0, 128], sizes = [2, 128], strides = [1, 1]} : vector<2x768xf32> to vector<2x128xf32>
    %423 = arith.addf %421, %422 : vector<2x128xf32>
    %cst_114 = arith.constant 5.000000e-01 : f32
    %424 = vector.broadcast %cst_114 : f32 to vector<2x128xf32>
    %425 = arith.mulf %424, %423 : vector<2x128xf32>
    %426 = math.tanh %425 : vector<2x128xf32>
    %cst_115 = arith.constant 5.000000e-01 : f32
    %427 = vector.broadcast %cst_115 : f32 to vector<2x128xf32>
    %428 = arith.mulf %427, %426 : vector<2x128xf32>
    %cst_116 = arith.constant 5.000000e-01 : f32
    %429 = vector.broadcast %cst_116 : f32 to vector<2x128xf32>
    %430 = arith.addf %428, %429 : vector<2x128xf32>
    %431 = vector.extract_strided_slice %410 {offsets = [0, 256], sizes = [2, 128], strides = [1, 1]} : vector<2x384xf32> to vector<2x128xf32>
    %432 = vector.extract_strided_slice %407 {offsets = [0, 256], sizes = [2, 128], strides = [1, 1]} : vector<2x768xf32> to vector<2x128xf32>
    %433 = arith.mulf %420, %432 : vector<2x128xf32>
    %434 = arith.addf %431, %433 : vector<2x128xf32>
    %435 = math.tanh %434 : vector<2x128xf32>
    %cst_117 = arith.constant 1.000000e+00 : f32
    %436 = vector.broadcast %cst_117 : f32 to vector<2x128xf32>
    %437 = arith.subf %436, %430 : vector<2x128xf32>
    %438 = arith.mulf %437, %435 : vector<2x128xf32>
    %439 = arith.mulf %430, %370 : vector<2x128xf32>
    %440 = arith.addf %438, %439 : vector<2x128xf32>
    %cst_118 = arith.constant dense<0.000000e+00> : vector<2x384xf32>
    %441 = tpu.matmul %440, %50, %cst_118 {dimension_numbers = #tpu.dot_dimension_numbers<[1], [0], [0], [1], [0, 0, 1, 1], [], []>} : vector<2x128xf32>, vector<128x384xf32>, vector<2x384xf32> -> vector<2x384xf32>
    %442 = vector.broadcast %51 : vector<1x384xf32> to vector<2x384xf32>
    %443 = arith.addf %441, %442 : vector<2x384xf32>
    %444 = vector.extract_strided_slice %443 {offsets = [0, 0], sizes = [2, 128], strides = [1, 1]} : vector<2x384xf32> to vector<2x128xf32>
    %445 = vector.extract_strided_slice %407 {offsets = [0, 384], sizes = [2, 128], strides = [1, 1]} : vector<2x768xf32> to vector<2x128xf32>
    %446 = arith.addf %444, %445 : vector<2x128xf32>
    %cst_119 = arith.constant 5.000000e-01 : f32
    %447 = vector.broadcast %cst_119 : f32 to vector<2x128xf32>
    %448 = arith.mulf %447, %446 : vector<2x128xf32>
    %449 = math.tanh %448 : vector<2x128xf32>
    %cst_120 = arith.constant 5.000000e-01 : f32
    %450 = vector.broadcast %cst_120 : f32 to vector<2x128xf32>
    %451 = arith.mulf %450, %449 : vector<2x128xf32>
    %cst_121 = arith.constant 5.000000e-01 : f32
    %452 = vector.broadcast %cst_121 : f32 to vector<2x128xf32>
    %453 = arith.addf %451, %452 : vector<2x128xf32>
    %454 = vector.extract_strided_slice %443 {offsets = [0, 128], sizes = [2, 128], strides = [1, 1]} : vector<2x384xf32> to vector<2x128xf32>
    %455 = vector.extract_strided_slice %407 {offsets = [0, 512], sizes = [2, 128], strides = [1, 1]} : vector<2x768xf32> to vector<2x128xf32>
    %456 = arith.addf %454, %455 : vector<2x128xf32>
    %cst_122 = arith.constant 5.000000e-01 : f32
    %457 = vector.broadcast %cst_122 : f32 to vector<2x128xf32>
    %458 = arith.mulf %457, %456 : vector<2x128xf32>
    %459 = math.tanh %458 : vector<2x128xf32>
    %cst_123 = arith.constant 5.000000e-01 : f32
    %460 = vector.broadcast %cst_123 : f32 to vector<2x128xf32>
    %461 = arith.mulf %460, %459 : vector<2x128xf32>
    %cst_124 = arith.constant 5.000000e-01 : f32
    %462 = vector.broadcast %cst_124 : f32 to vector<2x128xf32>
    %463 = arith.addf %461, %462 : vector<2x128xf32>
    %464 = vector.extract_strided_slice %443 {offsets = [0, 256], sizes = [2, 128], strides = [1, 1]} : vector<2x384xf32> to vector<2x128xf32>
    %465 = vector.extract_strided_slice %407 {offsets = [0, 640], sizes = [2, 128], strides = [1, 1]} : vector<2x768xf32> to vector<2x128xf32>
    %466 = arith.mulf %453, %465 : vector<2x128xf32>
    %467 = arith.addf %464, %466 : vector<2x128xf32>
    %468 = math.tanh %467 : vector<2x128xf32>
    %cst_125 = arith.constant 1.000000e+00 : f32
    %469 = vector.broadcast %cst_125 : f32 to vector<2x128xf32>
    %470 = arith.subf %469, %463 : vector<2x128xf32>
    %471 = arith.mulf %470, %468 : vector<2x128xf32>
    %472 = arith.mulf %463, %403 : vector<2x128xf32>
    %473 = arith.addf %471, %472 : vector<2x128xf32>
    %c6_i32 = arith.constant 6 : i32
    %474 = tpu.concatenate %440, %473 in 1 : vector<2x128xf32>, vector<2x128xf32> -> vector<2x256xf32>
    %cst_126 = arith.constant dense<0.000000e+00> : vector<2x768xf32>
    %475 = tpu.matmul %474, %48, %cst_126 {dimension_numbers = #tpu.dot_dimension_numbers<[1], [0], [0], [1], [0, 0, 1, 1], [], []>} : vector<2x256xf32>, vector<256x768xf32>, vector<2x768xf32> -> vector<2x768xf32>
    %476 = vector.broadcast %49 : vector<1x768xf32> to vector<2x768xf32>
    %477 = arith.addf %475, %476 : vector<2x768xf32>
    %478 = arith.index_cast %c6_i32 : i32 to index
    %c0_127 = arith.constant 0 : index
    %c0_128 = arith.constant 0 : index
    %479 = vector.load %arg11[%478, %c0_127, %c0_128] : memref<8x2x384xf32, #tpu.memory_space<vmem>>, vector<1x2x384xf32>
    %480 = vector.shape_cast %479 : vector<1x2x384xf32> to vector<2x384xf32>
    %481 = vector.extract_strided_slice %480 {offsets = [0, 0], sizes = [2, 128], strides = [1, 1]} : vector<2x384xf32> to vector<2x128xf32>
    %482 = vector.extract_strided_slice %477 {offsets = [0, 0], sizes = [2, 128], strides = [1, 1]} : vector<2x768xf32> to vector<2x128xf32>
    %483 = arith.addf %481, %482 : vector<2x128xf32>
    %cst_129 = arith.constant 5.000000e-01 : f32
    %484 = vector.broadcast %cst_129 : f32 to vector<2x128xf32>
    %485 = arith.mulf %484, %483 : vector<2x128xf32>
    %486 = math.tanh %485 : vector<2x128xf32>
    %cst_130 = arith.constant 5.000000e-01 : f32
    %487 = vector.broadcast %cst_130 : f32 to vector<2x128xf32>
    %488 = arith.mulf %487, %486 : vector<2x128xf32>
    %cst_131 = arith.constant 5.000000e-01 : f32
    %489 = vector.broadcast %cst_131 : f32 to vector<2x128xf32>
    %490 = arith.addf %488, %489 : vector<2x128xf32>
    %491 = vector.extract_strided_slice %480 {offsets = [0, 128], sizes = [2, 128], strides = [1, 1]} : vector<2x384xf32> to vector<2x128xf32>
    %492 = vector.extract_strided_slice %477 {offsets = [0, 128], sizes = [2, 128], strides = [1, 1]} : vector<2x768xf32> to vector<2x128xf32>
    %493 = arith.addf %491, %492 : vector<2x128xf32>
    %cst_132 = arith.constant 5.000000e-01 : f32
    %494 = vector.broadcast %cst_132 : f32 to vector<2x128xf32>
    %495 = arith.mulf %494, %493 : vector<2x128xf32>
    %496 = math.tanh %495 : vector<2x128xf32>
    %cst_133 = arith.constant 5.000000e-01 : f32
    %497 = vector.broadcast %cst_133 : f32 to vector<2x128xf32>
    %498 = arith.mulf %497, %496 : vector<2x128xf32>
    %cst_134 = arith.constant 5.000000e-01 : f32
    %499 = vector.broadcast %cst_134 : f32 to vector<2x128xf32>
    %500 = arith.addf %498, %499 : vector<2x128xf32>
    %501 = vector.extract_strided_slice %480 {offsets = [0, 256], sizes = [2, 128], strides = [1, 1]} : vector<2x384xf32> to vector<2x128xf32>
    %502 = vector.extract_strided_slice %477 {offsets = [0, 256], sizes = [2, 128], strides = [1, 1]} : vector<2x768xf32> to vector<2x128xf32>
    %503 = arith.mulf %490, %502 : vector<2x128xf32>
    %504 = arith.addf %501, %503 : vector<2x128xf32>
    %505 = math.tanh %504 : vector<2x128xf32>
    %cst_135 = arith.constant 1.000000e+00 : f32
    %506 = vector.broadcast %cst_135 : f32 to vector<2x128xf32>
    %507 = arith.subf %506, %500 : vector<2x128xf32>
    %508 = arith.mulf %507, %505 : vector<2x128xf32>
    %509 = arith.mulf %500, %440 : vector<2x128xf32>
    %510 = arith.addf %508, %509 : vector<2x128xf32>
    %cst_136 = arith.constant dense<0.000000e+00> : vector<2x384xf32>
    %511 = tpu.matmul %510, %50, %cst_136 {dimension_numbers = #tpu.dot_dimension_numbers<[1], [0], [0], [1], [0, 0, 1, 1], [], []>} : vector<2x128xf32>, vector<128x384xf32>, vector<2x384xf32> -> vector<2x384xf32>
    %512 = vector.broadcast %51 : vector<1x384xf32> to vector<2x384xf32>
    %513 = arith.addf %511, %512 : vector<2x384xf32>
    %514 = vector.extract_strided_slice %513 {offsets = [0, 0], sizes = [2, 128], strides = [1, 1]} : vector<2x384xf32> to vector<2x128xf32>
    %515 = vector.extract_strided_slice %477 {offsets = [0, 384], sizes = [2, 128], strides = [1, 1]} : vector<2x768xf32> to vector<2x128xf32>
    %516 = arith.addf %514, %515 : vector<2x128xf32>
    %cst_137 = arith.constant 5.000000e-01 : f32
    %517 = vector.broadcast %cst_137 : f32 to vector<2x128xf32>
    %518 = arith.mulf %517, %516 : vector<2x128xf32>
    %519 = math.tanh %518 : vector<2x128xf32>
    %cst_138 = arith.constant 5.000000e-01 : f32
    %520 = vector.broadcast %cst_138 : f32 to vector<2x128xf32>
    %521 = arith.mulf %520, %519 : vector<2x128xf32>
    %cst_139 = arith.constant 5.000000e-01 : f32
    %522 = vector.broadcast %cst_139 : f32 to vector<2x128xf32>
    %523 = arith.addf %521, %522 : vector<2x128xf32>
    %524 = vector.extract_strided_slice %513 {offsets = [0, 128], sizes = [2, 128], strides = [1, 1]} : vector<2x384xf32> to vector<2x128xf32>
    %525 = vector.extract_strided_slice %477 {offsets = [0, 512], sizes = [2, 128], strides = [1, 1]} : vector<2x768xf32> to vector<2x128xf32>
    %526 = arith.addf %524, %525 : vector<2x128xf32>
    %cst_140 = arith.constant 5.000000e-01 : f32
    %527 = vector.broadcast %cst_140 : f32 to vector<2x128xf32>
    %528 = arith.mulf %527, %526 : vector<2x128xf32>
    %529 = math.tanh %528 : vector<2x128xf32>
    %cst_141 = arith.constant 5.000000e-01 : f32
    %530 = vector.broadcast %cst_141 : f32 to vector<2x128xf32>
    %531 = arith.mulf %530, %529 : vector<2x128xf32>
    %cst_142 = arith.constant 5.000000e-01 : f32
    %532 = vector.broadcast %cst_142 : f32 to vector<2x128xf32>
    %533 = arith.addf %531, %532 : vector<2x128xf32>
    %534 = vector.extract_strided_slice %513 {offsets = [0, 256], sizes = [2, 128], strides = [1, 1]} : vector<2x384xf32> to vector<2x128xf32>
    %535 = vector.extract_strided_slice %477 {offsets = [0, 640], sizes = [2, 128], strides = [1, 1]} : vector<2x768xf32> to vector<2x128xf32>
    %536 = arith.mulf %523, %535 : vector<2x128xf32>
    %537 = arith.addf %534, %536 : vector<2x128xf32>
    %538 = math.tanh %537 : vector<2x128xf32>
    %cst_143 = arith.constant 1.000000e+00 : f32
    %539 = vector.broadcast %cst_143 : f32 to vector<2x128xf32>
    %540 = arith.subf %539, %533 : vector<2x128xf32>
    %541 = arith.mulf %540, %538 : vector<2x128xf32>
    %542 = arith.mulf %533, %473 : vector<2x128xf32>
    %543 = arith.addf %541, %542 : vector<2x128xf32>
    %c7_i32 = arith.constant 7 : i32
    %544 = tpu.concatenate %510, %543 in 1 : vector<2x128xf32>, vector<2x128xf32> -> vector<2x256xf32>
    %cst_144 = arith.constant dense<0.000000e+00> : vector<2x768xf32>
    %545 = tpu.matmul %544, %48, %cst_144 {dimension_numbers = #tpu.dot_dimension_numbers<[1], [0], [0], [1], [0, 0, 1, 1], [], []>} : vector<2x256xf32>, vector<256x768xf32>, vector<2x768xf32> -> vector<2x768xf32>
    %546 = vector.broadcast %49 : vector<1x768xf32> to vector<2x768xf32>
    %547 = arith.addf %545, %546 : vector<2x768xf32>
    %548 = arith.index_cast %c7_i32 : i32 to index
    %c0_145 = arith.constant 0 : index
    %c0_146 = arith.constant 0 : index
    %549 = vector.load %arg11[%548, %c0_145, %c0_146] : memref<8x2x384xf32, #tpu.memory_space<vmem>>, vector<1x2x384xf32>
    %550 = vector.shape_cast %549 : vector<1x2x384xf32> to vector<2x384xf32>
    %551 = vector.extract_strided_slice %550 {offsets = [0, 0], sizes = [2, 128], strides = [1, 1]} : vector<2x384xf32> to vector<2x128xf32>
    %552 = vector.extract_strided_slice %547 {offsets = [0, 0], sizes = [2, 128], strides = [1, 1]} : vector<2x768xf32> to vector<2x128xf32>
    %553 = arith.addf %551, %552 : vector<2x128xf32>
    %cst_147 = arith.constant 5.000000e-01 : f32
    %554 = vector.broadcast %cst_147 : f32 to vector<2x128xf32>
    %555 = arith.mulf %554, %553 : vector<2x128xf32>
    %556 = math.tanh %555 : vector<2x128xf32>
    %cst_148 = arith.constant 5.000000e-01 : f32
    %557 = vector.broadcast %cst_148 : f32 to vector<2x128xf32>
    %558 = arith.mulf %557, %556 : vector<2x128xf32>
    %cst_149 = arith.constant 5.000000e-01 : f32
    %559 = vector.broadcast %cst_149 : f32 to vector<2x128xf32>
    %560 = arith.addf %558, %559 : vector<2x128xf32>
    %561 = vector.extract_strided_slice %550 {offsets = [0, 128], sizes = [2, 128], strides = [1, 1]} : vector<2x384xf32> to vector<2x128xf32>
    %562 = vector.extract_strided_slice %547 {offsets = [0, 128], sizes = [2, 128], strides = [1, 1]} : vector<2x768xf32> to vector<2x128xf32>
    %563 = arith.addf %561, %562 : vector<2x128xf32>
    %cst_150 = arith.constant 5.000000e-01 : f32
    %564 = vector.broadcast %cst_150 : f32 to vector<2x128xf32>
    %565 = arith.mulf %564, %563 : vector<2x128xf32>
    %566 = math.tanh %565 : vector<2x128xf32>
    %cst_151 = arith.constant 5.000000e-01 : f32
    %567 = vector.broadcast %cst_151 : f32 to vector<2x128xf32>
    %568 = arith.mulf %567, %566 : vector<2x128xf32>
    %cst_152 = arith.constant 5.000000e-01 : f32
    %569 = vector.broadcast %cst_152 : f32 to vector<2x128xf32>
    %570 = arith.addf %568, %569 : vector<2x128xf32>
    %571 = vector.extract_strided_slice %550 {offsets = [0, 256], sizes = [2, 128], strides = [1, 1]} : vector<2x384xf32> to vector<2x128xf32>
    %572 = vector.extract_strided_slice %547 {offsets = [0, 256], sizes = [2, 128], strides = [1, 1]} : vector<2x768xf32> to vector<2x128xf32>
    %573 = arith.mulf %560, %572 : vector<2x128xf32>
    %574 = arith.addf %571, %573 : vector<2x128xf32>
    %575 = math.tanh %574 : vector<2x128xf32>
    %cst_153 = arith.constant 1.000000e+00 : f32
    %576 = vector.broadcast %cst_153 : f32 to vector<2x128xf32>
    %577 = arith.subf %576, %570 : vector<2x128xf32>
    %578 = arith.mulf %577, %575 : vector<2x128xf32>
    %579 = arith.mulf %570, %510 : vector<2x128xf32>
    %580 = arith.addf %578, %579 : vector<2x128xf32>
    %cst_154 = arith.constant dense<0.000000e+00> : vector<2x384xf32>
    %581 = tpu.matmul %580, %50, %cst_154 {dimension_numbers = #tpu.dot_dimension_numbers<[1], [0], [0], [1], [0, 0, 1, 1], [], []>} : vector<2x128xf32>, vector<128x384xf32>, vector<2x384xf32> -> vector<2x384xf32>
    %582 = vector.broadcast %51 : vector<1x384xf32> to vector<2x384xf32>
    %583 = arith.addf %581, %582 : vector<2x384xf32>
    %584 = vector.extract_strided_slice %583 {offsets = [0, 0], sizes = [2, 128], strides = [1, 1]} : vector<2x384xf32> to vector<2x128xf32>
    %585 = vector.extract_strided_slice %547 {offsets = [0, 384], sizes = [2, 128], strides = [1, 1]} : vector<2x768xf32> to vector<2x128xf32>
    %586 = arith.addf %584, %585 : vector<2x128xf32>
    %cst_155 = arith.constant 5.000000e-01 : f32
    %587 = vector.broadcast %cst_155 : f32 to vector<2x128xf32>
    %588 = arith.mulf %587, %586 : vector<2x128xf32>
    %589 = math.tanh %588 : vector<2x128xf32>
    %cst_156 = arith.constant 5.000000e-01 : f32
    %590 = vector.broadcast %cst_156 : f32 to vector<2x128xf32>
    %591 = arith.mulf %590, %589 : vector<2x128xf32>
    %cst_157 = arith.constant 5.000000e-01 : f32
    %592 = vector.broadcast %cst_157 : f32 to vector<2x128xf32>
    %593 = arith.addf %591, %592 : vector<2x128xf32>
    %594 = vector.extract_strided_slice %583 {offsets = [0, 128], sizes = [2, 128], strides = [1, 1]} : vector<2x384xf32> to vector<2x128xf32>
    %595 = vector.extract_strided_slice %547 {offsets = [0, 512], sizes = [2, 128], strides = [1, 1]} : vector<2x768xf32> to vector<2x128xf32>
    %596 = arith.addf %594, %595 : vector<2x128xf32>
    %cst_158 = arith.constant 5.000000e-01 : f32
    %597 = vector.broadcast %cst_158 : f32 to vector<2x128xf32>
    %598 = arith.mulf %597, %596 : vector<2x128xf32>
    %599 = math.tanh %598 : vector<2x128xf32>
    %cst_159 = arith.constant 5.000000e-01 : f32
    %600 = vector.broadcast %cst_159 : f32 to vector<2x128xf32>
    %601 = arith.mulf %600, %599 : vector<2x128xf32>
    %cst_160 = arith.constant 5.000000e-01 : f32
    %602 = vector.broadcast %cst_160 : f32 to vector<2x128xf32>
    %603 = arith.addf %601, %602 : vector<2x128xf32>
    %604 = vector.extract_strided_slice %583 {offsets = [0, 256], sizes = [2, 128], strides = [1, 1]} : vector<2x384xf32> to vector<2x128xf32>
    %605 = vector.extract_strided_slice %547 {offsets = [0, 640], sizes = [2, 128], strides = [1, 1]} : vector<2x768xf32> to vector<2x128xf32>
    %606 = arith.mulf %593, %605 : vector<2x128xf32>
    %607 = arith.addf %604, %606 : vector<2x128xf32>
    %608 = math.tanh %607 : vector<2x128xf32>
    %cst_161 = arith.constant 1.000000e+00 : f32
    %609 = vector.broadcast %cst_161 : f32 to vector<2x128xf32>
    %610 = arith.subf %609, %603 : vector<2x128xf32>
    %611 = arith.mulf %610, %608 : vector<2x128xf32>
    %612 = arith.mulf %603, %543 : vector<2x128xf32>
    %613 = arith.addf %611, %612 : vector<2x128xf32>
    %c8_i32 = arith.constant 8 : i32
    %c0_162 = arith.constant 0 : index
    %c0_163 = arith.constant 0 : index
    %614 = vector.load %arg8[%c0_162, %c0_163] : memref<128x5xf32, #tpu.memory_space<vmem>>, vector<128x5xf32>
    %cst_164 = arith.constant dense<0.000000e+00> : vector<2x5xf32>
    %615 = tpu.matmul %613, %614, %cst_164 {dimension_numbers = #tpu.dot_dimension_numbers<[1], [0], [0], [1], [0, 0, 1, 1], [], []>} : vector<2x128xf32>, vector<128x5xf32>, vector<2x5xf32> -> vector<2x5xf32>
    %c0_165 = arith.constant 0 : index
    %c0_166 = arith.constant 0 : index
    %616 = vector.load %arg9[%c0_165, %c0_166] : memref<1x5xf32, #tpu.memory_space<vmem>>, vector<1x5xf32>
    %617 = vector.broadcast %616 : vector<1x5xf32> to vector<2x5xf32>
    %618 = arith.addf %615, %617 : vector<2x5xf32>
    %c0_167 = arith.constant 0 : index
    %c0_168 = arith.constant 0 : index
    %619 = vector.load %arg10[%c0_167, %c0_168] : memref<2x5xf32, #tpu.memory_space<vmem>>, vector<2x5xf32>
    tpu.vector_store %arg10[%c0_167, %c0_168], %618 {strides = array<i32>} : memref<2x5xf32, #tpu.memory_space<vmem>>, vector<2x5xf32>,
    return
  }
  func.func @transform_0(%arg0: i32) -> (i32, i32, i32) {
    %c0_i32 = arith.constant 0 : i32
    %c0_i32_0 = arith.constant 0 : i32
    %c0_i32_1 = arith.constant 0 : i32
    return %c0_i32, %arg0, %c0_i32_0 : i32, i32, i32
  }
  func.func @transform_1(%arg0: i32) -> (i32, i32) {
    %c0_i32 = arith.constant 0 : i32
    %c0_i32_0 = arith.constant 0 : i32
    %c0_i32_1 = arith.constant 0 : i32
    return %c0_i32, %c0_i32_0 : i32, i32
  }
  func.func @transform_2(%arg0: i32) -> (i32, i32) {
    %c0_i32 = arith.constant 0 : i32
    %c0_i32_0 = arith.constant 0 : i32
    %c0_i32_1 = arith.constant 0 : i32
    return %c0_i32, %c0_i32_0 : i32, i32
  }
  func.func @transform_3(%arg0: i32) -> (i32, i32) {
    %c0_i32 = arith.constant 0 : i32
    %c0_i32_0 = arith.constant 0 : i32
    %c0_i32_1 = arith.constant 0 : i32
    return %c0_i32, %c0_i32_0 : i32, i32
  }
  func.func @transform_4(%arg0: i32) -> (i32, i32) {
    %c0_i32 = arith.constant 0 : i32
    %c0_i32_0 = arith.constant 0 : i32
    %c0_i32_1 = arith.constant 0 : i32
    return %c0_i32, %c0_i32_0 : i32, i32
  }
  func.func @transform_5(%arg0: i32) -> (i32, i32) {
    %c0_i32 = arith.constant 0 : i32
    %c0_i32_0 = arith.constant 0 : i32
    %c0_i32_1 = arith.constant 0 : i32
    return %c0_i32, %c0_i32_0 : i32, i32
  }
  func.func @transform_6(%arg0: i32) -> (i32, i32) {
    %c0_i32 = arith.constant 0 : i32
    %c0_i32_0 = arith.constant 0 : i32
    %c0_i32_1 = arith.constant 0 : i32
    return %c0_i32, %c0_i32_0 : i32, i32
  }
  func.func @transform_7(%arg0: i32) -> (i32, i32) {
    %c0_i32 = arith.constant 0 : i32
    %c0_i32_0 = arith.constant 0 : i32
    %c0_i32_1 = arith.constant 0 : i32
    return %c0_i32, %c0_i32_0 : i32, i32
  }
  func.func @transform_8(%arg0: i32) -> (i32, i32) {
    %c0_i32 = arith.constant 0 : i32
    %c0_i32_0 = arith.constant 0 : i32
    %c0_i32_1 = arith.constant 0 : i32
    return %c0_i32, %c0_i32_0 : i32, i32
  }
  func.func @transform_9(%arg0: i32) -> (i32, i32) {
    %c0_i32 = arith.constant 0 : i32
    %c0_i32_0 = arith.constant 0 : i32
    return %arg0, %c0_i32 : i32, i32
  }
}

</mosaic_0001>

<bundles_post_ra>
// kernel: tpu_custom_call.1
= control target key start
LH: loop header
LB: loop body
LE: loop exit
PB: predicated region body
PF: predicated region fallthrough
CT: control target
= control target key end

     0   :  { %14 = vsyncpa [#allocation4], 0  ;;  %s9183_s0 = inlined_call_operand.vmem [shape: f32[8,2,6], index: 0, kind: input, shape index: {}]   ;;  %s9184_s1 = inlined_call_operand.vmem [shape: f32[6,384], index: 1, kind: input, shape index: {}]   ;;  %s9185_s2 = inlined_call_operand.vmem [shape: f32[1,384], index: 2, kind: input, shape index: {}]   ;;  %s9186_s3 = inlined_call_operand.hbm [shape: f32[256,768], index: 3, kind: input, shape index: {}]   ;;  %s9187_s4 = inlined_call_operand.vmem [shape: f32[1,768], index: 4, kind: input, shape index: {}]   ;;  %s9188_s5 = inlined_call_operand.hbm [shape: f32[128,384], index: 5, kind: input, shape index: {}]   ;;  %s9189_s6 = inlined_call_operand.vmem [shape: f32[1,384], index: 6, kind: input, shape index: {}]   ;;  %s9190_s7 = inlined_call_operand.vmem [shape: f32[128,5], index: 7, kind: input, shape index: {}]   ;;  %s9191_s8 = inlined_call_operand.vmem [shape: f32[1,5], index: 8, kind: input, shape index: {}]   ;;  %s9192_s9 = inlined_call_operand.hbm [shape: f32[2,5], index: 9, kind: output, shape index: {}]  }
   0x1   :  { %15 = vsyncpa [#allocation7], 0 }
   0x2   :  { %16 = vsyncpa [#allocation5], 0  ;;  %s7086_s30 = smov [#allocation3]   ;;  %s7014_s13 = scalar_lea.hbm %s9186_s3, 24576 }
   0x3   :  { %s28_s10 = sshll.u32 %s7086_s30, 4  ;;  %p7015_p0 = scmp.ne.s32.totalorder %s9186_s3, %s7014_s13  ;;  %s29_s10 = int_to_ptr.vmem [resolvable:$true] %s28_s10 }
   0x4   :  { %p7018_p1 = scmp.lt.u32.totalorder %s7014_s13, %s9186_s3 }
   0x6   :  { %p7020_p2 = pnand %p7018_p1, %p7015_p0 }
   0x8   :  { %7023 = shalt.err (!%p7020_p2)
}
   0x9   :  { %s7024_s18 = scalar_lea.vmem %s29_s10, 24576  ;;  %p7029_p4 = scmp.lt.s32.totalorder %s29_s10, %s29_s10 }
   0xa   :  { %p7025_p3 = scmp.ne.s32.totalorder %s29_s10, %s7024_s18  ;;  %p7030_p5 = scmp.lt.s32.totalorder %s7024_s18, %s7024_s18 }
   0xc   :  { %p7031_p6 = por %p7030_p5, %p7029_p4 }
   0xe   :  { %p7032_p7 = pnand %p7031_p6, %p7025_p3 }
  0x10   :  { %7035 = shalt.err (!%p7032_p7)
}
  0x11   :  { %s7087_s19 = smov 768   ;;  %s7088_s20 = smov 48  }
  0x12   :  { %34 = dma.hbm_to_vmem [thread:$0]  %s9186_s3, 24576, %s29_s10, [#allocation4], %s7087_s19, %s7087_s19, %s7088_s20  }
  0x13   :  { %s7089_s23 = smov [#allocation6]   ;;  %s7036_s27 = scalar_lea.hbm %s9188_s5, 6144 }
  0x14   :  { %s42_s24 = sshll.u32 %s7089_s23, 4  ;;  %p7037_p8 = scmp.ne.s32.totalorder %s9188_s5, %s7036_s27  ;;  %s43_s24 = int_to_ptr.vmem [resolvable:$true] %s42_s24 }
  0x15   :  { %p7040_p9 = scmp.lt.u32.totalorder %s7036_s27, %s9188_s5 }
  0x17   :  { %p7042_p10 = pnand %p7040_p9, %p7037_p8 }
  0x19   :  { %7045 = shalt.err (!%p7042_p10)
}
  0x1a   :  { %s7046_s12 = scalar_lea.vmem %s43_s24, 6144  ;;  %p7051_p12 = scmp.lt.s32.totalorder %s43_s24, %s43_s24 }
  0x1b   :  { %p7047_p11 = scmp.ne.s32.totalorder %s43_s24, %s7046_s12  ;;  %p7052_p13 = scmp.lt.s32.totalorder %s7046_s12, %s7046_s12 }
  0x1d   :  { %p7053_p0 = por %p7052_p13, %p7051_p12 }
  0x1f   :  { %p7054_p1 = pnand %p7053_p0, %p7047_p11 }
  0x21   :  { %7057 = shalt.err (!%p7054_p1)
}
  0x22   :  { %s7090_s3 = smov 384   ;;  %s7091_s10 = smov 24  }
  0x23   :  { %48 = dma.hbm_to_vmem [thread:$0]  %s9188_s5, 6144, %s43_s24, [#allocation7], %s7090_s3, %s7090_s3, %s7091_s10  }
  0x24   :  { %7080 = dma.done.wait [#allocation4], 24576  }
  0x25   :  { %7081 = vsyncadd [#allocation4], 4294942720 }
  0x26   :  { %7082 = dma.done.wait [#allocation7], 6144  }
  0x27   :  { %7083 = vsyncadd [#allocation7], 4294961152  ;;  %v9193_v0 = vmov 0.0   ;;  %v9197_v1 = vmov 0   ;;  %v9195_v2 = vmov 2   ;;  %v818_v3 = vld [vmem:[#allocation3 + $0x8] sm:$0xff] }
  0x28   :  { %1154 = vmatprep.mubr.f32.mxu0 %v9193_v0  ;;  %1225 = vmatprep.mubr.f32.mxu1 %v9193_v0  ;;  %v824_v4 = vld [vmem:[#allocation3 + $0x38] sm:$0xff]  ;;  %v817_v5 = vld [vmem:[#allocation3] sm:$0xff]  ;;  %v823_v7 = vld [vmem:[#allocation3 + $0x30] sm:$0xff]  ;;  %vm7101_vm0 = vmmov 0   ;;  %s7102_s19 = smov [#allocation8]   ;;  %vm4358_vm1 = vcmask 33792  }
  0x29   :  { %6870 = vset.pattern.permute.xlu0 %v9197_v1  ;;  %6872 = vset.pattern.permute.xlu1 %v9195_v2  ;;  %v7181_v6 = vpack.c.bf16 %v824_v4, %v818_v3  ;;  %v830_v8 = vld [vmem:[#allocation3 + $0x68] sm:$0xff]  ;;  %v836_v9 = vld [vmem:[#allocation3 + $0x98] sm:$0xff]  ;;  %v7183_v10 = vpack.c.bf16 %v823_v7, %v817_v5  ;;  %v829_v12 = vld [vmem:[#allocation3 + $0x60] sm:$0xff]  ;;  %s4366_s20 = sshll.u32 %s7102_s19, 4  ;;  %s4367_s20 = int_to_ptr.vmem [resolvable:$true] %s4366_s20 }
  0x2a   :  { %v7185_v11 = vpack.c.bf16 %v836_v9, %v830_v8  ;;  %v835_v13 = vld [vmem:[#allocation3 + $0x90] sm:$0xff]  ;;  %v842_v14 = vld [vmem:[#allocation3 + $0xc8] sm:$0xff]  ;;  %v848_v15 = vld [vmem:[#allocation3 + $0xf8] sm:$0xff]  ;;  %s7058_s21 = scalar_lea.vmem %s4367_s20, 32  ;;  %p7063_p3 = scmp.lt.s32.totalorder %s4367_s20, %s4367_s20 }
  0x2b   :  { %4846 = vmatprep.subr.bf16.mxu0 %v7181_v6  ;;  %v7189_v16 = vpack.c.bf16 %v835_v13, %v829_v12  ;;  %v7192_v17 = vpack.c.bf16 %v848_v15, %v842_v14  ;;  %v841_v18 = vld [vmem:[#allocation3 + $0xc0] sm:$0xff]  ;;  %v847_v19 = vld [vmem:[#allocation3 + $0xf0] sm:$0xff]  ;;  %v854_v20 = vld [vmem:[#allocation3 + $0x128] sm:$0xff]  ;;  %p7059_p2 = scmp.ne.s32.totalorder %s4367_s20, %s7058_s21  ;;  %p7064_p4 = scmp.lt.s32.totalorder %s7058_s21, %s7058_s21 }
  0x2c   :  { %4848 = vmatpush1.bf16.msra.mxu0 %v7183_v10  ;;  %v860_v21 = vld [vmem:[#allocation3 + $0x158] sm:$0xff]  ;;  %v826_v23 = vld [vmem:[#allocation3 + $0x48] sm:$0xff]  ;;  %v819_v24 = vld [vmem:[#allocation3 + $0x10] sm:$0xff]  ;;  %v7195_v26 = vpack.c.bf16 %v847_v19, %v841_v18 }
  0x2d   :  { %4850 = vmatprep.subr.bf16.mxu0 %v7185_v11  ;;  %v820_v22 = vld [vmem:[#allocation3 + $0x18] sm:$0xff]  ;;  %v825_v25 = vld [vmem:[#allocation3 + $0x40] sm:$0xff]  ;;  %v859_v28 = vld [vmem:[#allocation3 + $0x150] sm:$0xff]  ;;  %v7202_v31 = vpack.c.bf16 %v860_v21, %v854_v20  ;;  %p7065_p5 = por %p7064_p4, %p7063_p3 }
  0x2e   :  { %v853_v27 = vld [vmem:[#allocation3 + $0x120] sm:$0xff]  ;;  %v7197_v29 = vpack.c.bf16 %v826_v23, %v820_v22  ;;  %v7199_v30 = vpack.c.bf16 %v825_v25, %v819_v24  ;;  %v866_v32 = vld [vmem:[#allocation3 + $0x188] sm:$0xff]  ;;  %v832_v33 = vld [vmem:[#allocation3 + $0x78] sm:$0xff] }
  0x2f   :  { %v838_v34 = vld [vmem:[#allocation3 + $0xa8] sm:$0xff]  ;;  %v872_v35 = vld [vmem:[#allocation3 + $0x1b8] sm:$0xff]  ;;  %v831_v37 = vld [vmem:[#allocation3 + $0x70] sm:$0xff]  ;;  %v7211_v40 = vpack.c.bf16 %v859_v28, %v853_v27  ;;  %p7066_p6 = pnand %p7065_p5, %p7059_p2 }
  0x30   :  { %4852 = vmatpush1.bf16.msra.mxu0 %v7189_v16  ;;  %9472 = vst [vmem:[#allocation12_spill] sm:$0xff] %v7197_v29  ;;  %9473 = vst [vmem:[#allocation13_spill] sm:$0xff] %v7199_v30  ;;  %4910 = vmatprep.subr.bf16.mxu1 %v7197_v29  ;;  %v7205_v36 = vpack.c.bf16 %v838_v34, %v832_v33  ;;  %v837_v38 = vld [vmem:[#allocation3 + $0xa0] sm:$0xff]  ;;  %v844_v41 = vld [vmem:[#allocation3 + $0xd8] sm:$0xff]  ;;  %v7215_v44 = vpack.c.bf16 %v872_v35, %v866_v32 }
  0x31   :  { %4854 = vmatprep.subr.bf16.mxu0 %v7192_v17  ;;  %4912 = vmatpush1.bf16.msra.mxu1 %v7199_v30  ;;  %v7208_v39 = vpack.c.bf16 %v837_v38, %v831_v37  ;;  %v850_v42 = vld [vmem:[#allocation3 + $0x108] sm:$0xff]  ;;  %v843_v43 = vld [vmem:[#allocation3 + $0xd0] sm:$0xff]  ;;  %v865_v45 = vld [vmem:[#allocation3 + $0x180] sm:$0xff] }
  0x32   :  { %9474 = vst [vmem:[#allocation14_spill] sm:$0xff] %v7205_v36  ;;  %4914 = vmatprep.subr.bf16.mxu1 %v7205_v36  ;;  %v871_v46 = vld [vmem:[#allocation3 + $0x1b0] sm:$0xff]  ;;  %v7217_v47 = vpack.c.bf16 %v850_v42, %v844_v41  ;;  %v849_v48 = vld [vmem:[#allocation3 + $0x100] sm:$0xff]  ;;  %v878_v49 = vld [vmem:[#allocation3 + $0x1e8] sm:$0xff] }
  0x33   :  { %9475 = vst [vmem:[#allocation15_spill] sm:$0xff] %v7208_v39  ;;  %v884_v50 = vld [vmem:[#allocation3 + $0x218] sm:$0xff]  ;;  %v7220_v52 = vpack.c.bf16 %v849_v48, %v843_v43  ;;  %v862_v53 = vld [vmem:[#allocation3 + $0x168] sm:$0xff]  ;;  %v7223_v54 = vpack.c.bf16 %v871_v46, %v865_v45  ;;  %v877_v55 = vld [vmem:[#allocation3 + $0x1e0] sm:$0xff] }
  0x34   :  { %4856 = vmatpush1.bf16.msra.mxu0 %v7195_v26  ;;  %9476 = vst [vmem:[#allocation16_spill] sm:$0xff] %v7217_v47  ;;  %v856_v51 = vld [vmem:[#allocation3 + $0x138] sm:$0xff]  ;;  %v855_v57 = vld [vmem:[#allocation3 + $0x130] sm:$0xff]  ;;  %v861_v58 = vld [vmem:[#allocation3 + $0x160] sm:$0xff]  ;;  %v7229_v59 = vpack.c.bf16 %v884_v50, %v878_v49 }
  0x35   :  { %4858 = vmatprep.subr.bf16.mxu0 %v7202_v31  ;;  %4916 = vmatpush1.bf16.msra.mxu1 %v7208_v39  ;;  %9477 = vst [vmem:[#allocation17_spill] sm:$0xff] %v7220_v52  ;;  %v7226_v56 = vpack.c.bf16 %v862_v53, %v856_v51  ;;  %v883_v60 = vld [vmem:[#allocation3 + $0x210] sm:$0xff]  ;;  %v868_v61 = vld [vmem:[#allocation3 + $0x198] sm:$0xff]  ;;  %v874_v62 = vld [vmem:[#allocation3 + $0x1c8] sm:$0xff]  ;;  %v7232_v4 = vpack.c.bf16 %v861_v58, %v855_v57 }
  0x36   :  { %4918 = vmatprep.subr.bf16.mxu1 %v7217_v47  ;;  %v890_v63 = vld [vmem:[#allocation3 + $0x248] sm:$0xff]  ;;  %v896_v3 = vld [vmem:[#allocation3 + $0x278] sm:$0xff]  ;;  %v7235_v5 = vpack.c.bf16 %v883_v60, %v877_v55  ;;  %v889_v7 = vld [vmem:[#allocation3 + $0x240] sm:$0xff]  ;;  %v7238_v8 = vpack.c.bf16 %v874_v62, %v868_v61 }
  0x37   :  { %9478 = vst [vmem:[#allocation18_spill] sm:$0xff] %v7226_v56  ;;  %9479 = vst [vmem:[#allocation19_spill] sm:$0xff] %v7232_v4  ;;  %v867_v9 = vld [vmem:[#allocation3 + $0x190] sm:$0xff]  ;;  %v873_v12 = vld [vmem:[#allocation3 + $0x1c0] sm:$0xff]  ;;  %v7241_v13 = vpack.c.bf16 %v896_v3, %v890_v63 }
  0x38   :  { %4860 = vmatpush1.bf16.msra.mxu0 %v7211_v40  ;;  %9480 = vst [vmem:[#allocation20_spill] sm:$0xff] %v7235_v5  ;;  %9481 = vst [vmem:[#allocation21_spill] sm:$0xff] %v7238_v8  ;;  %v895_v14 = vld [vmem:[#allocation3 + $0x270] sm:$0xff]  ;;  %v880_v15 = vld [vmem:[#allocation3 + $0x1f8] sm:$0xff]  ;;  %v7244_v21 = vpack.c.bf16 %v873_v12, %v867_v9 }
  0x39   :  { %4862 = vmatprep.subr.bf16.mxu0 %v7215_v44  ;;  %4920 = vmatpush1.bf16.msra.mxu1 %v7220_v52  ;;  %9482 = vst [vmem:[#allocation22_spill] sm:$0xff] %v7241_v13  ;;  %v886_v18 = vld [vmem:[#allocation3 + $0x228] sm:$0xff]  ;;  %v908_v20 = vld [vmem:[#allocation3 + $0x2d8] sm:$0xff]  ;;  %v7247_v22 = vpack.c.bf16 %v895_v14, %v889_v7  ;;  %v901_v23 = vld [vmem:[#allocation3 + $0x2a0] sm:$0xff] }
  0x3a   :  { %4922 = vmatprep.subr.bf16.mxu1 %v7226_v56  ;;  %v902_v19 = vld [vmem:[#allocation3 + $0x2a8] sm:$0xff]  ;;  %9483 = vst [vmem:[#allocation23_spill] sm:$0xff] %v7244_v21  ;;  %v7250_v24 = vpack.c.bf16 %v886_v18, %v880_v15  ;;  %v879_v25 = vld [vmem:[#allocation3 + $0x1f0] sm:$0xff]  ;;  %v885_v27 = vld [vmem:[#allocation3 + $0x220] sm:$0xff] }
  0x3b   :  { %9484 = vst [vmem:[#allocation24_spill] sm:$0xff] %v7247_v22  ;;  %v7253_v28 = vpack.c.bf16 %v908_v20, %v902_v19  ;;  %v907_v32 = vld [vmem:[#allocation3 + $0x2d0] sm:$0xff]  ;;  %v892_v33 = vld [vmem:[#allocation3 + $0x258] sm:$0xff]  ;;  %v898_v34 = vld [vmem:[#allocation3 + $0x288] sm:$0xff]  ;;  %v7256_v38 = vpack.c.bf16 %v885_v27, %v879_v25 }
  0x3c   :  { %4864 = vmatpush1.bf16.msra.mxu0 %v7223_v54  ;;  %9485 = vst [vmem:[#allocation25_spill] sm:$0xff] %v7250_v24  ;;  %v914_v35 = vld [vmem:[#allocation3 + $0x308] sm:$0xff]  ;;  %v920_v37 = vld [vmem:[#allocation3 + $0x338] sm:$0xff]  ;;  %v7259_v41 = vpack.c.bf16 %v907_v32, %v901_v23  ;;  %v913_v42 = vld [vmem:[#allocation3 + $0x300] sm:$0xff]  ;;  %v7262_v43 = vpack.c.bf16 %v898_v34, %v892_v33 }
  0x3d   :  { %4866 = vmatprep.subr.bf16.mxu0 %v7229_v59  ;;  %4924 = vmatpush1.bf16.msra.mxu1 %v7232_v4  ;;  %9486 = vst [vmem:[#allocation26_spill] sm:$0xff] %v7253_v28  ;;  %9487 = vst [vmem:[#allocation27_spill] sm:$0xff] %v7256_v38  ;;  %v891_v45 = vld [vmem:[#allocation3 + $0x250] sm:$0xff]  ;;  %v897_v46 = vld [vmem:[#allocation3 + $0x280] sm:$0xff]  ;;  %v7265_v48 = vpack.c.bf16 %v920_v37, %v914_v35 }
  0x3e   :  { %4926 = vmatprep.subr.bf16.mxu1 %v7238_v8  ;;  %9488 = vst [vmem:[#allocation28_spill] sm:$0xff] %v7259_v41  ;;  %9489 = vst [vmem:[#allocation29_spill] sm:$0xff] %v7262_v43  ;;  %v919_v49 = vld [vmem:[#allocation3 + $0x330] sm:$0xff]  ;;  %v904_v50 = vld [vmem:[#allocation3 + $0x2b8] sm:$0xff]  ;;  %v7268_v57 = vpack.c.bf16 %v897_v46, %v891_v45 }
  0x3f   :  { %9490 = vst [vmem:[#allocation30_spill] sm:$0xff] %v7265_v48  ;;  %v910_v51 = vld [vmem:[#allocation3 + $0x2e8] sm:$0xff]  ;;  %v932_v55 = vld [vmem:[#allocation3 + $0x398] sm:$0xff]  ;;  %v7271_v58 = vpack.c.bf16 %v919_v49, %v913_v42  ;;  %v925_v60 = vld [vmem:[#allocation3 + $0x360] sm:$0xff] }
  0x40   :  { %4868 = vmatpush1.bf16.msra.mxu0 %v7235_v5  ;;  %v926_v53 = vld [vmem:[#allocation3 + $0x368] sm:$0xff]  ;;  %9491 = vst [vmem:[#allocation31_spill] sm:$0xff] %v7268_v57  ;;  %v7274_v61 = vpack.c.bf16 %v910_v51, %v904_v50  ;;  %v903_v62 = vld [vmem:[#allocation3 + $0x2b0] sm:$0xff]  ;;  %v909_v63 = vld [vmem:[#allocation3 + $0x2e0] sm:$0xff] }
  0x41   :  { %4870 = vmatprep.subr.bf16.mxu0 %v7241_v13  ;;  %4928 = vmatpush1.bf16.msra.mxu1 %v7244_v21  ;;  %9492 = vst [vmem:[#allocation32_spill] sm:$0xff] %v7271_v58  ;;  %v7277_v3 = vpack.c.bf16 %v932_v55, %v926_v53  ;;  %v931_v7 = vld [vmem:[#allocation3 + $0x390] sm:$0xff]  ;;  %v916_v9 = vld [vmem:[#allocation3 + $0x318] sm:$0xff]  ;;  %v922_v12 = vld [vmem:[#allocation3 + $0x348] sm:$0xff]  ;;  %v7280_v18 = vpack.c.bf16 %v909_v63, %v903_v62 }
  0x42   :  { %4930 = vmatprep.subr.bf16.mxu1 %v7250_v24  ;;  %9493 = vst [vmem:[#allocation33_spill] sm:$0xff] %v7274_v61  ;;  %v938_v14 = vld [vmem:[#allocation3 + $0x3c8] sm:$0xff]  ;;  %v944_v15 = vld [vmem:[#allocation3 + $0x3f8] sm:$0xff]  ;;  %v7283_v19 = vpack.c.bf16 %v931_v7, %v925_v60  ;;  %v937_v20 = vld [vmem:[#allocation3 + $0x3c0] sm:$0xff]  ;;  %v7286_v23 = vpack.c.bf16 %v922_v12, %v916_v9 }
  0x43   :  { %9494 = vst [vmem:[#allocation34_spill] sm:$0xff] %v7277_v3  ;;  %9495 = vst [vmem:[#allocation35_spill] sm:$0xff] %v7280_v18  ;;  %v915_v25 = vld [vmem:[#allocation3 + $0x310] sm:$0xff]  ;;  %v921_v27 = vld [vmem:[#allocation3 + $0x340] sm:$0xff]  ;;  %v7289_v32 = vpack.c.bf16 %v944_v15, %v938_v14 }
  0x44   :  { %4872 = vmatpush1.bf16.msra.mxu0 %v7247_v22  ;;  %9496 = vst [vmem:[#allocation36_spill] sm:$0xff] %v7283_v19  ;;  %9497 = vst [vmem:[#allocation37_spill] sm:$0xff] %v7286_v23  ;;  %v943_v33 = vld [vmem:[#allocation3 + $0x3f0] sm:$0xff]  ;;  %v928_v34 = vld [vmem:[#allocation3 + $0x378] sm:$0xff]  ;;  %v7292_v45 = vpack.c.bf16 %v921_v27, %v915_v25 }
  0x45   :  { %4874 = vmatprep.subr.bf16.mxu0 %v7253_v28  ;;  %4932 = vmatpush1.bf16.msra.mxu1 %v7256_v38  ;;  %9498 = vst [vmem:[#allocation38_spill] sm:$0xff] %v7289_v32  ;;  %v934_v35 = vld [vmem:[#allocation3 + $0x3a8] sm:$0xff]  ;;  %v956_v42 = vld [vmem:[#allocation3 + $0x458] sm:$0xff]  ;;  %v7295_v46 = vpack.c.bf16 %v943_v33, %v937_v20  ;;  %v949_v49 = vld [vmem:[#allocation3 + $0x420] sm:$0xff] }
  0x46   :  { %4934 = vmatprep.subr.bf16.mxu1 %v7262_v43  ;;  %v950_v37 = vld [vmem:[#allocation3 + $0x428] sm:$0xff]  ;;  %9499 = vst [vmem:[#allocation39_spill] sm:$0xff] %v7292_v45  ;;  %v7298_v50 = vpack.c.bf16 %v934_v35, %v928_v34  ;;  %v927_v51 = vld [vmem:[#allocation3 + $0x370] sm:$0xff]  ;;  %v933_v53 = vld [vmem:[#allocation3 + $0x3a0] sm:$0xff] }
  0x47   :  { %9500 = vst [vmem:[#allocation40_spill] sm:$0xff] %v7295_v46  ;;  %v7301_v55 = vpack.c.bf16 %v956_v42, %v950_v37  ;;  %v955_v60 = vld [vmem:[#allocation3 + $0x450] sm:$0xff]  ;;  %v940_v62 = vld [vmem:[#allocation3 + $0x3d8] sm:$0xff]  ;;  %v946_v63 = vld [vmem:[#allocation3 + $0x408] sm:$0xff]  ;;  %v7309_v14 = vpack.c.bf16 %v933_v53, %v927_v51 }
  0x48   :  { %4876 = vmatpush1.bf16.msra.mxu0 %v7259_v41  ;;  %9501 = vst [vmem:[#allocation41_spill] sm:$0xff] %v7298_v50  ;;  %v962_v7 = vld [vmem:[#allocation3 + $0x488] sm:$0xff]  ;;  %v968_v9 = vld [vmem:[#allocation3 + $0x4b8] sm:$0xff]  ;;  %v7306_v12 = vld [vmem:[%s9183_s0] sm:$0x3]  ;;  %v7313_v15 = vpack.c.bf16 %v955_v60, %v949_v49  ;;  %v7316_v25 = vpack.c.bf16 %v946_v63, %v940_v62  ;;  %v9201_v60 = vmov 1  }
  0x49   :  { %4878 = vmatprep.subr.bf16.mxu0 %v7265_v48  ;;  %4936 = vmatpush1.bf16.msra.mxu1 %v7268_v57  ;;  %9502 = vst [vmem:[#allocation42_spill] sm:$0xff] %v7301_v55  ;;  %9503 = vst [vmem:[#allocation43_spill] sm:$0xff] %v7309_v14  ;;  %v961_v20 = vld [vmem:[#allocation3 + $0x480] sm:$0xff]  ;;  %v939_v27 = vld [vmem:[#allocation3 + $0x3d0] sm:$0xff]  ;;  %v7319_v34 = vpack.c.bf16 %v968_v9, %v962_v7 }
  0x4a   :  { %4938 = vmatprep.subr.bf16.mxu1 %v7274_v61  ;;  %74 = vperm.xlu0 %6870, %v7306_v12   ;;  %9504 = vst [vmem:[#allocation44_spill] sm:$0xff] %v7313_v15  ;;  %9505 = vst [vmem:[#allocation45_spill] sm:$0xff] %v7316_v25  ;;  %v945_v33 = vld [vmem:[#allocation3 + $0x400] sm:$0xff]  ;;  %v967_v35 = vld [vmem:[#allocation3 + $0x4b0] sm:$0xff] }
  0x4b   :  { %9506 = vst [vmem:[#allocation46_spill] sm:$0xff] %v7319_v34  ;;  %v952_v37 = vld [vmem:[#allocation3 + $0x438] sm:$0xff]  ;;  %v958_v42 = vld [vmem:[#allocation3 + $0x468] sm:$0xff]  ;;  %282 = vperm.xlu1 %6872, %v7306_v12   ;;  %v7323_v49 = vpack.c.bf16 %v945_v33, %v939_v27  ;;  %v7327_v62 = vpack.c.bf16 %v967_v35, %v961_v20  ;;  %v973_v63 = vld [vmem:[#allocation3 + $0x4e0] sm:$0xff] }
  0x4c   :  { %4880 = vmatpush1.bf16.msra.mxu0 %v7271_v58  ;;  %v974_v51 = vld [vmem:[#allocation3 + $0x4e8] sm:$0xff]  ;;  %v980_v53 = vld [vmem:[#allocation3 + $0x518] sm:$0xff]  ;;  %v7330_v7 = vpack.c.bf16 %v958_v42, %v952_v37  ;;  %v951_v9 = vld [vmem:[#allocation3 + $0x430] sm:$0xff] }
  0x4d   :  { %4882 = vmatprep.subr.bf16.mxu0 %v7277_v3  ;;  %4940 = vmatpush1.bf16.msra.mxu1 %v7280_v18  ;;  %9507 = vst [vmem:[#allocation47_spill] sm:$0xff] %v7323_v49  ;;  %9508 = vst [vmem:[#allocation48_spill] sm:$0xff] %v7327_v62  ;;  %v957_v0 = vld [vmem:[#allocation3 + $0x460] sm:$0xff]  ;;  %v7333_v2 = vpack.c.bf16 %v980_v53, %v974_v51  ;;  %v979_v27 = vld [vmem:[#allocation3 + $0x510] sm:$0xff] }
  0x4e   :  { %4942 = vmatprep.subr.bf16.mxu1 %v7286_v23  ;;  %6871 = vset.pattern.permute.xlu0 %v9201_v60  ;;  %9509 = vst [vmem:[#allocation49_spill] sm:$0xff] %v7330_v7  ;;  %v964_v33 = vld [vmem:[#allocation3 + $0x498] sm:$0xff]  ;;  %v970_v1 = vld [vmem:[#allocation3 + $0x4c8] sm:$0xff]  ;;  %v7339_v35 = vpack.c.bf16 %v957_v0, %v951_v9  ;;  %v7342_v37 = vpack.c.bf16 %v979_v27, %v973_v63  ;;  %v985_v42 = vld [vmem:[#allocation3 + $0x540] sm:$0xff]  ;;  %v9215_v23 = vmov 4   ;;  %v9217_v63 = vmov 5  }
  0x4f   :  { %9510 = vst [vmem:[#allocation50_spill] sm:$0xff] %v7333_v2  ;;  %v986_v60 = vld [vmem:[#allocation3 + $0x548] sm:$0xff]  ;;  %v992_v20 = vld [vmem:[#allocation3 + $0x578] sm:$0xff]  ;;  %190 = vperm.xlu0 %6871, %v7306_v12   ;;  %v7345_v51 = vpack.c.bf16 %v970_v1, %v964_v33  ;;  %v963_v53 = vld [vmem:[#allocation3 + $0x490] sm:$0xff] }
  0x50   :  { %4884 = vmatpush1.bf16.msra.mxu0 %v7283_v19  ;;  %9511 = vst [vmem:[#allocation51_spill] sm:$0xff] %v7339_v35  ;;  %9512 = vst [vmem:[#allocation52_spill] sm:$0xff] %v7342_v37  ;;  %v998_v0 = vld [vmem:[#allocation3 + $0x5a8] sm:$0xff]  ;;  %v1004_v9 = vld [vmem:[#allocation3 + $0x5d8] sm:$0xff] }
  0x51   :  { %4886 = vmatprep.subr.bf16.mxu0 %v7289_v32  ;;  %4944 = vmatpush1.bf16.msra.mxu1 %v7292_v45  ;;  %9513 = vst [vmem:[#allocation53_spill] sm:$0xff] %v7345_v51  ;;  %v976_v45 = vld [vmem:[#allocation3 + $0x4f8] sm:$0xff]  ;;  %v997_v27 = vld [vmem:[#allocation3 + $0x5a0] sm:$0xff]  ;;  %v148_v61 = vld [vmem:[%s9185_s2] sm:$0x7] }
  0x52   :  { %4946 = vmatprep.subr.bf16.mxu1 %v7298_v50  ;;  %v991_v50 = vld [vmem:[#allocation3 + $0x570] sm:$0xff]  ;;  %v869_v18 = vld [vmem:[#allocation3 + $0x1a0] sm:$0xff]  ;;  %v948_v43 = vld [vmem:[#allocation3 + $0x418] sm:$0xff] }
  0x53   :  { %6875 = vset.pattern.permute.xlu0 %v9217_v63  ;;  %v7363_v63 = vpack.c.bf16 %v1004_v9, %v998_v0  ;;  %v987_v0 = vld [vmem:[#allocation3 + $0x550] sm:$0xff]  ;;  %v993_v9 = vld [vmem:[#allocation3 + $0x580] sm:$0xff]  ;;  %v954_v52 = vld [vmem:[#allocation3 + $0x448] sm:$0xff] }
  0x54   :  { %4888 = vmatpush1.bf16.msra.mxu0 %v7295_v46  ;;  %558 = vperm.xlu0 %6875, %v7306_v12   ;;  %v1022_v57 = vld [vmem:[#allocation6 + $0x60] sm:$0xff]  ;;  %v1028_v56 = vld [vmem:[#allocation6 + $0x90] sm:$0xff]  ;;  %v960_v47 = vld [vmem:[#allocation3 + $0x478] sm:$0xff] }
  0x55   :  { %4890 = vmatprep.subr.bf16.mxu0 %v7301_v55  ;;  %4948 = vmatpush1.bf16.msra.mxu1 %v7309_v14  ;;  %v9203_v14 = vmov 3   ;;  %9518 = vst [vmem:[#allocation58_spill] sm:$0xff] %v7363_v63  ;;  %v941_v21 = vld [vmem:[#allocation3 + $0x3e0] sm:$0xff]  ;;  %v7555_v36 = vpack.c.bf16 %v960_v47, %v954_v52 }
  0x56   :  { %4950 = vmatprep.subr.bf16.mxu1 %v7316_v25  ;;  %6873 = vset.pattern.permute.xlu1 %v9203_v14  ;;  %v969_v14 = vld [vmem:[#allocation3 + $0x4c0] sm:$0xff]  ;;  %v7348_v25 = vpack.c.bf16 %v992_v20, %v986_v60  ;;  %v7357_v60 = vpack.c.bf16 %v991_v50, %v985_v42  ;;  %v975_v20 = vld [vmem:[#allocation3 + $0x4f0] sm:$0xff]  ;;  %v9520_v42 = vmov 0  }
  0x57   :  { %374 = vperm.xlu1 %6873, %v7306_v12   ;;  %v7353_v1 = vpack.c.bf16 %v969_v14, %v963_v53  ;;  %v988_v14 = vld [vmem:[#allocation3 + $0x558] sm:$0xff]  ;;  %v994_v53 = vld [vmem:[#allocation3 + $0x588] sm:$0xff]  ;;  %9573 = vst [vmem:[#allocation110_spill] sm:$0xff] %v7555_v36 }
  0x58   :  { %4892 = vmatpush1.bf16.msra.mxu0 %v7313_v15  ;;  %9514 = vst [vmem:[#allocation54_spill] sm:$0xff] %v7348_v25  ;;  %9516 = vst [vmem:[#allocation56_spill] sm:$0xff] %v7357_v60 }
  0x59   :  { %4894 = vmatprep.subr.bf16.mxu0 %v7319_v34  ;;  %4952 = vmatpush1.bf16.msra.mxu1 %v7323_v49  ;;  %v982_v49 = vld [vmem:[#allocation3 + $0x528] sm:$0xff]  ;;  %9515 = vst [vmem:[#allocation55_spill] sm:$0xff] %v7353_v1  ;;  %v1041_v34 = vld [vmem:[#allocation6 + $0xf8] sm:$0xff] }
  0x5a   :  { %4954 = vmatprep.subr.bf16.mxu1 %v7330_v7  ;;  %v7360_v33 = vpack.c.bf16 %v982_v49, %v976_v45  ;;  %v7374_v49 = vpack.c.bf16 %v994_v53, %v988_v14  ;;  %v9523_v7 = vmov 2   ;;  %v9526_v14 = vmov 0.0  }
  0x5b   :  { %6874 = vset.pattern.permute.xlu1 %v9215_v23  ;;  %v981_v23 = vld [vmem:[#allocation3 + $0x520] sm:$0xff]  ;;  %6878 = vset.pattern.permute.xlu0 %v9523_v7  ;;  %v828_v7 = vld [vmem:[#allocation3 + $0x58] sm:$0xff] }
  0x5c   :  { %4896 = vmatpush1.bf16.msra.mxu0 %v7327_v62  ;;  %466 = vperm.xlu1 %6874, %v7306_v12   ;;  %9517 = vst [vmem:[#allocation57_spill] sm:$0xff] %v7360_v33  ;;  %v7367_v50 = vpack.c.bf16 %v981_v23, %v975_v20  ;;  %9522 = vst [vmem:[#allocation61_spill] sm:$0xff] %v7374_v49  ;;  %v1006_v12 = vld [vmem:[#allocation3 + $0x5e8] sm:$0xff]  ;;  %v7379_v23 = vpack.c.bf16 %v993_v9, %v987_v0  ;;  %v1005_v20 = vld [vmem:[#allocation3 + $0x5e0] sm:$0xff] }
  0x5d   :  { %4898 = vmatprep.subr.bf16.mxu0 %v7333_v2  ;;  %4956 = vmatpush1.bf16.msra.mxu1 %v7339_v35  ;;  %v1003_v35 = vld [vmem:[#allocation3 + $0x5d0] sm:$0xff]  ;;  %v821_v0 = vld [vmem:[#allocation3 + $0x20] sm:$0xff] }
  0x5e   :  { %4958 = vmatprep.subr.bf16.mxu1 %v7345_v51  ;;  %9519 = vst [vmem:[#allocation59_spill] sm:$0xff] %v7367_v50  ;;  %v7371_v45 = vpack.c.bf16 %v1003_v35, %v997_v27  ;;  %v1000_v51 = vld [vmem:[#allocation3 + $0x5b8] sm:$0xff]  ;;  %9524 = vst [vmem:[#allocation62_spill] sm:$0xff] %v7379_v23  ;;  %v999_v27 = vld [vmem:[#allocation3 + $0x5b0] sm:$0xff] }
  0x5f   :  { %v7383_v35 = vpack.c.bf16 %v1006_v12, %v1000_v51  ;;  %v7387_v53 = vpack.c.bf16 %v1005_v20, %v999_v27  ;;  %v834_v51 = vld [vmem:[#allocation3 + $0x88] sm:$0xff]  ;;  %v840_v12 = vld [vmem:[#allocation3 + $0xb8] sm:$0xff] }
  0x60   :  { %4900 = vmatpush1.bf16.msra.mxu0 %v7342_v37  ;;  %6876 = vset.pattern.permute.xlu1 %v9520_v42  ;;  %9521 = vst [vmem:[#allocation60_spill] sm:$0xff] %v7371_v45  ;;  %v822_v42 = vld [vmem:[#allocation3 + $0x28] sm:$0xff]  ;;  %v852_v20 = vld [vmem:[#allocation3 + $0x118] sm:$0xff] }
  0x61   :  { %4902 = vmatprep.subr.bf16.mxu0 %v7348_v25  ;;  %4960 = vmatpush1.bf16.msra.mxu1 %v7353_v1  ;;  %9525 = vst [vmem:[#allocation63_spill] sm:$0xff] %v7383_v35  ;;  %9527 = vst [vmem:[#allocation64_spill] sm:$0xff] %v7387_v53  ;;  %v7391_v9 = vpack.c.bf16 %v828_v7, %v822_v42  ;;  %v833_v1 = vld [vmem:[#allocation3 + $0x80] sm:$0xff]  ;;  %v846_v27 = vld [vmem:[#allocation3 + $0xe8] sm:$0xff] }
  0x62   :  { %4962 = vmatprep.subr.bf16.mxu1 %v7360_v33  ;;  %v7395_v33 = vpack.c.bf16 %v840_v12, %v834_v51  ;;  %v7403_v7 = vpack.c.bf16 %v852_v20, %v846_v27  ;;  %v845_v42 = vld [vmem:[#allocation3 + $0xe0] sm:$0xff]  ;;  %v864_v51 = vld [vmem:[#allocation3 + $0x178] sm:$0xff]  ;;  %v870_v27 = vld [vmem:[#allocation3 + $0x1a8] sm:$0xff] }
  0x63   :  { %9528 = vst [vmem:[#allocation65_spill] sm:$0xff] %v7391_v9  ;;  %v876_v20 = vld [vmem:[#allocation3 + $0x1d8] sm:$0xff] }
  0x64   :  { %4904 = vmatpush1.bf16.msra.mxu0 %v7357_v60  ;;  %9530 = vst [vmem:[#allocation67_spill] sm:$0xff] %v7395_v33  ;;  %9532 = vst [vmem:[#allocation69_spill] sm:$0xff] %v7403_v7  ;;  %v1034_v60 = vld [vmem:[#allocation6 + $0xc0] sm:$0xff]  ;;  %v1037_v25 = vld [vmem:[#allocation6 + $0xd8] sm:$0xff] }
  0x65   :  { %4906 = vmatprep.subr.bf16.mxu0 %v7363_v63  ;;  %4964 = vmatpush1.bf16.msra.mxu1 %v7367_v50 }
  0x66   :  { %4966 = vmatprep.subr.bf16.mxu1 %v7374_v49  ;;  %v827_v49 = vld [vmem:[#allocation3 + $0x50] sm:$0xff] }
  0x67   :  { %v7393_v50 = vpack.c.bf16 %v827_v49, %v821_v0  ;;  %v851_v49 = vld [vmem:[#allocation3 + $0x110] sm:$0xff]  ;;  %v858_v0 = vld [vmem:[#allocation3 + $0x148] sm:$0xff] }
  0x68   :  { %4908 = vmatpush1.bf16.msra.mxu0 %v7371_v45  ;;  %v7408_v12 = vpack.c.bf16 %v851_v49, %v845_v42  ;;  %v882_v42 = vld [vmem:[#allocation3 + $0x208] sm:$0xff]  ;;  %v888_v49 = vld [vmem:[#allocation3 + $0x238] sm:$0xff]  ;;  %v7099_v45 = vmov 1983009808  }
  0x69   :  { %4968 = vmatpush1.bf16.msra.mxu1 %v7379_v23  ;;  %9529 = vst [vmem:[#allocation66_spill] sm:$0xff] %v7393_v50  ;;  %v839_v23 = vld [vmem:[#allocation3 + $0xb0] sm:$0xff]  ;;  %4974 = vmatprep.subr.bf16.mxu0 %v7391_v9  ;;  %v1038_v9 = vld [vmem:[#allocation6 + $0xe0] sm:$0xff] }
  0x6a   :  { %4970 = vmatprep.subr.bf16.mxu1 %v7383_v35  ;;  %v7400_v35 = vpack.c.bf16 %v839_v23, %v833_v1  ;;  %9533 = vst [vmem:[#allocation70_spill] sm:$0xff] %v7408_v12  ;;  %v7411_v1 = vpack.c.bf16 %v864_v51, %v858_v0  ;;  %v857_v23 = vld [vmem:[#allocation3 + $0x140] sm:$0xff]  ;;  %v7423_v51 = vpack.c.bf16 %v888_v49, %v882_v42  ;;  %v906_v42 = vld [vmem:[#allocation3 + $0x2c8] sm:$0xff]  ;;  %v912_v49 = vld [vmem:[#allocation3 + $0x2f8] sm:$0xff] }
  0x6b   :  { %1155 = vmatmul.mubr.f32.vlgmr.msra.gmra.mrb[0].mxu0 %v9526_v14 }
  0x6c   :  { %1296 = vmatprep.mubr.f32.mxu0 %v9526_v14  ;;  %4976 = vmatpush1.bf16.msra.mxu0 %v7393_v50  ;;  %9531 = vst [vmem:[#allocation68_spill] sm:$0xff] %v7400_v35  ;;  %9534 = vst [vmem:[#allocation71_spill] sm:$0xff] %v7411_v1 }
  0x6d   :  { %4972 = vmatpush1.bf16.msra.mxu1 %v7387_v53  ;;  %4978 = vmatprep.subr.bf16.mxu0 %v7395_v33  ;;  %v863_v33 = vld [vmem:[#allocation3 + $0x170] sm:$0xff]  ;;  %v7417_v53 = vpack.c.bf16 %v876_v20, %v870_v27  ;;  %9538 = vst [vmem:[#allocation75_spill] sm:$0xff] %v7423_v51  ;;  %v900_v27 = vld [vmem:[#allocation3 + $0x298] sm:$0xff] }
  0x6e   :  { %v7414_v50 = vpack.c.bf16 %v863_v33, %v857_v23  ;;  %v894_v23 = vld [vmem:[#allocation3 + $0x268] sm:$0xff] }
  0x6f   :  { %9536 = vst [vmem:[#allocation73_spill] sm:$0xff] %v7417_v53  ;;  %v7430_v20 = vpack.c.bf16 %v900_v27, %v894_v23  ;;  %v1014_v23 = vld [vmem:[#allocation6 + $0x20] sm:$0xff] }
  0x70   :  { %1226 = vmatmul.mubr.f32.vlgmr.msra.gmra.mrb[0].mxu1 %v9526_v14  ;;  %4980 = vmatpush1.bf16.msra.mxu0 %v7400_v35  ;;  %9535 = vst [vmem:[#allocation72_spill] sm:$0xff] %v7414_v50  ;;  %v875_v35 = vld [vmem:[#allocation3 + $0x1d0] sm:$0xff] }
  0x71   :  { %1406 = vmatprep.mubr.f32.mxu1 %v9526_v14  ;;  %4982 = vmatprep.subr.bf16.mxu0 %v7403_v7  ;;  %v7420_v0 = vpack.c.bf16 %v875_v35, %v869_v18  ;;  %v881_v7 = vld [vmem:[#allocation3 + $0x200] sm:$0xff]  ;;  %9540 = vst [vmem:[#allocation77_spill] sm:$0xff] %v7430_v20  ;;  %v899_v35 = vld [vmem:[#allocation3 + $0x290] sm:$0xff] }
  0x72   :  { %v893_v18 = vld [vmem:[#allocation3 + $0x260] sm:$0xff] }
  0x73   :  { %9537 = vst [vmem:[#allocation74_spill] sm:$0xff] %v7420_v0 }
  0x74   :  { %4984 = vmatpush1.bf16.msra.mxu0 %v7408_v12  ;;  %v887_v12 = vld [vmem:[#allocation3 + $0x230] sm:$0xff] }
  0x75   :  { %4986 = vmatprep.subr.bf16.mxu0 %v7411_v1  ;;  %v7426_v33 = vpack.c.bf16 %v887_v12, %v881_v7  ;;  %v112_v7 = vlaneseq  ;;  %v7436_v12 = vpack.c.bf16 %v912_v49, %v906_v42  ;;  %v924_v1 = vld [vmem:[#allocation3 + $0x358] sm:$0xff]  ;;  %v923_v49 = vld [vmem:[#allocation3 + $0x350] sm:$0xff] }
  0x77   :  { %9539 = vst [vmem:[#allocation76_spill] sm:$0xff] %v7426_v33  ;;  %9542 = vst [vmem:[#allocation79_spill] sm:$0xff] %v7436_v12  ;;  %v7446_v42 = vshrl.u32 %v112_v7, 7  ;;  %v7460_v7 = vld [vmem:[%s9184_s1] sm:$0x3f] }
  0x78   :  { %4988 = vmatpush1.bf16.msra.mxu0 %v7414_v50  ;;  %v7432_v50 = vpack.c.bf16 %v899_v35, %v893_v18  ;;  %v1010_v18 = vld [vmem:[#allocation6] sm:$0xff]  ;;  %v1013_v35 = vld [vmem:[#allocation6 + $0x18] sm:$0xff] }
  0x79   :  { %4990 = vmatprep.subr.bf16.mxu0 %v7417_v53  ;;  %v1011_v53 = vld [vmem:[#allocation6 + $0x8] sm:$0xff]  ;;  %v7563_v29 = vsub.s32 5, %v7446_v42 }
  0x7a   :  { %9541 = vst [vmem:[#allocation78_spill] sm:$0xff] %v7432_v50  ;;  %v7441_v27 = vpack.c.bf16 %v1014_v23, %v1011_v53  ;;  %v1017_v23 = vld [vmem:[#allocation6 + $0x38] sm:$0xff] }
  0x7b   :  { %v7612_v2 = vrot.slane %v7460_v7, %v7563_v29 }
  0x7c   :  { %4992 = vmatpush1.bf16.msra.mxu0 %v7420_v0  ;;  %v911_v0 = vld [vmem:[#allocation3 + $0x2f0] sm:$0xff]  ;;  %9544 = vst [vmem:[#allocation81_spill] sm:$0xff] %v7441_v27  ;;  %5038 = vmatprep.subr.bf16.mxu1 %v7441_v27  ;;  %v1026_v27 = vld [vmem:[#allocation6 + $0x80] sm:$0xff] }
  0x7d   :  { %4994 = vmatprep.subr.bf16.mxu0 %v7423_v51  ;;  %v905_v51 = vld [vmem:[#allocation3 + $0x2c0] sm:$0xff] }
  0x80   :  { %4996 = vmatpush1.bf16.msra.mxu0 %v7426_v33  ;;  %v7438_v33 = vpack.c.bf16 %v911_v0, %v905_v51  ;;  %v917_v51 = vld [vmem:[#allocation3 + $0x320] sm:$0xff] }
  0x81   :  { %4998 = vmatprep.subr.bf16.mxu0 %v7430_v20  ;;  %v918_v20 = vld [vmem:[#allocation3 + $0x328] sm:$0xff]  ;;  %v7452_v53 = vpack.c.bf16 %v923_v49, %v917_v51  ;;  %v936_v51 = vld [vmem:[#allocation3 + $0x3b8] sm:$0xff] }
  0x82   :  { %9543 = vst [vmem:[#allocation80_spill] sm:$0xff] %v7438_v33  ;;  %v7449_v0 = vpack.c.bf16 %v924_v1, %v918_v20  ;;  %v930_v20 = vld [vmem:[#allocation3 + $0x388] sm:$0xff]  ;;  %v7468_v49 = vld [vmem:[%s9184_s1 + $0x8] sm:$0x3f] }
  0x83   :  { %9547 = vst [vmem:[#allocation84_spill] sm:$0xff] %v7452_v53 }
  0x84   :  { %5000 = vmatpush1.bf16.msra.mxu0 %v7432_v50  ;;  %v7444_v50 = vpack.c.bf16 %v1013_v35, %v1010_v18  ;;  %9546 = vst [vmem:[#allocation83_spill] sm:$0xff] %v7449_v0  ;;  %v1016_v35 = vld [vmem:[#allocation6 + $0x30] sm:$0xff] }
  0x85   :  { %5002 = vmatprep.subr.bf16.mxu0 %v7436_v12  ;;  %v1020_v12 = vld [vmem:[#allocation6 + $0x50] sm:$0xff] }
  0x86   :  { %9545 = vst [vmem:[#allocation82_spill] sm:$0xff] %v7444_v50  ;;  %5040 = vmatpush1.bf16.msra.mxu1 %v7444_v50  ;;  %v7455_v18 = vpack.c.bf16 %v1020_v12, %v1017_v23  ;;  %v7471_v12 = vsub.s32 0, %v7446_v42  ;;  %v7474_v23 = vpack.c.bf16 %v936_v51, %v930_v20  ;;  %v935_v50 = vld [vmem:[#allocation3 + $0x3b0] sm:$0xff]  ;;  %v7488_v20 = vsub.s32 1, %v7446_v42 }
  0x87   :  { %v7491_v51 = vsub.s32 2, %v7446_v42 }
  0x88   :  { %5004 = vmatpush1.bf16.msra.mxu0 %v7438_v33  ;;  %9548 = vst [vmem:[#allocation85_spill] sm:$0xff] %v7455_v18  ;;  %v1019_v33 = vld [vmem:[#allocation6 + $0x48] sm:$0xff]  ;;  %9550 = vst [vmem:[#allocation87_spill] sm:$0xff] %v7471_v12  ;;  %5042 = vmatprep.subr.bf16.mxu1 %v7455_v18  ;;  %v7501_v38 = vrot.slane %v7460_v7, %v7471_v12  ;;  %v7560_v30 = vrot.slane %v7468_v49, %v7488_v20 }
  0x89   :  { %5006 = vmatprep.subr.bf16.mxu0 %v7449_v0  ;;  %v7463_v1 = vpack.c.bf16 %v1019_v33, %v1016_v35  ;;  %9551 = vst [vmem:[#allocation88_spill] sm:$0xff] %v7474_v23  ;;  %v929_v0 = vld [vmem:[#allocation3 + $0x380] sm:$0xff]  ;;  %9553 = vst [vmem:[#allocation90_spill] sm:$0xff] %v7488_v20  ;;  %v7528_v8 = vrot.slane %v7460_v7, %v7491_v51 }
  0x8a   :  { %v7479_v33 = vld [vmem:[%s9184_s1 + $0x10] sm:$0x3f]  ;;  %v7482_v35 = vpack.c.bf16 %v935_v50, %v929_v0  ;;  %9554 = vst [vmem:[#allocation91_spill] sm:$0xff] %v7491_v51  ;;  %v942_v0 = vld [vmem:[#allocation3 + $0x3e8] sm:$0xff]  ;;  %9557 = vst [vmem:[#allocation94_spill] sm:$0xff] %v7501_v38 }
  0x8b   :  { %9549 = vst [vmem:[#allocation86_spill] sm:$0xff] %v7463_v1  ;;  %5044 = vmatpush1.bf16.msra.mxu1 %v7463_v1  ;;  %v1025_v1 = vld [vmem:[#allocation6 + $0x78] sm:$0xff]  ;;  %v7504_v24 = vpack.c.bf16 %v948_v43, %v942_v0  ;;  %v1032_v43 = vld [vmem:[#allocation6 + $0xb0] sm:$0xff]  ;;  %v7521_v0 = vrot.slane %v148_v61, %v7488_v20  ;;  %9565 = vst [vmem:[#allocation102_spill] sm:$0xff] %v7528_v8 }
  0x8c   :  { %5008 = vmatpush1.bf16.msra.mxu0 %v7452_v53  ;;  %9552 = vst [vmem:[#allocation89_spill] sm:$0xff] %v7482_v35  ;;  %v1023_v53 = vld [vmem:[#allocation6 + $0x68] sm:$0xff]  ;;  %v7497_v50 = vpack.c.bf16 %v1025_v1, %v1022_v57  ;;  %v7512_v57 = vrot.slane %v7479_v33, %v7471_v12  ;;  %9574 = vst [vmem:[#allocation111_spill] sm:$0xff] %v7560_v30 }
  0x8d   :  { %5010 = vmatprep.subr.bf16.mxu0 %v7474_v23  ;;  %v7494_v18 = vpack.c.bf16 %v1026_v27, %v1023_v53  ;;  %9558 = vst [vmem:[#allocation95_spill] sm:$0xff] %v7504_v24  ;;  %v947_v23 = vld [vmem:[#allocation3 + $0x410] sm:$0xff]  ;;  %v7508_v27 = vrot.slane %v7468_v49, %v7471_v12  ;;  %v7515_v53 = vrot.slane %v148_v61, %v7471_v12  ;;  %9563 = vst [vmem:[#allocation100_spill] sm:$0xff] %v7521_v0  ;;  %v1035_v12 = vld [vmem:[#allocation6 + $0xc8] sm:$0xff] }
  0x8e   :  { %9556 = vst [vmem:[#allocation93_spill] sm:$0xff] %v7497_v50  ;;  %9560 = vst [vmem:[#allocation97_spill] sm:$0xff] %v7512_v57  ;;  %v7518_v1 = vpack.c.bf16 %v947_v23, %v941_v21  ;;  %v7535_v21 = vrot.slane %v7468_v49, %v7491_v51  ;;  %v7538_v23 = vsub.s32 3, %v7446_v42  ;;  %v7573_v63 = vpack.c.bf16 %v1038_v9, %v1035_v12  ;;  %v966_v9 = vld [vmem:[#allocation3 + $0x4a8] sm:$0xff]  ;;  %v972_v12 = vld [vmem:[#allocation3 + $0x4d8] sm:$0xff] }
  0x8f   :  { %9555 = vst [vmem:[#allocation92_spill] sm:$0xff] %v7494_v18  ;;  %5046 = vmatprep.subr.bf16.mxu1 %v7494_v18  ;;  %9559 = vst [vmem:[#allocation96_spill] sm:$0xff] %v7508_v27  ;;  %v7524_v18 = vrot.slane %v148_v61, %v7491_v51 }
  0x90   :  { %5012 = vmatpush1.bf16.msra.mxu0 %v7482_v35  ;;  %9561 = vst [vmem:[#allocation98_spill] sm:$0xff] %v7515_v53  ;;  %5048 = vmatpush1.bf16.msra.mxu1 %v7497_v50  ;;  %9562 = vst [vmem:[#allocation99_spill] sm:$0xff] %v7518_v1  ;;  %v1029_v35 = vld [vmem:[#allocation6 + $0x98] sm:$0xff]  ;;  %v1031_v50 = vld [vmem:[#allocation6 + $0xa8] sm:$0xff] }
  0x91   :  { %9564 = vst [vmem:[#allocation101_spill] sm:$0xff] %v7524_v18  ;;  %5014 = vmatprep.subr.bf16.mxu0 %v7504_v24  ;;  %v7531_v4 = vpack.c.bf16 %v1032_v43, %v1029_v35  ;;  %9567 = vst [vmem:[#allocation104_spill] sm:$0xff] %v7535_v21  ;;  %v7541_v61 = vpack.c.bf16 %v1031_v50, %v1028_v56  ;;  %v7545_v35 = vrot.slane %v7479_v33, %v7491_v51  ;;  %v953_v56 = vld [vmem:[#allocation3 + $0x440] sm:$0xff]  ;;  %v959_v50 = vld [vmem:[#allocation3 + $0x470] sm:$0xff] }
  0x92   :  { %9568 = vst [vmem:[#allocation105_spill] sm:$0xff] %v7538_v23  ;;  %v7549_v43 = vrot.slane %v7460_v7, %v7488_v20  ;;  %v7552_v24 = vsub.s32 4, %v7446_v42  ;;  %v7566_v51 = vpack.c.bf16 %v959_v50, %v953_v56  ;;  %9576 = vst [vmem:[#allocation113_spill] sm:$0xff] %v7573_v63  ;;  %v7577_v56 = vrot.slane %v7479_v33, %v7488_v20  ;;  %v971_v20 = vld [vmem:[#allocation3 + $0x4d0] sm:$0xff] }
  0x93   :  { %9566 = vst [vmem:[#allocation103_spill] sm:$0xff] %v7531_v4  ;;  %9569 = vst [vmem:[#allocation106_spill] sm:$0xff] %v7541_v61  ;;  %5050 = vmatprep.subr.bf16.mxu1 %v7531_v4  ;;  %v7581_v50 = vrot.slane %v7460_v7, %v7538_v23 }
  0x94   :  { %5016 = vmatpush1.bf16.msra.mxu0 %v7518_v1  ;;  %9570 = vst [vmem:[#allocation107_spill] sm:$0xff] %v7545_v35  ;;  %9571 = vst [vmem:[#allocation108_spill] sm:$0xff] %v7549_v43  ;;  %5052 = vmatpush1.bf16.msra.mxu1 %v7541_v61  ;;  %v7603_v61 = vpack.c.bf16 %v972_v12, %v966_v9  ;;  %v7608_v37 = vrot.slane %v7479_v33, %v7552_v24  ;;  %v1040_v12 = vld [vmem:[#allocation6 + $0xf0] sm:$0xff] }
  0x95   :  { %9572 = vst [vmem:[#allocation109_spill] sm:$0xff] %v7552_v24  ;;  %9575 = vst [vmem:[#allocation112_spill] sm:$0xff] %v7566_v51  ;;  %5018 = vmatprep.subr.bf16.mxu0 %v7555_v36  ;;  %5054 = vmatprep.subr.bf16.mxu1 %v7573_v63  ;;  %v7601_v36 = vpack.c.bf16 %v1037_v25, %v1034_v60  ;;  %v1044_v63 = vld [vmem:[#allocation6 + $0x110] sm:$0xff] }
  0x96   :  { %9577 = vst [vmem:[#allocation114_spill] sm:$0xff] %v7577_v56  ;;  %9578 = vst [vmem:[#allocation115_spill] sm:$0xff] %v7581_v50 }
  0x97   :  { %9580 = vst [vmem:[#allocation117_spill] sm:$0xff] %v7601_v36  ;;  %9581 = vst [vmem:[#allocation118_spill] sm:$0xff] %v7603_v61 }
  0x98   :  { %5020 = vmatpush1.bf16.msra.mxu0 %v7566_v51  ;;  %5056 = vmatpush1.bf16.msra.mxu1 %v7601_v36 }
  0x99   :  { %5022 = vmatprep.subr.bf16.mxu0 %v7603_v61 }
  0xc9   :  { %v75_v39 = vpop.permute.xlu0 %74 }
  0xca   :  { %v124_v1 = vmul.f32 %v7501_v38, %v75_v39  ;;  %v125_v47 = vmul.f32 %v7508_v27, %v75_v39  ;;  %v126_v52 = vmul.f32 %v7512_v57, %v75_v39  ;;  %v283_v4 = vpop.permute.xlu1 %282  ;;  %v7570_v38 = vunpack.c.l.s4 %v7099_v45 }
  0xcb   :  { %v7585_v39 = vrot.slane %v7468_v49, %v7538_v23  ;;  %v7589_v45 = vrot.slane %v7479_v33, %v7538_v23  ;;  %v7594_v57 = vrot.slane %v7460_v7, %v7552_v24  ;;  %v7598_v27 = vrot.slane %v7468_v49, %v7552_v24  ;;  %v965_v23 = vld [vmem:[#allocation3 + $0x4a0] sm:$0xff] }
  0xcc   :  { %v165_v51 = vadd.f32 %v7515_v53, %v124_v1  ;;  %v7614_v62 = vpack.c.bf16 %v971_v20, %v965_v23  ;;  %v166_v25 = vadd.f32 %v7521_v0, %v125_v47  ;;  %v167_v60 = vadd.f32 %v7524_v18, %v126_v52  ;;  %v1043_v53 = vld [vmem:[#allocation6 + $0x108] sm:$0xff]  ;;  %v984_v18 = vld [vmem:[#allocation3 + $0x538] sm:$0xff] }
  0xcd   :  { %9579 = vst [vmem:[#allocation116_spill] sm:$0xff] %v7598_v27  ;;  %v676_v9 = vunpack.c.0.s8 %v7570_v38  ;;  %v7621_v1 = vpack.c.bf16 %v1044_v63, %v1041_v34  ;;  %v325_v7 = vmul.f32 %v7528_v8, %v283_v4  ;;  %v326_v20 = vmul.f32 %v7535_v21, %v283_v4  ;;  %v978_v38 = vld [vmem:[#allocation3 + $0x508] sm:$0xff]  ;;  %v977_v21 = vld [vmem:[#allocation3 + $0x500] sm:$0xff] }
  0xce   :  { %9582 = vst [vmem:[#allocation119_spill] sm:$0xff] %v7614_v62  ;;  %v327_v23 = vmul.f32 %v7545_v35, %v283_v4  ;;  %v191_v24 = vpop.permute.xlu0 %190  ;;  %5024 = vmatpush1.bf16.msra.mxu0 %v7614_v62  ;;  %v7627_v52 = vpack.c.bf16 %v1043_v53, %v1040_v12  ;;  %v983_v4 = vld [vmem:[#allocation3 + $0x530] sm:$0xff]  ;;  %v7636_v53 = vpack.c.bf16 %v984_v18, %v978_v38  ;;  %v1047_v0 = vld [vmem:[#allocation6 + $0x128] sm:$0xff] }
  0xcf   :  { %9583 = vst [vmem:[#allocation120_spill] sm:$0xff] %v7621_v1  ;;  %v233_v61 = vmul.f32 %v7549_v43, %v191_v24  ;;  %v234_v34 = vmul.f32 %v7560_v30, %v191_v24  ;;  %v235_v63 = vmul.f32 %v7577_v56, %v191_v24  ;;  %5058 = vmatprep.subr.bf16.mxu1 %v7621_v1  ;;  %v1050_v43 = vld [vmem:[#allocation6 + $0x140] sm:$0xff]  ;;  %v1049_v56 = vld [vmem:[#allocation6 + $0x138] sm:$0xff] }
  0xd0   :  { %9584 = vst [vmem:[#allocation121_spill] sm:$0xff] %v7627_v52  ;;  %v7638_v12 = vpack.c.bf16 %v983_v4, %v977_v21  ;;  %5060 = vmatpush1.bf16.msra.mxu1 %v7627_v52  ;;  %v7641_v24 = vpack.c.bf16 %v1050_v43, %v1047_v0  ;;  %v7644_v1 = vsub.s32 %v676_v9, %v7446_v42  ;;  %v996_v0 = vld [vmem:[#allocation3 + $0x598] sm:$0xff]  ;;  %v989_v42 = vld [vmem:[#allocation3 + $0x560] sm:$0xff] }
  0xd1   :  { %v257_v36 = vadd.f32 %v233_v61, %v165_v51  ;;  %v258_v30 = vadd.f32 %v234_v34, %v166_v25  ;;  %v259_v15 = vadd.f32 %v235_v63, %v167_v60  ;;  %v7648_v18 = vrot.slane %v7468_v49, %v7563_v29  ;;  %5026 = vmatprep.subr.bf16.mxu0 %v7636_v53  ;;  %v990_v61 = vld [vmem:[#allocation3 + $0x568] sm:$0xff]  ;;  %v995_v49 = vld [vmem:[#allocation3 + $0x590] sm:$0xff] }
  0xd2   :  { %9585 = vst [vmem:[#allocation122_spill] sm:$0xff] %v7641_v24  ;;  %v7652_v21 = vrot.slane %v7479_v33, %v7563_v29  ;;  %5028 = vmatpush1.bf16.msra.mxu0 %v7638_v12  ;;  %5062 = vmatprep.subr.bf16.mxu1 %v7641_v24  ;;  %v1056_v34 = vld [vmem:[#allocation6 + $0x170] sm:$0xff]  ;;  %v1055_v63 = vld [vmem:[#allocation6 + $0x168] sm:$0xff] }
  0xd3   :  { %v349_v43 = vadd.f32 %v325_v7, %v257_v36  ;;  %v350_v25 = vadd.f32 %v326_v20, %v258_v30  ;;  %v351_v60 = vadd.f32 %v327_v23, %v259_v15  ;;  %v559_v7 = vpop.permute.xlu0 %558  ;;  %v7665_v20 = vpack.c.bf16 %v995_v49, %v989_v42  ;;  %v1052_v23 = vld [vmem:[#allocation6 + $0x150] sm:$0xff] }
  0xd4   :  { %9586 = vst [vmem:[#allocation123_spill] sm:$0xff] %v7652_v21  ;;  %v601_v4 = vmul.f32 %v7612_v2, %v559_v7  ;;  %v1007_v42 = vld [vmem:[#allocation3 + $0x5f0] sm:$0xff] }
  0xd6   :  { %v375_v47 = vpop.permute.xlu1 %374 }
  0xd7   :  { %v417_v8 = vmul.f32 %v7581_v50, %v375_v47  ;;  %v418_v35 = vmul.f32 %v7585_v39, %v375_v47  ;;  %v419_v62 = vmul.f32 %v7589_v45, %v375_v47  ;;  %v1046_v50 = vld [vmem:[#allocation6 + $0x120] sm:$0xff] }
  0xd8   :  { %v7655_v51 = vpack.c.bf16 %v1049_v56, %v1046_v50  ;;  %v7662_v56 = vpack.c.bf16 %v996_v0, %v990_v61  ;;  %v1053_v50 = vld [vmem:[#allocation6 + $0x158] sm:$0xff] }
  0xd9   :  { %v441_v36 = vadd.f32 %v417_v8, %v349_v43  ;;  %v442_v30 = vadd.f32 %v418_v35, %v350_v25  ;;  %v443_v15 = vadd.f32 %v419_v62, %v351_v60  ;;  %v7671_v61 = vpack.c.bf16 %v1056_v34, %v1053_v50  ;;  %v1002_v8 = vld [vmem:[#allocation3 + $0x5c8] sm:$0xff]  ;;  %v1008_v35 = vld [vmem:[#allocation3 + $0x5f8] sm:$0xff]  ;;  %v1001_v60 = vld [vmem:[#allocation3 + $0x5c0] sm:$0xff] }
  0xda   :  { %9587 = vst [vmem:[#allocation124_spill] sm:$0xff] %v7655_v51  ;;  %5064 = vmatpush1.bf16.msra.mxu1 %v7655_v51  ;;  %5030 = vmatprep.subr.bf16.mxu0 %v7662_v56  ;;  %v7674_v25 = vpack.c.bf16 %v1055_v63, %v1052_v23  ;;  %v7677_v49 = vpack.c.bf16 %v1008_v35, %v1002_v8  ;;  %v9593_v23 = vld [vmem:[#allocation50_spill] sm:$0xff]  ;;  %v9594_v63 = vld [vmem:[#allocation52_spill] sm:$0xff] }
  0xdb   :  { %v467_v47 = vpop.permute.xlu1 %466  ;;  %9588 = vst [vmem:[#allocation125_spill] sm:$0xff] %v7671_v61  ;;  %5032 = vmatpush1.bf16.msra.mxu0 %v7665_v20  ;;  %5066 = vmatprep.subr.bf16.mxu1 %v7671_v61  ;;  %v9597_v8 = vld [vmem:[#allocation58_spill] sm:$0xff]  ;;  %v9598_v35 = vld [vmem:[#allocation60_spill] sm:$0xff] }
  0xdc   :  { %v509_v9 = vmul.f32 %v7594_v57, %v467_v47  ;;  %v510_v33 = vmul.f32 %v7598_v27, %v467_v47  ;;  %v511_v38 = vmul.f32 %v7608_v37, %v467_v47  ;;  %v602_v27 = vmul.f32 %v7648_v18, %v559_v7  ;;  %9589 = vst [vmem:[#allocation126_spill] sm:$0xff] %v7674_v25 }
  0xdd   :  { %v603_v47 = vmul.f32 %v7652_v21, %v559_v7  ;;  %v7679_v7 = vpack.c.bf16 %v1007_v42, %v1001_v60  ;;  %5034 = vmatprep.subr.bf16.mxu0 %v7677_v49  ;;  %v9602_v42 = vld [vmem:[#allocation90_spill] sm:$0xff] }
  0xde   :  { %v533_v62 = vadd.f32 %v509_v9, %v441_v36  ;;  %v534_v0 = vadd.f32 %v510_v33, %v442_v30  ;;  %v535_v43 = vadd.f32 %v511_v38, %v443_v15  ;;  %5068 = vmatpush1.bf16.msra.mxu1 %v7674_v25  ;;  %v9401_v9 = vmov 0.0|0.0   ;;  %v9591_v30 = vld [vmem:[#allocation46_spill] sm:$0xff]  ;;  %v9592_v15 = vld [vmem:[#allocation48_spill] sm:$0xff] }
  0xdf   :  { %5069 = vmatprep.subr.bf16.mxu1 %v9401_v9  ;;  %5036 = vmatpush1.bf16.msra.mxu0 %v7679_v7 }
  0xe0   :  { %v625_v21 = vadd.f32 %v601_v4, %v533_v62  ;;  %v626_v50 = vadd.f32 %v602_v27, %v534_v0  ;;  %v627_v34 = vadd.f32 %v603_v47, %v535_v43  ;;  %5094 = vmatprep.subr.bf16.mxu0 %v7181_v6  ;;  %v9595_v4 = vld [vmem:[#allocation54_spill] sm:$0xff]  ;;  %v9596_v47 = vld [vmem:[#allocation56_spill] sm:$0xff]  ;;  %v9599_v62 = vld [vmem:[#allocation65_spill] sm:$0xff] }
  0xe1   :  { %v7724_v0 = vld [vmem:[%s9187_s4] sm:$0x3f]  ;;  %v9600_v43 = vld [vmem:[#allocation87_spill] sm:$0xff] }
  0xe2   :  { %v673_v33 = vcombine.low %v625_v21, %v626_v50  ;;  %v687_v38 = vrot.slane %v627_v34, %v7644_v1  ;;  %1297 = vmatmul.mubr.f32.vlgmr.msra.gmra.mrb[2].mxu0 %v9526_v14  ;;  %v9590_v21 = vld [vmem:[#allocation44_spill] sm:$0xff]  ;;  %v7728_v60 = vrot.slane %v7724_v0, %v9600_v43  ;;  %v7732_v50 = vrot.slane %v7724_v0, %v9602_v42 }
  0xe3   :  { %5096 = vmatpush1.bf16.msra.mxu0 %v7183_v10 }
  0xe4   :  { %v680_v36 = vrot.slane %v673_v33, %v7644_v1  ;;  %5098 = vmatprep.subr.bf16.mxu0 %v7185_v11  ;;  %9601 = vst [vmem:[#allocation87_spill] sm:$0xff] %v7728_v60  ;;  %9603 = vst [vmem:[#allocation90_spill] sm:$0xff] %v7732_v50 }
  0xe6   :  { %v688_v27 = vcombine.low %v680_v36, %v687_v38 }
  0xe7   :  { %5100 = vmatpush1.bf16.msra.mxu0 %v7189_v16 }
  0xe8   :  { %809 = vst [vmem:[#allocation2] sm:$0x3f] %v688_v27  ;;  %5102 = vmatprep.subr.bf16.mxu0 %v7192_v17 }
  0xeb   :  { %5104 = vmatpush1.bf16.msra.mxu0 %v7195_v26 }
  0xec   :  { %5106 = vmatprep.subr.bf16.mxu0 %v7202_v31 }
  0xef   :  { %5108 = vmatpush1.bf16.msra.mxu0 %v7211_v40  ;;  %v1303_v38 = vld [vmem:[#allocation2] sm:$0x3f] }
  0xf0   :  { %5110 = vmatprep.subr.bf16.mxu0 %v7215_v44 }
  0xf3   :  { %5112 = vmatpush1.bf16.msra.mxu0 %v7223_v54 }
  0xf4   :  { %5114 = vmatprep.subr.bf16.mxu0 %v7229_v59 }
  0xf7   :  { %5116 = vmatpush1.bf16.msra.mxu0 %v7235_v5 }
  0xf8   :  { %5118 = vmatprep.subr.bf16.mxu0 %v7241_v13 }
  0xfb   :  { %5120 = vmatpush1.bf16.msra.mxu0 %v7247_v22 }
  0xfc   :  { %5122 = vmatprep.subr.bf16.mxu0 %v7253_v28 }
  0xff   :  { %5124 = vmatpush1.bf16.msra.mxu0 %v7259_v41 }
 0x100   :  { %5126 = vmatprep.subr.bf16.mxu0 %v7265_v48 }
 0x103   :  { %5128 = vmatpush1.bf16.msra.mxu0 %v7271_v58 }
 0x104   :  { %5130 = vmatprep.subr.bf16.mxu0 %v7277_v3 }
 0x107   :  { %5132 = vmatpush1.bf16.msra.mxu0 %v7283_v19 }
 0x108   :  { %5134 = vmatprep.subr.bf16.mxu0 %v7289_v32 }
 0x10b   :  { %5136 = vmatpush1.bf16.msra.mxu0 %v7295_v46 }
 0x10c   :  { %5138 = vmatprep.subr.bf16.mxu0 %v7301_v55  ;;  %v1012_v55 = vld [vmem:[#allocation6 + $0x10] sm:$0xff] }
 0x10f   :  { %5140 = vmatpush1.bf16.msra.mxu0 %v9590_v21 }
 0x110   :  { %5142 = vmatprep.subr.bf16.mxu0 %v9591_v30 }
 0x113   :  { %5144 = vmatpush1.bf16.msra.mxu0 %v9592_v15 }
 0x114   :  { %5146 = vmatprep.subr.bf16.mxu0 %v9593_v23  ;;  %v9604_v23 = vld [vmem:[#allocation91_spill] sm:$0xff] }
 0x115   :  { %v7740_v15 = vrot.slane %v7724_v0, %v9604_v23 }
 0x117   :  { %5148 = vmatpush1.bf16.msra.mxu0 %v9594_v63 }
 0x118   :  { %5150 = vmatprep.subr.bf16.mxu0 %v9595_v4 }
 0x11b   :  { %5152 = vmatpush1.bf16.msra.mxu0 %v9596_v47 }
 0x11c   :  { %5154 = vmatprep.subr.bf16.mxu0 %v9597_v8 }
 0x11f   :  { %5156 = vmatpush1.bf16.msra.mxu0 %v9598_v35 }
 0x120   :  { %5222 = vmatprep.subr.bf16.mxu0 %v9599_v62  ;;  %v1310_v62 = vrot.slane %v1303_v38, 2 }
 0x13e   :  { %v1156_v34 = vpop.f32.mrb[0].mxu0 }
 0x13f   :  { %v1157_v33 = vadd.f32 %v1156_v34, %v7728_v60  ;;  %v1158_v36 = vpop.f32.mrb[1].mxu0 }
 0x140   :  { %v1159_v27 = vadd.f32 %v1158_v36, %v7732_v50 }
 0x141   :  { %v1304_v9 = vadd.f32 %v1303_v38, %v1157_v33  ;;  %v1318_v33 = vrot.slane %v1303_v38, 4  ;;  %v1027_v38 = vld [vmem:[#allocation6 + $0x88] sm:$0xff] }
 0x142   :  { %v1312_v8 = vadd.f32 %v1310_v62, %v1159_v27 }
 0x143   :  { %v1305_v35 = vmul.f32 0.5, %v1304_v9  ;;  %v1227_v47 = vpop.f32.mrb[0].mxu1 }
 0x144   :  { %v7736_v4 = vpop.f32.mrb[1].mxu1  ;;  %v1313_v63 = vmul.f32 0.5, %v1312_v8  ;;  %v1228_v34 = vadd.f32 %v1227_v47, %v7740_v15  ;;  %v1015_v8 = vld [vmem:[#allocation6 + $0x28] sm:$0xff]  ;;  %v1018_v47 = vld [vmem:[#allocation6 + $0x40] sm:$0xff] }
 0x145   :  { %6918 = vtanh.f32 %v1305_v35  ;;  %v7743_v19 = vpack.c.bf16 %v1015_v8, %v1012_v55  ;;  %v1033_v55 = vld [vmem:[#allocation6 + $0xb8] sm:$0xff]  ;;  %v1048_v8 = vld [vmem:[#allocation6 + $0x130] sm:$0xff] }
 0x146   :  { %6920 = vtanh.f32 %v1313_v63 }
 0x147   :  { %9605 = vst [vmem:[#allocation91_spill] sm:$0xff] %v7743_v19 }
 0x14f   :  { %v6919_v30 = vpop.eup %6918 }
 0x150   :  { %v1307_v60 = vmul.f32 0.5, %v6919_v30  ;;  %v6921_v50 = vpop.eup %6920  ;;  %v1021_v30 = vld [vmem:[#allocation6 + $0x58] sm:$0xff] }
 0x151   :  { %v1315_v35 = vmul.f32 0.5, %v6921_v50  ;;  %v1024_v50 = vld [vmem:[#allocation6 + $0x70] sm:$0xff] }
 0x152   :  { %v1308_v21 = vadd.f32 0.5, %v1307_v60  ;;  %v9607_v60 = vmov 0.0|0.0  }
 0x153   :  { %v1316_v62 = vadd.f32 0.5, %v1315_v35  ;;  %v1042_v35 = vld [vmem:[#allocation6 + $0x100] sm:$0xff] }
 0x154   :  { %v1317_v36 = vmul.f32 %v1308_v21, %v1228_v34  ;;  %v7749_v21 = vpack.c.bf16 %v1021_v30, %v1018_v47  ;;  %v1054_v30 = vld [vmem:[#allocation6 + $0x160] sm:$0xff] }
 0x155   :  { %v1322_v27 = vsub.f32 1.0, %v1316_v62  ;;  %v1324_v46 = vmul.f32 0.0, %v1316_v62  ;;  %v1045_v62 = vld [vmem:[#allocation6 + $0x118] sm:$0xff] }
 0x156   :  { %v1320_v9 = vadd.f32 %v1318_v33, %v1317_v36  ;;  %9606 = vst [vmem:[#allocation127_spill] sm:$0xff] %v7749_v21  ;;  %v1036_v36 = vld [vmem:[#allocation6 + $0xd0] sm:$0xff]  ;;  %v1039_v33 = vld [vmem:[#allocation6 + $0xe8] sm:$0xff] }
 0x158   :  { %6922 = vtanh.f32 %v1320_v9  ;;  %v7763_v9 = vpack.c.bf16 %v1039_v33, %v1036_v36  ;;  %v9616_v36 = vld [vmem:[#allocation14_spill] sm:$0xff]  ;;  %v9617_v33 = vld [vmem:[#allocation15_spill] sm:$0xff] }
 0x15a   :  { %9610 = vst [vmem:[#allocation130_spill] sm:$0xff] %v7763_v9 }
 0x162   :  { %v6923_v63 = vpop.eup %6922 }
 0x163   :  { %v1323_v32 = vmul.f32 %v6923_v63, %v1322_v27  ;;  %v7767_v27 = vpack.c.bf16 %v1045_v62, %v1042_v35  ;;  %v1051_v63 = vld [vmem:[#allocation6 + $0x148] sm:$0xff] }
 0x164   :  { %v7771_v47 = vpack.c.bf16 %v1051_v63, %v1048_v8  ;;  %v9618_v35 = vld [vmem:[#allocation16_spill] sm:$0xff]  ;;  %v9619_v62 = vld [vmem:[#allocation17_spill] sm:$0xff]  ;;  %v9620_v8 = vld [vmem:[#allocation18_spill] sm:$0xff] }
 0x165   :  { %v7745_v3 = vadd.f32 %v1324_v46, %v1323_v32  ;;  %v7755_v32 = vpack.c.bf16 %v1027_v38, %v1024_v50  ;;  %v1030_v46 = vld [vmem:[#allocation6 + $0xa0] sm:$0xff]  ;;  %9611 = vst [vmem:[#allocation131_spill] sm:$0xff] %v7767_v27  ;;  %v1057_v50 = vld [vmem:[#allocation6 + $0x178] sm:$0xff] }
 0x166   :  { %v7759_v34 = vpack.c.bf16 %v1033_v55, %v1030_v46  ;;  %9612 = vst [vmem:[#allocation132_spill] sm:$0xff] %v7771_v47  ;;  %v7775_v38 = vpack.c.bf16 %v1057_v50, %v1054_v30  ;;  %v9614_v46 = vld [vmem:[#allocation12_spill] sm:$0xff]  ;;  %v9615_v55 = vld [vmem:[#allocation13_spill] sm:$0xff]  ;;  %v9621_v63 = vld [vmem:[#allocation19_spill] sm:$0xff] }
 0x167   :  { %1407 = vmatmul.mubr.f32.vlgmr.msra.gmra.mrb[2].mxu1 %v7745_v3  ;;  %9608 = vst [vmem:[#allocation128_spill] sm:$0xff] %v7755_v32  ;;  %v9622_v30 = vld [vmem:[#allocation21_spill] sm:$0xff]  ;;  %v9623_v50 = vld [vmem:[#allocation23_spill] sm:$0xff] }
 0x168   :  { %5071 = vmatpush3.bf16.msra.mxu1 %v7743_v19  ;;  %4562 = vmatprep.mubr.msk.f32.mxu1 %vm7101_vm0, %v9526_v14  ;;  %9609 = vst [vmem:[#allocation129_spill] sm:$0xff] %v7759_v34  ;;  %9613 = vst [vmem:[#allocation133_spill] sm:$0xff] %v7775_v38 }
 0x169   :  { %5072 = vmatprep.subr.bf16.mxu1 %v9607_v60 }
 0x16c   :  { %5074 = vmatpush3.bf16.msra.mxu1 %v7749_v21 }
 0x16d   :  { %5075 = vmatprep.subr.bf16.mxu1 %v9607_v60 }
 0x170   :  { %5077 = vmatpush3.bf16.msra.mxu1 %v7755_v32 }
 0x171   :  { %5078 = vmatprep.subr.bf16.mxu1 %v9607_v60 }
 0x174   :  { %5080 = vmatpush3.bf16.msra.mxu1 %v7759_v34 }
 0x175   :  { %5081 = vmatprep.subr.bf16.mxu1 %v9607_v60 }
 0x178   :  { %5083 = vmatpush3.bf16.msra.mxu1 %v7763_v9 }
 0x179   :  { %5084 = vmatprep.subr.bf16.mxu1 %v9607_v60 }
 0x17c   :  { %5086 = vmatpush3.bf16.msra.mxu1 %v7767_v27 }
 0x17d   :  { %5087 = vmatprep.subr.bf16.mxu1 %v9607_v60 }
 0x180   :  { %5089 = vmatpush3.bf16.msra.mxu1 %v7771_v47 }
 0x181   :  { %5090 = vmatprep.subr.bf16.mxu1 %v9607_v60 }
 0x184   :  { %5092 = vmatpush3.bf16.msra.mxu1 %v7775_v38  ;;  %v9625_v38 = vld [vmem:[#allocation27_spill] sm:$0xff] }
 0x185   :  { %5158 = vmatprep.subr.bf16.mxu1 %v9614_v46  ;;  %v9624_v46 = vld [vmem:[#allocation25_spill] sm:$0xff] }
 0x187   :  { %4563 = vmatmul.mubr.f32.vlgmr.msra.gmra.mrb[4].mxu1 %v7745_v3 }
 0x188   :  { %5160 = vmatpush1.bf16.msra.mxu1 %v9615_v55  ;;  %v9626_v55 = vld [vmem:[#allocation29_spill] sm:$0xff] }
 0x189   :  { %5162 = vmatprep.subr.bf16.mxu1 %v9616_v36  ;;  %v9627_v36 = vld [vmem:[#allocation31_spill] sm:$0xff] }
 0x18c   :  { %5164 = vmatpush1.bf16.msra.mxu1 %v9617_v33  ;;  %v9628_v33 = vld [vmem:[#allocation33_spill] sm:$0xff] }
 0x18d   :  { %5166 = vmatprep.subr.bf16.mxu1 %v9618_v35  ;;  %v9629_v35 = vld [vmem:[#allocation35_spill] sm:$0xff] }
 0x190   :  { %5168 = vmatpush1.bf16.msra.mxu1 %v9619_v62  ;;  %v9630_v62 = vld [vmem:[#allocation37_spill] sm:$0xff] }
 0x191   :  { %5170 = vmatprep.subr.bf16.mxu1 %v9620_v8  ;;  %v9631_v8 = vld [vmem:[#allocation39_spill] sm:$0xff] }
 0x194   :  { %5172 = vmatpush1.bf16.msra.mxu1 %v9621_v63  ;;  %v9632_v63 = vld [vmem:[#allocation41_spill] sm:$0xff] }
 0x195   :  { %5174 = vmatprep.subr.bf16.mxu1 %v9622_v30  ;;  %v9633_v30 = vld [vmem:[#allocation43_spill] sm:$0xff] }
 0x198   :  { %5176 = vmatpush1.bf16.msra.mxu1 %v9623_v50  ;;  %v9634_v50 = vld [vmem:[#allocation45_spill] sm:$0xff] }
 0x199   :  { %5178 = vmatprep.subr.bf16.mxu1 %v9624_v46  ;;  %v9635_v46 = vld [vmem:[#allocation47_spill] sm:$0xff] }
 0x19c   :  { %5180 = vmatpush1.bf16.msra.mxu1 %v9625_v38  ;;  %v9636_v38 = vld [vmem:[#allocation49_spill] sm:$0xff] }
 0x19d   :  { %5182 = vmatprep.subr.bf16.mxu1 %v9626_v55  ;;  %v9637_v55 = vld [vmem:[#allocation51_spill] sm:$0xff] }
 0x1a0   :  { %5184 = vmatpush1.bf16.msra.mxu1 %v9627_v36  ;;  %v9638_v36 = vld [vmem:[#allocation53_spill] sm:$0xff] }
 0x1a1   :  { %5186 = vmatprep.subr.bf16.mxu1 %v9628_v33  ;;  %v9639_v33 = vld [vmem:[#allocation55_spill] sm:$0xff] }
 0x1a4   :  { %5188 = vmatpush1.bf16.msra.mxu1 %v9629_v35  ;;  %v9640_v35 = vld [vmem:[#allocation57_spill] sm:$0xff] }
 0x1a5   :  { %5190 = vmatprep.subr.bf16.mxu1 %v9630_v62 }
 0x1a8   :  { %5192 = vmatpush1.bf16.msra.mxu1 %v9631_v8  ;;  %v9641_v8 = vld [vmem:[#allocation59_spill] sm:$0xff] }
 0x1a9   :  { %5194 = vmatprep.subr.bf16.mxu1 %v9632_v63  ;;  %v9642_v63 = vld [vmem:[#allocation61_spill] sm:$0xff] }
 0x1ac   :  { %5196 = vmatpush1.bf16.msra.mxu1 %v9633_v30  ;;  %v9643_v30 = vld [vmem:[#allocation62_spill] sm:$0xff] }
 0x1ad   :  { %5198 = vmatprep.subr.bf16.mxu1 %v9634_v50  ;;  %v9644_v50 = vld [vmem:[#allocation63_spill] sm:$0xff] }
 0x1b0   :  { %5200 = vmatpush1.bf16.msra.mxu1 %v9635_v46  ;;  %v9645_v46 = vld [vmem:[#allocation64_spill] sm:$0xff] }
 0x1b1   :  { %5202 = vmatprep.subr.bf16.mxu1 %v9636_v38  ;;  %v9646_v38 = vld [vmem:[#allocation81_spill] sm:$0xff] }
 0x1b4   :  { %5204 = vmatpush1.bf16.msra.mxu1 %v9637_v55 }
 0x1b5   :  { %5206 = vmatprep.subr.bf16.mxu1 %v9638_v36  ;;  %v1298_v62 = vpop.f32.mrb[2].mxu0  ;;  %v9653_v36 = vld [vmem:[#allocation109_spill] sm:$0xff] }
 0x1b6   :  { %v1300_v55 = vpop.f32.mrb[3].mxu0 }
 0x1b8   :  { %5208 = vmatpush1.bf16.msra.mxu1 %v9639_v33  ;;  %v62_v33 = vld [vmem:[%s9183_s0 + $0x2] sm:$0x3] }
 0x1b9   :  { %5210 = vmatprep.subr.bf16.mxu1 %v9640_v35  ;;  %79 = vperm.xlu1 %6876, %v62_v33   ;;  %v9647_v35 = vmov 1  }
 0x1ba   :  { %286 = vperm.xlu0 %6878, %v62_v33  }
 0x1bc   :  { %5212 = vmatpush1.bf16.msra.mxu1 %v9641_v8  ;;  %v9648_v8 = vmov 5  }
 0x1bd   :  { %5214 = vmatprep.subr.bf16.mxu1 %v9642_v63  ;;  %6877 = vset.pattern.permute.xlu1 %v9647_v35  ;;  %v1058_v63 = vld [vmem:[%s9189_s6] sm:$0x7]  ;;  %v7827_v35 = vrot.slane %v7724_v0, %v9653_v36 }
 0x1be   :  { %6881 = vset.pattern.permute.xlu0 %v9648_v8  ;;  %194 = vperm.xlu1 %6877, %v62_v33   ;;  %v9655_v8 = vld [vmem:[#allocation105_spill] sm:$0xff] }
 0x1bf   :  { %562 = vperm.xlu0 %6881, %v62_v33   ;;  %9654 = vst [vmem:[#allocation109_spill] sm:$0xff] %v7827_v35  ;;  %v7831_v47 = vrot.slane %v7724_v0, %v9655_v8 }
 0x1c0   :  { %5216 = vmatpush1.bf16.msra.mxu1 %v9643_v30  ;;  %v9649_v30 = vmov 3  }
 0x1c1   :  { %5218 = vmatprep.subr.bf16.mxu1 %v9644_v50  ;;  %v9650_v50 = vmov 2   ;;  %9656 = vst [vmem:[#allocation105_spill] sm:$0xff] %v7831_v47 }
 0x1c2   :  { %6879 = vset.pattern.permute.xlu1 %v9649_v30  ;;  %v1230_v30 = vadd.f32 %v7736_v4, %v7831_v47 }
 0x1c3   :  { %6884 = vset.pattern.permute.xlu0 %v9650_v50  ;;  %378 = vperm.xlu1 %6879, %v62_v33   ;;  %v7834_v50 = vrot.slane %v1058_v63, %v9600_v43  ;;  %v7846_v43 = vrot.slane %v7724_v0, %v7563_v29 }
 0x1c4   :  { %5220 = vmatpush1.bf16.msra.mxu1 %v9645_v46  ;;  %v9651_v46 = vmov 4  }
 0x1c5   :  { %5286 = vmatprep.subr.bf16.mxu1 %v9646_v38  ;;  %v9652_v38 = vmov 0   ;;  %9657 = vst [vmem:[#allocation134_spill] sm:$0xff] %v7834_v50  ;;  %9658 = vst [vmem:[#allocation135_spill] sm:$0xff] %v7846_v43  ;;  %v1301_v21 = vadd.f32 %v1300_v55, %v7846_v43 }
 0x1c7   :  { %6880 = vset.pattern.permute.xlu1 %v9651_v46  ;;  %v7837_v46 = vrot.slane %v1058_v63, %v9602_v42 }
 0x1c8   :  { %470 = vperm.xlu1 %6880, %v62_v33  }
 0x1cc   :  { %6882 = vset.pattern.permute.xlu1 %v9652_v38  ;;  %v1299_v38 = vadd.f32 %v1298_v62, %v7827_v35 }
 0x23a   :  { %v1408_v33 = vpop.f32.mrb[2].mxu1 }
 0x23b   :  { %v1409_v27 = vadd.f32 %v1408_v33, %v7834_v50  ;;  %v1410_v36 = vpop.f32.mrb[3].mxu1  ;;  %v7850_v33 = vrot.slane %v1058_v63, %v9604_v23  ;;  %v9662_v23 = vld [vmem:[#allocation67_spill] sm:$0xff]  ;;  %v9665_v63 = vld [vmem:[#allocation68_spill] sm:$0xff] }
 0x23c   :  { %v1411_v9 = vadd.f32 %v1410_v36, %v7837_v46 }
 0x23d   :  { %v1483_v34 = vadd.f32 %v1409_v27, %v1230_v30  ;;  %9659 = vst [vmem:[#allocation136_spill] sm:$0xff] %v7850_v33 }
 0x23e   :  { %v1488_v8 = vadd.f32 %v1411_v9, %v1299_v38 }
 0x23f   :  { %v1484_v32 = vmul.f32 0.5, %v1483_v34 }
 0x240   :  { %v1489_v19 = vmul.f32 0.5, %v1488_v8  ;;  %v9666_v8 = vld [vmem:[#allocation69_spill] sm:$0xff] }
 0x241   :  { %6924 = vtanh.f32 %v1484_v32 }
 0x242   :  { %6926 = vtanh.f32 %v1489_v19  ;;  %v9661_v19 = vld [vmem:[#allocation66_spill] sm:$0xff] }
 0x24b   :  { %v6925_v42 = vpop.eup %6924 }
 0x24c   :  { %v1486_v62 = vmul.f32 0.5, %v6925_v42  ;;  %v6927_v32 = vpop.eup %6926 }
 0x24d   :  { %v1491_v29 = vmul.f32 0.5, %v6927_v32  ;;  %v9671_v32 = vld [vmem:[#allocation93_spill] sm:$0xff] }
 0x24e   :  { %v1487_v35 = vadd.f32 0.5, %v1486_v62 }
 0x24f   :  { %v1492_v0 = vadd.f32 0.5, %v1491_v29  ;;  %v9673_v29 = vld [vmem:[#allocation72_spill] sm:$0xff] }
 0x250   :  { %v1493_v4 = vmul.f32 %v1487_v35, %v1301_v21  ;;  %v9663_v21 = vld [vmem:[#allocation82_spill] sm:$0xff]  ;;  %v9664_v35 = vld [vmem:[#allocation85_spill] sm:$0xff] }
 0x251   :  { %v1496_v38 = vsub.f32 1.0, %v1492_v0  ;;  %v1498_v55 = vmul.f32 0.0, %v1492_v0  ;;  %v9674_v0 = vld [vmem:[#allocation73_spill] sm:$0xff] }
 0x25a   :  { %v1479_v36 = vpop.f32.mrb[4].mxu1 }
 0x25b   :  { %v1480_v9 = vadd.f32 %v1479_v36, %v7850_v33  ;;  %v4564_v34 = vpop.f32.mrb[5].mxu1  ;;  %v9668_v36 = vld [vmem:[#allocation92_spill] sm:$0xff] }
 0x25c   :  { %v9670_v34 = vld [vmem:[#allocation71_spill] sm:$0xff] }
 0x25d   :  { %v1494_v27 = vadd.f32 %v1493_v4, %v1480_v9  ;;  %v9667_v4 = vld [vmem:[#allocation86_spill] sm:$0xff] }
 0x25e   :  { %v9669_v9 = vld [vmem:[#allocation70_spill] sm:$0xff] }
 0x25f   :  { %6928 = vtanh.f32 %v1494_v27  ;;  %v9672_v27 = vld [vmem:[#allocation103_spill] sm:$0xff] }
 0x269   :  { %v6929_v30 = vpop.eup %6928 }
 0x26a   :  { %v1497_v42 = vmul.f32 %v6929_v30, %v1496_v38  ;;  %v9675_v38 = vld [vmem:[#allocation106_spill] sm:$0xff]  ;;  %v9676_v30 = vld [vmem:[#allocation113_spill] sm:$0xff] }
 0x26c   :  { %v7853_v62 = vadd.f32 %v1498_v55, %v1497_v42  ;;  %v9677_v55 = vld [vmem:[#allocation74_spill] sm:$0xff]  ;;  %v9678_v42 = vld [vmem:[#allocation75_spill] sm:$0xff] }
 0x26e   :  { %9660 = vst [vmem:[#allocation137_spill] sm:$0xff] %v7853_v62  ;;  %1564 = vmatprep.mubr.f32.mxu0 %v7853_v62  ;;  %1635 = vmatprep.mubr.f32.mxu1 %v7853_v62 }
 0x26f   :  { %1565 = vmatmul.mubr.f32.vlgmr.msra.gmra.mrb[4].mxu0 %v7745_v3  ;;  %1636 = vmatmul.mubr.f32.vlgmr.msra.gmra.mrb[6].mxu1 %v7745_v3 }
 0x270   :  { %5224 = vmatpush1.bf16.msra.mxu0 %v9661_v19  ;;  %1706 = vmatprep.mubr.f32.mxu0 %v7853_v62 }
 0x271   :  { %5226 = vmatprep.subr.bf16.mxu0 %v9662_v23  ;;  %5288 = vmatpush1.bf16.msra.mxu1 %v9663_v21  ;;  %v9703_v21 = vld [vmem:[#allocation108_spill] sm:$0xff]  ;;  %v9704_v23 = vld [vmem:[#allocation111_spill] sm:$0xff] }
 0x272   :  { %5290 = vmatprep.subr.bf16.mxu1 %v9664_v35  ;;  %1801 = vmatprep.mubr.f32.mxu1 %v9526_v14  ;;  %v9702_v35 = vld [vmem:[#allocation104_spill] sm:$0xff] }
 0x274   :  { %5228 = vmatpush1.bf16.msra.mxu0 %v9665_v63  ;;  %v9701_v63 = vld [vmem:[#allocation102_spill] sm:$0xff] }
 0x275   :  { %5230 = vmatprep.subr.bf16.mxu0 %v9666_v8  ;;  %5292 = vmatpush1.bf16.msra.mxu1 %v9667_v4  ;;  %v9699_v4 = vld [vmem:[#allocation101_spill] sm:$0xff]  ;;  %v9700_v8 = vld [vmem:[#allocation118_spill] sm:$0xff] }
 0x276   :  { %5294 = vmatprep.subr.bf16.mxu1 %v9668_v36  ;;  %v9679_v36 = vld [vmem:[#allocation117_spill] sm:$0xff] }
 0x278   :  { %5232 = vmatpush1.bf16.msra.mxu0 %v9669_v9  ;;  %v9680_v9 = vld [vmem:[#allocation120_spill] sm:$0xff] }
 0x279   :  { %5234 = vmatprep.subr.bf16.mxu0 %v9670_v34  ;;  %5296 = vmatpush1.bf16.msra.mxu1 %v9671_v32  ;;  %v9681_v34 = vld [vmem:[#allocation76_spill] sm:$0xff]  ;;  %v9682_v32 = vld [vmem:[#allocation77_spill] sm:$0xff] }
 0x27a   :  { %5298 = vmatprep.subr.bf16.mxu1 %v9672_v27  ;;  %v9698_v27 = vld [vmem:[#allocation100_spill] sm:$0xff] }
 0x27c   :  { %5236 = vmatpush1.bf16.msra.mxu0 %v9673_v29  ;;  %v9696_v29 = vld [vmem:[#allocation112_spill] sm:$0xff] }
 0x27d   :  { %5238 = vmatprep.subr.bf16.mxu0 %v9674_v0  ;;  %5300 = vmatpush1.bf16.msra.mxu1 %v9675_v38  ;;  %v9683_v0 = vld [vmem:[#allocation78_spill] sm:$0xff]  ;;  %v9684_v38 = vld [vmem:[#allocation79_spill] sm:$0xff] }
 0x27e   :  { %5302 = vmatprep.subr.bf16.mxu1 %v9676_v30  ;;  %v287_v30 = vpop.permute.xlu0 %286 }
 0x280   :  { %5240 = vmatpush1.bf16.msra.mxu0 %v9677_v55 }
 0x281   :  { %5242 = vmatprep.subr.bf16.mxu0 %v9678_v42  ;;  %5304 = vmatpush1.bf16.msra.mxu1 %v9679_v36  ;;  %v9685_v42 = vld [vmem:[#allocation80_spill] sm:$0xff]  ;;  %v9686_v36 = vld [vmem:[#allocation83_spill] sm:$0xff] }
 0x282   :  { %5306 = vmatprep.subr.bf16.mxu1 %v9680_v9 }
 0x284   :  { %5244 = vmatpush1.bf16.msra.mxu0 %v9681_v34 }
 0x285   :  { %5246 = vmatprep.subr.bf16.mxu0 %v9682_v32  ;;  %5308 = vmatpush1.bf16.msra.mxu1 %v7627_v52  ;;  %v9687_v32 = vld [vmem:[#allocation84_spill] sm:$0xff] }
 0x286   :  { %5310 = vmatprep.subr.bf16.mxu1 %v7641_v24  ;;  %v9688_v52 = vld [vmem:[#allocation88_spill] sm:$0xff]  ;;  %v9689_v24 = vld [vmem:[#allocation89_spill] sm:$0xff] }
 0x288   :  { %5248 = vmatpush1.bf16.msra.mxu0 %v9683_v0  ;;  %v9690_v0 = vld [vmem:[#allocation95_spill] sm:$0xff] }
 0x289   :  { %5250 = vmatprep.subr.bf16.mxu0 %v9684_v38  ;;  %5312 = vmatpush1.bf16.msra.mxu1 %v7655_v51  ;;  %v9691_v38 = vld [vmem:[#allocation99_spill] sm:$0xff]  ;;  %v80_v51 = vpop.permute.xlu1 %79 }
 0x28a   :  { %5314 = vmatprep.subr.bf16.mxu1 %v7671_v61  ;;  %v9692_v61 = vld [vmem:[#allocation110_spill] sm:$0xff] }
 0x28c   :  { %5252 = vmatpush1.bf16.msra.mxu0 %v9685_v42  ;;  %v9693_v42 = vld [vmem:[#allocation94_spill] sm:$0xff] }
 0x28d   :  { %5254 = vmatprep.subr.bf16.mxu0 %v9686_v36  ;;  %5316 = vmatpush1.bf16.msra.mxu1 %v7674_v25  ;;  %v127_v34 = vmul.f32 %v9693_v42, %v80_v51  ;;  %v9694_v36 = vld [vmem:[#allocation96_spill] sm:$0xff]  ;;  %v9695_v25 = vld [vmem:[#allocation97_spill] sm:$0xff]  ;;  %v329_v42 = vmul.f32 %v9702_v35, %v287_v30  ;;  %v9708_v35 = vld [vmem:[#allocation115_spill] sm:$0xff] }
 0x28e   :  { %5317 = vmatprep.subr.bf16.mxu1 %v9607_v60  ;;  %v128_v9 = vmul.f32 %v9694_v36, %v80_v51  ;;  %v129_v55 = vmul.f32 %v9695_v25, %v80_v51  ;;  %v9705_v25 = vld [vmem:[#allocation114_spill] sm:$0xff] }
 0x290   :  { %5256 = vmatpush1.bf16.msra.mxu0 %v9687_v32  ;;  %v9697_v32 = vld [vmem:[#allocation98_spill] sm:$0xff] }
 0x291   :  { %5258 = vmatprep.subr.bf16.mxu0 %v9688_v52  ;;  %v168_v52 = vadd.f32 %v9697_v32, %v127_v34  ;;  %v9707_v34 = vld [vmem:[#allocation119_spill] sm:$0xff] }
 0x294   :  { %5260 = vmatpush1.bf16.msra.mxu0 %v9689_v24  ;;  %v169_v24 = vadd.f32 %v9698_v27, %v128_v9 }
 0x295   :  { %5262 = vmatprep.subr.bf16.mxu0 %v9690_v0  ;;  %v170_v0 = vadd.f32 %v9699_v4, %v129_v55 }
 0x298   :  { %5264 = vmatpush1.bf16.msra.mxu0 %v9691_v38  ;;  %v195_v38 = vpop.permute.xlu1 %194 }
 0x299   :  { %5266 = vmatprep.subr.bf16.mxu0 %v9692_v61  ;;  %v328_v61 = vmul.f32 %v9701_v63, %v287_v30  ;;  %v236_v36 = vmul.f32 %v9703_v21, %v195_v38  ;;  %v237_v51 = vmul.f32 %v9704_v23, %v195_v38  ;;  %v238_v19 = vmul.f32 %v9705_v25, %v195_v38  ;;  %v563_v38 = vpop.permute.xlu0 %562 }
 0x29b   :  { %v260_v9 = vadd.f32 %v236_v36, %v168_v52  ;;  %v261_v27 = vadd.f32 %v237_v51, %v169_v24  ;;  %v262_v55 = vadd.f32 %v238_v19, %v170_v0  ;;  %v604_v0 = vmul.f32 %v7612_v2, %v563_v38 }
 0x29c   :  { %5268 = vmatpush1.bf16.msra.mxu0 %v9696_v29  ;;  %v9706_v29 = vld [vmem:[#allocation107_spill] sm:$0xff] }
 0x29d   :  { %5270 = vmatprep.subr.bf16.mxu0 %v9700_v8  ;;  %v330_v62 = vmul.f32 %v9706_v29, %v287_v30  ;;  %v379_v8 = vpop.permute.xlu1 %378  ;;  %v352_v4 = vadd.f32 %v328_v61, %v260_v9  ;;  %v353_v63 = vadd.f32 %v329_v42, %v261_v27  ;;  %v605_v61 = vmul.f32 %v7648_v18, %v563_v38  ;;  %v9709_v27 = vld [vmem:[#allocation116_spill] sm:$0xff]  ;;  %v9710_v42 = vld [vmem:[#allocation123_spill] sm:$0xff] }
 0x29e   :  { %v420_v33 = vmul.f32 %v9708_v35, %v379_v8  ;;  %v421_v21 = vmul.f32 %v7585_v39, %v379_v8  ;;  %v422_v23 = vmul.f32 %v7589_v45, %v379_v8  ;;  %v606_v51 = vmul.f32 %v9710_v42, %v563_v38 }
 0x29f   :  { %v354_v32 = vadd.f32 %v330_v62, %v262_v55 }
 0x2a0   :  { %5272 = vmatpush1.bf16.msra.mxu0 %v9707_v34  ;;  %v444_v52 = vadd.f32 %v420_v33, %v352_v4  ;;  %v445_v24 = vadd.f32 %v421_v21, %v353_v63 }
 0x2a1   :  { %5274 = vmatprep.subr.bf16.mxu0 %v7636_v53  ;;  %v446_v19 = vadd.f32 %v422_v23, %v354_v32  ;;  %v471_v36 = vpop.permute.xlu1 %470 }
 0x2a2   :  { %v512_v62 = vmul.f32 %v7594_v57, %v471_v36  ;;  %v513_v30 = vmul.f32 %v9709_v27, %v471_v36  ;;  %v514_v8 = vmul.f32 %v7608_v37, %v471_v36 }
 0x2a4   :  { %5276 = vmatpush1.bf16.msra.mxu0 %v7638_v12  ;;  %v536_v33 = vadd.f32 %v512_v62, %v444_v52  ;;  %v537_v21 = vadd.f32 %v513_v30, %v445_v24  ;;  %v538_v23 = vadd.f32 %v514_v8, %v446_v19  ;;  %v9711_v52 = vld [vmem:[#allocation34_spill] sm:$0xff]  ;;  %v9712_v24 = vld [vmem:[#allocation36_spill] sm:$0xff] }
 0x2a5   :  { %5278 = vmatprep.subr.bf16.mxu0 %v7662_v56  ;;  %v9713_v19 = vld [vmem:[#allocation38_spill] sm:$0xff]  ;;  %v9716_v62 = vld [vmem:[#allocation44_spill] sm:$0xff] }
 0x2a6   :  { %v628_v63 = vadd.f32 %v604_v0, %v536_v33  ;;  %v629_v4 = vadd.f32 %v605_v61, %v537_v21  ;;  %v630_v32 = vadd.f32 %v606_v51, %v538_v23  ;;  %v9714_v0 = vld [vmem:[#allocation40_spill] sm:$0xff]  ;;  %v9715_v61 = vld [vmem:[#allocation42_spill] sm:$0xff] }
 0x2a7   :  { %v9717_v30 = vld [vmem:[#allocation46_spill] sm:$0xff]  ;;  %v9718_v8 = vld [vmem:[#allocation48_spill] sm:$0xff] }
 0x2a8   :  { %5280 = vmatpush1.bf16.msra.mxu0 %v7665_v20  ;;  %v689_v9 = vcombine.low %v628_v63, %v629_v4  ;;  %v703_v55 = vrot.slane %v630_v32, %v7644_v1  ;;  %v9719_v51 = vld [vmem:[#allocation50_spill] sm:$0xff]  ;;  %v9720_v33 = vld [vmem:[#allocation52_spill] sm:$0xff]  ;;  %v9725_v32 = vld [vmem:[#allocation65_spill] sm:$0xff] }
 0x2a9   :  { %5282 = vmatprep.subr.bf16.mxu0 %v7677_v49  ;;  %v9721_v21 = vld [vmem:[#allocation54_spill] sm:$0xff]  ;;  %v9722_v23 = vld [vmem:[#allocation56_spill] sm:$0xff] }
 0x2aa   :  { %v696_v36 = vrot.slane %v689_v9, %v7644_v1  ;;  %v9723_v63 = vld [vmem:[#allocation58_spill] sm:$0xff]  ;;  %v9724_v4 = vld [vmem:[#allocation60_spill] sm:$0xff] }
 0x2ac   :  { %5284 = vmatpush1.bf16.msra.mxu0 %v7679_v7  ;;  %v704_v38 = vcombine.low %v696_v36, %v703_v55  ;;  %v9726_v36 = vld [vmem:[#allocation87_spill] sm:$0xff] }
 0x2ad   :  { %5342 = vmatprep.subr.bf16.mxu0 %v7181_v6 }
 0x2ae   :  { %810 = vst [vmem:[#allocation2 + $0x6] sm:$0x3f] %v704_v38 }
 0x2af   :  { %1707 = vmatmul.mubr.f32.vlgmr.msra.gmra.mrb[6].mxu0 %v7745_v3 }
 0x2b0   :  { %5344 = vmatpush1.bf16.msra.mxu0 %v7183_v10 }
 0x2b1   :  { %5346 = vmatprep.subr.bf16.mxu0 %v7185_v11 }
 0x2b4   :  { %5348 = vmatpush1.bf16.msra.mxu0 %v7189_v16 }
 0x2b5   :  { %5350 = vmatprep.subr.bf16.mxu0 %v7192_v17 }
 0x2b8   :  { %5352 = vmatpush1.bf16.msra.mxu0 %v7195_v26 }
 0x2b9   :  { %5354 = vmatprep.subr.bf16.mxu0 %v7202_v31 }
 0x2bc   :  { %5356 = vmatpush1.bf16.msra.mxu0 %v7211_v40 }
 0x2bd   :  { %5358 = vmatprep.subr.bf16.mxu0 %v7215_v44 }
 0x2c0   :  { %5360 = vmatpush1.bf16.msra.mxu0 %v7223_v54 }
 0x2c1   :  { %5362 = vmatprep.subr.bf16.mxu0 %v7229_v59 }
 0x2c4   :  { %5364 = vmatpush1.bf16.msra.mxu0 %v7235_v5 }
 0x2c5   :  { %5366 = vmatprep.subr.bf16.mxu0 %v7241_v13 }
 0x2c8   :  { %5368 = vmatpush1.bf16.msra.mxu0 %v7247_v22 }
 0x2c9   :  { %5370 = vmatprep.subr.bf16.mxu0 %v7253_v28 }
 0x2cc   :  { %5372 = vmatpush1.bf16.msra.mxu0 %v7259_v41 }
 0x2cd   :  { %5374 = vmatprep.subr.bf16.mxu0 %v7265_v48 }
 0x2d0   :  { %5376 = vmatpush1.bf16.msra.mxu0 %v7271_v58 }
 0x2d1   :  { %5378 = vmatprep.subr.bf16.mxu0 %v9711_v52 }
 0x2d4   :  { %5380 = vmatpush1.bf16.msra.mxu0 %v9712_v24 }
 0x2d5   :  { %5382 = vmatprep.subr.bf16.mxu0 %v9713_v19 }
 0x2d8   :  { %5384 = vmatpush1.bf16.msra.mxu0 %v9714_v0 }
 0x2d9   :  { %5386 = vmatprep.subr.bf16.mxu0 %v9715_v61 }
 0x2dc   :  { %5388 = vmatpush1.bf16.msra.mxu0 %v9716_v62 }
 0x2dd   :  { %5390 = vmatprep.subr.bf16.mxu0 %v9717_v30  ;;  %v1714_v30 = vld [vmem:[#allocation2 + $0x6] sm:$0x3f] }
 0x2e0   :  { %5392 = vmatpush1.bf16.msra.mxu0 %v9718_v8 }
 0x2e1   :  { %5394 = vmatprep.subr.bf16.mxu0 %v9719_v51  ;;  %v9727_v51 = vld [vmem:[#allocation90_spill] sm:$0xff] }
 0x2e4   :  { %5396 = vmatpush1.bf16.msra.mxu0 %v9720_v33 }
 0x2e5   :  { %5398 = vmatprep.subr.bf16.mxu0 %v9721_v21  ;;  %v1721_v21 = vrot.slane %v1714_v30, 2 }
 0x2e8   :  { %5400 = vmatpush1.bf16.msra.mxu0 %v9722_v23 }
 0x2e9   :  { %5402 = vmatprep.subr.bf16.mxu0 %v9723_v63 }
 0x2ec   :  { %5404 = vmatpush1.bf16.msra.mxu0 %v9724_v4 }
 0x2ed   :  { %5470 = vmatprep.subr.bf16.mxu0 %v9725_v32 }
 0x342   :  { %v1566_v9 = vpop.f32.mrb[4].mxu0  ;;  %v1637_v55 = vpop.f32.mrb[6].mxu1 }
 0x343   :  { %v1567_v38 = vadd.f32 %v1566_v9, %v9726_v36  ;;  %v1568_v8 = vpop.f32.mrb[5].mxu0  ;;  %v7966_v62 = vpop.f32.mrb[7].mxu1  ;;  %v1638_v32 = vadd.f32 %v1637_v55, %v7740_v15  ;;  %v1729_v9 = vrot.slane %v1714_v30, 4  ;;  %v9741_v55 = vld [vmem:[#allocation17_spill] sm:$0xff] }
 0x344   :  { %v1569_v33 = vadd.f32 %v1568_v8, %v9727_v51 }
 0x345   :  { %v1715_v61 = vadd.f32 %v1714_v30, %v1567_v38  ;;  %v9734_v30 = vld [vmem:[#allocation132_spill] sm:$0xff] }
 0x346   :  { %v1723_v23 = vadd.f32 %v1721_v21, %v1569_v33  ;;  %v9728_v33 = vld [vmem:[#allocation91_spill] sm:$0xff]  ;;  %v9736_v21 = vld [vmem:[#allocation12_spill] sm:$0xff] }
 0x347   :  { %v1716_v0 = vmul.f32 0.5, %v1715_v61 }
 0x348   :  { %v1724_v63 = vmul.f32 0.5, %v1723_v23  ;;  %v9737_v23 = vld [vmem:[#allocation13_spill] sm:$0xff] }
 0x349   :  { %6930 = vtanh.f32 %v1716_v0 }
 0x34a   :  { %6932 = vtanh.f32 %v1724_v63  ;;  %v9738_v63 = vld [vmem:[#allocation14_spill] sm:$0xff] }
 0x353   :  { %v6931_v4 = vpop.eup %6930 }
 0x354   :  { %v1718_v19 = vmul.f32 0.5, %v6931_v4  ;;  %v6933_v36 = vpop.eup %6932  ;;  %v9739_v4 = vld [vmem:[#allocation15_spill] sm:$0xff] }
 0x355   :  { %v1726_v48 = vmul.f32 0.5, %v6933_v36  ;;  %v9742_v36 = vld [vmem:[#allocation18_spill] sm:$0xff] }
 0x356   :  { %v1719_v24 = vadd.f32 0.5, %v1718_v19 }
 0x357   :  { %v1727_v41 = vadd.f32 0.5, %v1726_v48  ;;  %v9730_v48 = vld [vmem:[#allocation128_spill] sm:$0xff] }
 0x358   :  { %v1728_v52 = vmul.f32 %v1719_v24, %v1638_v32  ;;  %v9740_v32 = vld [vmem:[#allocation16_spill] sm:$0xff] }
 0x359   :  { %v1733_v8 = vsub.f32 1.0, %v1727_v41  ;;  %v1735_v61 = vmul.f32 %v1727_v41, %v7745_v3  ;;  %v9731_v41 = vld [vmem:[#allocation129_spill] sm:$0xff]  ;;  %v9733_v3 = vld [vmem:[#allocation131_spill] sm:$0xff] }
 0x35a   :  { %v1731_v58 = vadd.f32 %v1729_v9, %v1728_v52  ;;  %v9729_v52 = vld [vmem:[#allocation127_spill] sm:$0xff] }
 0x35b   :  { %v9743_v9 = vld [vmem:[#allocation19_spill] sm:$0xff] }
 0x35c   :  { %6934 = vtanh.f32 %v1731_v58  ;;  %v9732_v58 = vld [vmem:[#allocation130_spill] sm:$0xff] }
 0x366   :  { %v6935_v38 = vpop.eup %6934 }
 0x367   :  { %v1734_v51 = vmul.f32 %v6935_v38, %v1733_v8  ;;  %v9744_v8 = vld [vmem:[#allocation21_spill] sm:$0xff]  ;;  %v9745_v38 = vld [vmem:[#allocation23_spill] sm:$0xff] }
 0x369   :  { %v7971_v0 = vadd.f32 %v1735_v61, %v1734_v51  ;;  %v9735_v51 = vld [vmem:[#allocation133_spill] sm:$0xff] }
 0x36a   :  { %v9746_v61 = vld [vmem:[#allocation25_spill] sm:$0xff] }
 0x36b   :  { %1802 = vmatmul.mubr.f32.vlgmr.msra.gmra.mrb[8].mxu1 %v7971_v0 }
 0x36c   :  { %5319 = vmatpush3.bf16.msra.mxu1 %v9728_v33  ;;  %4597 = vmatprep.mubr.msk.f32.mxu1 %vm7101_vm0, %v9526_v14 }
 0x36d   :  { %5320 = vmatprep.subr.bf16.mxu1 %v9607_v60 }
 0x370   :  { %5322 = vmatpush3.bf16.msra.mxu1 %v9729_v52 }
 0x371   :  { %5323 = vmatprep.subr.bf16.mxu1 %v9607_v60 }
 0x374   :  { %5325 = vmatpush3.bf16.msra.mxu1 %v9730_v48 }
 0x375   :  { %5326 = vmatprep.subr.bf16.mxu1 %v9607_v60 }
 0x378   :  { %5328 = vmatpush3.bf16.msra.mxu1 %v9731_v41 }
 0x379   :  { %5329 = vmatprep.subr.bf16.mxu1 %v9607_v60 }
 0x37c   :  { %5331 = vmatpush3.bf16.msra.mxu1 %v9732_v58 }
 0x37d   :  { %5332 = vmatprep.subr.bf16.mxu1 %v9607_v60 }
 0x380   :  { %5334 = vmatpush3.bf16.msra.mxu1 %v9733_v3 }
 0x381   :  { %5335 = vmatprep.subr.bf16.mxu1 %v9607_v60 }
 0x382   :  { %v1708_v24 = vpop.f32.mrb[6].mxu0 }
 0x383   :  { %v7988_v19 = vpop.f32.mrb[7].mxu0 }
 0x384   :  { %5337 = vmatpush3.bf16.msra.mxu1 %v9734_v30 }
 0x385   :  { %5338 = vmatprep.subr.bf16.mxu1 %v9607_v60 }
 0x388   :  { %5340 = vmatpush3.bf16.msra.mxu1 %v9735_v51 }
 0x389   :  { %5406 = vmatprep.subr.bf16.mxu1 %v9736_v21  ;;  %v9747_v21 = vld [vmem:[#allocation27_spill] sm:$0xff] }
 0x38b   :  { %4598 = vmatmul.mubr.f32.vlgmr.msra.gmra.mrb[10].mxu1 %v7971_v0 }
 0x38c   :  { %5408 = vmatpush1.bf16.msra.mxu1 %v9737_v23  ;;  %v9748_v23 = vld [vmem:[#allocation29_spill] sm:$0xff] }
 0x38d   :  { %5410 = vmatprep.subr.bf16.mxu1 %v9738_v63  ;;  %v9749_v63 = vld [vmem:[#allocation31_spill] sm:$0xff] }
 0x390   :  { %5412 = vmatpush1.bf16.msra.mxu1 %v9739_v4  ;;  %v9750_v4 = vld [vmem:[#allocation33_spill] sm:$0xff] }
 0x391   :  { %5414 = vmatprep.subr.bf16.mxu1 %v9740_v32  ;;  %v9751_v32 = vld [vmem:[#allocation35_spill] sm:$0xff] }
 0x394   :  { %5416 = vmatpush1.bf16.msra.mxu1 %v9741_v55  ;;  %v9752_v55 = vld [vmem:[#allocation37_spill] sm:$0xff] }
 0x395   :  { %5418 = vmatprep.subr.bf16.mxu1 %v9742_v36  ;;  %v9753_v36 = vld [vmem:[#allocation39_spill] sm:$0xff] }
 0x398   :  { %5420 = vmatpush1.bf16.msra.mxu1 %v9743_v9  ;;  %v9754_v9 = vld [vmem:[#allocation41_spill] sm:$0xff] }
 0x399   :  { %5422 = vmatprep.subr.bf16.mxu1 %v9744_v8  ;;  %v9755_v8 = vld [vmem:[#allocation43_spill] sm:$0xff] }
 0x39c   :  { %5424 = vmatpush1.bf16.msra.mxu1 %v9745_v38  ;;  %v9756_v38 = vld [vmem:[#allocation45_spill] sm:$0xff] }
 0x39d   :  { %5426 = vmatprep.subr.bf16.mxu1 %v9746_v61  ;;  %v9757_v61 = vld [vmem:[#allocation47_spill] sm:$0xff] }
 0x3a0   :  { %5428 = vmatpush1.bf16.msra.mxu1 %v9747_v21  ;;  %v9758_v21 = vld [vmem:[#allocation49_spill] sm:$0xff] }
 0x3a1   :  { %5430 = vmatprep.subr.bf16.mxu1 %v9748_v23  ;;  %v9759_v23 = vld [vmem:[#allocation51_spill] sm:$0xff] }
 0x3a4   :  { %5432 = vmatpush1.bf16.msra.mxu1 %v9749_v63  ;;  %v9760_v63 = vld [vmem:[#allocation53_spill] sm:$0xff] }
 0x3a5   :  { %5434 = vmatprep.subr.bf16.mxu1 %v9750_v4  ;;  %v9761_v4 = vld [vmem:[#allocation55_spill] sm:$0xff] }
 0x3a8   :  { %5436 = vmatpush1.bf16.msra.mxu1 %v9751_v32  ;;  %v9762_v32 = vld [vmem:[#allocation57_spill] sm:$0xff] }
 0x3a9   :  { %5438 = vmatprep.subr.bf16.mxu1 %v9752_v55  ;;  %v9763_v55 = vld [vmem:[#allocation59_spill] sm:$0xff] }
 0x3ac   :  { %5440 = vmatpush1.bf16.msra.mxu1 %v9753_v36  ;;  %v9764_v36 = vld [vmem:[#allocation61_spill] sm:$0xff] }
 0x3ad   :  { %5442 = vmatprep.subr.bf16.mxu1 %v9754_v9  ;;  %v9765_v9 = vld [vmem:[#allocation62_spill] sm:$0xff] }
 0x3b0   :  { %5444 = vmatpush1.bf16.msra.mxu1 %v9755_v8  ;;  %v9766_v8 = vld [vmem:[#allocation63_spill] sm:$0xff] }
 0x3b1   :  { %5446 = vmatprep.subr.bf16.mxu1 %v9756_v38  ;;  %v9767_v38 = vld [vmem:[#allocation64_spill] sm:$0xff] }
 0x3b4   :  { %5448 = vmatpush1.bf16.msra.mxu1 %v9757_v61  ;;  %v9768_v61 = vld [vmem:[#allocation81_spill] sm:$0xff] }
 0x3b5   :  { %5450 = vmatprep.subr.bf16.mxu1 %v9758_v21 }
 0x3b8   :  { %5452 = vmatpush1.bf16.msra.mxu1 %v9759_v23 }
 0x3b9   :  { %5454 = vmatprep.subr.bf16.mxu1 %v9760_v63  ;;  %v63_v63 = vld [vmem:[%s9183_s0 + $0x4] sm:$0x3] }
 0x3ba   :  { %84 = vperm.xlu1 %6882, %v63_v63   ;;  %290 = vperm.xlu0 %6884, %v63_v63  }
 0x3bc   :  { %5456 = vmatpush1.bf16.msra.mxu1 %v9761_v4  ;;  %v9769_v4 = vmov 1  }
 0x3bd   :  { %5458 = vmatprep.subr.bf16.mxu1 %v9762_v32  ;;  %v9770_v32 = vmov 5  }
 0x3be   :  { %6883 = vset.pattern.permute.xlu1 %v9769_v4  ;;  %6887 = vset.pattern.permute.xlu0 %v9770_v32  ;;  %v9775_v32 = vld [vmem:[#allocation109_spill] sm:$0xff] }
 0x3bf   :  { %198 = vperm.xlu1 %6883, %v63_v63   ;;  %566 = vperm.xlu0 %6887, %v63_v63   ;;  %v1709_v21 = vadd.f32 %v1708_v24, %v9775_v32 }
 0x3c0   :  { %5460 = vmatpush1.bf16.msra.mxu1 %v9763_v55  ;;  %v1640_v55 = vadd.f32 %v7966_v62, %v7831_v47 }
 0x3c1   :  { %5462 = vmatprep.subr.bf16.mxu1 %v9764_v36  ;;  %v9771_v36 = vmov 3  }
 0x3c3   :  { %6885 = vset.pattern.permute.xlu1 %v9771_v36 }
 0x3c4   :  { %5464 = vmatpush1.bf16.msra.mxu1 %v9765_v9  ;;  %v9772_v9 = vmov 2   ;;  %382 = vperm.xlu1 %6885, %v63_v63  }
 0x3c5   :  { %5466 = vmatprep.subr.bf16.mxu1 %v9766_v8  ;;  %6890 = vset.pattern.permute.xlu0 %v9772_v9 }
 0x3c8   :  { %5468 = vmatpush1.bf16.msra.mxu1 %v9767_v38  ;;  %v9773_v38 = vmov 4  }
 0x3c9   :  { %5534 = vmatprep.subr.bf16.mxu1 %v9768_v61  ;;  %6886 = vset.pattern.permute.xlu1 %v9773_v38  ;;  %v9774_v61 = vmov 0  }
 0x3ca   :  { %474 = vperm.xlu1 %6886, %v63_v63   ;;  %v1711_v63 = vadd.f32 %v7988_v19, %v7846_v43  ;;  %v9783_v19 = vld [vmem:[#allocation68_spill] sm:$0xff]  ;;  %v9827_v43 = vld [vmem:[#allocation111_spill] sm:$0xff] }
 0x3ce   :  { %6888 = vset.pattern.permute.xlu1 %v9774_v61 }
 0x43e   :  { %v1803_v8 = vpop.f32.mrb[8].mxu1 }
 0x43f   :  { %v1804_v4 = vadd.f32 %v1803_v8, %v7834_v50  ;;  %v1805_v23 = vpop.f32.mrb[9].mxu1  ;;  %v9776_v8 = vld [vmem:[#allocation136_spill] sm:$0xff] }
 0x440   :  { %v1806_v51 = vadd.f32 %v1805_v23, %v7837_v46 }
 0x441   :  { %v1878_v36 = vadd.f32 %v1804_v4, %v1640_v55  ;;  %v9777_v55 = vld [vmem:[#allocation137_spill] sm:$0xff] }
 0x442   :  { %v1883_v30 = vadd.f32 %v1806_v51, %v1709_v21 }
 0x443   :  { %v1879_v9 = vmul.f32 0.5, %v1878_v36 }
 0x444   :  { %v1884_v58 = vmul.f32 0.5, %v1883_v30  ;;  %v9784_v30 = vld [vmem:[#allocation69_spill] sm:$0xff] }
 0x445   :  { %6936 = vtanh.f32 %v1879_v9 }
 0x446   :  { %6938 = vtanh.f32 %v1884_v58  ;;  %v9782_v58 = vld [vmem:[#allocation85_spill] sm:$0xff] }
 0x44f   :  { %v6937_v3 = vpop.eup %6936 }
 0x450   :  { %v1881_v38 = vmul.f32 0.5, %v6937_v3  ;;  %v6939_v24 = vpop.eup %6938 }
 0x451   :  { %v1886_v23 = vmul.f32 0.5, %v6939_v24  ;;  %v9790_v24 = vld [vmem:[#allocation103_spill] sm:$0xff] }
 0x452   :  { %v1882_v61 = vadd.f32 0.5, %v1881_v38  ;;  %v9786_v38 = vld [vmem:[#allocation92_spill] sm:$0xff] }
 0x453   :  { %v1887_v51 = vadd.f32 0.5, %v1886_v23  ;;  %v9791_v23 = vld [vmem:[#allocation72_spill] sm:$0xff] }
 0x454   :  { %v1888_v41 = vmul.f32 %v1882_v61, %v1711_v63  ;;  %v9787_v61 = vld [vmem:[#allocation70_spill] sm:$0xff]  ;;  %v9788_v63 = vld [vmem:[#allocation71_spill] sm:$0xff] }
 0x455   :  { %v1891_v21 = vsub.f32 1.0, %v1887_v51  ;;  %v1893_v3 = vmul.f32 %v1887_v51, %v9777_v55  ;;  %v9792_v51 = vld [vmem:[#allocation73_spill] sm:$0xff]  ;;  %v9795_v55 = vld [vmem:[#allocation74_spill] sm:$0xff] }
 0x45e   :  { %v1874_v62 = vpop.f32.mrb[10].mxu1 }
 0x45f   :  { %v1875_v50 = vadd.f32 %v1874_v62, %v9776_v8  ;;  %v4599_v47 = vpop.f32.mrb[11].mxu1  ;;  %v9789_v62 = vld [vmem:[#allocation93_spill] sm:$0xff]  ;;  %v9826_v8 = vld [vmem:[#allocation108_spill] sm:$0xff] }
 0x460   :  { %v9779_v47 = vld [vmem:[#allocation66_spill] sm:$0xff] }
 0x461   :  { %v1889_v32 = vadd.f32 %v1888_v41, %v1875_v50  ;;  %v9780_v50 = vld [vmem:[#allocation67_spill] sm:$0xff]  ;;  %v9781_v41 = vld [vmem:[#allocation82_spill] sm:$0xff] }
 0x463   :  { %6940 = vtanh.f32 %v1889_v32  ;;  %v9785_v32 = vld [vmem:[#allocation86_spill] sm:$0xff] }
 0x46d   :  { %v6941_v4 = vpop.eup %6940 }
 0x46e   :  { %v1892_v36 = vmul.f32 %v6941_v4, %v1891_v21  ;;  %v9793_v21 = vld [vmem:[#allocation106_spill] sm:$0xff]  ;;  %v9794_v4 = vld [vmem:[#allocation113_spill] sm:$0xff] }
 0x470   :  { %v8045_v9 = vadd.f32 %v1893_v3, %v1892_v36  ;;  %v9796_v3 = vld [vmem:[#allocation75_spill] sm:$0xff]  ;;  %v9797_v36 = vld [vmem:[#allocation117_spill] sm:$0xff] }
 0x472   :  { %9778 = vst [vmem:[#allocation114_spill] sm:$0xff] %v8045_v9  ;;  %1959 = vmatprep.mubr.f32.mxu0 %v8045_v9  ;;  %2030 = vmatprep.mubr.f32.mxu1 %v8045_v9 }
 0x473   :  { %1960 = vmatmul.mubr.f32.vlgmr.msra.gmra.mrb[8].mxu0 %v7971_v0  ;;  %2031 = vmatmul.mubr.f32.vlgmr.msra.gmra.mrb[12].mxu1 %v7971_v0 }
 0x474   :  { %5472 = vmatpush1.bf16.msra.mxu0 %v9779_v47  ;;  %2101 = vmatprep.mubr.f32.mxu0 %v8045_v9  ;;  %v9824_v47 = vld [vmem:[#allocation102_spill] sm:$0xff]  ;;  %v9825_v9 = vld [vmem:[#allocation104_spill] sm:$0xff] }
 0x475   :  { %5474 = vmatprep.subr.bf16.mxu0 %v9780_v50  ;;  %5536 = vmatpush1.bf16.msra.mxu1 %v9781_v41  ;;  %v9822_v41 = vld [vmem:[#allocation101_spill] sm:$0xff]  ;;  %v9823_v50 = vld [vmem:[#allocation118_spill] sm:$0xff] }
 0x476   :  { %5538 = vmatprep.subr.bf16.mxu1 %v9782_v58  ;;  %2196 = vmatprep.mubr.f32.mxu1 %v9526_v14  ;;  %v9821_v58 = vld [vmem:[#allocation100_spill] sm:$0xff] }
 0x478   :  { %5476 = vmatpush1.bf16.msra.mxu0 %v9783_v19  ;;  %v9819_v19 = vld [vmem:[#allocation112_spill] sm:$0xff] }
 0x479   :  { %5478 = vmatprep.subr.bf16.mxu0 %v9784_v30  ;;  %5540 = vmatpush1.bf16.msra.mxu1 %v9785_v32  ;;  %v291_v30 = vpop.permute.xlu0 %290 }
 0x47a   :  { %5542 = vmatprep.subr.bf16.mxu1 %v9786_v38 }
 0x47c   :  { %5480 = vmatpush1.bf16.msra.mxu0 %v9787_v61  ;;  %v9798_v61 = vld [vmem:[#allocation120_spill] sm:$0xff] }
 0x47d   :  { %5482 = vmatprep.subr.bf16.mxu0 %v9788_v63  ;;  %5544 = vmatpush1.bf16.msra.mxu1 %v9789_v62  ;;  %v9799_v63 = vld [vmem:[#allocation76_spill] sm:$0xff]  ;;  %v9800_v62 = vld [vmem:[#allocation77_spill] sm:$0xff] }
 0x47e   :  { %5546 = vmatprep.subr.bf16.mxu1 %v9790_v24  ;;  %v9801_v24 = vld [vmem:[#allocation121_spill] sm:$0xff] }
 0x480   :  { %5484 = vmatpush1.bf16.msra.mxu0 %v9791_v23  ;;  %v9802_v23 = vld [vmem:[#allocation122_spill] sm:$0xff] }
 0x481   :  { %5486 = vmatprep.subr.bf16.mxu0 %v9792_v51  ;;  %5548 = vmatpush1.bf16.msra.mxu1 %v9793_v21  ;;  %v9803_v51 = vld [vmem:[#allocation78_spill] sm:$0xff]  ;;  %v9804_v21 = vld [vmem:[#allocation79_spill] sm:$0xff] }
 0x482   :  { %5550 = vmatprep.subr.bf16.mxu1 %v9794_v4  ;;  %v9805_v4 = vld [vmem:[#allocation124_spill] sm:$0xff] }
 0x484   :  { %5488 = vmatpush1.bf16.msra.mxu0 %v9795_v55  ;;  %v9806_v55 = vld [vmem:[#allocation125_spill] sm:$0xff] }
 0x485   :  { %5490 = vmatprep.subr.bf16.mxu0 %v9796_v3  ;;  %5552 = vmatpush1.bf16.msra.mxu1 %v9797_v36  ;;  %v9807_v3 = vld [vmem:[#allocation80_spill] sm:$0xff]  ;;  %v9808_v36 = vld [vmem:[#allocation83_spill] sm:$0xff] }
 0x486   :  { %5554 = vmatprep.subr.bf16.mxu1 %v9798_v61  ;;  %v9809_v61 = vld [vmem:[#allocation126_spill] sm:$0xff] }
 0x488   :  { %5492 = vmatpush1.bf16.msra.mxu0 %v9799_v63 }
 0x489   :  { %5494 = vmatprep.subr.bf16.mxu0 %v9800_v62  ;;  %5556 = vmatpush1.bf16.msra.mxu1 %v9801_v24  ;;  %v9810_v62 = vld [vmem:[#allocation84_spill] sm:$0xff] }
 0x48a   :  { %5558 = vmatprep.subr.bf16.mxu1 %v9802_v23  ;;  %v9811_v24 = vld [vmem:[#allocation88_spill] sm:$0xff]  ;;  %v9812_v23 = vld [vmem:[#allocation89_spill] sm:$0xff] }
 0x48c   :  { %5496 = vmatpush1.bf16.msra.mxu0 %v9803_v51  ;;  %v9813_v51 = vld [vmem:[#allocation95_spill] sm:$0xff] }
 0x48d   :  { %5498 = vmatprep.subr.bf16.mxu0 %v9804_v21  ;;  %5560 = vmatpush1.bf16.msra.mxu1 %v9805_v4  ;;  %v9814_v21 = vld [vmem:[#allocation99_spill] sm:$0xff]  ;;  %v85_v4 = vpop.permute.xlu1 %84 }
 0x48e   :  { %5562 = vmatprep.subr.bf16.mxu1 %v9806_v55  ;;  %v9815_v55 = vld [vmem:[#allocation110_spill] sm:$0xff] }
 0x490   :  { %5500 = vmatpush1.bf16.msra.mxu0 %v9807_v3  ;;  %v9816_v3 = vld [vmem:[#allocation94_spill] sm:$0xff] }
 0x491   :  { %5502 = vmatprep.subr.bf16.mxu0 %v9808_v36  ;;  %5564 = vmatpush1.bf16.msra.mxu1 %v9809_v61  ;;  %v130_v63 = vmul.f32 %v9816_v3, %v85_v4  ;;  %v9817_v36 = vld [vmem:[#allocation96_spill] sm:$0xff]  ;;  %v9818_v61 = vld [vmem:[#allocation97_spill] sm:$0xff]  ;;  %v332_v3 = vmul.f32 %v9825_v9, %v291_v30 }
 0x492   :  { %5565 = vmatprep.subr.bf16.mxu1 %v9607_v60  ;;  %v131_v38 = vmul.f32 %v9817_v36, %v85_v4  ;;  %v132_v32 = vmul.f32 %v9818_v61, %v85_v4 }
 0x494   :  { %5504 = vmatpush1.bf16.msra.mxu0 %v9810_v62  ;;  %v9820_v62 = vld [vmem:[#allocation98_spill] sm:$0xff] }
 0x495   :  { %5506 = vmatprep.subr.bf16.mxu0 %v9811_v24  ;;  %v171_v24 = vadd.f32 %v9820_v62, %v130_v63 }
 0x498   :  { %5508 = vmatpush1.bf16.msra.mxu0 %v9812_v23  ;;  %v172_v23 = vadd.f32 %v9821_v58, %v131_v38 }
 0x499   :  { %5510 = vmatprep.subr.bf16.mxu0 %v9813_v51  ;;  %v173_v51 = vadd.f32 %v9822_v41, %v132_v32 }
 0x49c   :  { %5512 = vmatpush1.bf16.msra.mxu0 %v9814_v21  ;;  %v199_v21 = vpop.permute.xlu1 %198 }
 0x49d   :  { %5514 = vmatprep.subr.bf16.mxu0 %v9815_v55  ;;  %v331_v55 = vmul.f32 %v9824_v47, %v291_v30  ;;  %v239_v36 = vmul.f32 %v9826_v8, %v199_v21  ;;  %v240_v4 = vmul.f32 %v9827_v43, %v199_v21  ;;  %v241_v61 = vmul.f32 %v9705_v25, %v199_v21 }
 0x49f   :  { %v263_v38 = vadd.f32 %v239_v36, %v171_v24  ;;  %v264_v63 = vadd.f32 %v240_v4, %v172_v23  ;;  %v265_v32 = vadd.f32 %v241_v61, %v173_v51 }
 0x4a0   :  { %5516 = vmatpush1.bf16.msra.mxu0 %v9819_v19  ;;  %v333_v19 = vmul.f32 %v9706_v29, %v291_v30  ;;  %v567_v30 = vpop.permute.xlu0 %566 }
 0x4a1   :  { %5518 = vmatprep.subr.bf16.mxu0 %v9823_v50  ;;  %v383_v50 = vpop.permute.xlu1 %382  ;;  %v355_v41 = vadd.f32 %v331_v55, %v263_v38  ;;  %v356_v47 = vadd.f32 %v332_v3, %v264_v63  ;;  %v607_v21 = vmul.f32 %v7612_v2, %v567_v30  ;;  %v608_v55 = vmul.f32 %v7648_v18, %v567_v30 }
 0x4a2   :  { %v357_v58 = vadd.f32 %v333_v19, %v265_v32  ;;  %v423_v9 = vmul.f32 %v9708_v35, %v383_v50  ;;  %v424_v8 = vmul.f32 %v7585_v39, %v383_v50  ;;  %v425_v43 = vmul.f32 %v7589_v45, %v383_v50 }
 0x4a3   :  { %v609_v36 = vmul.f32 %v9710_v42, %v567_v30  ;;  %v9828_v30 = vld [vmem:[#allocation28_spill] sm:$0xff] }
 0x4a4   :  { %5520 = vmatpush1.bf16.msra.mxu0 %v9707_v34  ;;  %v447_v24 = vadd.f32 %v423_v9, %v355_v41  ;;  %v448_v23 = vadd.f32 %v424_v8, %v356_v47  ;;  %v449_v61 = vadd.f32 %v425_v43, %v357_v58 }
 0x4a5   :  { %5522 = vmatprep.subr.bf16.mxu0 %v7636_v53  ;;  %v475_v51 = vpop.permute.xlu1 %474 }
 0x4a6   :  { %v515_v19 = vmul.f32 %v7594_v57, %v475_v51  ;;  %v516_v3 = vmul.f32 %v9709_v27, %v475_v51  ;;  %v517_v50 = vmul.f32 %v7608_v37, %v475_v51  ;;  %v9832_v51 = vld [vmem:[#allocation36_spill] sm:$0xff] }
 0x4a8   :  { %5524 = vmatpush1.bf16.msra.mxu0 %v7638_v12  ;;  %v539_v9 = vadd.f32 %v515_v19, %v447_v24  ;;  %v540_v8 = vadd.f32 %v516_v3, %v448_v23  ;;  %v541_v43 = vadd.f32 %v517_v50, %v449_v61  ;;  %v9829_v24 = vld [vmem:[#allocation30_spill] sm:$0xff]  ;;  %v9830_v23 = vld [vmem:[#allocation32_spill] sm:$0xff] }
 0x4a9   :  { %5526 = vmatprep.subr.bf16.mxu0 %v7662_v56  ;;  %v9831_v61 = vld [vmem:[#allocation34_spill] sm:$0xff]  ;;  %v9836_v3 = vld [vmem:[#allocation44_spill] sm:$0xff] }
 0x4aa   :  { %v631_v47 = vadd.f32 %v607_v21, %v539_v9  ;;  %v632_v41 = vadd.f32 %v608_v55, %v540_v8  ;;  %v633_v58 = vadd.f32 %v609_v36, %v541_v43  ;;  %v9833_v21 = vld [vmem:[#allocation38_spill] sm:$0xff]  ;;  %v9834_v55 = vld [vmem:[#allocation40_spill] sm:$0xff] }
 0x4ab   :  { %v9835_v19 = vld [vmem:[#allocation42_spill] sm:$0xff]  ;;  %v9838_v36 = vld [vmem:[#allocation48_spill] sm:$0xff] }
 0x4ac   :  { %5528 = vmatpush1.bf16.msra.mxu0 %v7665_v20  ;;  %v705_v4 = vcombine.low %v631_v47, %v632_v41  ;;  %v719_v38 = vrot.slane %v633_v58, %v7644_v1  ;;  %v9837_v50 = vld [vmem:[#allocation46_spill] sm:$0xff]  ;;  %v9840_v8 = vld [vmem:[#allocation52_spill] sm:$0xff] }
 0x4ad   :  { %5530 = vmatprep.subr.bf16.mxu0 %v7677_v49  ;;  %v9839_v9 = vld [vmem:[#allocation50_spill] sm:$0xff]  ;;  %v9842_v47 = vld [vmem:[#allocation56_spill] sm:$0xff] }
 0x4ae   :  { %v712_v63 = vrot.slane %v705_v4, %v7644_v1  ;;  %v9841_v43 = vld [vmem:[#allocation54_spill] sm:$0xff]  ;;  %v9844_v58 = vld [vmem:[#allocation60_spill] sm:$0xff]  ;;  %v9845_v4 = vld [vmem:[#allocation65_spill] sm:$0xff] }
 0x4af   :  { %v9843_v41 = vld [vmem:[#allocation58_spill] sm:$0xff] }
 0x4b0   :  { %5532 = vmatpush1.bf16.msra.mxu0 %v7679_v7  ;;  %v720_v32 = vcombine.low %v712_v63, %v719_v38 }
 0x4b1   :  { %5590 = vmatprep.subr.bf16.mxu0 %v7181_v6 }
 0x4b2   :  { %811 = vst [vmem:[#allocation2 + $0xc] sm:$0x3f] %v720_v32  ;;  %v9846_v32 = vld [vmem:[#allocation87_spill] sm:$0xff] }
 0x4b3   :  { %2102 = vmatmul.mubr.f32.vlgmr.msra.gmra.mrb[10].mxu0 %v7971_v0 }
 0x4b4   :  { %5592 = vmatpush1.bf16.msra.mxu0 %v7183_v10 }
 0x4b5   :  { %5594 = vmatprep.subr.bf16.mxu0 %v7185_v11 }
 0x4b8   :  { %5596 = vmatpush1.bf16.msra.mxu0 %v7189_v16 }
 0x4b9   :  { %5598 = vmatprep.subr.bf16.mxu0 %v7192_v17 }
 0x4bc   :  { %5600 = vmatpush1.bf16.msra.mxu0 %v7195_v26 }
 0x4bd   :  { %5602 = vmatprep.subr.bf16.mxu0 %v7202_v31 }
 0x4c0   :  { %5604 = vmatpush1.bf16.msra.mxu0 %v7211_v40 }
 0x4c1   :  { %5606 = vmatprep.subr.bf16.mxu0 %v7215_v44 }
 0x4c4   :  { %5608 = vmatpush1.bf16.msra.mxu0 %v7223_v54 }
 0x4c5   :  { %5610 = vmatprep.subr.bf16.mxu0 %v7229_v59 }
 0x4c8   :  { %5612 = vmatpush1.bf16.msra.mxu0 %v7235_v5 }
 0x4c9   :  { %5614 = vmatprep.subr.bf16.mxu0 %v7241_v13 }
 0x4cc   :  { %5616 = vmatpush1.bf16.msra.mxu0 %v7247_v22 }
 0x4cd   :  { %5618 = vmatprep.subr.bf16.mxu0 %v7253_v28 }
 0x4d0   :  { %5620 = vmatpush1.bf16.msra.mxu0 %v9828_v30 }
 0x4d1   :  { %5622 = vmatprep.subr.bf16.mxu0 %v9829_v24 }
 0x4d4   :  { %5624 = vmatpush1.bf16.msra.mxu0 %v9830_v23 }
 0x4d5   :  { %5626 = vmatprep.subr.bf16.mxu0 %v9831_v61 }
 0x4d8   :  { %5628 = vmatpush1.bf16.msra.mxu0 %v9832_v51 }
 0x4d9   :  { %5630 = vmatprep.subr.bf16.mxu0 %v9833_v21 }
 0x4dc   :  { %5632 = vmatpush1.bf16.msra.mxu0 %v9834_v55 }
 0x4dd   :  { %5634 = vmatprep.subr.bf16.mxu0 %v9835_v19 }
 0x4e0   :  { %5636 = vmatpush1.bf16.msra.mxu0 %v9836_v3  ;;  %v2109_v3 = vld [vmem:[#allocation2 + $0xc] sm:$0x3f] }
 0x4e1   :  { %5638 = vmatprep.subr.bf16.mxu0 %v9837_v50 }
 0x4e4   :  { %5640 = vmatpush1.bf16.msra.mxu0 %v9838_v36 }
 0x4e5   :  { %5642 = vmatprep.subr.bf16.mxu0 %v9839_v9  ;;  %v9847_v9 = vld [vmem:[#allocation90_spill] sm:$0xff] }
 0x4e8   :  { %5644 = vmatpush1.bf16.msra.mxu0 %v9840_v8 }
 0x4e9   :  { %5646 = vmatprep.subr.bf16.mxu0 %v9841_v43  ;;  %v2116_v43 = vrot.slane %v2109_v3, 2 }
 0x4ec   :  { %5648 = vmatpush1.bf16.msra.mxu0 %v9842_v47 }
 0x4ed   :  { %5650 = vmatprep.subr.bf16.mxu0 %v9843_v41 }
 0x4f0   :  { %5652 = vmatpush1.bf16.msra.mxu0 %v9844_v58 }
 0x4f1   :  { %5718 = vmatprep.subr.bf16.mxu0 %v9845_v4 }
 0x546   :  { %v1961_v38 = vpop.f32.mrb[8].mxu0  ;;  %v2032_v63 = vpop.f32.mrb[12].mxu1 }
 0x547   :  { %v1962_v50 = vadd.f32 %v1961_v38, %v9846_v32  ;;  %v1963_v36 = vpop.f32.mrb[9].mxu0  ;;  %v8158_v19 = vpop.f32.mrb[13].mxu1  ;;  %v2033_v4 = vadd.f32 %v2032_v63, %v7740_v15  ;;  %v2124_v38 = vrot.slane %v2109_v3, 4  ;;  %v9861_v63 = vld [vmem:[#allocation21_spill] sm:$0xff] }
 0x548   :  { %v1964_v8 = vadd.f32 %v1963_v36, %v9847_v9 }
 0x549   :  { %v2110_v55 = vadd.f32 %v2109_v3, %v1962_v50  ;;  %v9853_v3 = vld [vmem:[#allocation12_spill] sm:$0xff] }
 0x54a   :  { %v2118_v47 = vadd.f32 %v2116_v43, %v1964_v8  ;;  %v9855_v8 = vld [vmem:[#allocation14_spill] sm:$0xff]  ;;  %v9856_v43 = vld [vmem:[#allocation15_spill] sm:$0xff] }
 0x54b   :  { %v2111_v21 = vmul.f32 0.5, %v2110_v55 }
 0x54c   :  { %v2119_v41 = vmul.f32 0.5, %v2118_v47  ;;  %v9857_v47 = vld [vmem:[#allocation16_spill] sm:$0xff] }
 0x54d   :  { %6942 = vtanh.f32 %v2111_v21 }
 0x54e   :  { %6944 = vtanh.f32 %v2119_v41  ;;  %v9858_v41 = vld [vmem:[#allocation17_spill] sm:$0xff] }
 0x557   :  { %v6943_v58 = vpop.eup %6942 }
 0x558   :  { %v2113_v51 = vmul.f32 0.5, %v6943_v58  ;;  %v6945_v32 = vpop.eup %6944  ;;  %v9859_v58 = vld [vmem:[#allocation18_spill] sm:$0xff] }
 0x559   :  { %v2121_v30 = vmul.f32 0.5, %v6945_v32  ;;  %v9862_v32 = vld [vmem:[#allocation23_spill] sm:$0xff] }
 0x55a   :  { %v2114_v61 = vadd.f32 0.5, %v2113_v51  ;;  %v9852_v51 = vld [vmem:[#allocation133_spill] sm:$0xff] }
 0x55b   :  { %v2122_v28 = vadd.f32 0.5, %v2121_v30  ;;  %v9850_v30 = vld [vmem:[#allocation131_spill] sm:$0xff] }
 0x55c   :  { %v2123_v23 = vmul.f32 %v2114_v61, %v2033_v4  ;;  %v9851_v61 = vld [vmem:[#allocation132_spill] sm:$0xff]  ;;  %v9860_v4 = vld [vmem:[#allocation19_spill] sm:$0xff] }
 0x55d   :  { %v2128_v36 = vsub.f32 1.0, %v2122_v28  ;;  %v2130_v55 = vmul.f32 %v2122_v28, %v7971_v0  ;;  %v9848_v28 = vld [vmem:[#allocation129_spill] sm:$0xff]  ;;  %v9849_v0 = vld [vmem:[#allocation130_spill] sm:$0xff] }
 0x55e   :  { %v2126_v24 = vadd.f32 %v2124_v38, %v2123_v23  ;;  %v9863_v38 = vld [vmem:[#allocation25_spill] sm:$0xff] }
 0x560   :  { %6946 = vtanh.f32 %v2126_v24 }
 0x56a   :  { %v6947_v50 = vpop.eup %6946 }
 0x56b   :  { %v2129_v9 = vmul.f32 %v6947_v50, %v2128_v36  ;;  %v9864_v36 = vld [vmem:[#allocation27_spill] sm:$0xff]  ;;  %v9865_v50 = vld [vmem:[#allocation29_spill] sm:$0xff] }
 0x56d   :  { %v8163_v21 = vadd.f32 %v2130_v55, %v2129_v9  ;;  %v9854_v9 = vld [vmem:[#allocation13_spill] sm:$0xff]  ;;  %v9866_v55 = vld [vmem:[#allocation31_spill] sm:$0xff] }
 0x56f   :  { %2197 = vmatmul.mubr.f32.vlgmr.msra.gmra.mrb[14].mxu1 %v8163_v21 }
 0x570   :  { %5567 = vmatpush3.bf16.msra.mxu1 %v9728_v33  ;;  %4632 = vmatprep.mubr.msk.f32.mxu1 %vm7101_vm0, %v9526_v14 }
 0x571   :  { %5568 = vmatprep.subr.bf16.mxu1 %v9607_v60 }
 0x574   :  { %5570 = vmatpush3.bf16.msra.mxu1 %v9729_v52 }
 0x575   :  { %5571 = vmatprep.subr.bf16.mxu1 %v9607_v60 }
 0x578   :  { %5573 = vmatpush3.bf16.msra.mxu1 %v9730_v48 }
 0x579   :  { %5574 = vmatprep.subr.bf16.mxu1 %v9607_v60 }
 0x57c   :  { %5576 = vmatpush3.bf16.msra.mxu1 %v9848_v28 }
 0x57d   :  { %5577 = vmatprep.subr.bf16.mxu1 %v9607_v60 }
 0x580   :  { %5579 = vmatpush3.bf16.msra.mxu1 %v9849_v0 }
 0x581   :  { %5580 = vmatprep.subr.bf16.mxu1 %v9607_v60 }
 0x584   :  { %5582 = vmatpush3.bf16.msra.mxu1 %v9850_v30 }
 0x585   :  { %5583 = vmatprep.subr.bf16.mxu1 %v9607_v60 }
 0x586   :  { %v2103_v24 = vpop.f32.mrb[10].mxu0 }
 0x587   :  { %v8180_v23 = vpop.f32.mrb[11].mxu0 }
 0x588   :  { %5585 = vmatpush3.bf16.msra.mxu1 %v9851_v61 }
 0x589   :  { %5586 = vmatprep.subr.bf16.mxu1 %v9607_v60 }
 0x58c   :  { %5588 = vmatpush3.bf16.msra.mxu1 %v9852_v51 }
 0x58d   :  { %5654 = vmatprep.subr.bf16.mxu1 %v9853_v3 }
 0x58f   :  { %4633 = vmatmul.mubr.f32.vlgmr.msra.gmra.mrb[16].mxu1 %v8163_v21 }
 0x590   :  { %5656 = vmatpush1.bf16.msra.mxu1 %v9854_v9 }
 0x591   :  { %5658 = vmatprep.subr.bf16.mxu1 %v9855_v8 }
 0x594   :  { %5660 = vmatpush1.bf16.msra.mxu1 %v9856_v43  ;;  %v9867_v43 = vld [vmem:[#allocation33_spill] sm:$0xff] }
 0x595   :  { %5662 = vmatprep.subr.bf16.mxu1 %v9857_v47  ;;  %v9868_v47 = vld [vmem:[#allocation35_spill] sm:$0xff] }
 0x598   :  { %5664 = vmatpush1.bf16.msra.mxu1 %v9858_v41  ;;  %v9869_v41 = vld [vmem:[#allocation37_spill] sm:$0xff] }
 0x599   :  { %5666 = vmatprep.subr.bf16.mxu1 %v9859_v58  ;;  %v9870_v58 = vld [vmem:[#allocation39_spill] sm:$0xff] }
 0x59c   :  { %5668 = vmatpush1.bf16.msra.mxu1 %v9860_v4  ;;  %v9871_v4 = vld [vmem:[#allocation41_spill] sm:$0xff] }
 0x59d   :  { %5670 = vmatprep.subr.bf16.mxu1 %v9861_v63  ;;  %v9872_v63 = vld [vmem:[#allocation43_spill] sm:$0xff] }
 0x5a0   :  { %5672 = vmatpush1.bf16.msra.mxu1 %v9862_v32  ;;  %v9873_v32 = vld [vmem:[#allocation45_spill] sm:$0xff] }
 0x5a1   :  { %5674 = vmatprep.subr.bf16.mxu1 %v9863_v38  ;;  %v9874_v38 = vld [vmem:[#allocation47_spill] sm:$0xff] }
 0x5a4   :  { %5676 = vmatpush1.bf16.msra.mxu1 %v9864_v36  ;;  %v9875_v36 = vld [vmem:[#allocation49_spill] sm:$0xff] }
 0x5a5   :  { %5678 = vmatprep.subr.bf16.mxu1 %v9865_v50  ;;  %v9876_v50 = vld [vmem:[#allocation51_spill] sm:$0xff] }
 0x5a8   :  { %5680 = vmatpush1.bf16.msra.mxu1 %v9866_v55  ;;  %v9877_v55 = vld [vmem:[#allocation53_spill] sm:$0xff] }
 0x5a9   :  { %5682 = vmatprep.subr.bf16.mxu1 %v9867_v43  ;;  %v9878_v43 = vld [vmem:[#allocation55_spill] sm:$0xff] }
 0x5ac   :  { %5684 = vmatpush1.bf16.msra.mxu1 %v9868_v47  ;;  %v9879_v47 = vld [vmem:[#allocation57_spill] sm:$0xff] }
 0x5ad   :  { %5686 = vmatprep.subr.bf16.mxu1 %v9869_v41  ;;  %v9880_v41 = vld [vmem:[#allocation59_spill] sm:$0xff] }
 0x5b0   :  { %5688 = vmatpush1.bf16.msra.mxu1 %v9870_v58  ;;  %v9881_v58 = vld [vmem:[#allocation61_spill] sm:$0xff] }
 0x5b1   :  { %5690 = vmatprep.subr.bf16.mxu1 %v9871_v4  ;;  %v9882_v4 = vld [vmem:[#allocation62_spill] sm:$0xff] }
 0x5b4   :  { %5692 = vmatpush1.bf16.msra.mxu1 %v9872_v63  ;;  %v9883_v63 = vld [vmem:[#allocation63_spill] sm:$0xff] }
 0x5b5   :  { %5694 = vmatprep.subr.bf16.mxu1 %v9873_v32  ;;  %v9884_v32 = vld [vmem:[#allocation64_spill] sm:$0xff] }
 0x5b8   :  { %5696 = vmatpush1.bf16.msra.mxu1 %v9874_v38  ;;  %v9885_v38 = vld [vmem:[#allocation81_spill] sm:$0xff] }
 0x5b9   :  { %5698 = vmatprep.subr.bf16.mxu1 %v9875_v36  ;;  %v9893_v36 = vld [vmem:[#allocation134_spill] sm:$0xff] }
 0x5bc   :  { %5700 = vmatpush1.bf16.msra.mxu1 %v9876_v50 }
 0x5bd   :  { %5702 = vmatprep.subr.bf16.mxu1 %v9877_v55  ;;  %v64_v55 = vld [vmem:[%s9183_s0 + $0x6] sm:$0x3] }
 0x5be   :  { %89 = vperm.xlu1 %6888, %v64_v55   ;;  %294 = vperm.xlu0 %6890, %v64_v55  }
 0x5c0   :  { %5704 = vmatpush1.bf16.msra.mxu1 %v9878_v43  ;;  %v9886_v43 = vmov 1  }
 0x5c1   :  { %5706 = vmatprep.subr.bf16.mxu1 %v9879_v47  ;;  %v9887_v47 = vmov 5  }
 0x5c2   :  { %6889 = vset.pattern.permute.xlu1 %v9886_v43  ;;  %6893 = vset.pattern.permute.xlu0 %v9887_v47  ;;  %v9894_v47 = vld [vmem:[#allocation109_spill] sm:$0xff] }
 0x5c3   :  { %202 = vperm.xlu1 %6889, %v64_v55   ;;  %570 = vperm.xlu0 %6893, %v64_v55   ;;  %v2104_v9 = vadd.f32 %v2103_v24, %v9894_v47 }
 0x5c4   :  { %5708 = vmatpush1.bf16.msra.mxu1 %v9880_v41  ;;  %v9892_v41 = vld [vmem:[#allocation105_spill] sm:$0xff] }
 0x5c5   :  { %5710 = vmatprep.subr.bf16.mxu1 %v9881_v58  ;;  %v9888_v58 = vmov 3   ;;  %v2035_v50 = vadd.f32 %v8158_v19, %v9892_v41 }
 0x5c7   :  { %6891 = vset.pattern.permute.xlu1 %v9888_v58 }
 0x5c8   :  { %5712 = vmatpush1.bf16.msra.mxu1 %v9882_v4  ;;  %v9889_v4 = vmov 2   ;;  %386 = vperm.xlu1 %6891, %v64_v55  }
 0x5c9   :  { %5714 = vmatprep.subr.bf16.mxu1 %v9883_v63  ;;  %6896 = vset.pattern.permute.xlu0 %v9889_v4 }
 0x5cc   :  { %5716 = vmatpush1.bf16.msra.mxu1 %v9884_v32  ;;  %v9890_v32 = vmov 4  }
 0x5cd   :  { %5782 = vmatprep.subr.bf16.mxu1 %v9885_v38  ;;  %6892 = vset.pattern.permute.xlu1 %v9890_v32  ;;  %v9891_v38 = vmov 0  }
 0x5ce   :  { %478 = vperm.xlu1 %6892, %v64_v55   ;;  %v9895_v55 = vld [vmem:[#allocation135_spill] sm:$0xff] }
 0x5d2   :  { %6894 = vset.pattern.permute.xlu1 %v9891_v38  ;;  %v2106_v38 = vadd.f32 %v8180_v23, %v9895_v55  ;;  %v9902_v23 = vld [vmem:[#allocation85_spill] sm:$0xff] }
 0x642   :  { %v2198_v63 = vpop.f32.mrb[14].mxu1 }
 0x643   :  { %v2199_v43 = vadd.f32 %v2198_v63, %v9893_v36  ;;  %v2200_v8 = vpop.f32.mrb[15].mxu1  ;;  %v9896_v63 = vld [vmem:[#allocation136_spill] sm:$0xff] }
 0x644   :  { %v2201_v3 = vadd.f32 %v2200_v8, %v7837_v46 }
 0x645   :  { %v2273_v58 = vadd.f32 %v2199_v43, %v2035_v50 }
 0x646   :  { %v2278_v51 = vadd.f32 %v2201_v3, %v2104_v9 }
 0x647   :  { %v2274_v4 = vmul.f32 0.5, %v2273_v58  ;;  %v9897_v58 = vld [vmem:[#allocation114_spill] sm:$0xff] }
 0x648   :  { %v2279_v0 = vmul.f32 0.5, %v2278_v51  ;;  %v9903_v51 = vld [vmem:[#allocation68_spill] sm:$0xff] }
 0x649   :  { %6948 = vtanh.f32 %v2274_v4 }
 0x64a   :  { %6950 = vtanh.f32 %v2279_v0  ;;  %v9899_v0 = vld [vmem:[#allocation66_spill] sm:$0xff] }
 0x653   :  { %v6949_v61 = vpop.eup %6948 }
 0x654   :  { %v2276_v32 = vmul.f32 0.5, %v6949_v61  ;;  %v6951_v24 = vpop.eup %6950 }
 0x655   :  { %v2281_v8 = vmul.f32 0.5, %v6951_v24  ;;  %v9910_v24 = vld [vmem:[#allocation103_spill] sm:$0xff] }
 0x656   :  { %v2277_v30 = vadd.f32 0.5, %v2276_v32  ;;  %v9906_v32 = vld [vmem:[#allocation92_spill] sm:$0xff] }
 0x657   :  { %v2282_v3 = vadd.f32 0.5, %v2281_v8  ;;  %v9911_v8 = vld [vmem:[#allocation72_spill] sm:$0xff] }
 0x658   :  { %v2283_v28 = vmul.f32 %v2277_v30, %v2106_v38  ;;  %v9901_v30 = vld [vmem:[#allocation82_spill] sm:$0xff] }
 0x659   :  { %v2286_v9 = vsub.f32 1.0, %v2282_v3  ;;  %v2288_v61 = vmul.f32 %v2282_v3, %v9897_v58  ;;  %v9907_v38 = vld [vmem:[#allocation70_spill] sm:$0xff]  ;;  %v9912_v3 = vld [vmem:[#allocation73_spill] sm:$0xff] }
 0x65a   :  { %v9915_v58 = vld [vmem:[#allocation74_spill] sm:$0xff] }
 0x662   :  { %v2269_v19 = vpop.f32.mrb[16].mxu1 }
 0x663   :  { %v2270_v36 = vadd.f32 %v2269_v19, %v9896_v63  ;;  %v4634_v41 = vpop.f32.mrb[17].mxu1  ;;  %v9909_v19 = vld [vmem:[#allocation93_spill] sm:$0xff]  ;;  %v9946_v63 = vld [vmem:[#allocation111_spill] sm:$0xff] }
 0x664   :  { %v9905_v41 = vld [vmem:[#allocation86_spill] sm:$0xff] }
 0x665   :  { %v2284_v47 = vadd.f32 %v2283_v28, %v2270_v36  ;;  %v9900_v28 = vld [vmem:[#allocation67_spill] sm:$0xff] }
 0x666   :  { %v9908_v36 = vld [vmem:[#allocation71_spill] sm:$0xff] }
 0x667   :  { %6952 = vtanh.f32 %v2284_v47  ;;  %v9904_v47 = vld [vmem:[#allocation69_spill] sm:$0xff] }
 0x671   :  { %v6953_v43 = vpop.eup %6952 }
 0x672   :  { %v2287_v4 = vmul.f32 %v6953_v43, %v2286_v9  ;;  %v9913_v9 = vld [vmem:[#allocation106_spill] sm:$0xff]  ;;  %v9914_v43 = vld [vmem:[#allocation113_spill] sm:$0xff] }
 0x674   :  { %v8237_v50 = vadd.f32 %v2288_v61, %v2287_v4  ;;  %v9916_v61 = vld [vmem:[#allocation75_spill] sm:$0xff]  ;;  %v9917_v4 = vld [vmem:[#allocation117_spill] sm:$0xff] }
 0x676   :  { %9898 = vst [vmem:[#allocation107_spill] sm:$0xff] %v8237_v50  ;;  %2354 = vmatprep.mubr.f32.mxu0 %v8237_v50  ;;  %2425 = vmatprep.mubr.f32.mxu1 %v8237_v50 }
 0x677   :  { %2355 = vmatmul.mubr.f32.vlgmr.msra.gmra.mrb[12].mxu0 %v8163_v21  ;;  %2426 = vmatmul.mubr.f32.vlgmr.msra.gmra.mrb[18].mxu1 %v8163_v21 }
 0x678   :  { %5720 = vmatpush1.bf16.msra.mxu0 %v9899_v0  ;;  %2496 = vmatprep.mubr.f32.mxu0 %v8237_v50  ;;  %v9944_v0 = vld [vmem:[#allocation104_spill] sm:$0xff] }
 0x679   :  { %5722 = vmatprep.subr.bf16.mxu0 %v9900_v28  ;;  %5784 = vmatpush1.bf16.msra.mxu1 %v9901_v30  ;;  %v9942_v30 = vld [vmem:[#allocation118_spill] sm:$0xff]  ;;  %v9945_v50 = vld [vmem:[#allocation108_spill] sm:$0xff] }
 0x67a   :  { %5786 = vmatprep.subr.bf16.mxu1 %v9902_v23  ;;  %2591 = vmatprep.mubr.f32.mxu1 %v9526_v14  ;;  %v9941_v23 = vld [vmem:[#allocation101_spill] sm:$0xff]  ;;  %v9943_v28 = vld [vmem:[#allocation102_spill] sm:$0xff] }
 0x67c   :  { %5724 = vmatpush1.bf16.msra.mxu0 %v9903_v51  ;;  %v9939_v51 = vld [vmem:[#allocation112_spill] sm:$0xff] }
 0x67d   :  { %5726 = vmatprep.subr.bf16.mxu0 %v9904_v47  ;;  %5788 = vmatpush1.bf16.msra.mxu1 %v9905_v41  ;;  %v295_v47 = vpop.permute.xlu0 %294 }
 0x67e   :  { %5790 = vmatprep.subr.bf16.mxu1 %v9906_v32 }
 0x680   :  { %5728 = vmatpush1.bf16.msra.mxu0 %v9907_v38  ;;  %v9918_v38 = vld [vmem:[#allocation120_spill] sm:$0xff] }
 0x681   :  { %5730 = vmatprep.subr.bf16.mxu0 %v9908_v36  ;;  %5792 = vmatpush1.bf16.msra.mxu1 %v9909_v19  ;;  %v9919_v36 = vld [vmem:[#allocation76_spill] sm:$0xff]  ;;  %v9920_v19 = vld [vmem:[#allocation77_spill] sm:$0xff] }
 0x682   :  { %5794 = vmatprep.subr.bf16.mxu1 %v9910_v24  ;;  %v9921_v24 = vld [vmem:[#allocation121_spill] sm:$0xff] }
 0x684   :  { %5732 = vmatpush1.bf16.msra.mxu0 %v9911_v8  ;;  %v9922_v8 = vld [vmem:[#allocation122_spill] sm:$0xff] }
 0x685   :  { %5734 = vmatprep.subr.bf16.mxu0 %v9912_v3  ;;  %5796 = vmatpush1.bf16.msra.mxu1 %v9913_v9  ;;  %v9923_v3 = vld [vmem:[#allocation78_spill] sm:$0xff]  ;;  %v9924_v9 = vld [vmem:[#allocation79_spill] sm:$0xff] }
 0x686   :  { %5798 = vmatprep.subr.bf16.mxu1 %v9914_v43  ;;  %v9925_v43 = vld [vmem:[#allocation124_spill] sm:$0xff] }
 0x688   :  { %5736 = vmatpush1.bf16.msra.mxu0 %v9915_v58  ;;  %v9926_v58 = vld [vmem:[#allocation125_spill] sm:$0xff] }
 0x689   :  { %5738 = vmatprep.subr.bf16.mxu0 %v9916_v61  ;;  %5800 = vmatpush1.bf16.msra.mxu1 %v9917_v4  ;;  %v9927_v61 = vld [vmem:[#allocation80_spill] sm:$0xff]  ;;  %v9928_v4 = vld [vmem:[#allocation83_spill] sm:$0xff] }
 0x68a   :  { %5802 = vmatprep.subr.bf16.mxu1 %v9918_v38  ;;  %v9929_v38 = vld [vmem:[#allocation126_spill] sm:$0xff] }
 0x68c   :  { %5740 = vmatpush1.bf16.msra.mxu0 %v9919_v36 }
 0x68d   :  { %5742 = vmatprep.subr.bf16.mxu0 %v9920_v19  ;;  %5804 = vmatpush1.bf16.msra.mxu1 %v9921_v24  ;;  %v9930_v19 = vld [vmem:[#allocation84_spill] sm:$0xff] }
 0x68e   :  { %5806 = vmatprep.subr.bf16.mxu1 %v9922_v8  ;;  %v9931_v24 = vld [vmem:[#allocation88_spill] sm:$0xff]  ;;  %v9932_v8 = vld [vmem:[#allocation89_spill] sm:$0xff] }
 0x690   :  { %5744 = vmatpush1.bf16.msra.mxu0 %v9923_v3  ;;  %v9933_v3 = vld [vmem:[#allocation95_spill] sm:$0xff] }
 0x691   :  { %5746 = vmatprep.subr.bf16.mxu0 %v9924_v9  ;;  %5808 = vmatpush1.bf16.msra.mxu1 %v9925_v43  ;;  %v9934_v9 = vld [vmem:[#allocation99_spill] sm:$0xff]  ;;  %v90_v43 = vpop.permute.xlu1 %89 }
 0x692   :  { %5810 = vmatprep.subr.bf16.mxu1 %v9926_v58  ;;  %v9935_v58 = vld [vmem:[#allocation110_spill] sm:$0xff] }
 0x694   :  { %5748 = vmatpush1.bf16.msra.mxu0 %v9927_v61  ;;  %v9936_v61 = vld [vmem:[#allocation94_spill] sm:$0xff] }
 0x695   :  { %5750 = vmatprep.subr.bf16.mxu0 %v9928_v4  ;;  %5812 = vmatpush1.bf16.msra.mxu1 %v9929_v38  ;;  %v133_v36 = vmul.f32 %v9936_v61, %v90_v43  ;;  %v9937_v4 = vld [vmem:[#allocation96_spill] sm:$0xff]  ;;  %v9938_v38 = vld [vmem:[#allocation97_spill] sm:$0xff]  ;;  %v335_v61 = vmul.f32 %v9944_v0, %v295_v47 }
 0x696   :  { %5813 = vmatprep.subr.bf16.mxu1 %v9607_v60  ;;  %v134_v32 = vmul.f32 %v9937_v4, %v90_v43  ;;  %v135_v41 = vmul.f32 %v9938_v38, %v90_v43 }
 0x698   :  { %5752 = vmatpush1.bf16.msra.mxu0 %v9930_v19  ;;  %v9940_v19 = vld [vmem:[#allocation100_spill] sm:$0xff] }
 0x699   :  { %5754 = vmatprep.subr.bf16.mxu0 %v9931_v24  ;;  %v174_v24 = vadd.f32 %v9820_v62, %v133_v36 }
 0x69c   :  { %5756 = vmatpush1.bf16.msra.mxu0 %v9932_v8  ;;  %v175_v8 = vadd.f32 %v9940_v19, %v134_v32 }
 0x69d   :  { %5758 = vmatprep.subr.bf16.mxu0 %v9933_v3  ;;  %v176_v3 = vadd.f32 %v9941_v23, %v135_v41 }
 0x6a0   :  { %5760 = vmatpush1.bf16.msra.mxu0 %v9934_v9  ;;  %v203_v9 = vpop.permute.xlu1 %202 }
 0x6a1   :  { %5762 = vmatprep.subr.bf16.mxu0 %v9935_v58  ;;  %v334_v58 = vmul.f32 %v9943_v28, %v295_v47  ;;  %v242_v4 = vmul.f32 %v9945_v50, %v203_v9  ;;  %v243_v43 = vmul.f32 %v9946_v63, %v203_v9  ;;  %v244_v38 = vmul.f32 %v9705_v25, %v203_v9 }
 0x6a3   :  { %v266_v32 = vadd.f32 %v242_v4, %v174_v24  ;;  %v267_v36 = vadd.f32 %v243_v43, %v175_v8  ;;  %v268_v41 = vadd.f32 %v244_v38, %v176_v3 }
 0x6a4   :  { %5764 = vmatpush1.bf16.msra.mxu0 %v9939_v51  ;;  %v336_v51 = vmul.f32 %v9706_v29, %v295_v47  ;;  %v571_v47 = vpop.permute.xlu0 %570 }
 0x6a5   :  { %5766 = vmatprep.subr.bf16.mxu0 %v9942_v30  ;;  %v387_v30 = vpop.permute.xlu1 %386  ;;  %v358_v23 = vadd.f32 %v334_v58, %v266_v32  ;;  %v359_v28 = vadd.f32 %v335_v61, %v267_v36  ;;  %v610_v9 = vmul.f32 %v7612_v2, %v571_v47  ;;  %v611_v58 = vmul.f32 %v7648_v18, %v571_v47 }
 0x6a6   :  { %v360_v19 = vadd.f32 %v336_v51, %v268_v41  ;;  %v426_v0 = vmul.f32 %v9708_v35, %v387_v30  ;;  %v427_v50 = vmul.f32 %v7585_v39, %v387_v30  ;;  %v428_v63 = vmul.f32 %v7589_v45, %v387_v30 }
 0x6a7   :  { %v612_v4 = vmul.f32 %v9710_v42, %v571_v47  ;;  %v9947_v47 = vld [vmem:[#allocation26_spill] sm:$0xff] }
 0x6a8   :  { %5768 = vmatpush1.bf16.msra.mxu0 %v9707_v34  ;;  %v450_v24 = vadd.f32 %v426_v0, %v358_v23  ;;  %v451_v8 = vadd.f32 %v427_v50, %v359_v28  ;;  %v452_v38 = vadd.f32 %v428_v63, %v360_v19 }
 0x6a9   :  { %5770 = vmatprep.subr.bf16.mxu0 %v7636_v53  ;;  %v479_v3 = vpop.permute.xlu1 %478 }
 0x6aa   :  { %v518_v51 = vmul.f32 %v7594_v57, %v479_v3  ;;  %v519_v61 = vmul.f32 %v9709_v27, %v479_v3  ;;  %v520_v30 = vmul.f32 %v7608_v37, %v479_v3  ;;  %v9951_v3 = vld [vmem:[#allocation34_spill] sm:$0xff] }
 0x6ac   :  { %5772 = vmatpush1.bf16.msra.mxu0 %v7638_v12  ;;  %v542_v0 = vadd.f32 %v518_v51, %v450_v24  ;;  %v543_v50 = vadd.f32 %v519_v61, %v451_v8  ;;  %v544_v63 = vadd.f32 %v520_v30, %v452_v38  ;;  %v9948_v24 = vld [vmem:[#allocation28_spill] sm:$0xff]  ;;  %v9949_v8 = vld [vmem:[#allocation30_spill] sm:$0xff] }
 0x6ad   :  { %5774 = vmatprep.subr.bf16.mxu0 %v7662_v56  ;;  %v9950_v38 = vld [vmem:[#allocation32_spill] sm:$0xff]  ;;  %v9955_v61 = vld [vmem:[#allocation42_spill] sm:$0xff] }
 0x6ae   :  { %v634_v28 = vadd.f32 %v610_v9, %v542_v0  ;;  %v635_v23 = vadd.f32 %v611_v58, %v543_v50  ;;  %v636_v19 = vadd.f32 %v612_v4, %v544_v63  ;;  %v9952_v9 = vld [vmem:[#allocation36_spill] sm:$0xff]  ;;  %v9953_v58 = vld [vmem:[#allocation38_spill] sm:$0xff] }
 0x6af   :  { %v9954_v51 = vld [vmem:[#allocation40_spill] sm:$0xff]  ;;  %v9957_v4 = vld [vmem:[#allocation46_spill] sm:$0xff] }
 0x6b0   :  { %5776 = vmatpush1.bf16.msra.mxu0 %v7665_v20  ;;  %v721_v43 = vcombine.low %v634_v28, %v635_v23  ;;  %v735_v32 = vrot.slane %v636_v19, %v7644_v1  ;;  %v9956_v30 = vld [vmem:[#allocation44_spill] sm:$0xff]  ;;  %v9959_v50 = vld [vmem:[#allocation50_spill] sm:$0xff] }
 0x6b1   :  { %5778 = vmatprep.subr.bf16.mxu0 %v7677_v49  ;;  %v9958_v0 = vld [vmem:[#allocation48_spill] sm:$0xff]  ;;  %v9961_v28 = vld [vmem:[#allocation54_spill] sm:$0xff] }
 0x6b2   :  { %v728_v36 = vrot.slane %v721_v43, %v7644_v1  ;;  %v9960_v63 = vld [vmem:[#allocation52_spill] sm:$0xff]  ;;  %v9963_v19 = vld [vmem:[#allocation58_spill] sm:$0xff] }
 0x6b3   :  { %v9962_v23 = vld [vmem:[#allocation56_spill] sm:$0xff] }
 0x6b4   :  { %5780 = vmatpush1.bf16.msra.mxu0 %v7679_v7  ;;  %v736_v41 = vcombine.low %v728_v36, %v735_v32  ;;  %v9964_v43 = vld [vmem:[#allocation60_spill] sm:$0xff]  ;;  %v9965_v32 = vld [vmem:[#allocation65_spill] sm:$0xff] }
 0x6b5   :  { %5838 = vmatprep.subr.bf16.mxu0 %v7181_v6 }
 0x6b6   :  { %812 = vst [vmem:[#allocation2 + $0x12] sm:$0x3f] %v736_v41 }
 0x6b7   :  { %2497 = vmatmul.mubr.f32.vlgmr.msra.gmra.mrb[14].mxu0 %v8163_v21 }
 0x6b8   :  { %5840 = vmatpush1.bf16.msra.mxu0 %v7183_v10 }
 0x6b9   :  { %5842 = vmatprep.subr.bf16.mxu0 %v7185_v11 }
 0x6bc   :  { %5844 = vmatpush1.bf16.msra.mxu0 %v7189_v16 }
 0x6bd   :  { %5846 = vmatprep.subr.bf16.mxu0 %v7192_v17 }
 0x6c0   :  { %5848 = vmatpush1.bf16.msra.mxu0 %v7195_v26 }
 0x6c1   :  { %5850 = vmatprep.subr.bf16.mxu0 %v7202_v31 }
 0x6c4   :  { %5852 = vmatpush1.bf16.msra.mxu0 %v7211_v40 }
 0x6c5   :  { %5854 = vmatprep.subr.bf16.mxu0 %v7215_v44 }
 0x6c8   :  { %5856 = vmatpush1.bf16.msra.mxu0 %v7223_v54 }
 0x6c9   :  { %5858 = vmatprep.subr.bf16.mxu0 %v7229_v59 }
 0x6cc   :  { %5860 = vmatpush1.bf16.msra.mxu0 %v7235_v5 }
 0x6cd   :  { %5862 = vmatprep.subr.bf16.mxu0 %v7241_v13 }
 0x6d0   :  { %5864 = vmatpush1.bf16.msra.mxu0 %v7247_v22 }
 0x6d1   :  { %5866 = vmatprep.subr.bf16.mxu0 %v9947_v47 }
 0x6d4   :  { %5868 = vmatpush1.bf16.msra.mxu0 %v9948_v24 }
 0x6d5   :  { %5870 = vmatprep.subr.bf16.mxu0 %v9949_v8 }
 0x6d8   :  { %5872 = vmatpush1.bf16.msra.mxu0 %v9950_v38 }
 0x6d9   :  { %5874 = vmatprep.subr.bf16.mxu0 %v9951_v3 }
 0x6dc   :  { %5876 = vmatpush1.bf16.msra.mxu0 %v9952_v9 }
 0x6dd   :  { %5878 = vmatprep.subr.bf16.mxu0 %v9953_v58 }
 0x6e0   :  { %5880 = vmatpush1.bf16.msra.mxu0 %v9954_v51 }
 0x6e1   :  { %5882 = vmatprep.subr.bf16.mxu0 %v9955_v61  ;;  %v2504_v61 = vld [vmem:[#allocation2 + $0x12] sm:$0x3f] }
 0x6e4   :  { %5884 = vmatpush1.bf16.msra.mxu0 %v9956_v30  ;;  %v9966_v30 = vld [vmem:[#allocation87_spill] sm:$0xff] }
 0x6e5   :  { %5886 = vmatprep.subr.bf16.mxu0 %v9957_v4 }
 0x6e8   :  { %5888 = vmatpush1.bf16.msra.mxu0 %v9958_v0 }
 0x6e9   :  { %5890 = vmatprep.subr.bf16.mxu0 %v9959_v50  ;;  %v9967_v50 = vld [vmem:[#allocation90_spill] sm:$0xff] }
 0x6ec   :  { %5892 = vmatpush1.bf16.msra.mxu0 %v9960_v63 }
 0x6ed   :  { %5894 = vmatprep.subr.bf16.mxu0 %v9961_v28  ;;  %v2511_v28 = vrot.slane %v2504_v61, 2 }
 0x6f0   :  { %5896 = vmatpush1.bf16.msra.mxu0 %v9962_v23 }
 0x6f1   :  { %5898 = vmatprep.subr.bf16.mxu0 %v9963_v19 }
 0x6f4   :  { %5900 = vmatpush1.bf16.msra.mxu0 %v9964_v43 }
 0x6f5   :  { %5966 = vmatprep.subr.bf16.mxu0 %v9965_v32 }
 0x74a   :  { %v2356_v36 = vpop.f32.mrb[12].mxu0  ;;  %v2427_v41 = vpop.f32.mrb[18].mxu1 }
 0x74b   :  { %v2357_v4 = vadd.f32 %v2356_v36, %v9966_v30  ;;  %v2358_v0 = vpop.f32.mrb[13].mxu0  ;;  %v8350_v51 = vpop.f32.mrb[19].mxu1  ;;  %v2428_v32 = vadd.f32 %v2427_v41, %v7740_v15  ;;  %v2519_v36 = vrot.slane %v2504_v61, 4  ;;  %v9982_v41 = vld [vmem:[#allocation23_spill] sm:$0xff] }
 0x74c   :  { %v2359_v63 = vadd.f32 %v2358_v0, %v9967_v50 }
 0x74d   :  { %v2505_v58 = vadd.f32 %v2504_v61, %v2357_v4  ;;  %v9973_v61 = vld [vmem:[#allocation12_spill] sm:$0xff] }
 0x74e   :  { %v2513_v23 = vadd.f32 %v2511_v28, %v2359_v63  ;;  %v9976_v63 = vld [vmem:[#allocation15_spill] sm:$0xff]  ;;  %v9977_v28 = vld [vmem:[#allocation16_spill] sm:$0xff] }
 0x74f   :  { %v2506_v9 = vmul.f32 0.5, %v2505_v58 }
 0x750   :  { %v2514_v19 = vmul.f32 0.5, %v2513_v23  ;;  %v9978_v23 = vld [vmem:[#allocation17_spill] sm:$0xff] }
 0x751   :  { %6954 = vtanh.f32 %v2506_v9 }
 0x752   :  { %6956 = vtanh.f32 %v2514_v19  ;;  %v9979_v19 = vld [vmem:[#allocation18_spill] sm:$0xff] }
 0x75b   :  { %v6955_v43 = vpop.eup %6954 }
 0x75c   :  { %v2508_v3 = vmul.f32 0.5, %v6955_v43  ;;  %v6957_v30 = vpop.eup %6956  ;;  %v9980_v43 = vld [vmem:[#allocation19_spill] sm:$0xff] }
 0x75d   :  { %v2516_v47 = vmul.f32 0.5, %v6957_v30  ;;  %v9974_v30 = vld [vmem:[#allocation13_spill] sm:$0xff] }
 0x75e   :  { %v2509_v38 = vadd.f32 0.5, %v2508_v3  ;;  %v9972_v3 = vld [vmem:[#allocation133_spill] sm:$0xff] }
 0x75f   :  { %v2517_v22 = vadd.f32 0.5, %v2516_v47  ;;  %v9970_v47 = vld [vmem:[#allocation131_spill] sm:$0xff] }
 0x760   :  { %v2518_v8 = vmul.f32 %v2509_v38, %v2428_v32  ;;  %v9971_v38 = vld [vmem:[#allocation132_spill] sm:$0xff]  ;;  %v9981_v32 = vld [vmem:[#allocation21_spill] sm:$0xff] }
 0x761   :  { %v2523_v0 = vsub.f32 1.0, %v2517_v22  ;;  %v2525_v58 = vmul.f32 %v2517_v22, %v8163_v21  ;;  %v9968_v22 = vld [vmem:[#allocation129_spill] sm:$0xff]  ;;  %v9969_v21 = vld [vmem:[#allocation130_spill] sm:$0xff] }
 0x762   :  { %v2521_v24 = vadd.f32 %v2519_v36, %v2518_v8  ;;  %v9983_v36 = vld [vmem:[#allocation25_spill] sm:$0xff] }
 0x764   :  { %6958 = vtanh.f32 %v2521_v24 }
 0x76e   :  { %v6959_v4 = vpop.eup %6958 }
 0x76f   :  { %v2524_v50 = vmul.f32 %v6959_v4, %v2523_v0  ;;  %v9984_v0 = vld [vmem:[#allocation27_spill] sm:$0xff]  ;;  %v9985_v4 = vld [vmem:[#allocation29_spill] sm:$0xff] }
 0x771   :  { %v8355_v9 = vadd.f32 %v2525_v58, %v2524_v50  ;;  %v9975_v50 = vld [vmem:[#allocation14_spill] sm:$0xff]  ;;  %v9986_v58 = vld [vmem:[#allocation31_spill] sm:$0xff] }
 0x773   :  { %2592 = vmatmul.mubr.f32.vlgmr.msra.gmra.mrb[20].mxu1 %v8355_v9 }
 0x774   :  { %5815 = vmatpush3.bf16.msra.mxu1 %v9728_v33  ;;  %4667 = vmatprep.mubr.msk.f32.mxu1 %vm7101_vm0, %v9526_v14 }
 0x775   :  { %5816 = vmatprep.subr.bf16.mxu1 %v9607_v60 }
 0x778   :  { %5818 = vmatpush3.bf16.msra.mxu1 %v9729_v52 }
 0x779   :  { %5819 = vmatprep.subr.bf16.mxu1 %v9607_v60 }
 0x77c   :  { %5821 = vmatpush3.bf16.msra.mxu1 %v9730_v48 }
 0x77d   :  { %5822 = vmatprep.subr.bf16.mxu1 %v9607_v60 }
 0x780   :  { %5824 = vmatpush3.bf16.msra.mxu1 %v9968_v22 }
 0x781   :  { %5825 = vmatprep.subr.bf16.mxu1 %v9607_v60 }
 0x784   :  { %5827 = vmatpush3.bf16.msra.mxu1 %v9969_v21 }
 0x785   :  { %5828 = vmatprep.subr.bf16.mxu1 %v9607_v60 }
 0x788   :  { %5830 = vmatpush3.bf16.msra.mxu1 %v9970_v47 }
 0x789   :  { %5831 = vmatprep.subr.bf16.mxu1 %v9607_v60 }
 0x78a   :  { %v2498_v24 = vpop.f32.mrb[14].mxu0 }
 0x78b   :  { %v8372_v8 = vpop.f32.mrb[15].mxu0 }
 0x78c   :  { %5833 = vmatpush3.bf16.msra.mxu1 %v9971_v38 }
 0x78d   :  { %5834 = vmatprep.subr.bf16.mxu1 %v9607_v60 }
 0x790   :  { %5836 = vmatpush3.bf16.msra.mxu1 %v9972_v3 }
 0x791   :  { %5902 = vmatprep.subr.bf16.mxu1 %v9973_v61 }
 0x793   :  { %4668 = vmatmul.mubr.f32.vlgmr.msra.gmra.mrb[22].mxu1 %v8355_v9 }
 0x794   :  { %5904 = vmatpush1.bf16.msra.mxu1 %v9974_v30 }
 0x795   :  { %5906 = vmatprep.subr.bf16.mxu1 %v9975_v50 }
 0x798   :  { %5908 = vmatpush1.bf16.msra.mxu1 %v9976_v63  ;;  %v9987_v63 = vld [vmem:[#allocation33_spill] sm:$0xff] }
 0x799   :  { %5910 = vmatprep.subr.bf16.mxu1 %v9977_v28  ;;  %v9988_v28 = vld [vmem:[#allocation35_spill] sm:$0xff] }
 0x79c   :  { %5912 = vmatpush1.bf16.msra.mxu1 %v9978_v23  ;;  %v9989_v23 = vld [vmem:[#allocation37_spill] sm:$0xff] }
 0x79d   :  { %5914 = vmatprep.subr.bf16.mxu1 %v9979_v19  ;;  %v9990_v19 = vld [vmem:[#allocation39_spill] sm:$0xff] }
 0x7a0   :  { %5916 = vmatpush1.bf16.msra.mxu1 %v9980_v43  ;;  %v9991_v43 = vld [vmem:[#allocation41_spill] sm:$0xff] }
 0x7a1   :  { %5918 = vmatprep.subr.bf16.mxu1 %v9981_v32  ;;  %v9992_v32 = vld [vmem:[#allocation43_spill] sm:$0xff] }
 0x7a4   :  { %5920 = vmatpush1.bf16.msra.mxu1 %v9982_v41  ;;  %v9993_v41 = vld [vmem:[#allocation45_spill] sm:$0xff] }
 0x7a5   :  { %5922 = vmatprep.subr.bf16.mxu1 %v9983_v36  ;;  %v9994_v36 = vld [vmem:[#allocation47_spill] sm:$0xff] }
 0x7a8   :  { %5924 = vmatpush1.bf16.msra.mxu1 %v9984_v0  ;;  %v9995_v0 = vld [vmem:[#allocation49_spill] sm:$0xff] }
 0x7a9   :  { %5926 = vmatprep.subr.bf16.mxu1 %v9985_v4  ;;  %v9996_v4 = vld [vmem:[#allocation51_spill] sm:$0xff] }
 0x7ac   :  { %5928 = vmatpush1.bf16.msra.mxu1 %v9986_v58  ;;  %v9997_v58 = vld [vmem:[#allocation53_spill] sm:$0xff] }
 0x7ad   :  { %5930 = vmatprep.subr.bf16.mxu1 %v9987_v63  ;;  %v9998_v63 = vld [vmem:[#allocation55_spill] sm:$0xff] }
 0x7b0   :  { %5932 = vmatpush1.bf16.msra.mxu1 %v9988_v28  ;;  %v9999_v28 = vld [vmem:[#allocation57_spill] sm:$0xff] }
 0x7b1   :  { %5934 = vmatprep.subr.bf16.mxu1 %v9989_v23  ;;  %v10000_v23 = vld [vmem:[#allocation59_spill] sm:$0xff] }
 0x7b4   :  { %5936 = vmatpush1.bf16.msra.mxu1 %v9990_v19  ;;  %v10001_v19 = vld [vmem:[#allocation61_spill] sm:$0xff] }
 0x7b5   :  { %5938 = vmatprep.subr.bf16.mxu1 %v9991_v43  ;;  %v10002_v43 = vld [vmem:[#allocation62_spill] sm:$0xff] }
 0x7b8   :  { %5940 = vmatpush1.bf16.msra.mxu1 %v9992_v32  ;;  %v10003_v32 = vld [vmem:[#allocation63_spill] sm:$0xff] }
 0x7b9   :  { %5942 = vmatprep.subr.bf16.mxu1 %v9993_v41  ;;  %v10004_v41 = vld [vmem:[#allocation64_spill] sm:$0xff] }
 0x7bc   :  { %5944 = vmatpush1.bf16.msra.mxu1 %v9994_v36  ;;  %v10005_v36 = vld [vmem:[#allocation81_spill] sm:$0xff] }
 0x7bd   :  { %5946 = vmatprep.subr.bf16.mxu1 %v9995_v0  ;;  %v10013_v0 = vld [vmem:[#allocation134_spill] sm:$0xff] }
 0x7c0   :  { %5948 = vmatpush1.bf16.msra.mxu1 %v9996_v4 }
 0x7c1   :  { %5950 = vmatprep.subr.bf16.mxu1 %v9997_v58  ;;  %v65_v58 = vld [vmem:[%s9183_s0 + $0x8] sm:$0x3] }
 0x7c2   :  { %94 = vperm.xlu1 %6894, %v65_v58   ;;  %298 = vperm.xlu0 %6896, %v65_v58  }
 0x7c4   :  { %5952 = vmatpush1.bf16.msra.mxu1 %v9998_v63  ;;  %v10006_v63 = vmov 1  }
 0x7c5   :  { %5954 = vmatprep.subr.bf16.mxu1 %v9999_v28  ;;  %v10007_v28 = vmov 5  }
 0x7c6   :  { %6895 = vset.pattern.permute.xlu1 %v10006_v63  ;;  %6899 = vset.pattern.permute.xlu0 %v10007_v28  ;;  %v10014_v28 = vld [vmem:[#allocation109_spill] sm:$0xff] }
 0x7c7   :  { %206 = vperm.xlu1 %6895, %v65_v58   ;;  %574 = vperm.xlu0 %6899, %v65_v58   ;;  %v2499_v30 = vadd.f32 %v2498_v24, %v10014_v28 }
 0x7c8   :  { %5956 = vmatpush1.bf16.msra.mxu1 %v10000_v23  ;;  %v10012_v23 = vld [vmem:[#allocation105_spill] sm:$0xff] }
 0x7c9   :  { %5958 = vmatprep.subr.bf16.mxu1 %v10001_v19  ;;  %v10008_v19 = vmov 3   ;;  %v2430_v4 = vadd.f32 %v8350_v51, %v10012_v23 }
 0x7cb   :  { %6897 = vset.pattern.permute.xlu1 %v10008_v19 }
 0x7cc   :  { %5960 = vmatpush1.bf16.msra.mxu1 %v10002_v43  ;;  %v10009_v43 = vmov 2   ;;  %390 = vperm.xlu1 %6897, %v65_v58  }
 0x7cd   :  { %5962 = vmatprep.subr.bf16.mxu1 %v10003_v32  ;;  %6902 = vset.pattern.permute.xlu0 %v10009_v43 }
 0x7d0   :  { %5964 = vmatpush1.bf16.msra.mxu1 %v10004_v41  ;;  %v10010_v41 = vmov 4  }
 0x7d1   :  { %6030 = vmatprep.subr.bf16.mxu1 %v10005_v36  ;;  %6898 = vset.pattern.permute.xlu1 %v10010_v41  ;;  %v10011_v36 = vmov 0  }
 0x7d2   :  { %482 = vperm.xlu1 %6898, %v65_v58   ;;  %v2501_v58 = vadd.f32 %v8372_v8, %v9895_v55  ;;  %v10020_v8 = vld [vmem:[#allocation82_spill] sm:$0xff] }
 0x7d6   :  { %6900 = vset.pattern.permute.xlu1 %v10011_v36 }
 0x846   :  { %v2593_v32 = vpop.f32.mrb[20].mxu1 }
 0x847   :  { %v2594_v63 = vadd.f32 %v2593_v32, %v10013_v0  ;;  %v2595_v50 = vpop.f32.mrb[21].mxu1  ;;  %v10015_v32 = vld [vmem:[#allocation136_spill] sm:$0xff] }
 0x848   :  { %v2596_v61 = vadd.f32 %v2595_v50, %v7837_v46 }
 0x849   :  { %v2668_v19 = vadd.f32 %v2594_v63, %v2430_v4 }
 0x84a   :  { %v2673_v3 = vadd.f32 %v2596_v61, %v2499_v30 }
 0x84b   :  { %v2669_v43 = vmul.f32 0.5, %v2668_v19  ;;  %v10016_v19 = vld [vmem:[#allocation107_spill] sm:$0xff] }
 0x84c   :  { %v2674_v47 = vmul.f32 0.5, %v2673_v3  ;;  %v10021_v3 = vld [vmem:[#allocation85_spill] sm:$0xff] }
 0x84d   :  { %6960 = vtanh.f32 %v2669_v43 }
 0x84e   :  { %6962 = vtanh.f32 %v2674_v47  ;;  %v10018_v47 = vld [vmem:[#allocation66_spill] sm:$0xff] }
 0x857   :  { %v6961_v38 = vpop.eup %6960 }
 0x858   :  { %v2671_v41 = vmul.f32 0.5, %v6961_v38  ;;  %v6963_v24 = vpop.eup %6962 }
 0x859   :  { %v2676_v50 = vmul.f32 0.5, %v6963_v24  ;;  %v10029_v24 = vld [vmem:[#allocation103_spill] sm:$0xff] }
 0x85a   :  { %v2672_v36 = vadd.f32 0.5, %v2671_v41  ;;  %v10024_v41 = vld [vmem:[#allocation86_spill] sm:$0xff] }
 0x85b   :  { %v2677_v61 = vadd.f32 0.5, %v2676_v50  ;;  %v10030_v50 = vld [vmem:[#allocation72_spill] sm:$0xff] }
 0x85c   :  { %v2678_v21 = vmul.f32 %v2672_v36, %v2501_v58  ;;  %v10025_v36 = vld [vmem:[#allocation92_spill] sm:$0xff]  ;;  %v10027_v58 = vld [vmem:[#allocation71_spill] sm:$0xff] }
 0x85d   :  { %v2681_v30 = vsub.f32 1.0, %v2677_v61  ;;  %v2683_v38 = vmul.f32 %v2677_v61, %v10016_v19  ;;  %v10031_v61 = vld [vmem:[#allocation73_spill] sm:$0xff]  ;;  %v10034_v19 = vld [vmem:[#allocation74_spill] sm:$0xff] }
 0x866   :  { %v2664_v51 = vpop.f32.mrb[22].mxu1 }
 0x867   :  { %v2665_v0 = vadd.f32 %v2664_v51, %v10015_v32  ;;  %v4669_v23 = vpop.f32.mrb[23].mxu1  ;;  %v10028_v51 = vld [vmem:[#allocation93_spill] sm:$0xff]  ;;  %v10065_v32 = vld [vmem:[#allocation111_spill] sm:$0xff] }
 0x868   :  { %v10023_v23 = vld [vmem:[#allocation69_spill] sm:$0xff] }
 0x869   :  { %v2679_v28 = vadd.f32 %v2678_v21, %v2665_v0  ;;  %v10019_v21 = vld [vmem:[#allocation67_spill] sm:$0xff]  ;;  %v10026_v0 = vld [vmem:[#allocation70_spill] sm:$0xff] }
 0x86b   :  { %6964 = vtanh.f32 %v2679_v28  ;;  %v10022_v28 = vld [vmem:[#allocation68_spill] sm:$0xff] }
 0x875   :  { %v6965_v63 = vpop.eup %6964 }
 0x876   :  { %v2682_v43 = vmul.f32 %v6965_v63, %v2681_v30  ;;  %v10032_v30 = vld [vmem:[#allocation106_spill] sm:$0xff]  ;;  %v10033_v63 = vld [vmem:[#allocation113_spill] sm:$0xff] }
 0x878   :  { %v8429_v4 = vadd.f32 %v2683_v38, %v2682_v43  ;;  %v10035_v38 = vld [vmem:[#allocation75_spill] sm:$0xff]  ;;  %v10036_v43 = vld [vmem:[#allocation117_spill] sm:$0xff] }
 0x87a   :  { %10017 = vst [vmem:[#allocation119_spill] sm:$0xff] %v8429_v4  ;;  %2749 = vmatprep.mubr.f32.mxu0 %v8429_v4  ;;  %2820 = vmatprep.mubr.f32.mxu1 %v8429_v4 }
 0x87b   :  { %2750 = vmatmul.mubr.f32.vlgmr.msra.gmra.mrb[16].mxu0 %v8355_v9  ;;  %2821 = vmatmul.mubr.f32.vlgmr.msra.gmra.mrb[24].mxu1 %v8355_v9 }
 0x87c   :  { %5968 = vmatpush1.bf16.msra.mxu0 %v10018_v47  ;;  %2891 = vmatprep.mubr.f32.mxu0 %v8429_v4  ;;  %v10063_v47 = vld [vmem:[#allocation104_spill] sm:$0xff] }
 0x87d   :  { %5970 = vmatprep.subr.bf16.mxu0 %v10019_v21  ;;  %6032 = vmatpush1.bf16.msra.mxu1 %v10020_v8  ;;  %v10061_v8 = vld [vmem:[#allocation118_spill] sm:$0xff]  ;;  %v10064_v4 = vld [vmem:[#allocation108_spill] sm:$0xff] }
 0x87e   :  { %6034 = vmatprep.subr.bf16.mxu1 %v10021_v3  ;;  %2986 = vmatprep.mubr.f32.mxu1 %v9526_v14  ;;  %v10060_v3 = vld [vmem:[#allocation101_spill] sm:$0xff]  ;;  %v10062_v21 = vld [vmem:[#allocation102_spill] sm:$0xff] }
 0x880   :  { %5972 = vmatpush1.bf16.msra.mxu0 %v10022_v28  ;;  %v10058_v28 = vld [vmem:[#allocation112_spill] sm:$0xff] }
 0x881   :  { %5974 = vmatprep.subr.bf16.mxu0 %v10023_v23  ;;  %6036 = vmatpush1.bf16.msra.mxu1 %v10024_v41  ;;  %v299_v23 = vpop.permute.xlu0 %298 }
 0x882   :  { %6038 = vmatprep.subr.bf16.mxu1 %v10025_v36 }
 0x884   :  { %5976 = vmatpush1.bf16.msra.mxu0 %v10026_v0  ;;  %v10037_v0 = vld [vmem:[#allocation120_spill] sm:$0xff] }
 0x885   :  { %5978 = vmatprep.subr.bf16.mxu0 %v10027_v58  ;;  %6040 = vmatpush1.bf16.msra.mxu1 %v10028_v51  ;;  %v10038_v58 = vld [vmem:[#allocation76_spill] sm:$0xff]  ;;  %v10039_v51 = vld [vmem:[#allocation77_spill] sm:$0xff] }
 0x886   :  { %6042 = vmatprep.subr.bf16.mxu1 %v10029_v24  ;;  %v10040_v24 = vld [vmem:[#allocation121_spill] sm:$0xff] }
 0x888   :  { %5980 = vmatpush1.bf16.msra.mxu0 %v10030_v50  ;;  %v10041_v50 = vld [vmem:[#allocation122_spill] sm:$0xff] }
 0x889   :  { %5982 = vmatprep.subr.bf16.mxu0 %v10031_v61  ;;  %6044 = vmatpush1.bf16.msra.mxu1 %v10032_v30  ;;  %v10042_v61 = vld [vmem:[#allocation78_spill] sm:$0xff]  ;;  %v10043_v30 = vld [vmem:[#allocation79_spill] sm:$0xff] }
 0x88a   :  { %6046 = vmatprep.subr.bf16.mxu1 %v10033_v63  ;;  %v10044_v63 = vld [vmem:[#allocation124_spill] sm:$0xff] }
 0x88c   :  { %5984 = vmatpush1.bf16.msra.mxu0 %v10034_v19  ;;  %v10045_v19 = vld [vmem:[#allocation125_spill] sm:$0xff] }
 0x88d   :  { %5986 = vmatprep.subr.bf16.mxu0 %v10035_v38  ;;  %6048 = vmatpush1.bf16.msra.mxu1 %v10036_v43  ;;  %v10046_v38 = vld [vmem:[#allocation80_spill] sm:$0xff]  ;;  %v10047_v43 = vld [vmem:[#allocation83_spill] sm:$0xff] }
 0x88e   :  { %6050 = vmatprep.subr.bf16.mxu1 %v10037_v0  ;;  %v10048_v0 = vld [vmem:[#allocation126_spill] sm:$0xff] }
 0x890   :  { %5988 = vmatpush1.bf16.msra.mxu0 %v10038_v58 }
 0x891   :  { %5990 = vmatprep.subr.bf16.mxu0 %v10039_v51  ;;  %6052 = vmatpush1.bf16.msra.mxu1 %v10040_v24  ;;  %v10049_v51 = vld [vmem:[#allocation84_spill] sm:$0xff] }
 0x892   :  { %6054 = vmatprep.subr.bf16.mxu1 %v10041_v50  ;;  %v10050_v24 = vld [vmem:[#allocation88_spill] sm:$0xff]  ;;  %v10051_v50 = vld [vmem:[#allocation89_spill] sm:$0xff] }
 0x894   :  { %5992 = vmatpush1.bf16.msra.mxu0 %v10042_v61  ;;  %v10052_v61 = vld [vmem:[#allocation95_spill] sm:$0xff] }
 0x895   :  { %5994 = vmatprep.subr.bf16.mxu0 %v10043_v30  ;;  %6056 = vmatpush1.bf16.msra.mxu1 %v10044_v63  ;;  %v10053_v30 = vld [vmem:[#allocation99_spill] sm:$0xff]  ;;  %v95_v63 = vpop.permute.xlu1 %94 }
 0x896   :  { %6058 = vmatprep.subr.bf16.mxu1 %v10045_v19  ;;  %v10054_v19 = vld [vmem:[#allocation110_spill] sm:$0xff] }
 0x898   :  { %5996 = vmatpush1.bf16.msra.mxu0 %v10046_v38  ;;  %v10055_v38 = vld [vmem:[#allocation94_spill] sm:$0xff] }
 0x899   :  { %5998 = vmatprep.subr.bf16.mxu0 %v10047_v43  ;;  %6060 = vmatpush1.bf16.msra.mxu1 %v10048_v0  ;;  %v136_v58 = vmul.f32 %v10055_v38, %v95_v63  ;;  %v10056_v43 = vld [vmem:[#allocation96_spill] sm:$0xff]  ;;  %v10057_v0 = vld [vmem:[#allocation97_spill] sm:$0xff]  ;;  %v338_v38 = vmul.f32 %v10063_v47, %v299_v23 }
 0x89a   :  { %6061 = vmatprep.subr.bf16.mxu1 %v9607_v60  ;;  %v137_v36 = vmul.f32 %v10056_v43, %v95_v63  ;;  %v138_v41 = vmul.f32 %v10057_v0, %v95_v63 }
 0x89c   :  { %6000 = vmatpush1.bf16.msra.mxu0 %v10049_v51  ;;  %v10059_v51 = vld [vmem:[#allocation100_spill] sm:$0xff] }
 0x89d   :  { %6002 = vmatprep.subr.bf16.mxu0 %v10050_v24  ;;  %v177_v24 = vadd.f32 %v9820_v62, %v136_v58 }
 0x8a0   :  { %6004 = vmatpush1.bf16.msra.mxu0 %v10051_v50  ;;  %v178_v50 = vadd.f32 %v10059_v51, %v137_v36 }
 0x8a1   :  { %6006 = vmatprep.subr.bf16.mxu0 %v10052_v61  ;;  %v179_v61 = vadd.f32 %v10060_v3, %v138_v41 }
 0x8a4   :  { %6008 = vmatpush1.bf16.msra.mxu0 %v10053_v30  ;;  %v207_v30 = vpop.permute.xlu1 %206 }
 0x8a5   :  { %6010 = vmatprep.subr.bf16.mxu0 %v10054_v19  ;;  %v337_v19 = vmul.f32 %v10062_v21, %v299_v23  ;;  %v245_v43 = vmul.f32 %v10064_v4, %v207_v30  ;;  %v246_v63 = vmul.f32 %v10065_v32, %v207_v30  ;;  %v247_v0 = vmul.f32 %v9705_v25, %v207_v30 }
 0x8a7   :  { %v269_v36 = vadd.f32 %v245_v43, %v177_v24  ;;  %v270_v58 = vadd.f32 %v246_v63, %v178_v50  ;;  %v271_v41 = vadd.f32 %v247_v0, %v179_v61 }
 0x8a8   :  { %6012 = vmatpush1.bf16.msra.mxu0 %v10058_v28  ;;  %v339_v28 = vmul.f32 %v9706_v29, %v299_v23  ;;  %v575_v23 = vpop.permute.xlu0 %574 }
 0x8a9   :  { %6014 = vmatprep.subr.bf16.mxu0 %v10061_v8  ;;  %v391_v8 = vpop.permute.xlu1 %390  ;;  %v361_v3 = vadd.f32 %v337_v19, %v269_v36  ;;  %v362_v21 = vadd.f32 %v338_v38, %v270_v58  ;;  %v613_v30 = vmul.f32 %v7612_v2, %v575_v23  ;;  %v614_v19 = vmul.f32 %v7648_v18, %v575_v23 }
 0x8aa   :  { %v363_v51 = vadd.f32 %v339_v28, %v271_v41  ;;  %v429_v47 = vmul.f32 %v9708_v35, %v391_v8  ;;  %v430_v4 = vmul.f32 %v7585_v39, %v391_v8  ;;  %v431_v32 = vmul.f32 %v7589_v45, %v391_v8 }
 0x8ab   :  { %v615_v43 = vmul.f32 %v9710_v42, %v575_v23  ;;  %v10066_v23 = vld [vmem:[#allocation24_spill] sm:$0xff] }
 0x8ac   :  { %6016 = vmatpush1.bf16.msra.mxu0 %v9707_v34  ;;  %v453_v24 = vadd.f32 %v429_v47, %v361_v3  ;;  %v454_v50 = vadd.f32 %v430_v4, %v362_v21  ;;  %v455_v0 = vadd.f32 %v431_v32, %v363_v51 }
 0x8ad   :  { %6018 = vmatprep.subr.bf16.mxu0 %v7636_v53  ;;  %v483_v61 = vpop.permute.xlu1 %482 }
 0x8ae   :  { %v521_v28 = vmul.f32 %v7594_v57, %v483_v61  ;;  %v522_v38 = vmul.f32 %v9709_v27, %v483_v61  ;;  %v523_v8 = vmul.f32 %v7608_v37, %v483_v61  ;;  %v10070_v61 = vld [vmem:[#allocation32_spill] sm:$0xff] }
 0x8b0   :  { %6020 = vmatpush1.bf16.msra.mxu0 %v7638_v12  ;;  %v545_v47 = vadd.f32 %v521_v28, %v453_v24  ;;  %v546_v4 = vadd.f32 %v522_v38, %v454_v50  ;;  %v547_v32 = vadd.f32 %v523_v8, %v455_v0  ;;  %v10067_v24 = vld [vmem:[#allocation26_spill] sm:$0xff]  ;;  %v10068_v50 = vld [vmem:[#allocation28_spill] sm:$0xff] }
 0x8b1   :  { %6022 = vmatprep.subr.bf16.mxu0 %v7662_v56  ;;  %v10069_v0 = vld [vmem:[#allocation30_spill] sm:$0xff]  ;;  %v10074_v38 = vld [vmem:[#allocation40_spill] sm:$0xff] }
 0x8b2   :  { %v637_v21 = vadd.f32 %v613_v30, %v545_v47  ;;  %v638_v3 = vadd.f32 %v614_v19, %v546_v4  ;;  %v639_v51 = vadd.f32 %v615_v43, %v547_v32  ;;  %v10071_v30 = vld [vmem:[#allocation34_spill] sm:$0xff]  ;;  %v10072_v19 = vld [vmem:[#allocation36_spill] sm:$0xff] }
 0x8b3   :  { %v10073_v28 = vld [vmem:[#allocation38_spill] sm:$0xff]  ;;  %v10076_v43 = vld [vmem:[#allocation44_spill] sm:$0xff] }
 0x8b4   :  { %6024 = vmatpush1.bf16.msra.mxu0 %v7665_v20  ;;  %v737_v63 = vcombine.low %v637_v21, %v638_v3  ;;  %v751_v36 = vrot.slane %v639_v51, %v7644_v1  ;;  %v10075_v8 = vld [vmem:[#allocation42_spill] sm:$0xff]  ;;  %v10078_v4 = vld [vmem:[#allocation48_spill] sm:$0xff] }
 0x8b5   :  { %6026 = vmatprep.subr.bf16.mxu0 %v7677_v49  ;;  %v10077_v47 = vld [vmem:[#allocation46_spill] sm:$0xff]  ;;  %v10080_v21 = vld [vmem:[#allocation52_spill] sm:$0xff] }
 0x8b6   :  { %v744_v58 = vrot.slane %v737_v63, %v7644_v1  ;;  %v10079_v32 = vld [vmem:[#allocation50_spill] sm:$0xff]  ;;  %v10082_v51 = vld [vmem:[#allocation56_spill] sm:$0xff] }
 0x8b7   :  { %v10081_v3 = vld [vmem:[#allocation54_spill] sm:$0xff] }
 0x8b8   :  { %6028 = vmatpush1.bf16.msra.mxu0 %v7679_v7  ;;  %v752_v41 = vcombine.low %v744_v58, %v751_v36  ;;  %v10083_v63 = vld [vmem:[#allocation58_spill] sm:$0xff]  ;;  %v10084_v36 = vld [vmem:[#allocation60_spill] sm:$0xff]  ;;  %v10085_v58 = vld [vmem:[#allocation65_spill] sm:$0xff] }
 0x8b9   :  { %6086 = vmatprep.subr.bf16.mxu0 %v7181_v6 }
 0x8ba   :  { %813 = vst [vmem:[#allocation2 + $0x18] sm:$0x3f] %v752_v41 }
 0x8bb   :  { %2892 = vmatmul.mubr.f32.vlgmr.msra.gmra.mrb[18].mxu0 %v8355_v9 }
 0x8bc   :  { %6088 = vmatpush1.bf16.msra.mxu0 %v7183_v10 }
 0x8bd   :  { %6090 = vmatprep.subr.bf16.mxu0 %v7185_v11 }
 0x8c0   :  { %6092 = vmatpush1.bf16.msra.mxu0 %v7189_v16 }
 0x8c1   :  { %6094 = vmatprep.subr.bf16.mxu0 %v7192_v17 }
 0x8c4   :  { %6096 = vmatpush1.bf16.msra.mxu0 %v7195_v26 }
 0x8c5   :  { %6098 = vmatprep.subr.bf16.mxu0 %v7202_v31 }
 0x8c8   :  { %6100 = vmatpush1.bf16.msra.mxu0 %v7211_v40 }
 0x8c9   :  { %6102 = vmatprep.subr.bf16.mxu0 %v7215_v44 }
 0x8cc   :  { %6104 = vmatpush1.bf16.msra.mxu0 %v7223_v54 }
 0x8cd   :  { %6106 = vmatprep.subr.bf16.mxu0 %v7229_v59 }
 0x8d0   :  { %6108 = vmatpush1.bf16.msra.mxu0 %v7235_v5 }
 0x8d1   :  { %6110 = vmatprep.subr.bf16.mxu0 %v7241_v13 }
 0x8d4   :  { %6112 = vmatpush1.bf16.msra.mxu0 %v10066_v23 }
 0x8d5   :  { %6114 = vmatprep.subr.bf16.mxu0 %v10067_v24 }
 0x8d8   :  { %6116 = vmatpush1.bf16.msra.mxu0 %v10068_v50 }
 0x8d9   :  { %6118 = vmatprep.subr.bf16.mxu0 %v10069_v0 }
 0x8dc   :  { %6120 = vmatpush1.bf16.msra.mxu0 %v10070_v61 }
 0x8dd   :  { %6122 = vmatprep.subr.bf16.mxu0 %v10071_v30 }
 0x8e0   :  { %6124 = vmatpush1.bf16.msra.mxu0 %v10072_v19 }
 0x8e1   :  { %6126 = vmatprep.subr.bf16.mxu0 %v10073_v28 }
 0x8e4   :  { %6128 = vmatpush1.bf16.msra.mxu0 %v10074_v38  ;;  %v2899_v38 = vld [vmem:[#allocation2 + $0x18] sm:$0x3f] }
 0x8e5   :  { %6130 = vmatprep.subr.bf16.mxu0 %v10075_v8  ;;  %v10086_v8 = vld [vmem:[#allocation87_spill] sm:$0xff] }
 0x8e8   :  { %6132 = vmatpush1.bf16.msra.mxu0 %v10076_v43 }
 0x8e9   :  { %6134 = vmatprep.subr.bf16.mxu0 %v10077_v47 }
 0x8ec   :  { %6136 = vmatpush1.bf16.msra.mxu0 %v10078_v4 }
 0x8ed   :  { %6138 = vmatprep.subr.bf16.mxu0 %v10079_v32  ;;  %v10087_v32 = vld [vmem:[#allocation90_spill] sm:$0xff] }
 0x8f0   :  { %6140 = vmatpush1.bf16.msra.mxu0 %v10080_v21 }
 0x8f1   :  { %6142 = vmatprep.subr.bf16.mxu0 %v10081_v3  ;;  %v2906_v3 = vrot.slane %v2899_v38, 2 }
 0x8f4   :  { %6144 = vmatpush1.bf16.msra.mxu0 %v10082_v51 }
 0x8f5   :  { %6146 = vmatprep.subr.bf16.mxu0 %v10083_v63 }
 0x8f8   :  { %6148 = vmatpush1.bf16.msra.mxu0 %v10084_v36 }
 0x8f9   :  { %6214 = vmatprep.subr.bf16.mxu0 %v10085_v58 }
 0x94e   :  { %v2751_v41 = vpop.f32.mrb[16].mxu0  ;;  %v2822_v43 = vpop.f32.mrb[24].mxu1 }
 0x94f   :  { %v2752_v47 = vadd.f32 %v2751_v41, %v10086_v8  ;;  %v2753_v4 = vpop.f32.mrb[17].mxu0  ;;  %v8542_v28 = vpop.f32.mrb[25].mxu1  ;;  %v2823_v58 = vadd.f32 %v2822_v43, %v7740_v15  ;;  %v2914_v41 = vrot.slane %v2899_v38, 4  ;;  %v10095_v43 = vld [vmem:[#allocation15_spill] sm:$0xff] }
 0x950   :  { %v2754_v21 = vadd.f32 %v2753_v4, %v10087_v32 }
 0x951   :  { %v2900_v19 = vadd.f32 %v2899_v38, %v2752_v47  ;;  %v10093_v38 = vld [vmem:[#allocation13_spill] sm:$0xff] }
 0x952   :  { %v2908_v51 = vadd.f32 %v2906_v3, %v2754_v21  ;;  %v10097_v21 = vld [vmem:[#allocation17_spill] sm:$0xff]  ;;  %v10098_v3 = vld [vmem:[#allocation18_spill] sm:$0xff] }
 0x953   :  { %v2901_v30 = vmul.f32 0.5, %v2900_v19 }
 0x954   :  { %v2909_v63 = vmul.f32 0.5, %v2908_v51  ;;  %v10099_v51 = vld [vmem:[#allocation19_spill] sm:$0xff] }
 0x955   :  { %6966 = vtanh.f32 %v2901_v30 }
 0x956   :  { %6968 = vtanh.f32 %v2909_v63  ;;  %v10100_v63 = vld [vmem:[#allocation21_spill] sm:$0xff] }
 0x95f   :  { %v6967_v36 = vpop.eup %6966 }
 0x960   :  { %v2903_v61 = vmul.f32 0.5, %v6967_v36  ;;  %v6969_v8 = vpop.eup %6968  ;;  %v10101_v36 = vld [vmem:[#allocation23_spill] sm:$0xff] }
 0x961   :  { %v2911_v23 = vmul.f32 0.5, %v6969_v8  ;;  %v10094_v8 = vld [vmem:[#allocation14_spill] sm:$0xff] }
 0x962   :  { %v2904_v0 = vadd.f32 0.5, %v2903_v61  ;;  %v10092_v61 = vld [vmem:[#allocation12_spill] sm:$0xff] }
 0x963   :  { %v2912_v13 = vadd.f32 0.5, %v2911_v23 }
 0x964   :  { %v2913_v50 = vmul.f32 %v2904_v0, %v2823_v58  ;;  %v10091_v0 = vld [vmem:[#allocation133_spill] sm:$0xff] }
 0x965   :  { %v2918_v4 = vsub.f32 1.0, %v2912_v13  ;;  %v2920_v19 = vmul.f32 %v2912_v13, %v8355_v9  ;;  %v10088_v13 = vld [vmem:[#allocation130_spill] sm:$0xff]  ;;  %v10089_v9 = vld [vmem:[#allocation131_spill] sm:$0xff]  ;;  %v10102_v58 = vld [vmem:[#allocation25_spill] sm:$0xff] }
 0x966   :  { %v2916_v24 = vadd.f32 %v2914_v41, %v2913_v50  ;;  %v10090_v50 = vld [vmem:[#allocation132_spill] sm:$0xff]  ;;  %v10103_v41 = vld [vmem:[#allocation27_spill] sm:$0xff] }
 0x968   :  { %6970 = vtanh.f32 %v2916_v24 }
 0x972   :  { %v6971_v47 = vpop.eup %6970 }
 0x973   :  { %v2919_v32 = vmul.f32 %v6971_v47, %v2918_v4  ;;  %v10104_v4 = vld [vmem:[#allocation29_spill] sm:$0xff]  ;;  %v10105_v47 = vld [vmem:[#allocation31_spill] sm:$0xff] }
 0x975   :  { %v8547_v30 = vadd.f32 %v2920_v19, %v2919_v32  ;;  %v10096_v32 = vld [vmem:[#allocation16_spill] sm:$0xff]  ;;  %v10106_v19 = vld [vmem:[#allocation33_spill] sm:$0xff] }
 0x977   :  { %2987 = vmatmul.mubr.f32.vlgmr.msra.gmra.mrb[26].mxu1 %v8547_v30 }
 0x978   :  { %6063 = vmatpush3.bf16.msra.mxu1 %v9728_v33  ;;  %4702 = vmatprep.mubr.msk.f32.mxu1 %vm7101_vm0, %v9526_v14 }
 0x979   :  { %6064 = vmatprep.subr.bf16.mxu1 %v9607_v60 }
 0x97c   :  { %6066 = vmatpush3.bf16.msra.mxu1 %v9729_v52 }
 0x97d   :  { %6067 = vmatprep.subr.bf16.mxu1 %v9607_v60 }
 0x980   :  { %6069 = vmatpush3.bf16.msra.mxu1 %v9730_v48 }
 0x981   :  { %6070 = vmatprep.subr.bf16.mxu1 %v9607_v60 }
 0x984   :  { %6072 = vmatpush3.bf16.msra.mxu1 %v9968_v22 }
 0x985   :  { %6073 = vmatprep.subr.bf16.mxu1 %v9607_v60 }
 0x988   :  { %6075 = vmatpush3.bf16.msra.mxu1 %v10088_v13 }
 0x989   :  { %6076 = vmatprep.subr.bf16.mxu1 %v9607_v60 }
 0x98c   :  { %6078 = vmatpush3.bf16.msra.mxu1 %v10089_v9 }
 0x98d   :  { %6079 = vmatprep.subr.bf16.mxu1 %v9607_v60 }
 0x98e   :  { %v2893_v23 = vpop.f32.mrb[18].mxu0 }
 0x98f   :  { %v8564_v24 = vpop.f32.mrb[19].mxu0 }
 0x990   :  { %6081 = vmatpush3.bf16.msra.mxu1 %v10090_v50 }
 0x991   :  { %6082 = vmatprep.subr.bf16.mxu1 %v9607_v60 }
 0x994   :  { %6084 = vmatpush3.bf16.msra.mxu1 %v10091_v0 }
 0x995   :  { %6150 = vmatprep.subr.bf16.mxu1 %v10092_v61 }
 0x997   :  { %4703 = vmatmul.mubr.f32.vlgmr.msra.gmra.mrb[28].mxu1 %v8547_v30 }
 0x998   :  { %6152 = vmatpush1.bf16.msra.mxu1 %v10093_v38 }
 0x999   :  { %6154 = vmatprep.subr.bf16.mxu1 %v10094_v8 }
 0x99c   :  { %6156 = vmatpush1.bf16.msra.mxu1 %v10095_v43 }
 0x99d   :  { %6158 = vmatprep.subr.bf16.mxu1 %v10096_v32  ;;  %v10107_v32 = vld [vmem:[#allocation35_spill] sm:$0xff] }
 0x9a0   :  { %6160 = vmatpush1.bf16.msra.mxu1 %v10097_v21  ;;  %v10108_v21 = vld [vmem:[#allocation37_spill] sm:$0xff] }
 0x9a1   :  { %6162 = vmatprep.subr.bf16.mxu1 %v10098_v3  ;;  %v10109_v3 = vld [vmem:[#allocation39_spill] sm:$0xff] }
 0x9a4   :  { %6164 = vmatpush1.bf16.msra.mxu1 %v10099_v51  ;;  %v10110_v51 = vld [vmem:[#allocation41_spill] sm:$0xff] }
 0x9a5   :  { %6166 = vmatprep.subr.bf16.mxu1 %v10100_v63  ;;  %v10111_v63 = vld [vmem:[#allocation43_spill] sm:$0xff] }
 0x9a8   :  { %6168 = vmatpush1.bf16.msra.mxu1 %v10101_v36  ;;  %v10112_v36 = vld [vmem:[#allocation45_spill] sm:$0xff] }
 0x9a9   :  { %6170 = vmatprep.subr.bf16.mxu1 %v10102_v58  ;;  %v10113_v58 = vld [vmem:[#allocation47_spill] sm:$0xff] }
 0x9ac   :  { %6172 = vmatpush1.bf16.msra.mxu1 %v10103_v41  ;;  %v10114_v41 = vld [vmem:[#allocation49_spill] sm:$0xff] }
 0x9ad   :  { %6174 = vmatprep.subr.bf16.mxu1 %v10104_v4  ;;  %v10115_v4 = vld [vmem:[#allocation51_spill] sm:$0xff] }
 0x9b0   :  { %6176 = vmatpush1.bf16.msra.mxu1 %v10105_v47  ;;  %v10116_v47 = vld [vmem:[#allocation53_spill] sm:$0xff] }
 0x9b1   :  { %6178 = vmatprep.subr.bf16.mxu1 %v10106_v19  ;;  %v10117_v19 = vld [vmem:[#allocation55_spill] sm:$0xff] }
 0x9b4   :  { %6180 = vmatpush1.bf16.msra.mxu1 %v10107_v32  ;;  %v10118_v32 = vld [vmem:[#allocation57_spill] sm:$0xff] }
 0x9b5   :  { %6182 = vmatprep.subr.bf16.mxu1 %v10108_v21  ;;  %v10119_v21 = vld [vmem:[#allocation59_spill] sm:$0xff] }
 0x9b8   :  { %6184 = vmatpush1.bf16.msra.mxu1 %v10109_v3  ;;  %v10120_v3 = vld [vmem:[#allocation61_spill] sm:$0xff] }
 0x9b9   :  { %6186 = vmatprep.subr.bf16.mxu1 %v10110_v51  ;;  %v10121_v51 = vld [vmem:[#allocation62_spill] sm:$0xff] }
 0x9bc   :  { %6188 = vmatpush1.bf16.msra.mxu1 %v10111_v63  ;;  %v10122_v63 = vld [vmem:[#allocation63_spill] sm:$0xff] }
 0x9bd   :  { %6190 = vmatprep.subr.bf16.mxu1 %v10112_v36  ;;  %v10123_v36 = vld [vmem:[#allocation64_spill] sm:$0xff] }
 0x9c0   :  { %6192 = vmatpush1.bf16.msra.mxu1 %v10113_v58  ;;  %v10124_v58 = vld [vmem:[#allocation81_spill] sm:$0xff] }
 0x9c1   :  { %6194 = vmatprep.subr.bf16.mxu1 %v10114_v41  ;;  %v10132_v41 = vld [vmem:[#allocation134_spill] sm:$0xff] }
 0x9c4   :  { %6196 = vmatpush1.bf16.msra.mxu1 %v10115_v4 }
 0x9c5   :  { %6198 = vmatprep.subr.bf16.mxu1 %v10116_v47  ;;  %v66_v47 = vld [vmem:[%s9183_s0 + $0xa] sm:$0x3] }
 0x9c6   :  { %99 = vperm.xlu1 %6900, %v66_v47   ;;  %302 = vperm.xlu0 %6902, %v66_v47  }
 0x9c8   :  { %6200 = vmatpush1.bf16.msra.mxu1 %v10117_v19  ;;  %v10125_v19 = vmov 1  }
 0x9c9   :  { %6202 = vmatprep.subr.bf16.mxu1 %v10118_v32  ;;  %v10126_v32 = vmov 5  }
 0x9ca   :  { %6901 = vset.pattern.permute.xlu1 %v10125_v19  ;;  %6905 = vset.pattern.permute.xlu0 %v10126_v32  ;;  %v10133_v32 = vld [vmem:[#allocation109_spill] sm:$0xff] }
 0x9cb   :  { %210 = vperm.xlu1 %6901, %v66_v47   ;;  %578 = vperm.xlu0 %6905, %v66_v47   ;;  %v2894_v8 = vadd.f32 %v2893_v23, %v10133_v32 }
 0x9cc   :  { %6204 = vmatpush1.bf16.msra.mxu1 %v10119_v21  ;;  %v10131_v21 = vld [vmem:[#allocation105_spill] sm:$0xff] }
 0x9cd   :  { %6206 = vmatprep.subr.bf16.mxu1 %v10120_v3  ;;  %v10127_v3 = vmov 3   ;;  %v2825_v4 = vadd.f32 %v8542_v28, %v10131_v21 }
 0x9cf   :  { %6903 = vset.pattern.permute.xlu1 %v10127_v3 }
 0x9d0   :  { %6208 = vmatpush1.bf16.msra.mxu1 %v10121_v51  ;;  %v10128_v51 = vmov 2   ;;  %394 = vperm.xlu1 %6903, %v66_v47  }
 0x9d1   :  { %6210 = vmatprep.subr.bf16.mxu1 %v10122_v63  ;;  %6908 = vset.pattern.permute.xlu0 %v10128_v51 }
 0x9d4   :  { %6212 = vmatpush1.bf16.msra.mxu1 %v10123_v36  ;;  %v10129_v36 = vmov 4  }
 0x9d5   :  { %6278 = vmatprep.subr.bf16.mxu1 %v10124_v58  ;;  %6904 = vset.pattern.permute.xlu1 %v10129_v36  ;;  %v10130_v58 = vmov 0  }
 0x9d6   :  { %486 = vperm.xlu1 %6904, %v66_v47   ;;  %v2896_v47 = vadd.f32 %v8564_v24, %v9895_v55  ;;  %v10137_v24 = vld [vmem:[#allocation66_spill] sm:$0xff] }
 0x9da   :  { %6906 = vset.pattern.permute.xlu1 %v10130_v58 }
 0xa4a   :  { %v2988_v63 = vpop.f32.mrb[26].mxu1 }
 0xa4b   :  { %v2989_v19 = vadd.f32 %v2988_v63, %v10132_v41  ;;  %v2990_v43 = vpop.f32.mrb[27].mxu1  ;;  %v10134_v63 = vld [vmem:[#allocation136_spill] sm:$0xff] }
 0xa4c   :  { %v2991_v38 = vadd.f32 %v2990_v43, %v7837_v46 }
 0xa4d   :  { %v3063_v3 = vadd.f32 %v2989_v19, %v2825_v4 }
 0xa4e   :  { %v3068_v61 = vadd.f32 %v2991_v38, %v2894_v8 }
 0xa4f   :  { %v3064_v51 = vmul.f32 0.5, %v3063_v3 }
 0xa50   :  { %v3069_v50 = vmul.f32 0.5, %v3068_v61  ;;  %v10140_v61 = vld [vmem:[#allocation85_spill] sm:$0xff] }
 0xa51   :  { %6972 = vtanh.f32 %v3064_v51  ;;  %v10135_v51 = vld [vmem:[#allocation119_spill] sm:$0xff] }
 0xa52   :  { %6974 = vtanh.f32 %v3069_v50  ;;  %v10139_v50 = vld [vmem:[#allocation82_spill] sm:$0xff] }
 0xa5b   :  { %v6973_v0 = vpop.eup %6972 }
 0xa5c   :  { %v3066_v36 = vmul.f32 0.5, %v6973_v0  ;;  %v6975_v23 = vpop.eup %6974 }
 0xa5d   :  { %v3071_v43 = vmul.f32 0.5, %v6975_v23  ;;  %v10148_v23 = vld [vmem:[#allocation103_spill] sm:$0xff] }
 0xa5e   :  { %v3067_v58 = vadd.f32 0.5, %v3066_v36  ;;  %v10143_v36 = vld [vmem:[#allocation86_spill] sm:$0xff] }
 0xa5f   :  { %v3072_v38 = vadd.f32 0.5, %v3071_v43  ;;  %v10149_v43 = vld [vmem:[#allocation72_spill] sm:$0xff] }
 0xa60   :  { %v3073_v9 = vmul.f32 %v3067_v58, %v2896_v47  ;;  %v10144_v58 = vld [vmem:[#allocation92_spill] sm:$0xff]  ;;  %v10146_v47 = vld [vmem:[#allocation71_spill] sm:$0xff] }
 0xa61   :  { %v3076_v8 = vsub.f32 1.0, %v3072_v38  ;;  %v3078_v0 = vmul.f32 %v3072_v38, %v10135_v51  ;;  %v10150_v38 = vld [vmem:[#allocation73_spill] sm:$0xff]  ;;  %v10153_v51 = vld [vmem:[#allocation74_spill] sm:$0xff] }
 0xa6a   :  { %v3059_v28 = vpop.f32.mrb[28].mxu1 }
 0xa6b   :  { %v3060_v41 = vadd.f32 %v3059_v28, %v10134_v63  ;;  %v4704_v21 = vpop.f32.mrb[29].mxu1  ;;  %v10147_v28 = vld [vmem:[#allocation93_spill] sm:$0xff]  ;;  %v10184_v63 = vld [vmem:[#allocation111_spill] sm:$0xff] }
 0xa6c   :  { %v10142_v21 = vld [vmem:[#allocation69_spill] sm:$0xff] }
 0xa6d   :  { %v3074_v32 = vadd.f32 %v3073_v9, %v3060_v41  ;;  %v10138_v9 = vld [vmem:[#allocation67_spill] sm:$0xff]  ;;  %v10145_v41 = vld [vmem:[#allocation70_spill] sm:$0xff] }
 0xa6f   :  { %6976 = vtanh.f32 %v3074_v32  ;;  %v10141_v32 = vld [vmem:[#allocation68_spill] sm:$0xff] }
 0xa79   :  { %v6977_v3 = vpop.eup %6976 }
 0xa7a   :  { %v3077_v4 = vmul.f32 %v6977_v3, %v3076_v8  ;;  %v10151_v8 = vld [vmem:[#allocation106_spill] sm:$0xff]  ;;  %v10152_v3 = vld [vmem:[#allocation113_spill] sm:$0xff] }
 0xa7c   :  { %v8621_v19 = vadd.f32 %v3078_v0, %v3077_v4  ;;  %v10154_v0 = vld [vmem:[#allocation75_spill] sm:$0xff]  ;;  %v10155_v4 = vld [vmem:[#allocation117_spill] sm:$0xff] }
 0xa7e   :  { %10136 = vst [vmem:[#allocation115_spill] sm:$0xff] %v8621_v19  ;;  %3144 = vmatprep.mubr.f32.mxu0 %v8621_v19  ;;  %3215 = vmatprep.mubr.f32.mxu1 %v8621_v19 }
 0xa7f   :  { %3145 = vmatmul.mubr.f32.vlgmr.msra.gmra.mrb[20].mxu0 %v8547_v30  ;;  %3216 = vmatmul.mubr.f32.vlgmr.msra.gmra.mrb[30].mxu1 %v8547_v30 }
 0xa80   :  { %6216 = vmatpush1.bf16.msra.mxu0 %v10137_v24  ;;  %3286 = vmatprep.mubr.f32.mxu0 %v8621_v19  ;;  %v10182_v24 = vld [vmem:[#allocation104_spill] sm:$0xff] }
 0xa81   :  { %6218 = vmatprep.subr.bf16.mxu0 %v10138_v9  ;;  %6280 = vmatpush1.bf16.msra.mxu1 %v10139_v50  ;;  %v10180_v50 = vld [vmem:[#allocation118_spill] sm:$0xff]  ;;  %v10183_v19 = vld [vmem:[#allocation108_spill] sm:$0xff] }
 0xa82   :  { %6282 = vmatprep.subr.bf16.mxu1 %v10140_v61  ;;  %3381 = vmatprep.mubr.f32.mxu1 %v9526_v14  ;;  %v10179_v61 = vld [vmem:[#allocation101_spill] sm:$0xff]  ;;  %v10181_v9 = vld [vmem:[#allocation102_spill] sm:$0xff] }
 0xa84   :  { %6220 = vmatpush1.bf16.msra.mxu0 %v10141_v32  ;;  %v10177_v32 = vld [vmem:[#allocation112_spill] sm:$0xff] }
 0xa85   :  { %6222 = vmatprep.subr.bf16.mxu0 %v10142_v21  ;;  %6284 = vmatpush1.bf16.msra.mxu1 %v10143_v36  ;;  %v303_v21 = vpop.permute.xlu0 %302 }
 0xa86   :  { %6286 = vmatprep.subr.bf16.mxu1 %v10144_v58 }
 0xa88   :  { %6224 = vmatpush1.bf16.msra.mxu0 %v10145_v41  ;;  %v10156_v41 = vld [vmem:[#allocation120_spill] sm:$0xff] }
 0xa89   :  { %6226 = vmatprep.subr.bf16.mxu0 %v10146_v47  ;;  %6288 = vmatpush1.bf16.msra.mxu1 %v10147_v28  ;;  %v10157_v47 = vld [vmem:[#allocation76_spill] sm:$0xff]  ;;  %v10158_v28 = vld [vmem:[#allocation77_spill] sm:$0xff] }
 0xa8a   :  { %6290 = vmatprep.subr.bf16.mxu1 %v10148_v23  ;;  %v10159_v23 = vld [vmem:[#allocation121_spill] sm:$0xff] }
 0xa8c   :  { %6228 = vmatpush1.bf16.msra.mxu0 %v10149_v43  ;;  %v10160_v43 = vld [vmem:[#allocation122_spill] sm:$0xff] }
 0xa8d   :  { %6230 = vmatprep.subr.bf16.mxu0 %v10150_v38  ;;  %6292 = vmatpush1.bf16.msra.mxu1 %v10151_v8  ;;  %v10161_v38 = vld [vmem:[#allocation78_spill] sm:$0xff]  ;;  %v10162_v8 = vld [vmem:[#allocation79_spill] sm:$0xff] }
 0xa8e   :  { %6294 = vmatprep.subr.bf16.mxu1 %v10152_v3  ;;  %v10163_v3 = vld [vmem:[#allocation124_spill] sm:$0xff] }
 0xa90   :  { %6232 = vmatpush1.bf16.msra.mxu0 %v10153_v51  ;;  %v10164_v51 = vld [vmem:[#allocation125_spill] sm:$0xff] }
 0xa91   :  { %6234 = vmatprep.subr.bf16.mxu0 %v10154_v0  ;;  %6296 = vmatpush1.bf16.msra.mxu1 %v10155_v4  ;;  %v10165_v0 = vld [vmem:[#allocation80_spill] sm:$0xff]  ;;  %v10166_v4 = vld [vmem:[#allocation83_spill] sm:$0xff] }
 0xa92   :  { %6298 = vmatprep.subr.bf16.mxu1 %v10156_v41  ;;  %v10167_v41 = vld [vmem:[#allocation126_spill] sm:$0xff] }
 0xa94   :  { %6236 = vmatpush1.bf16.msra.mxu0 %v10157_v47 }
 0xa95   :  { %6238 = vmatprep.subr.bf16.mxu0 %v10158_v28  ;;  %6300 = vmatpush1.bf16.msra.mxu1 %v10159_v23  ;;  %v10168_v28 = vld [vmem:[#allocation84_spill] sm:$0xff] }
 0xa96   :  { %6302 = vmatprep.subr.bf16.mxu1 %v10160_v43  ;;  %v10169_v23 = vld [vmem:[#allocation88_spill] sm:$0xff]  ;;  %v10170_v43 = vld [vmem:[#allocation89_spill] sm:$0xff] }
 0xa98   :  { %6240 = vmatpush1.bf16.msra.mxu0 %v10161_v38  ;;  %v10171_v38 = vld [vmem:[#allocation95_spill] sm:$0xff] }
 0xa99   :  { %6242 = vmatprep.subr.bf16.mxu0 %v10162_v8  ;;  %6304 = vmatpush1.bf16.msra.mxu1 %v10163_v3  ;;  %v10172_v8 = vld [vmem:[#allocation99_spill] sm:$0xff]  ;;  %v100_v3 = vpop.permute.xlu1 %99 }
 0xa9a   :  { %6306 = vmatprep.subr.bf16.mxu1 %v10164_v51  ;;  %v10173_v51 = vld [vmem:[#allocation110_spill] sm:$0xff] }
 0xa9c   :  { %6244 = vmatpush1.bf16.msra.mxu0 %v10165_v0  ;;  %v10174_v0 = vld [vmem:[#allocation94_spill] sm:$0xff] }
 0xa9d   :  { %6246 = vmatprep.subr.bf16.mxu0 %v10166_v4  ;;  %6308 = vmatpush1.bf16.msra.mxu1 %v10167_v41  ;;  %v139_v47 = vmul.f32 %v10174_v0, %v100_v3  ;;  %v10175_v4 = vld [vmem:[#allocation96_spill] sm:$0xff]  ;;  %v10176_v41 = vld [vmem:[#allocation97_spill] sm:$0xff]  ;;  %v341_v0 = vmul.f32 %v10182_v24, %v303_v21 }
 0xa9e   :  { %6309 = vmatprep.subr.bf16.mxu1 %v9607_v60  ;;  %v140_v58 = vmul.f32 %v10175_v4, %v100_v3  ;;  %v141_v36 = vmul.f32 %v10176_v41, %v100_v3 }
 0xaa0   :  { %6248 = vmatpush1.bf16.msra.mxu0 %v10168_v28  ;;  %v10178_v28 = vld [vmem:[#allocation100_spill] sm:$0xff] }
 0xaa1   :  { %6250 = vmatprep.subr.bf16.mxu0 %v10169_v23  ;;  %v180_v23 = vadd.f32 %v9820_v62, %v139_v47 }
 0xaa4   :  { %6252 = vmatpush1.bf16.msra.mxu0 %v10170_v43  ;;  %v181_v43 = vadd.f32 %v10178_v28, %v140_v58 }
 0xaa5   :  { %6254 = vmatprep.subr.bf16.mxu0 %v10171_v38  ;;  %v182_v38 = vadd.f32 %v10179_v61, %v141_v36 }
 0xaa8   :  { %6256 = vmatpush1.bf16.msra.mxu0 %v10172_v8  ;;  %v211_v8 = vpop.permute.xlu1 %210 }
 0xaa9   :  { %6258 = vmatprep.subr.bf16.mxu0 %v10173_v51  ;;  %v340_v51 = vmul.f32 %v10181_v9, %v303_v21  ;;  %v248_v4 = vmul.f32 %v10183_v19, %v211_v8  ;;  %v249_v3 = vmul.f32 %v10184_v63, %v211_v8  ;;  %v250_v41 = vmul.f32 %v9705_v25, %v211_v8 }
 0xaab   :  { %v272_v58 = vadd.f32 %v248_v4, %v180_v23  ;;  %v273_v47 = vadd.f32 %v249_v3, %v181_v43  ;;  %v274_v36 = vadd.f32 %v250_v41, %v182_v38 }
 0xaac   :  { %6260 = vmatpush1.bf16.msra.mxu0 %v10177_v32  ;;  %v342_v32 = vmul.f32 %v9706_v29, %v303_v21  ;;  %v579_v21 = vpop.permute.xlu0 %578 }
 0xaad   :  { %6262 = vmatprep.subr.bf16.mxu0 %v10180_v50  ;;  %v395_v50 = vpop.permute.xlu1 %394  ;;  %v364_v61 = vadd.f32 %v340_v51, %v272_v58  ;;  %v365_v9 = vadd.f32 %v341_v0, %v273_v47  ;;  %v616_v8 = vmul.f32 %v7612_v2, %v579_v21  ;;  %v617_v51 = vmul.f32 %v7648_v18, %v579_v21 }
 0xaae   :  { %v366_v28 = vadd.f32 %v342_v32, %v274_v36  ;;  %v432_v24 = vmul.f32 %v9708_v35, %v395_v50  ;;  %v433_v19 = vmul.f32 %v7585_v39, %v395_v50  ;;  %v434_v63 = vmul.f32 %v7589_v45, %v395_v50 }
 0xaaf   :  { %v618_v4 = vmul.f32 %v9710_v42, %v579_v21  ;;  %v10185_v21 = vld [vmem:[#allocation22_spill] sm:$0xff] }
 0xab0   :  { %6264 = vmatpush1.bf16.msra.mxu0 %v9707_v34  ;;  %v456_v23 = vadd.f32 %v432_v24, %v364_v61  ;;  %v457_v43 = vadd.f32 %v433_v19, %v365_v9  ;;  %v458_v41 = vadd.f32 %v434_v63, %v366_v28 }
 0xab1   :  { %6266 = vmatprep.subr.bf16.mxu0 %v7636_v53  ;;  %v487_v38 = vpop.permute.xlu1 %486 }
 0xab2   :  { %v524_v32 = vmul.f32 %v7594_v57, %v487_v38  ;;  %v525_v0 = vmul.f32 %v9709_v27, %v487_v38  ;;  %v526_v50 = vmul.f32 %v7608_v37, %v487_v38  ;;  %v10189_v38 = vld [vmem:[#allocation30_spill] sm:$0xff] }
 0xab4   :  { %6268 = vmatpush1.bf16.msra.mxu0 %v7638_v12  ;;  %v548_v24 = vadd.f32 %v524_v32, %v456_v23  ;;  %v549_v19 = vadd.f32 %v525_v0, %v457_v43  ;;  %v550_v63 = vadd.f32 %v526_v50, %v458_v41  ;;  %v10186_v23 = vld [vmem:[#allocation24_spill] sm:$0xff]  ;;  %v10187_v43 = vld [vmem:[#allocation26_spill] sm:$0xff] }
 0xab5   :  { %6270 = vmatprep.subr.bf16.mxu0 %v7662_v56  ;;  %v10188_v41 = vld [vmem:[#allocation28_spill] sm:$0xff]  ;;  %v10193_v0 = vld [vmem:[#allocation38_spill] sm:$0xff] }
 0xab6   :  { %v640_v9 = vadd.f32 %v616_v8, %v548_v24  ;;  %v641_v61 = vadd.f32 %v617_v51, %v549_v19  ;;  %v642_v28 = vadd.f32 %v618_v4, %v550_v63  ;;  %v10190_v8 = vld [vmem:[#allocation32_spill] sm:$0xff]  ;;  %v10191_v51 = vld [vmem:[#allocation34_spill] sm:$0xff] }
 0xab7   :  { %v10192_v32 = vld [vmem:[#allocation36_spill] sm:$0xff]  ;;  %v10195_v4 = vld [vmem:[#allocation42_spill] sm:$0xff] }
 0xab8   :  { %6272 = vmatpush1.bf16.msra.mxu0 %v7665_v20  ;;  %v753_v3 = vcombine.low %v640_v9, %v641_v61  ;;  %v767_v58 = vrot.slane %v642_v28, %v7644_v1  ;;  %v10194_v50 = vld [vmem:[#allocation40_spill] sm:$0xff]  ;;  %v10197_v19 = vld [vmem:[#allocation46_spill] sm:$0xff] }
 0xab9   :  { %6274 = vmatprep.subr.bf16.mxu0 %v7677_v49  ;;  %v10196_v24 = vld [vmem:[#allocation44_spill] sm:$0xff]  ;;  %v10199_v9 = vld [vmem:[#allocation50_spill] sm:$0xff] }
 0xaba   :  { %v760_v47 = vrot.slane %v753_v3, %v7644_v1  ;;  %v10198_v63 = vld [vmem:[#allocation48_spill] sm:$0xff]  ;;  %v10201_v28 = vld [vmem:[#allocation54_spill] sm:$0xff] }
 0xabb   :  { %v10200_v61 = vld [vmem:[#allocation52_spill] sm:$0xff] }
 0xabc   :  { %6276 = vmatpush1.bf16.msra.mxu0 %v7679_v7  ;;  %v768_v36 = vcombine.low %v760_v47, %v767_v58  ;;  %v10202_v3 = vld [vmem:[#allocation56_spill] sm:$0xff]  ;;  %v10203_v58 = vld [vmem:[#allocation58_spill] sm:$0xff] }
 0xabd   :  { %6334 = vmatprep.subr.bf16.mxu0 %v7181_v6  ;;  %v10204_v47 = vld [vmem:[#allocation60_spill] sm:$0xff] }
 0xabe   :  { %814 = vst [vmem:[#allocation2 + $0x1e] sm:$0x3f] %v768_v36  ;;  %v10205_v36 = vld [vmem:[#allocation65_spill] sm:$0xff] }
 0xabf   :  { %3287 = vmatmul.mubr.f32.vlgmr.msra.gmra.mrb[22].mxu0 %v8547_v30 }
 0xac0   :  { %6336 = vmatpush1.bf16.msra.mxu0 %v7183_v10 }
 0xac1   :  { %6338 = vmatprep.subr.bf16.mxu0 %v7185_v11 }
 0xac4   :  { %6340 = vmatpush1.bf16.msra.mxu0 %v7189_v16 }
 0xac5   :  { %6342 = vmatprep.subr.bf16.mxu0 %v7192_v17 }
 0xac8   :  { %6344 = vmatpush1.bf16.msra.mxu0 %v7195_v26 }
 0xac9   :  { %6346 = vmatprep.subr.bf16.mxu0 %v7202_v31 }
 0xacc   :  { %6348 = vmatpush1.bf16.msra.mxu0 %v7211_v40 }
 0xacd   :  { %6350 = vmatprep.subr.bf16.mxu0 %v7215_v44 }
 0xad0   :  { %6352 = vmatpush1.bf16.msra.mxu0 %v7223_v54 }
 0xad1   :  { %6354 = vmatprep.subr.bf16.mxu0 %v7229_v59 }
 0xad4   :  { %6356 = vmatpush1.bf16.msra.mxu0 %v7235_v5 }
 0xad5   :  { %6358 = vmatprep.subr.bf16.mxu0 %v10185_v21 }
 0xad8   :  { %6360 = vmatpush1.bf16.msra.mxu0 %v10186_v23 }
 0xad9   :  { %6362 = vmatprep.subr.bf16.mxu0 %v10187_v43 }
 0xadc   :  { %6364 = vmatpush1.bf16.msra.mxu0 %v10188_v41 }
 0xadd   :  { %6366 = vmatprep.subr.bf16.mxu0 %v10189_v38 }
 0xae0   :  { %6368 = vmatpush1.bf16.msra.mxu0 %v10190_v8 }
 0xae1   :  { %6370 = vmatprep.subr.bf16.mxu0 %v10191_v51 }
 0xae4   :  { %6372 = vmatpush1.bf16.msra.mxu0 %v10192_v32 }
 0xae5   :  { %6374 = vmatprep.subr.bf16.mxu0 %v10193_v0  ;;  %v3294_v0 = vld [vmem:[#allocation2 + $0x1e] sm:$0x3f] }
 0xae8   :  { %6376 = vmatpush1.bf16.msra.mxu0 %v10194_v50  ;;  %v10206_v50 = vld [vmem:[#allocation87_spill] sm:$0xff] }
 0xae9   :  { %6378 = vmatprep.subr.bf16.mxu0 %v10195_v4 }
 0xaec   :  { %6380 = vmatpush1.bf16.msra.mxu0 %v10196_v24 }
 0xaed   :  { %6382 = vmatprep.subr.bf16.mxu0 %v10197_v19 }
 0xaf0   :  { %6384 = vmatpush1.bf16.msra.mxu0 %v10198_v63 }
 0xaf1   :  { %6386 = vmatprep.subr.bf16.mxu0 %v10199_v9  ;;  %v10207_v9 = vld [vmem:[#allocation90_spill] sm:$0xff] }
 0xaf4   :  { %6388 = vmatpush1.bf16.msra.mxu0 %v10200_v61 }
 0xaf5   :  { %6390 = vmatprep.subr.bf16.mxu0 %v10201_v28  ;;  %v3301_v28 = vrot.slane %v3294_v0, 2 }
 0xaf8   :  { %6392 = vmatpush1.bf16.msra.mxu0 %v10202_v3 }
 0xaf9   :  { %6394 = vmatprep.subr.bf16.mxu0 %v10203_v58 }
 0xafc   :  { %6396 = vmatpush1.bf16.msra.mxu0 %v10204_v47 }
 0xafd   :  { %6462 = vmatprep.subr.bf16.mxu0 %v10205_v36 }
 0xb52   :  { %v3146_v4 = vpop.f32.mrb[20].mxu0  ;;  %v3217_v24 = vpop.f32.mrb[30].mxu1 }
 0xb53   :  { %v3147_v19 = vadd.f32 %v3146_v4, %v10206_v50  ;;  %v3148_v63 = vpop.f32.mrb[21].mxu0  ;;  %v8734_v32 = vpop.f32.mrb[31].mxu1  ;;  %v3218_v36 = vadd.f32 %v3217_v24, %v7740_v15  ;;  %v3309_v4 = vrot.slane %v3294_v0, 4  ;;  %v10215_v24 = vld [vmem:[#allocation16_spill] sm:$0xff] }
 0xb54   :  { %v3149_v61 = vadd.f32 %v3148_v63, %v10207_v9 }
 0xb55   :  { %v3295_v51 = vadd.f32 %v3294_v0, %v3147_v19  ;;  %v10213_v0 = vld [vmem:[#allocation14_spill] sm:$0xff] }
 0xb56   :  { %v3303_v3 = vadd.f32 %v3301_v28, %v3149_v61  ;;  %v10217_v61 = vld [vmem:[#allocation18_spill] sm:$0xff]  ;;  %v10218_v28 = vld [vmem:[#allocation19_spill] sm:$0xff] }
 0xb57   :  { %v3296_v8 = vmul.f32 0.5, %v3295_v51 }
 0xb58   :  { %v3304_v58 = vmul.f32 0.5, %v3303_v3  ;;  %v10219_v3 = vld [vmem:[#allocation21_spill] sm:$0xff] }
 0xb59   :  { %6978 = vtanh.f32 %v3296_v8 }
 0xb5a   :  { %6980 = vtanh.f32 %v3304_v58  ;;  %v10220_v58 = vld [vmem:[#allocation23_spill] sm:$0xff] }
 0xb63   :  { %v6979_v47 = vpop.eup %6978 }
 0xb64   :  { %v3298_v38 = vmul.f32 0.5, %v6979_v47  ;;  %v6981_v50 = vpop.eup %6980  ;;  %v10221_v47 = vld [vmem:[#allocation25_spill] sm:$0xff] }
 0xb65   :  { %v3306_v21 = vmul.f32 0.5, %v6981_v50  ;;  %v10214_v50 = vld [vmem:[#allocation15_spill] sm:$0xff] }
 0xb66   :  { %v3299_v41 = vadd.f32 0.5, %v3298_v38  ;;  %v10212_v38 = vld [vmem:[#allocation13_spill] sm:$0xff] }
 0xb67   :  { %v3307_v5 = vadd.f32 0.5, %v3306_v21 }
 0xb68   :  { %v3308_v43 = vmul.f32 %v3299_v41, %v3218_v36  ;;  %v10211_v41 = vld [vmem:[#allocation12_spill] sm:$0xff]  ;;  %v10222_v36 = vld [vmem:[#allocation27_spill] sm:$0xff] }
 0xb69   :  { %v3313_v63 = vsub.f32 1.0, %v3307_v5  ;;  %v3315_v51 = vmul.f32 %v3307_v5, %v8547_v30  ;;  %v10208_v5 = vld [vmem:[#allocation131_spill] sm:$0xff] }
 0xb6a   :  { %v3311_v23 = vadd.f32 %v3309_v4, %v3308_v43  ;;  %v10210_v43 = vld [vmem:[#allocation133_spill] sm:$0xff] }
 0xb6b   :  { %v10223_v4 = vld [vmem:[#allocation29_spill] sm:$0xff] }
 0xb6c   :  { %6982 = vtanh.f32 %v3311_v23  ;;  %v10209_v23 = vld [vmem:[#allocation132_spill] sm:$0xff] }
 0xb76   :  { %v6983_v19 = vpop.eup %6982 }
 0xb77   :  { %v3314_v9 = vmul.f32 %v6983_v19, %v3313_v63  ;;  %v10224_v63 = vld [vmem:[#allocation31_spill] sm:$0xff]  ;;  %v10225_v19 = vld [vmem:[#allocation33_spill] sm:$0xff] }
 0xb79   :  { %v8739_v8 = vadd.f32 %v3315_v51, %v3314_v9  ;;  %v10216_v9 = vld [vmem:[#allocation17_spill] sm:$0xff]  ;;  %v10226_v51 = vld [vmem:[#allocation35_spill] sm:$0xff] }
 0xb7b   :  { %3382 = vmatmul.mubr.f32.vlgmr.msra.gmra.mrb[32].mxu1 %v8739_v8 }
 0xb7c   :  { %6311 = vmatpush3.bf16.msra.mxu1 %v9728_v33  ;;  %4737 = vmatprep.mubr.msk.f32.mxu1 %vm7101_vm0, %v9526_v14 }
 0xb7d   :  { %6312 = vmatprep.subr.bf16.mxu1 %v9607_v60 }
 0xb80   :  { %6314 = vmatpush3.bf16.msra.mxu1 %v9729_v52 }
 0xb81   :  { %6315 = vmatprep.subr.bf16.mxu1 %v9607_v60 }
 0xb84   :  { %6317 = vmatpush3.bf16.msra.mxu1 %v9730_v48 }
 0xb85   :  { %6318 = vmatprep.subr.bf16.mxu1 %v9607_v60 }
 0xb88   :  { %6320 = vmatpush3.bf16.msra.mxu1 %v9968_v22 }
 0xb89   :  { %6321 = vmatprep.subr.bf16.mxu1 %v9607_v60 }
 0xb8c   :  { %6323 = vmatpush3.bf16.msra.mxu1 %v10088_v13 }
 0xb8d   :  { %6324 = vmatprep.subr.bf16.mxu1 %v9607_v60 }
 0xb90   :  { %6326 = vmatpush3.bf16.msra.mxu1 %v10208_v5 }
 0xb91   :  { %6327 = vmatprep.subr.bf16.mxu1 %v9607_v60 }
 0xb92   :  { %v3288_v30 = vpop.f32.mrb[22].mxu0 }
 0xb93   :  { %v8756_v21 = vpop.f32.mrb[23].mxu0 }
 0xb94   :  { %6329 = vmatpush3.bf16.msra.mxu1 %v10209_v23 }
 0xb95   :  { %6330 = vmatprep.subr.bf16.mxu1 %v9607_v60 }
 0xb98   :  { %6332 = vmatpush3.bf16.msra.mxu1 %v10210_v43 }
 0xb99   :  { %6398 = vmatprep.subr.bf16.mxu1 %v10211_v41 }
 0xb9b   :  { %4738 = vmatmul.mubr.f32.vlgmr.msra.gmra.mrb[34].mxu1 %v8739_v8 }
 0xb9c   :  { %6400 = vmatpush1.bf16.msra.mxu1 %v10212_v38 }
 0xb9d   :  { %6402 = vmatprep.subr.bf16.mxu1 %v10213_v0 }
 0xba0   :  { %6404 = vmatpush1.bf16.msra.mxu1 %v10214_v50 }
 0xba1   :  { %6406 = vmatprep.subr.bf16.mxu1 %v10215_v24 }
 0xba4   :  { %6408 = vmatpush1.bf16.msra.mxu1 %v10216_v9  ;;  %v10227_v9 = vld [vmem:[#allocation37_spill] sm:$0xff] }
 0xba5   :  { %6410 = vmatprep.subr.bf16.mxu1 %v10217_v61  ;;  %v10228_v61 = vld [vmem:[#allocation39_spill] sm:$0xff] }
 0xba8   :  { %6412 = vmatpush1.bf16.msra.mxu1 %v10218_v28  ;;  %v10229_v28 = vld [vmem:[#allocation41_spill] sm:$0xff] }
 0xba9   :  { %6414 = vmatprep.subr.bf16.mxu1 %v10219_v3  ;;  %v10230_v3 = vld [vmem:[#allocation43_spill] sm:$0xff] }
 0xbac   :  { %6416 = vmatpush1.bf16.msra.mxu1 %v10220_v58  ;;  %v10231_v58 = vld [vmem:[#allocation45_spill] sm:$0xff] }
 0xbad   :  { %6418 = vmatprep.subr.bf16.mxu1 %v10221_v47  ;;  %v10232_v47 = vld [vmem:[#allocation47_spill] sm:$0xff] }
 0xbb0   :  { %6420 = vmatpush1.bf16.msra.mxu1 %v10222_v36  ;;  %v10233_v36 = vld [vmem:[#allocation49_spill] sm:$0xff] }
 0xbb1   :  { %6422 = vmatprep.subr.bf16.mxu1 %v10223_v4  ;;  %v10234_v4 = vld [vmem:[#allocation51_spill] sm:$0xff] }
 0xbb4   :  { %6424 = vmatpush1.bf16.msra.mxu1 %v10224_v63  ;;  %v10235_v63 = vld [vmem:[#allocation53_spill] sm:$0xff] }
 0xbb5   :  { %6426 = vmatprep.subr.bf16.mxu1 %v10225_v19  ;;  %v10236_v19 = vld [vmem:[#allocation55_spill] sm:$0xff] }
 0xbb8   :  { %6428 = vmatpush1.bf16.msra.mxu1 %v10226_v51  ;;  %v10237_v51 = vld [vmem:[#allocation57_spill] sm:$0xff] }
 0xbb9   :  { %6430 = vmatprep.subr.bf16.mxu1 %v10227_v9  ;;  %v10238_v9 = vld [vmem:[#allocation59_spill] sm:$0xff] }
 0xbbc   :  { %6432 = vmatpush1.bf16.msra.mxu1 %v10228_v61  ;;  %v10239_v61 = vld [vmem:[#allocation61_spill] sm:$0xff] }
 0xbbd   :  { %6434 = vmatprep.subr.bf16.mxu1 %v10229_v28  ;;  %v10240_v28 = vld [vmem:[#allocation62_spill] sm:$0xff] }
 0xbc0   :  { %6436 = vmatpush1.bf16.msra.mxu1 %v10230_v3  ;;  %v10241_v3 = vld [vmem:[#allocation63_spill] sm:$0xff] }
 0xbc1   :  { %6438 = vmatprep.subr.bf16.mxu1 %v10231_v58  ;;  %v10242_v58 = vld [vmem:[#allocation64_spill] sm:$0xff] }
 0xbc4   :  { %6440 = vmatpush1.bf16.msra.mxu1 %v10232_v47  ;;  %v10243_v47 = vld [vmem:[#allocation81_spill] sm:$0xff] }
 0xbc5   :  { %6442 = vmatprep.subr.bf16.mxu1 %v10233_v36  ;;  %v10251_v36 = vld [vmem:[#allocation134_spill] sm:$0xff] }
 0xbc8   :  { %6444 = vmatpush1.bf16.msra.mxu1 %v10234_v4 }
 0xbc9   :  { %6446 = vmatprep.subr.bf16.mxu1 %v10235_v63  ;;  %v67_v63 = vld [vmem:[%s9183_s0 + $0xc] sm:$0x3] }
 0xbca   :  { %104 = vperm.xlu1 %6906, %v67_v63   ;;  %306 = vperm.xlu0 %6908, %v67_v63  }
 0xbcc   :  { %6448 = vmatpush1.bf16.msra.mxu1 %v10236_v19  ;;  %v10244_v19 = vmov 1  }
 0xbcd   :  { %6450 = vmatprep.subr.bf16.mxu1 %v10237_v51  ;;  %v10245_v51 = vmov 5  }
 0xbce   :  { %6907 = vset.pattern.permute.xlu1 %v10244_v19  ;;  %6911 = vset.pattern.permute.xlu0 %v10245_v51  ;;  %v10252_v51 = vld [vmem:[#allocation109_spill] sm:$0xff] }
 0xbcf   :  { %214 = vperm.xlu1 %6907, %v67_v63   ;;  %582 = vperm.xlu0 %6911, %v67_v63   ;;  %v3289_v50 = vadd.f32 %v3288_v30, %v10252_v51 }
 0xbd0   :  { %6452 = vmatpush1.bf16.msra.mxu1 %v10238_v9  ;;  %v10250_v9 = vld [vmem:[#allocation105_spill] sm:$0xff] }
 0xbd1   :  { %6454 = vmatprep.subr.bf16.mxu1 %v10239_v61  ;;  %v10246_v61 = vmov 3   ;;  %v3220_v4 = vadd.f32 %v8734_v32, %v10250_v9 }
 0xbd3   :  { %6909 = vset.pattern.permute.xlu1 %v10246_v61 }
 0xbd4   :  { %6456 = vmatpush1.bf16.msra.mxu1 %v10240_v28  ;;  %v10247_v28 = vmov 2   ;;  %398 = vperm.xlu1 %6909, %v67_v63  }
 0xbd5   :  { %6458 = vmatprep.subr.bf16.mxu1 %v10241_v3  ;;  %6914 = vset.pattern.permute.xlu0 %v10247_v28 }
 0xbd8   :  { %6460 = vmatpush1.bf16.msra.mxu1 %v10242_v58  ;;  %v10248_v58 = vmov 4  }
 0xbd9   :  { %6526 = vmatprep.subr.bf16.mxu1 %v10243_v47  ;;  %6910 = vset.pattern.permute.xlu1 %v10248_v58  ;;  %v10249_v47 = vmov 0  }
 0xbda   :  { %490 = vperm.xlu1 %6910, %v67_v63  }
 0xbde   :  { %6912 = vset.pattern.permute.xlu1 %v10249_v47  ;;  %v3291_v47 = vadd.f32 %v8756_v21, %v9895_v55  ;;  %v10256_v21 = vld [vmem:[#allocation66_spill] sm:$0xff] }
 0xc4e   :  { %v3383_v3 = vpop.f32.mrb[32].mxu1 }
 0xc4f   :  { %v3384_v19 = vadd.f32 %v3383_v3, %v10251_v36  ;;  %v3385_v24 = vpop.f32.mrb[33].mxu1  ;;  %v10253_v3 = vld [vmem:[#allocation136_spill] sm:$0xff] }
 0xc50   :  { %v3386_v0 = vadd.f32 %v3385_v24, %v7837_v46 }
 0xc51   :  { %v3458_v61 = vadd.f32 %v3384_v19, %v3220_v4  ;;  %v10254_v4 = vld [vmem:[#allocation115_spill] sm:$0xff] }
 0xc52   :  { %v3463_v38 = vadd.f32 %v3386_v0, %v3289_v50 }
 0xc53   :  { %v3459_v28 = vmul.f32 0.5, %v3458_v61 }
 0xc54   :  { %v3464_v43 = vmul.f32 0.5, %v3463_v38  ;;  %v10259_v38 = vld [vmem:[#allocation85_spill] sm:$0xff] }
 0xc55   :  { %6984 = vtanh.f32 %v3459_v28 }
 0xc56   :  { %6986 = vtanh.f32 %v3464_v43  ;;  %v10258_v43 = vld [vmem:[#allocation82_spill] sm:$0xff] }
 0xc5f   :  { %v6985_v41 = vpop.eup %6984 }
 0xc60   :  { %v3461_v58 = vmul.f32 0.5, %v6985_v41  ;;  %v6987_v30 = vpop.eup %6986 }
 0xc61   :  { %v3466_v24 = vmul.f32 0.5, %v6987_v30  ;;  %v10267_v30 = vld [vmem:[#allocation103_spill] sm:$0xff] }
 0xc62   :  { %v3462_v63 = vadd.f32 0.5, %v3461_v58  ;;  %v10261_v58 = vld [vmem:[#allocation69_spill] sm:$0xff] }
 0xc63   :  { %v3467_v0 = vadd.f32 0.5, %v3466_v24  ;;  %v10268_v24 = vld [vmem:[#allocation72_spill] sm:$0xff] }
 0xc64   :  { %v3468_v23 = vmul.f32 %v3462_v63, %v3291_v47  ;;  %v10264_v47 = vld [vmem:[#allocation70_spill] sm:$0xff]  ;;  %v10265_v63 = vld [vmem:[#allocation71_spill] sm:$0xff] }
 0xc65   :  { %v3471_v50 = vsub.f32 1.0, %v3467_v0  ;;  %v3473_v41 = vmul.f32 %v3467_v0, %v10254_v4  ;;  %v10269_v0 = vld [vmem:[#allocation73_spill] sm:$0xff]  ;;  %v10272_v4 = vld [vmem:[#allocation74_spill] sm:$0xff] }
 0xc6e   :  { %v3454_v32 = vpop.f32.mrb[34].mxu1 }
 0xc6f   :  { %v3455_v36 = vadd.f32 %v3454_v32, %v10253_v3  ;;  %v4739_v9 = vpop.f32.mrb[35].mxu1  ;;  %v10266_v32 = vld [vmem:[#allocation93_spill] sm:$0xff]  ;;  %v10303_v3 = vld [vmem:[#allocation111_spill] sm:$0xff] }
 0xc70   :  { %v10260_v9 = vld [vmem:[#allocation68_spill] sm:$0xff] }
 0xc71   :  { %v3469_v51 = vadd.f32 %v3468_v23, %v3455_v36  ;;  %v10257_v23 = vld [vmem:[#allocation67_spill] sm:$0xff]  ;;  %v10262_v36 = vld [vmem:[#allocation86_spill] sm:$0xff] }
 0xc73   :  { %6988 = vtanh.f32 %v3469_v51  ;;  %v10263_v51 = vld [vmem:[#allocation92_spill] sm:$0xff] }
 0xc7d   :  { %v6989_v61 = vpop.eup %6988 }
 0xc7e   :  { %v3472_v19 = vmul.f32 %v6989_v61, %v3471_v50  ;;  %v10270_v50 = vld [vmem:[#allocation106_spill] sm:$0xff]  ;;  %v10271_v61 = vld [vmem:[#allocation113_spill] sm:$0xff] }
 0xc80   :  { %v8813_v28 = vadd.f32 %v3473_v41, %v3472_v19  ;;  %v10273_v41 = vld [vmem:[#allocation75_spill] sm:$0xff]  ;;  %v10274_v19 = vld [vmem:[#allocation117_spill] sm:$0xff] }
 0xc82   :  { %10255 = vst [vmem:[#allocation116_spill] sm:$0xff] %v8813_v28  ;;  %3539 = vmatprep.mubr.f32.mxu0 %v8813_v28  ;;  %3610 = vmatprep.mubr.f32.mxu1 %v8813_v28 }
 0xc83   :  { %3540 = vmatmul.mubr.f32.vlgmr.msra.gmra.mrb[24].mxu0 %v8739_v8  ;;  %3611 = vmatmul.mubr.f32.vlgmr.msra.gmra.mrb[36].mxu1 %v8739_v8 }
 0xc84   :  { %6464 = vmatpush1.bf16.msra.mxu0 %v10256_v21  ;;  %3681 = vmatprep.mubr.f32.mxu0 %v8813_v28  ;;  %v10301_v21 = vld [vmem:[#allocation104_spill] sm:$0xff] }
 0xc85   :  { %6466 = vmatprep.subr.bf16.mxu0 %v10257_v23  ;;  %6528 = vmatpush1.bf16.msra.mxu1 %v10258_v43  ;;  %v10299_v43 = vld [vmem:[#allocation118_spill] sm:$0xff]  ;;  %v10302_v28 = vld [vmem:[#allocation108_spill] sm:$0xff] }
 0xc86   :  { %6530 = vmatprep.subr.bf16.mxu1 %v10259_v38  ;;  %3776 = vmatprep.mubr.f32.mxu1 %v9526_v14  ;;  %v10298_v38 = vld [vmem:[#allocation101_spill] sm:$0xff]  ;;  %v10300_v23 = vld [vmem:[#allocation102_spill] sm:$0xff] }
 0xc88   :  { %6468 = vmatpush1.bf16.msra.mxu0 %v10260_v9  ;;  %v10296_v9 = vld [vmem:[#allocation112_spill] sm:$0xff] }
 0xc89   :  { %6470 = vmatprep.subr.bf16.mxu0 %v10261_v58  ;;  %6532 = vmatpush1.bf16.msra.mxu1 %v10262_v36  ;;  %v307_v58 = vpop.permute.xlu0 %306 }
 0xc8a   :  { %6534 = vmatprep.subr.bf16.mxu1 %v10263_v51 }
 0xc8c   :  { %6472 = vmatpush1.bf16.msra.mxu0 %v10264_v47  ;;  %v10275_v47 = vld [vmem:[#allocation120_spill] sm:$0xff] }
 0xc8d   :  { %6474 = vmatprep.subr.bf16.mxu0 %v10265_v63  ;;  %6536 = vmatpush1.bf16.msra.mxu1 %v10266_v32  ;;  %v10276_v63 = vld [vmem:[#allocation76_spill] sm:$0xff]  ;;  %v10277_v32 = vld [vmem:[#allocation77_spill] sm:$0xff] }
 0xc8e   :  { %6538 = vmatprep.subr.bf16.mxu1 %v10267_v30  ;;  %v10278_v30 = vld [vmem:[#allocation121_spill] sm:$0xff] }
 0xc90   :  { %6476 = vmatpush1.bf16.msra.mxu0 %v10268_v24  ;;  %v10279_v24 = vld [vmem:[#allocation122_spill] sm:$0xff] }
 0xc91   :  { %6478 = vmatprep.subr.bf16.mxu0 %v10269_v0  ;;  %6540 = vmatpush1.bf16.msra.mxu1 %v10270_v50  ;;  %v10280_v0 = vld [vmem:[#allocation78_spill] sm:$0xff]  ;;  %v10281_v50 = vld [vmem:[#allocation79_spill] sm:$0xff] }
 0xc92   :  { %6542 = vmatprep.subr.bf16.mxu1 %v10271_v61  ;;  %v10282_v61 = vld [vmem:[#allocation124_spill] sm:$0xff] }
 0xc94   :  { %6480 = vmatpush1.bf16.msra.mxu0 %v10272_v4  ;;  %v10283_v4 = vld [vmem:[#allocation125_spill] sm:$0xff] }
 0xc95   :  { %6482 = vmatprep.subr.bf16.mxu0 %v10273_v41  ;;  %6544 = vmatpush1.bf16.msra.mxu1 %v10274_v19  ;;  %v10284_v41 = vld [vmem:[#allocation80_spill] sm:$0xff]  ;;  %v10285_v19 = vld [vmem:[#allocation83_spill] sm:$0xff] }
 0xc96   :  { %6546 = vmatprep.subr.bf16.mxu1 %v10275_v47  ;;  %v10286_v47 = vld [vmem:[#allocation126_spill] sm:$0xff] }
 0xc98   :  { %6484 = vmatpush1.bf16.msra.mxu0 %v10276_v63 }
 0xc99   :  { %6486 = vmatprep.subr.bf16.mxu0 %v10277_v32  ;;  %6548 = vmatpush1.bf16.msra.mxu1 %v10278_v30  ;;  %v10287_v32 = vld [vmem:[#allocation84_spill] sm:$0xff] }
 0xc9a   :  { %6550 = vmatprep.subr.bf16.mxu1 %v10279_v24  ;;  %v10288_v30 = vld [vmem:[#allocation88_spill] sm:$0xff]  ;;  %v10289_v24 = vld [vmem:[#allocation89_spill] sm:$0xff] }
 0xc9c   :  { %6488 = vmatpush1.bf16.msra.mxu0 %v10280_v0  ;;  %v10290_v0 = vld [vmem:[#allocation95_spill] sm:$0xff] }
 0xc9d   :  { %6490 = vmatprep.subr.bf16.mxu0 %v10281_v50  ;;  %6552 = vmatpush1.bf16.msra.mxu1 %v10282_v61  ;;  %v10291_v50 = vld [vmem:[#allocation99_spill] sm:$0xff]  ;;  %v105_v61 = vpop.permute.xlu1 %104 }
 0xc9e   :  { %6554 = vmatprep.subr.bf16.mxu1 %v10283_v4  ;;  %v10292_v4 = vld [vmem:[#allocation110_spill] sm:$0xff] }
 0xca0   :  { %6492 = vmatpush1.bf16.msra.mxu0 %v10284_v41  ;;  %v10293_v41 = vld [vmem:[#allocation94_spill] sm:$0xff] }
 0xca1   :  { %6494 = vmatprep.subr.bf16.mxu0 %v10285_v19  ;;  %6556 = vmatpush1.bf16.msra.mxu1 %v10286_v47  ;;  %v142_v63 = vmul.f32 %v10293_v41, %v105_v61  ;;  %v10294_v19 = vld [vmem:[#allocation96_spill] sm:$0xff]  ;;  %v10295_v47 = vld [vmem:[#allocation97_spill] sm:$0xff]  ;;  %v344_v41 = vmul.f32 %v10301_v21, %v307_v58 }
 0xca2   :  { %6557 = vmatprep.subr.bf16.mxu1 %v9607_v60  ;;  %v143_v51 = vmul.f32 %v10294_v19, %v105_v61  ;;  %v144_v36 = vmul.f32 %v10295_v47, %v105_v61 }
 0xca4   :  { %6496 = vmatpush1.bf16.msra.mxu0 %v10287_v32  ;;  %v10297_v32 = vld [vmem:[#allocation100_spill] sm:$0xff] }
 0xca5   :  { %6498 = vmatprep.subr.bf16.mxu0 %v10288_v30  ;;  %v183_v30 = vadd.f32 %v9820_v62, %v142_v63 }
 0xca8   :  { %6500 = vmatpush1.bf16.msra.mxu0 %v10289_v24  ;;  %v184_v24 = vadd.f32 %v10297_v32, %v143_v51 }
 0xca9   :  { %6502 = vmatprep.subr.bf16.mxu0 %v10290_v0  ;;  %v185_v0 = vadd.f32 %v10298_v38, %v144_v36 }
 0xcac   :  { %6504 = vmatpush1.bf16.msra.mxu0 %v10291_v50  ;;  %v215_v50 = vpop.permute.xlu1 %214 }
 0xcad   :  { %6506 = vmatprep.subr.bf16.mxu0 %v10292_v4  ;;  %v343_v4 = vmul.f32 %v10300_v23, %v307_v58  ;;  %v251_v19 = vmul.f32 %v10302_v28, %v215_v50  ;;  %v252_v61 = vmul.f32 %v10303_v3, %v215_v50  ;;  %v253_v47 = vmul.f32 %v9705_v25, %v215_v50 }
 0xcaf   :  { %v275_v51 = vadd.f32 %v251_v19, %v183_v30  ;;  %v276_v63 = vadd.f32 %v252_v61, %v184_v24  ;;  %v277_v36 = vadd.f32 %v253_v47, %v185_v0 }
 0xcb0   :  { %6508 = vmatpush1.bf16.msra.mxu0 %v10296_v9  ;;  %v345_v9 = vmul.f32 %v9706_v29, %v307_v58  ;;  %v583_v58 = vpop.permute.xlu0 %582 }
 0xcb1   :  { %6510 = vmatprep.subr.bf16.mxu0 %v10299_v43  ;;  %v399_v43 = vpop.permute.xlu1 %398  ;;  %v367_v38 = vadd.f32 %v343_v4, %v275_v51  ;;  %v368_v23 = vadd.f32 %v344_v41, %v276_v63  ;;  %v619_v50 = vmul.f32 %v7612_v2, %v583_v58  ;;  %v620_v4 = vmul.f32 %v7648_v18, %v583_v58 }
 0xcb2   :  { %v369_v32 = vadd.f32 %v345_v9, %v277_v36  ;;  %v435_v21 = vmul.f32 %v9708_v35, %v399_v43  ;;  %v436_v28 = vmul.f32 %v7585_v39, %v399_v43  ;;  %v437_v3 = vmul.f32 %v7589_v45, %v399_v43 }
 0xcb3   :  { %v621_v19 = vmul.f32 %v9710_v42, %v583_v58  ;;  %v10315_v58 = vld [vmem:[#allocation42_spill] sm:$0xff] }
 0xcb4   :  { %6512 = vmatpush1.bf16.msra.mxu0 %v9707_v34  ;;  %v459_v30 = vadd.f32 %v435_v21, %v367_v38  ;;  %v460_v24 = vadd.f32 %v436_v28, %v368_v23  ;;  %v461_v47 = vadd.f32 %v437_v3, %v369_v32 }
 0xcb5   :  { %6514 = vmatprep.subr.bf16.mxu0 %v7636_v53  ;;  %v491_v0 = vpop.permute.xlu1 %490 }
 0xcb6   :  { %v527_v9 = vmul.f32 %v7594_v57, %v491_v0  ;;  %v528_v41 = vmul.f32 %v9709_v27, %v491_v0  ;;  %v529_v43 = vmul.f32 %v7608_v37, %v491_v0  ;;  %v10319_v0 = vld [vmem:[#allocation50_spill] sm:$0xff] }
 0xcb8   :  { %6516 = vmatpush1.bf16.msra.mxu0 %v7638_v12  ;;  %v551_v21 = vadd.f32 %v527_v9, %v459_v30  ;;  %v552_v28 = vadd.f32 %v528_v41, %v460_v24  ;;  %v553_v3 = vadd.f32 %v529_v43, %v461_v47  ;;  %v10316_v30 = vld [vmem:[#allocation44_spill] sm:$0xff]  ;;  %v10317_v24 = vld [vmem:[#allocation46_spill] sm:$0xff] }
 0xcb9   :  { %6518 = vmatprep.subr.bf16.mxu0 %v7662_v56  ;;  %v10318_v47 = vld [vmem:[#allocation48_spill] sm:$0xff]  ;;  %v10323_v41 = vld [vmem:[#allocation58_spill] sm:$0xff] }
 0xcba   :  { %v643_v23 = vadd.f32 %v619_v50, %v551_v21  ;;  %v644_v38 = vadd.f32 %v620_v4, %v552_v28  ;;  %v645_v32 = vadd.f32 %v621_v19, %v553_v3  ;;  %v10320_v50 = vld [vmem:[#allocation52_spill] sm:$0xff]  ;;  %v10321_v4 = vld [vmem:[#allocation54_spill] sm:$0xff]  ;;  %v10325_v19 = vld [vmem:[#allocation65_spill] sm:$0xff] }
 0xcbb   :  { %v10322_v9 = vld [vmem:[#allocation56_spill] sm:$0xff]  ;;  %v10326_v3 = vld [vmem:[#allocation87_spill] sm:$0xff] }
 0xcbc   :  { %6520 = vmatpush1.bf16.msra.mxu0 %v7665_v20  ;;  %v769_v61 = vcombine.low %v643_v23, %v644_v38  ;;  %v783_v51 = vrot.slane %v645_v32, %v7644_v1  ;;  %v10324_v43 = vld [vmem:[#allocation60_spill] sm:$0xff] }
 0xcbd   :  { %6522 = vmatprep.subr.bf16.mxu0 %v7677_v49 }
 0xcbe   :  { %v776_v63 = vrot.slane %v769_v61, %v7644_v1 }
 0xcc0   :  { %6524 = vmatpush1.bf16.msra.mxu0 %v7679_v7  ;;  %v784_v36 = vcombine.low %v776_v63, %v783_v51  ;;  %v10327_v51 = vld [vmem:[#allocation90_spill] sm:$0xff] }
 0xcc1   :  { %6582 = vmatprep.subr.bf16.mxu0 %v7181_v6  ;;  %v10304_v6 = vld [vmem:[#allocation20_spill] sm:$0xff] }
 0xcc2   :  { %815 = vst [vmem:[#allocation2 + $0x24] sm:$0x3f] %v784_v36 }
 0xcc3   :  { %3682 = vmatmul.mubr.f32.vlgmr.msra.gmra.mrb[26].mxu0 %v8739_v8 }
 0xcc4   :  { %6584 = vmatpush1.bf16.msra.mxu0 %v7183_v10  ;;  %v10305_v10 = vld [vmem:[#allocation22_spill] sm:$0xff] }
 0xcc5   :  { %6586 = vmatprep.subr.bf16.mxu0 %v7185_v11  ;;  %v10306_v11 = vld [vmem:[#allocation24_spill] sm:$0xff] }
 0xcc8   :  { %6588 = vmatpush1.bf16.msra.mxu0 %v7189_v16  ;;  %v10307_v16 = vld [vmem:[#allocation26_spill] sm:$0xff] }
 0xcc9   :  { %6590 = vmatprep.subr.bf16.mxu0 %v7192_v17  ;;  %v10308_v17 = vld [vmem:[#allocation28_spill] sm:$0xff]  ;;  %v3689_v38 = vld [vmem:[#allocation2 + $0x24] sm:$0x3f] }
 0xccc   :  { %6592 = vmatpush1.bf16.msra.mxu0 %v7195_v26  ;;  %v10309_v26 = vld [vmem:[#allocation30_spill] sm:$0xff] }
 0xccd   :  { %6594 = vmatprep.subr.bf16.mxu0 %v7202_v31  ;;  %v10310_v31 = vld [vmem:[#allocation32_spill] sm:$0xff] }
 0xcd0   :  { %6596 = vmatpush1.bf16.msra.mxu0 %v7211_v40  ;;  %v10311_v40 = vld [vmem:[#allocation34_spill] sm:$0xff] }
 0xcd1   :  { %6598 = vmatprep.subr.bf16.mxu0 %v7215_v44  ;;  %v10312_v44 = vld [vmem:[#allocation36_spill] sm:$0xff] }
 0xcd4   :  { %6600 = vmatpush1.bf16.msra.mxu0 %v7223_v54  ;;  %v10313_v54 = vld [vmem:[#allocation38_spill] sm:$0xff] }
 0xcd5   :  { %6602 = vmatprep.subr.bf16.mxu0 %v7229_v59  ;;  %v10314_v59 = vld [vmem:[#allocation40_spill] sm:$0xff] }
 0xcd8   :  { %6604 = vmatpush1.bf16.msra.mxu0 %v10304_v6  ;;  %v3696_v6 = vrot.slane %v3689_v38, 2 }
 0xcd9   :  { %6606 = vmatprep.subr.bf16.mxu0 %v10305_v10 }
 0xcdc   :  { %6608 = vmatpush1.bf16.msra.mxu0 %v10306_v11 }
 0xcdd   :  { %6610 = vmatprep.subr.bf16.mxu0 %v10307_v16 }
 0xce0   :  { %6612 = vmatpush1.bf16.msra.mxu0 %v10308_v17 }
 0xce1   :  { %6614 = vmatprep.subr.bf16.mxu0 %v10309_v26 }
 0xce4   :  { %6616 = vmatpush1.bf16.msra.mxu0 %v10310_v31 }
 0xce5   :  { %6618 = vmatprep.subr.bf16.mxu0 %v10311_v40 }
 0xce8   :  { %6620 = vmatpush1.bf16.msra.mxu0 %v10312_v44 }
 0xce9   :  { %6622 = vmatprep.subr.bf16.mxu0 %v10313_v54  ;;  %v3704_v54 = vrot.slane %v3689_v38, 4 }
 0xcec   :  { %6624 = vmatpush1.bf16.msra.mxu0 %v10314_v59 }
 0xced   :  { %6626 = vmatprep.subr.bf16.mxu0 %v10315_v58 }
 0xcf0   :  { %6628 = vmatpush1.bf16.msra.mxu0 %v10316_v30 }
 0xcf1   :  { %6630 = vmatprep.subr.bf16.mxu0 %v10317_v24 }
 0xcf4   :  { %6632 = vmatpush1.bf16.msra.mxu0 %v10318_v47 }
 0xcf5   :  { %6634 = vmatprep.subr.bf16.mxu0 %v10319_v0 }
 0xcf8   :  { %6636 = vmatpush1.bf16.msra.mxu0 %v10320_v50 }
 0xcf9   :  { %6638 = vmatprep.subr.bf16.mxu0 %v10321_v4 }
 0xcfc   :  { %6640 = vmatpush1.bf16.msra.mxu0 %v10322_v9 }
 0xcfd   :  { %6642 = vmatprep.subr.bf16.mxu0 %v10323_v41 }
 0xd00   :  { %6644 = vmatpush1.bf16.msra.mxu0 %v10324_v43  ;;  %v10328_v43 = vld [vmem:[#allocation132_spill] sm:$0xff] }
 0xd01   :  { %6710 = vmatprep.subr.bf16.mxu0 %v10325_v19  ;;  %v10329_v19 = vld [vmem:[#allocation133_spill] sm:$0xff] }
 0xd56   :  { %v3541_v21 = vpop.f32.mrb[24].mxu0  ;;  %v3612_v28 = vpop.f32.mrb[36].mxu1 }
 0xd57   :  { %v3542_v23 = vadd.f32 %v3541_v21, %v10326_v3  ;;  %v3543_v32 = vpop.f32.mrb[25].mxu0  ;;  %v8926_v61 = vpop.f32.mrb[37].mxu1  ;;  %v3613_v31 = vadd.f32 %v3612_v28, %v7740_v15  ;;  %v10330_v21 = vld [vmem:[#allocation12_spill] sm:$0xff]  ;;  %v10331_v28 = vld [vmem:[#allocation13_spill] sm:$0xff] }
 0xd58   :  { %v3544_v63 = vadd.f32 %v3543_v32, %v10327_v51  ;;  %v10334_v32 = vld [vmem:[#allocation16_spill] sm:$0xff] }
 0xd59   :  { %v3690_v36 = vadd.f32 %v3689_v38, %v3542_v23  ;;  %v10332_v23 = vld [vmem:[#allocation14_spill] sm:$0xff]  ;;  %v10333_v38 = vld [vmem:[#allocation15_spill] sm:$0xff] }
 0xd5a   :  { %v3698_v11 = vadd.f32 %v3696_v6, %v3544_v63  ;;  %v10335_v63 = vld [vmem:[#allocation17_spill] sm:$0xff]  ;;  %v10337_v6 = vld [vmem:[#allocation19_spill] sm:$0xff] }
 0xd5b   :  { %v3691_v10 = vmul.f32 0.5, %v3690_v36  ;;  %v10336_v36 = vld [vmem:[#allocation18_spill] sm:$0xff] }
 0xd5c   :  { %v3699_v16 = vmul.f32 0.5, %v3698_v11  ;;  %v10339_v11 = vld [vmem:[#allocation23_spill] sm:$0xff] }
 0xd5d   :  { %6990 = vtanh.f32 %v3691_v10  ;;  %v10338_v10 = vld [vmem:[#allocation21_spill] sm:$0xff] }
 0xd5e   :  { %6992 = vtanh.f32 %v3699_v16  ;;  %v10340_v16 = vld [vmem:[#allocation25_spill] sm:$0xff] }
 0xd67   :  { %v6991_v17 = vpop.eup %6990 }
 0xd68   :  { %v3693_v26 = vmul.f32 0.5, %v6991_v17  ;;  %v6993_v59 = vpop.eup %6992  ;;  %v10341_v17 = vld [vmem:[#allocation27_spill] sm:$0xff] }
 0xd69   :  { %v3701_v30 = vmul.f32 0.5, %v6993_v59  ;;  %v10347_v59 = vld [vmem:[#allocation39_spill] sm:$0xff] }
 0xd6a   :  { %v3694_v40 = vadd.f32 0.5, %v3693_v26  ;;  %v10342_v26 = vld [vmem:[#allocation29_spill] sm:$0xff] }
 0xd6b   :  { %v3702_v24 = vadd.f32 0.5, %v3701_v30  ;;  %v10349_v30 = vld [vmem:[#allocation43_spill] sm:$0xff] }
 0xd6c   :  { %v3703_v44 = vmul.f32 %v3694_v40, %v3613_v31  ;;  %v10343_v31 = vld [vmem:[#allocation31_spill] sm:$0xff]  ;;  %v10344_v40 = vld [vmem:[#allocation33_spill] sm:$0xff] }
 0xd6d   :  { %v3708_v47 = vsub.f32 1.0, %v3702_v24  ;;  %v3710_v4 = vmul.f32 %v3702_v24, %v8739_v8  ;;  %v10350_v24 = vld [vmem:[#allocation45_spill] sm:$0xff] }
 0xd6e   :  { %v3706_v58 = vadd.f32 %v3704_v54, %v3703_v44  ;;  %v10345_v44 = vld [vmem:[#allocation35_spill] sm:$0xff]  ;;  %v10346_v54 = vld [vmem:[#allocation37_spill] sm:$0xff] }
 0xd70   :  { %6994 = vtanh.f32 %v3706_v58  ;;  %v10348_v58 = vld [vmem:[#allocation41_spill] sm:$0xff] }
 0xd7a   :  { %v6995_v0 = vpop.eup %6994 }
 0xd7b   :  { %v3709_v50 = vmul.f32 %v6995_v0, %v3708_v47  ;;  %v10351_v47 = vld [vmem:[#allocation47_spill] sm:$0xff]  ;;  %v10352_v0 = vld [vmem:[#allocation49_spill] sm:$0xff] }
 0xd7d   :  { %v8931_v9 = vadd.f32 %v3710_v4, %v3709_v50  ;;  %v10353_v50 = vld [vmem:[#allocation51_spill] sm:$0xff]  ;;  %v10354_v4 = vld [vmem:[#allocation53_spill] sm:$0xff] }
 0xd7f   :  { %3777 = vmatmul.mubr.f32.vlgmr.msra.gmra.mrb[38].mxu1 %v8931_v9 }
 0xd80   :  { %6559 = vmatpush3.bf16.msra.mxu1 %v9728_v33  ;;  %4772 = vmatprep.mubr.msk.f32.mxu1 %vm7101_vm0, %v9526_v14 }
 0xd81   :  { %6560 = vmatprep.subr.bf16.mxu1 %v9607_v60 }
 0xd84   :  { %6562 = vmatpush3.bf16.msra.mxu1 %v9729_v52 }
 0xd85   :  { %6563 = vmatprep.subr.bf16.mxu1 %v9607_v60 }
 0xd88   :  { %6565 = vmatpush3.bf16.msra.mxu1 %v9730_v48 }
 0xd89   :  { %6566 = vmatprep.subr.bf16.mxu1 %v9607_v60 }
 0xd8c   :  { %6568 = vmatpush3.bf16.msra.mxu1 %v9968_v22 }
 0xd8d   :  { %6569 = vmatprep.subr.bf16.mxu1 %v9607_v60 }
 0xd90   :  { %6571 = vmatpush3.bf16.msra.mxu1 %v10088_v13 }
 0xd91   :  { %6572 = vmatprep.subr.bf16.mxu1 %v9607_v60 }
 0xd94   :  { %6574 = vmatpush3.bf16.msra.mxu1 %v10208_v5 }
 0xd95   :  { %6575 = vmatprep.subr.bf16.mxu1 %v9607_v60 }
 0xd96   :  { %v3683_v8 = vpop.f32.mrb[26].mxu0 }
 0xd97   :  { %v3685_v41 = vpop.f32.mrb[27].mxu0 }
 0xd98   :  { %6577 = vmatpush3.bf16.msra.mxu1 %v10328_v43 }
 0xd99   :  { %6578 = vmatprep.subr.bf16.mxu1 %v9607_v60 }
 0xd9c   :  { %6580 = vmatpush3.bf16.msra.mxu1 %v10329_v19 }
 0xd9d   :  { %6646 = vmatprep.subr.bf16.mxu1 %v10330_v21  ;;  %v10355_v21 = vld [vmem:[#allocation55_spill] sm:$0xff] }
 0xd9f   :  { %4773 = vmatmul.mubr.f32.vlgmr.msra.gmra.mrb[40].mxu1 %v8931_v9 }
 0xda0   :  { %6648 = vmatpush1.bf16.msra.mxu1 %v10331_v28  ;;  %v10356_v28 = vld [vmem:[#allocation57_spill] sm:$0xff] }
 0xda1   :  { %6650 = vmatprep.subr.bf16.mxu1 %v10332_v23  ;;  %v10357_v23 = vld [vmem:[#allocation59_spill] sm:$0xff] }
 0xda4   :  { %6652 = vmatpush1.bf16.msra.mxu1 %v10333_v38  ;;  %v10358_v38 = vld [vmem:[#allocation61_spill] sm:$0xff] }
 0xda5   :  { %6654 = vmatprep.subr.bf16.mxu1 %v10334_v32  ;;  %v10359_v32 = vld [vmem:[#allocation62_spill] sm:$0xff] }
 0xda8   :  { %6656 = vmatpush1.bf16.msra.mxu1 %v10335_v63  ;;  %v10360_v63 = vld [vmem:[#allocation63_spill] sm:$0xff] }
 0xda9   :  { %6658 = vmatprep.subr.bf16.mxu1 %v10336_v36  ;;  %v10361_v36 = vld [vmem:[#allocation64_spill] sm:$0xff] }
 0xdac   :  { %6660 = vmatpush1.bf16.msra.mxu1 %v10337_v6  ;;  %v10362_v6 = vld [vmem:[#allocation81_spill] sm:$0xff] }
 0xdad   :  { %6662 = vmatprep.subr.bf16.mxu1 %v10338_v10  ;;  %v68_v10 = vld [vmem:[%s9183_s0 + $0xe] sm:$0x3] }
 0xdae   :  { %109 = vperm.xlu1 %6912, %v68_v10   ;;  %310 = vperm.xlu0 %6914, %v68_v10  }
 0xdb0   :  { %6664 = vmatpush1.bf16.msra.mxu1 %v10339_v11  ;;  %v10363_v11 = vmov 1  }
 0xdb1   :  { %6666 = vmatprep.subr.bf16.mxu1 %v10340_v16  ;;  %v10364_v16 = vmov 5  }
 0xdb2   :  { %6913 = vset.pattern.permute.xlu1 %v10363_v11  ;;  %6917 = vset.pattern.permute.xlu0 %v10364_v16 }
 0xdb3   :  { %218 = vperm.xlu1 %6913, %v68_v10   ;;  %586 = vperm.xlu0 %6917, %v68_v10  }
 0xdb4   :  { %6668 = vmatpush1.bf16.msra.mxu1 %v10341_v17  ;;  %v10365_v17 = vmov 3  }
 0xdb5   :  { %6670 = vmatprep.subr.bf16.mxu1 %v10342_v26  ;;  %v10366_v26 = vmov 4  }
 0xdb7   :  { %6915 = vset.pattern.permute.xlu1 %v10365_v17 }
 0xdb8   :  { %6672 = vmatpush1.bf16.msra.mxu1 %v10343_v31  ;;  %402 = vperm.xlu1 %6915, %v68_v10  }
 0xdb9   :  { %6674 = vmatprep.subr.bf16.mxu1 %v10344_v40  ;;  %v10367_v40 = vld [vmem:[#allocation105_spill] sm:$0xff] }
 0xdbc   :  { %6676 = vmatpush1.bf16.msra.mxu1 %v10345_v44  ;;  %6916 = vset.pattern.permute.xlu1 %v10366_v26  ;;  %v3615_v44 = vadd.f32 %v8926_v61, %v10367_v40 }
 0xdbd   :  { %6678 = vmatprep.subr.bf16.mxu1 %v10346_v54  ;;  %494 = vperm.xlu1 %6916, %v68_v10   ;;  %v10368_v54 = vld [vmem:[#allocation134_spill] sm:$0xff] }
 0xdc0   :  { %6680 = vmatpush1.bf16.msra.mxu1 %v10347_v59 }
 0xdc1   :  { %6682 = vmatprep.subr.bf16.mxu1 %v10348_v58 }
 0xdc4   :  { %6684 = vmatpush1.bf16.msra.mxu1 %v10349_v30  ;;  %v10369_v30 = vld [vmem:[#allocation109_spill] sm:$0xff] }
 0xdc5   :  { %6686 = vmatprep.subr.bf16.mxu1 %v10350_v24  ;;  %v3684_v24 = vadd.f32 %v3683_v8, %v10369_v30 }
 0xdc8   :  { %6688 = vmatpush1.bf16.msra.mxu1 %v10351_v47 }
 0xdc9   :  { %6690 = vmatprep.subr.bf16.mxu1 %v10352_v0 }
 0xdcc   :  { %6692 = vmatpush1.bf16.msra.mxu1 %v10353_v50 }
 0xdcd   :  { %6694 = vmatprep.subr.bf16.mxu1 %v10354_v4 }
 0xdd0   :  { %6696 = vmatpush1.bf16.msra.mxu1 %v10355_v21 }
 0xdd1   :  { %6698 = vmatprep.subr.bf16.mxu1 %v10356_v28 }
 0xdd4   :  { %6700 = vmatpush1.bf16.msra.mxu1 %v10357_v23  ;;  %v3686_v23 = vadd.f32 %v3685_v41, %v9895_v55  ;;  %v10372_v41 = vld [vmem:[#allocation66_spill] sm:$0xff] }
 0xdd5   :  { %6702 = vmatprep.subr.bf16.mxu1 %v10358_v38 }
 0xdd8   :  { %6704 = vmatpush1.bf16.msra.mxu1 %v10359_v32 }
 0xdd9   :  { %6706 = vmatprep.subr.bf16.mxu1 %v10360_v63 }
 0xddc   :  { %6708 = vmatpush1.bf16.msra.mxu1 %v10361_v36  ;;  %v10370_v36 = vld [vmem:[#allocation136_spill] sm:$0xff] }
 0xddd   :  { %6774 = vmatprep.subr.bf16.mxu1 %v10362_v6 }
 0xe52   :  { %v3778_v31 = vpop.f32.mrb[38].mxu1 }
 0xe53   :  { %v3779_v59 = vadd.f32 %v3778_v31, %v10368_v54  ;;  %v3780_v58 = vpop.f32.mrb[39].mxu1 }
 0xe54   :  { %v3781_v47 = vadd.f32 %v3780_v58, %v7837_v46 }
 0xe55   :  { %v3853_v0 = vadd.f32 %v3779_v59, %v3615_v44  ;;  %v10371_v44 = vld [vmem:[#allocation116_spill] sm:$0xff] }
 0xe56   :  { %v3858_v50 = vadd.f32 %v3781_v47, %v3684_v24  ;;  %v10373_v47 = vld [vmem:[#allocation67_spill] sm:$0xff] }
 0xe57   :  { %v3854_v4 = vmul.f32 0.5, %v3853_v0  ;;  %v10374_v0 = vld [vmem:[#allocation82_spill] sm:$0xff] }
 0xe58   :  { %v3859_v32 = vmul.f32 0.5, %v3858_v50  ;;  %v10375_v50 = vld [vmem:[#allocation85_spill] sm:$0xff] }
 0xe59   :  { %6996 = vtanh.f32 %v3854_v4  ;;  %v10376_v4 = vld [vmem:[#allocation68_spill] sm:$0xff] }
 0xe5a   :  { %6998 = vtanh.f32 %v3859_v32  ;;  %v10381_v32 = vld [vmem:[#allocation71_spill] sm:$0xff] }
 0xe63   :  { %v6997_v21 = vpop.eup %6996 }
 0xe64   :  { %v3856_v28 = vmul.f32 0.5, %v6997_v21  ;;  %v6999_v11 = vpop.eup %6998  ;;  %v10377_v21 = vld [vmem:[#allocation69_spill] sm:$0xff] }
 0xe65   :  { %v3861_v16 = vmul.f32 0.5, %v6999_v11  ;;  %v10386_v11 = vld [vmem:[#allocation106_spill] sm:$0xff] }
 0xe66   :  { %v3857_v38 = vadd.f32 0.5, %v3856_v28  ;;  %v10378_v28 = vld [vmem:[#allocation86_spill] sm:$0xff] }
 0xe67   :  { %v3862_v17 = vadd.f32 0.5, %v3861_v16  ;;  %v10388_v16 = vld [vmem:[#allocation74_spill] sm:$0xff] }
 0xe68   :  { %v3863_v63 = vmul.f32 %v3857_v38, %v3686_v23  ;;  %v10379_v23 = vld [vmem:[#allocation92_spill] sm:$0xff]  ;;  %v10380_v38 = vld [vmem:[#allocation70_spill] sm:$0xff] }
 0xe69   :  { %v3866_v26 = vsub.f32 1.0, %v3862_v17  ;;  %v3868_v59 = vmul.f32 %v3862_v17, %v10371_v44  ;;  %v10389_v17 = vld [vmem:[#allocation75_spill] sm:$0xff]  ;;  %v10392_v44 = vld [vmem:[#allocation76_spill] sm:$0xff] }
 0xe72   :  { %v3849_v61 = vpop.f32.mrb[40].mxu1 }
 0xe73   :  { %v3850_v6 = vadd.f32 %v3849_v61, %v10370_v36  ;;  %v4774_v10 = vpop.f32.mrb[41].mxu1  ;;  %v10383_v61 = vld [vmem:[#allocation103_spill] sm:$0xff] }
 0xe74   :  { %v10385_v10 = vld [vmem:[#allocation73_spill] sm:$0xff] }
 0xe75   :  { %v3864_v8 = vadd.f32 %v3863_v63, %v3850_v6  ;;  %v10382_v63 = vld [vmem:[#allocation93_spill] sm:$0xff]  ;;  %v10384_v6 = vld [vmem:[#allocation72_spill] sm:$0xff] }
 0xe77   :  { %7000 = vtanh.f32 %v3864_v8  ;;  %v10387_v8 = vld [vmem:[#allocation113_spill] sm:$0xff] }
 0xe81   :  { %v7001_v31 = vpop.eup %7000 }
 0xe82   :  { %v3867_v58 = vmul.f32 %v7001_v31, %v3866_v26  ;;  %v10390_v26 = vld [vmem:[#allocation117_spill] sm:$0xff]  ;;  %v10391_v31 = vld [vmem:[#allocation120_spill] sm:$0xff] }
 0xe84   :  { %v9000_v24 = vadd.f32 %v3868_v59, %v3867_v58  ;;  %v10393_v59 = vld [vmem:[#allocation77_spill] sm:$0xff] }
 0xe85   :  { %v10394_v58 = vld [vmem:[#allocation121_spill] sm:$0xff] }
 0xe86   :  { %3934 = vmatprep.mubr.f32.mxu0 %v9000_v24  ;;  %4005 = vmatprep.mubr.f32.mxu1 %v9000_v24 }
 0xe87   :  { %3935 = vmatmul.mubr.f32.vlgmr.msra.gmra.mrb[28].mxu0 %v8931_v9  ;;  %4006 = vmatmul.mubr.f32.vlgmr.msra.gmra.mrb[42].mxu1 %v8931_v9 }
 0xe88   :  { %6712 = vmatpush1.bf16.msra.mxu0 %v10372_v41  ;;  %4076 = vmatprep.mubr.f32.mxu0 %v9000_v24  ;;  %v10395_v41 = vld [vmem:[#allocation122_spill] sm:$0xff] }
 0xe89   :  { %6714 = vmatprep.subr.bf16.mxu0 %v10373_v47  ;;  %6776 = vmatpush1.bf16.msra.mxu1 %v10374_v0  ;;  %v10396_v47 = vld [vmem:[#allocation78_spill] sm:$0xff]  ;;  %v10397_v0 = vld [vmem:[#allocation79_spill] sm:$0xff] }
 0xe8a   :  { %6778 = vmatprep.subr.bf16.mxu1 %v10375_v50  ;;  %4171 = vmatprep.mubr.f32.mxu1 %v9526_v14  ;;  %v10398_v50 = vld [vmem:[#allocation124_spill] sm:$0xff] }
 0xe8c   :  { %6716 = vmatpush1.bf16.msra.mxu0 %v10376_v4  ;;  %v10399_v4 = vld [vmem:[#allocation125_spill] sm:$0xff] }
 0xe8d   :  { %6718 = vmatprep.subr.bf16.mxu0 %v10377_v21  ;;  %6780 = vmatpush1.bf16.msra.mxu1 %v10378_v28  ;;  %v10400_v21 = vld [vmem:[#allocation80_spill] sm:$0xff]  ;;  %v10401_v28 = vld [vmem:[#allocation83_spill] sm:$0xff] }
 0xe8e   :  { %6782 = vmatprep.subr.bf16.mxu1 %v10379_v23  ;;  %v10402_v23 = vld [vmem:[#allocation126_spill] sm:$0xff] }
 0xe90   :  { %6720 = vmatpush1.bf16.msra.mxu0 %v10380_v38  ;;  %v10403_v38 = vld [vmem:[#allocation84_spill] sm:$0xff] }
 0xe91   :  { %6722 = vmatprep.subr.bf16.mxu0 %v10381_v32  ;;  %6784 = vmatpush1.bf16.msra.mxu1 %v10382_v63  ;;  %v10404_v32 = vld [vmem:[#allocation88_spill] sm:$0xff]  ;;  %v10405_v63 = vld [vmem:[#allocation89_spill] sm:$0xff] }
 0xe92   :  { %6786 = vmatprep.subr.bf16.mxu1 %v10383_v61  ;;  %v10406_v61 = vld [vmem:[#allocation95_spill] sm:$0xff] }
 0xe94   :  { %6724 = vmatpush1.bf16.msra.mxu0 %v10384_v6  ;;  %v10407_v6 = vld [vmem:[#allocation99_spill] sm:$0xff] }
 0xe95   :  { %6726 = vmatprep.subr.bf16.mxu0 %v10385_v10  ;;  %6788 = vmatpush1.bf16.msra.mxu1 %v10386_v11  ;;  %v110_v10 = vpop.permute.xlu1 %109  ;;  %v10408_v11 = vld [vmem:[#allocation110_spill] sm:$0xff] }
 0xe96   :  { %6790 = vmatprep.subr.bf16.mxu1 %v10387_v8  ;;  %v10409_v8 = vld [vmem:[#allocation94_spill] sm:$0xff] }
 0xe98   :  { %6728 = vmatpush1.bf16.msra.mxu0 %v10388_v16  ;;  %v145_v16 = vmul.f32 %v10409_v8, %v110_v10 }
 0xe99   :  { %6730 = vmatprep.subr.bf16.mxu0 %v10389_v17  ;;  %6792 = vmatpush1.bf16.msra.mxu1 %v10390_v26  ;;  %v10410_v17 = vld [vmem:[#allocation96_spill] sm:$0xff] }
 0xe9a   :  { %6794 = vmatprep.subr.bf16.mxu1 %v10391_v31  ;;  %v146_v26 = vmul.f32 %v10410_v17, %v110_v10  ;;  %v10411_v31 = vld [vmem:[#allocation97_spill] sm:$0xff] }
 0xe9c   :  { %6732 = vmatpush1.bf16.msra.mxu0 %v10392_v44  ;;  %v147_v44 = vmul.f32 %v10411_v31, %v110_v10 }
 0xe9d   :  { %6734 = vmatprep.subr.bf16.mxu0 %v10393_v59  ;;  %6796 = vmatpush1.bf16.msra.mxu1 %v10394_v58  ;;  %v311_v59 = vpop.permute.xlu0 %310  ;;  %v10412_v58 = vld [vmem:[#allocation112_spill] sm:$0xff] }
 0xe9e   :  { %6798 = vmatprep.subr.bf16.mxu1 %v10395_v41  ;;  %v186_v41 = vadd.f32 %v9820_v62, %v145_v16  ;;  %v348_v17 = vmul.f32 %v9706_v29, %v311_v59 }
 0xea0   :  { %6736 = vmatpush1.bf16.msra.mxu0 %v10396_v47  ;;  %v10413_v47 = vld [vmem:[#allocation100_spill] sm:$0xff] }
 0xea1   :  { %6738 = vmatprep.subr.bf16.mxu0 %v10397_v0  ;;  %6800 = vmatpush1.bf16.msra.mxu1 %v10398_v50  ;;  %v187_v0 = vadd.f32 %v10413_v47, %v146_v26  ;;  %v10414_v50 = vld [vmem:[#allocation101_spill] sm:$0xff] }
 0xea2   :  { %6802 = vmatprep.subr.bf16.mxu1 %v10399_v4  ;;  %v188_v4 = vadd.f32 %v10414_v50, %v147_v44 }
 0xea4   :  { %6740 = vmatpush1.bf16.msra.mxu0 %v10400_v21  ;;  %v10415_v21 = vld [vmem:[#allocation118_spill] sm:$0xff] }
 0xea5   :  { %6742 = vmatprep.subr.bf16.mxu0 %v10401_v28  ;;  %6804 = vmatpush1.bf16.msra.mxu1 %v10402_v23  ;;  %v219_v28 = vpop.permute.xlu1 %218  ;;  %v10416_v23 = vld [vmem:[#allocation102_spill] sm:$0xff] }
 0xea6   :  { %6805 = vmatprep.subr.bf16.mxu1 %v9607_v60  ;;  %v256_v8 = vmul.f32 %v9705_v25, %v219_v28  ;;  %v587_v25 = vpop.permute.xlu0 %586 }
 0xea8   :  { %6744 = vmatpush1.bf16.msra.mxu0 %v10403_v38  ;;  %v346_v38 = vmul.f32 %v10416_v23, %v311_v59  ;;  %v280_v26 = vadd.f32 %v256_v8, %v188_v4 }
 0xea9   :  { %6746 = vmatprep.subr.bf16.mxu0 %v10404_v32  ;;  %v10417_v32 = vld [vmem:[#allocation104_spill] sm:$0xff]  ;;  %v403_v31 = vpop.permute.xlu1 %402 }
 0xeaa   :  { %v372_v47 = vadd.f32 %v348_v17, %v280_v26  ;;  %v438_v50 = vmul.f32 %v9708_v35, %v403_v31  ;;  %v440_v23 = vmul.f32 %v7589_v45, %v403_v31 }
 0xeac   :  { %6748 = vmatpush1.bf16.msra.mxu0 %v10405_v63  ;;  %v347_v63 = vmul.f32 %v10417_v32, %v311_v59  ;;  %v464_v59 = vadd.f32 %v440_v23, %v372_v47 }
 0xead   :  { %6750 = vmatprep.subr.bf16.mxu0 %v10406_v61  ;;  %v10418_v61 = vld [vmem:[#allocation108_spill] sm:$0xff] }
 0xeb0   :  { %6752 = vmatpush1.bf16.msra.mxu0 %v10407_v6  ;;  %v254_v6 = vmul.f32 %v10418_v61, %v219_v28 }
 0xeb1   :  { %6754 = vmatprep.subr.bf16.mxu0 %v10408_v11  ;;  %v10419_v11 = vld [vmem:[#allocation111_spill] sm:$0xff] }
 0xeb2   :  { %v255_v10 = vmul.f32 %v10419_v11, %v219_v28  ;;  %v278_v62 = vadd.f32 %v254_v6, %v186_v41  ;;  %v495_v41 = vpop.permute.xlu1 %494 }
 0xeb3   :  { %v530_v35 = vmul.f32 %v7594_v57, %v495_v41  ;;  %v532_v45 = vmul.f32 %v7608_v37, %v495_v41 }
 0xeb4   :  { %6756 = vmatpush1.bf16.msra.mxu0 %v10412_v58  ;;  %v279_v16 = vadd.f32 %v255_v10, %v187_v0  ;;  %v370_v44 = vadd.f32 %v346_v38, %v278_v62  ;;  %v623_v0 = vmul.f32 %v7648_v18, %v587_v25 }
 0xeb5   :  { %6758 = vmatprep.subr.bf16.mxu0 %v10415_v21  ;;  %v439_v21 = vmul.f32 %v7585_v39, %v403_v31  ;;  %v531_v39 = vmul.f32 %v9709_v27, %v495_v41  ;;  %v556_v28 = vadd.f32 %v532_v45, %v464_v59  ;;  %v4271_v59 = vld [vmem:[%s9190_s7 + $0x30] sm:$0xff]  ;;  %v4272_v41 = vld [vmem:[%s9190_s7 + $0x38] sm:$0xff] }
 0xeb6   :  { %v371_v58 = vadd.f32 %v347_v63, %v279_v16  ;;  %v462_v29 = vadd.f32 %v438_v50, %v370_v44  ;;  %v4275_v45 = vld [vmem:[%s9190_s7 + $0x50] sm:$0xff] }
 0xeb8   :  { %6760 = vmatpush1.bf16.msra.mxu0 %v9707_v34  ;;  %v463_v34 = vadd.f32 %v439_v21, %v371_v58 }
 0xeb9   :  { %6762 = vmatprep.subr.bf16.mxu0 %v7636_v53  ;;  %v622_v53 = vmul.f32 %v7612_v2, %v587_v25 }
 0xeba   :  { %v555_v4 = vadd.f32 %v531_v39, %v463_v34 }
 0xebc   :  { %6764 = vmatpush1.bf16.msra.mxu0 %v7638_v12  ;;  %v624_v12 = vmul.f32 %v9710_v42, %v587_v25  ;;  %v647_v38 = vadd.f32 %v623_v0, %v555_v4  ;;  %v4273_v0 = vld [vmem:[%s9190_s7 + $0x40] sm:$0xff] }
 0xebd   :  { %6766 = vmatprep.subr.bf16.mxu0 %v7662_v56  ;;  %v554_v56 = vadd.f32 %v530_v35, %v462_v29  ;;  %v4274_v35 = vld [vmem:[%s9190_s7 + $0x48] sm:$0xff]  ;;  %v4277_v4 = vld [vmem:[%s9190_s7 + $0x60] sm:$0xff] }
 0xebe   :  { %v648_v18 = vadd.f32 %v624_v12, %v556_v28  ;;  %v6842_v39 = vpack.c.bf16 %v4274_v35, %v4273_v0  ;;  %v4276_v12 = vld [vmem:[%s9190_s7 + $0x58] sm:$0xff]  ;;  %v4278_v28 = vld [vmem:[%s9190_s7 + $0x68] sm:$0xff] }
 0xebf   :  { %v646_v2 = vadd.f32 %v622_v53, %v554_v56  ;;  %v6839_v53 = vpack.c.bf16 %v4272_v41, %v4271_v59  ;;  %v6845_v56 = vpack.c.bf16 %v4276_v12, %v4275_v45 }
 0xec0   :  { %6768 = vmatpush1.bf16.msra.mxu0 %v7665_v20  ;;  %v799_v57 = vrot.slane %v648_v18, %v7644_v1  ;;  %v4280_v18 = vld [vmem:[%s9190_s7 + $0x78] sm:$0xff] }
 0xec1   :  { %6770 = vmatprep.subr.bf16.mxu0 %v7677_v49  ;;  %v785_v20 = vcombine.low %v646_v2, %v647_v38  ;;  %v6848_v2 = vpack.c.bf16 %v4278_v28, %v4277_v4  ;;  %v4279_v38 = vld [vmem:[%s9190_s7 + $0x70] sm:$0xff] }
 0xec3   :  { %v792_v37 = vrot.slane %v785_v20, %v7644_v1  ;;  %v6851_v20 = vpack.c.bf16 %v4280_v18, %v4279_v38 }
 0xec4   :  { %6772 = vmatpush1.bf16.msra.mxu0 %v7679_v7 }
 0xec5   :  { %6829 = vmatprep.subr.bf16.mxu0 %v9607_v60  ;;  %v800_v49 = vcombine.low %v792_v37, %v799_v57 }
 0xec7   :  { %4077 = vmatmul.mubr.f32.vlgmr.msra.gmra.mrb[30].mxu0 %v8931_v9  ;;  %816 = vst [vmem:[#allocation2 + $0x2a] sm:$0x3f] %v800_v49 }
 0xec8   :  { %4842 = vmatprep.mubr.msk.f32.mxu0 %vm7101_vm0, %v9526_v14 }
 0xece   :  { %v4084_v32 = vld [vmem:[#allocation2 + $0x2a] sm:$0x3f] }
 0xecf   :  { %v4091_v10 = vrot.slane %v4084_v32, 2 }
 0xf5a   :  { %v3936_v27 = vpop.f32.mrb[28].mxu0  ;;  %v4007_v42 = vpop.f32.mrb[42].mxu1 }
 0xf5b   :  { %v3937_v7 = vadd.f32 %v3936_v27, %v10326_v3  ;;  %v3938_v63 = vpop.f32.mrb[29].mxu0  ;;  %v9083_v61 = vpop.f32.mrb[43].mxu1  ;;  %v4008_v26 = vadd.f32 %v4007_v42, %v7740_v15  ;;  %v4099_v3 = vrot.slane %v4084_v32, 4 }
 0xf5c   :  { %v3939_v6 = vadd.f32 %v3938_v63, %v10327_v51  ;;  %v4010_v37 = vadd.f32 %v9083_v61, %v10367_v40 }
 0xf5d   :  { %v4085_v11 = vadd.f32 %v4084_v32, %v3937_v7 }
 0xf5e   :  { %v4093_v17 = vadd.f32 %v4091_v10, %v3939_v6 }
 0xf5f   :  { %v4086_v8 = vmul.f32 0.5, %v4085_v11 }
 0xf60   :  { %v4094_v1 = vmul.f32 0.5, %v4093_v17 }
 0xf61   :  { %7002 = vtanh.f32 %v4086_v8 }
 0xf62   :  { %7004 = vtanh.f32 %v4094_v1 }
 0xf6b   :  { %v7003_v62 = vpop.eup %7002 }
 0xf6c   :  { %v4088_v16 = vmul.f32 0.5, %v7003_v62  ;;  %v7005_v58 = vpop.eup %7004 }
 0xf6d   :  { %v4096_v50 = vmul.f32 0.5, %v7005_v58 }
 0xf6e   :  { %v4089_v31 = vadd.f32 0.5, %v4088_v16 }
 0xf6f   :  { %v4097_v21 = vadd.f32 0.5, %v4096_v50 }
 0xf70   :  { %v4098_v44 = vmul.f32 %v4089_v31, %v4008_v26 }
 0xf71   :  { %v4103_v51 = vsub.f32 1.0, %v4097_v21  ;;  %v4105_v25 = vmul.f32 %v4097_v21, %v8931_v9  ;;  %v4269_v9 = vld [vmem:[%s9190_s7 + $0x20] sm:$0xff] }
 0xf72   :  { %v4101_v47 = vadd.f32 %v4099_v3, %v4098_v44 }
 0xf74   :  { %7006 = vtanh.f32 %v4101_v47 }
 0xf7e   :  { %v7007_v23 = vpop.eup %7006 }
 0xf7f   :  { %v4104_v29 = vmul.f32 %v7007_v23, %v4103_v51 }
 0xf81   :  { %v4106_v34 = vadd.f32 %v4105_v25, %v4104_v29 }
 0xf83   :  { %4172 = vmatmul.mubr.f32.vlgmr.msra.gmra.mrb[44].mxu1 %v4106_v34 }
 0xf84   :  { %6807 = vmatpush3.bf16.msra.mxu1 %v9728_v33  ;;  %4807 = vmatprep.mubr.msk.f32.mxu1 %vm7101_vm0, %v9526_v14  ;;  %v4265_v33 = vld [vmem:[%s9190_s7] sm:$0xff] }
 0xf85   :  { %6808 = vmatprep.subr.bf16.mxu1 %v9607_v60 }
 0xf88   :  { %6810 = vmatpush3.bf16.msra.mxu1 %v9729_v52  ;;  %v4266_v52 = vld [vmem:[%s9190_s7 + $0x8] sm:$0xff] }
 0xf89   :  { %6811 = vmatprep.subr.bf16.mxu1 %v9607_v60 }
 0xf8c   :  { %6813 = vmatpush3.bf16.msra.mxu1 %v9730_v48  ;;  %v6830_v48 = vpack.c.bf16 %v4266_v52, %v4265_v33 }
 0xf8d   :  { %6814 = vmatprep.subr.bf16.mxu1 %v9607_v60 }
 0xf8e   :  { %6831 = vmatpush3.bf16.msra.mxu0 %v6830_v48 }
 0xf8f   :  { %6832 = vmatprep.subr.bf16.mxu0 %v9607_v60 }
 0xf90   :  { %6816 = vmatpush3.bf16.msra.mxu1 %v9968_v22  ;;  %v4267_v22 = vld [vmem:[%s9190_s7 + $0x10] sm:$0xff] }
 0xf91   :  { %6817 = vmatprep.subr.bf16.mxu1 %v9607_v60 }
 0xf94   :  { %6819 = vmatpush3.bf16.msra.mxu1 %v10088_v13  ;;  %v4268_v13 = vld [vmem:[%s9190_s7 + $0x18] sm:$0xff] }
 0xf95   :  { %6820 = vmatprep.subr.bf16.mxu1 %v9607_v60 }
 0xf98   :  { %6822 = vmatpush3.bf16.msra.mxu1 %v10208_v5  ;;  %v6833_v5 = vpack.c.bf16 %v4268_v13, %v4267_v22 }
 0xf99   :  { %6823 = vmatprep.subr.bf16.mxu1 %v9607_v60 }
 0xf9a   :  { %v4078_v14 = vpop.f32.mrb[30].mxu0  ;;  %6834 = vmatpush3.bf16.msra.mxu0 %v6833_v5 }
 0xf9b   :  { %v4080_v15 = vpop.f32.mrb[31].mxu0  ;;  %6835 = vmatprep.subr.bf16.mxu0 %v9607_v60  ;;  %v4079_v42 = vadd.f32 %v4078_v14, %v10369_v30 }
 0xf9c   :  { %6825 = vmatpush3.bf16.msra.mxu1 %v10328_v43  ;;  %v4270_v43 = vld [vmem:[%s9190_s7 + $0x28] sm:$0xff] }
 0xf9d   :  { %6826 = vmatprep.subr.bf16.mxu1 %v9607_v60 }
 0xfa0   :  { %6828 = vmatpush3.bf16.msra.mxu1 %v10329_v19  ;;  %v6836_v19 = vpack.c.bf16 %v4270_v43, %v4269_v9 }
 0xfa2   :  { %6837 = vmatpush3.bf16.msra.mxu0 %v6836_v19 }
 0xfa3   :  { %4808 = vmatmul.mubr.f32.vlgmr.msra.gmra.mrb[46].mxu1 %v4106_v34  ;;  %6838 = vmatprep.subr.bf16.mxu0 %v9607_v60 }
 0xfa6   :  { %6840 = vmatpush3.bf16.msra.mxu0 %v6839_v53 }
 0xfa7   :  { %6841 = vmatprep.subr.bf16.mxu0 %v9607_v60 }
 0xfaa   :  { %6843 = vmatpush3.bf16.msra.mxu0 %v6842_v39 }
 0xfab   :  { %6844 = vmatprep.subr.bf16.mxu0 %v9607_v60 }
 0xfae   :  { %6846 = vmatpush3.bf16.msra.mxu0 %v6845_v56 }
 0xfaf   :  { %6847 = vmatprep.subr.bf16.mxu0 %v9607_v60 }
 0xfb2   :  { %6849 = vmatpush3.bf16.msra.mxu0 %v6848_v2 }
 0xfb3   :  { %6850 = vmatprep.subr.bf16.mxu0 %v9607_v60  ;;  %v4081_v60 = vadd.f32 %v4080_v15, %v9895_v55  ;;  %v4376_v55 = vld [vmem:[%s9191_s8] ss:$0 sm:$0xff] }
 0xfb6   :  { %6852 = vmatpush3.bf16.msra.mxu0 %v6851_v20 }
0x1056   :  { %v4173_v57 = vpop.f32.mrb[44].mxu1 }
0x1057   :  { %v4174_v49 = vadd.f32 %v4173_v57, %v10368_v54  ;;  %v4175_v27 = vpop.f32.mrb[45].mxu1 }
0x1058   :  { %v4176_v7 = vadd.f32 %v4175_v27, %v7837_v46 }
0x1059   :  { %v4248_v32 = vadd.f32 %v4174_v49, %v4010_v37 }
0x105a   :  { %v4253_v63 = vadd.f32 %v4176_v7, %v4079_v42 }
0x105b   :  { %v4249_v6 = vmul.f32 0.5, %v4248_v32 }
0x105c   :  { %v4254_v17 = vmul.f32 0.5, %v4253_v63 }
0x105d   :  { %7008 = vtanh.f32 %v4249_v6 }
0x105e   :  { %7010 = vtanh.f32 %v4254_v17 }
0x1067   :  { %v7009_v11 = vpop.eup %7008 }
0x1068   :  { %v4251_v10 = vmul.f32 0.5, %v7009_v11  ;;  %v7011_v62 = vpop.eup %7010 }
0x1069   :  { %v4256_v46 = vmul.f32 0.5, %v7011_v62 }
0x106a   :  { %v4252_v8 = vadd.f32 0.5, %v4251_v10 }
0x106b   :  { %v4257_v16 = vadd.f32 0.5, %v4256_v46 }
0x106c   :  { %v4258_v1 = vmul.f32 %v4252_v8, %v4081_v60 }
0x106d   :  { %v4261_v26 = vsub.f32 1.0, %v4257_v16  ;;  %v4263_v44 = vmul.f32 %v4257_v16, %v9000_v24 }
0x1076   :  { %v4244_v40 = vpop.f32.mrb[46].mxu1 }
0x1077   :  { %v4245_v54 = vadd.f32 %v4244_v40, %v10370_v36  ;;  %v4809_v61 = vpop.f32.mrb[47].mxu1 }
0x1079   :  { %v4259_v30 = vadd.f32 %v4258_v1, %v4245_v54 }
0x107b   :  { %7012 = vtanh.f32 %v4259_v30 }
0x1085   :  { %v7013_v31 = vpop.eup %7012 }
0x1086   :  { %v4262_v3 = vmul.f32 %v7013_v31, %v4261_v26 }
0x1088   :  { %v4264_v58 = vadd.f32 %v4263_v44, %v4262_v3 }
0x108a   :  { %4843 = vmatmul.mubr.f32.vlgmr.msra.gmra.mrb[32].mxu0 %v4264_v58 }
0x115d   :  { %v4354_v36 = vpop.f32.mrb[32].mxu0 }
0x115e   :  { %v4355_v47 = vadd.f32 %v4376_v55, %v4354_v36  ;;  %v4844_v50 = vpop.f32.mrb[33].mxu0 }
0x1160   :  { %4359 = vst.msk [vmem:[#allocation8] sm:$0x3] %vm4358_vm1, %v4355_v47 }
0x1161   :  { %7069 = shalt.err (!%p7066_p6)
}
0x1162   :  { %s7070_s1 = scalar_lea.hbm %s9192_s9, 32 }
0x1163   :  { %p7071_p7 = scmp.ne.s32.totalorder %s9192_s9, %s7070_s1  ;;  %p7074_p8 = scmp.lt.u32.totalorder %s7070_s1, %s9192_s9 }
0x1165   :  { %p7076_p9 = pnand %p7074_p8, %p7071_p7 }
0x1167   :  { %7079 = shalt.err (!%p7076_p9)
}
0x1168   :  { %4369 = dma.vmem_to_hbm [thread:$0]  %s4367_s20, 32, %s9192_s9, [#allocation5]  }
0x1169   :  { %7084 = dma.done.wait [#allocation5], 32  }
0x116a   :  { %7085 = vsyncadd [#allocation5], 4294967264 }
0x116b   :  { %4373 = vsyncpa [#allocation4], 1 }
0x116c   :  { %4374 = vsyncpa [#allocation7], 1 }
0x116d   :  { %4375 = vsyncpa [#allocation5], 1 }

</bundles_post_ra>
